<compile_context>
chip_gen: v6e
topology: v6e:2x2x1
jax: 0.10.0
libtpu: 0.0.40
codegen_flags: <defaults>
</compile_context>

<pallas_src>
import numpy as np
import jax
import jax.numpy as jnp
from jax import lax
from jax.experimental import pallas as pl
from jax.experimental.pallas import tpu as pltpu

# ----------------------------- configuration --------------------------------
SEQ_LEN = 8          # seq_len            (90 in the original)
K       = 17         # num_input_keypoints
F       = 2          # feature_dim
G       = 32         # GAT hidden         (64 in the original)
H       = 64         # LSTM hidden        (512 in the original)
HEAD    = 32         # head hidden        (256 in the original)
OUT     = 16         # output_dim         (57 in the original)
B       = 2          # batch of videos
N       = SEQ_LEN * K            # nodes per graph
C       = G + F                  # per-node embedding after concat
D1      = K * C                  # LSTM1 input size (== 1122 at full scale)
TB      = SEQ_LEN * B            # rows of the time-major LSTM workspaces

CONNECTIONS_2D = [[15, 13], [13, 11], [16, 14], [14, 12], [11, 12], [5, 11],
                  [6, 12], [5, 6], [5, 7], [6, 8], [7, 9], [8, 10], [1, 2],
                  [0, 1], [0, 2], [1, 3], [2, 4], [3, 5], [4, 6]]


def build_adjacency(seq_len, num_kp, connections):
    """Dense adjacency A[dst, src]=1 (temporal + structural edges, both
    directions, plus GATConv self-loops). edge_attr is unused by GATConv."""
    n = seq_len * num_kp
    a = np.zeros((n, n), dtype=np.float32)
    edges = []
    for i in range(n - num_kp):                       # temporal edges
        edges.append((i, i + num_kp))
    for (p, q) in connections:                        # structural edges
        for t in range(seq_len):
            edges.append((p + t * num_kp, q + t * num_kp))
    for (s, d) in edges:                              # + flipped edges
        a[d, s] = 1.0
        a[s, d] = 1.0
    np.fill_diagonal(a, 1.0)                          # self loops
    return a


# ---------------- kernel A: GAT1+BN+ReLU -> GAT2+BN+ReLU ---------------------
def _gat_attention(h, a_src, a_dst, bias, adj_bias):
    """Single-head GATConv attention + aggregation (eval semantics)."""
    s_src = jnp.sum(h * a_src, axis=-1, keepdims=True)        # (N, 1)
    s_dst = jnp.sum(h * a_dst, axis=-1, keepdims=True)        # (N, 1)
    e = s_dst + jnp.transpose(s_src)                          # e[i, j]
    e = jnp.where(e > 0, e, 0.2 * e)                          # LeakyReLU(0.2)
    e = e + adj_bias                                          # -1e30 off-edges
    m = jnp.max(e, axis=-1, keepdims=True)
    p = jnp.exp(e - m)                                        # masked -> 0
    denom = jnp.sum(p, axis=-1, keepdims=True)
    alpha = p * pl.reciprocal(denom, approx=True)             # EUP reciprocal
    return (jnp.dot(alpha.astype(jnp.bfloat16), h.astype(jnp.bfloat16),
                    preferred_element_type=jnp.float32) + bias)


def gat_kernel(x_ref, adjb_ref, w1_ref, a1s_ref, a1d_ref, b1_ref, s1_ref,
               t1_ref, w2_ref, a2s_ref, a2d_ref, b2_ref, s2_ref, t2_ref,
               o_ref):
    x = x_ref[0]                                              # (N, F) f32
    adj_bias = adjb_ref[...].astype(jnp.float32)              # (N, N)

    # GAT layer 1 (Fin=2): VPU outer-product instead of degenerate MXU matmul.
    w1 = w1_ref[...]                                          # (F, G)
    h = x[:, 0:1] * w1[0:1, :] + x[:, 1:2] * w1[1:2, :]       # (N, G)
    h = _gat_attention(h, a1s_ref[...], a1d_ref[...], b1_ref[...], adj_bias)
    h = jnp.maximum(h * s1_ref[...] + t1_ref[...], 0.0)       # BN(eval)+ReLU

    # GAT layer 2: MXU with bf16 operands.
    h2 = jnp.dot(h.astype(jnp.bfloat16), w2_ref[...],
                 preferred_element_type=jnp.float32)
    h2 = _gat_attention(h2, a2s_ref[...], a2d_ref[...], b2_ref[...], adj_bias)
    h2 = jnp.maximum(h2 * s2_ref[...] + t2_ref[...], 0.0)

    # No in-kernel concat with x: the concat is absorbed into the host-side
    # row split of W_ih1 (see init_params / lstm_stack_kernel).
    o_ref[0] = h2.astype(jnp.bfloat16)


def gat_fused(x, adj_bias, p):
    c2 = lambda i: (0, 0)
    return pl.pallas_call(
        gat_kernel,
        out_shape=jax.ShapeDtypeStruct((B, N, G), jnp.bfloat16),
        grid=(B,),
        in_specs=[
            pl.BlockSpec((1, N, F), lambda i: (i, 0, 0)),
            pl.BlockSpec((N, N), c2),
            pl.BlockSpec((F, G), c2),
            pl.BlockSpec((1, G), c2),   # a1_src
            pl.BlockSpec((1, G), c2),   # a1_dst
            pl.BlockSpec((1, G), c2),   # b1
            pl.BlockSpec((1, G), c2),   # bn1 scale
            pl.BlockSpec((1, G), c2),   # bn1 shift
            pl.BlockSpec((G, G), c2),   # w2 (bf16)
            pl.BlockSpec((1, G), c2),   # a2_src
            pl.BlockSpec((1, G), c2),   # a2_dst
            pl.BlockSpec((1, G), c2),   # b2
            pl.BlockSpec((1, G), c2),   # bn2 scale
            pl.BlockSpec((1, G), c2),   # bn2 shift
        ],
        out_specs=pl.BlockSpec((1, N, G), lambda i: (i, 0, 0)),
        compiler_params=pltpu.CompilerParams(dimension_semantics=("parallel",)),
    )(x, adj_bias, p["w1"], p["a1_src"], p["a1_dst"], p["b1"], p["s1"], p["t1"],
      p["w2"], p["a2_src"], p["a2_dst"], p["b2"], p["s2"], p["t2"])


# ------ kernel B: input proj -> bi-LSTM1 -> proj -> bi-LSTM2 -> MLP head -----
def _sigmoid(v):
    # one EUP tanh + one FMA (v5e has no bf16 EUP; avoids the f32 divide).
    return 0.5 * jnp.tanh(0.5 * v) + 0.5


def _cell(gx, c_prev):
    """LSTM cell nonlinearity. gx: (B, 4H) = x@W_ih + b + h@W_hh, order ifgo."""
    i_g = _sigmoid(gx[:, 0:H])
    f_g = _sigmoid(gx[:, H:2 * H])
    g_g = jnp.tanh(gx[:, 2 * H:3 * H])
    o_g = _sigmoid(gx[:, 3 * H:4 * H])
    c_new = f_g * c_prev + i_g * g_g
    h_new = o_g * jnp.tanh(c_new)
    return h_new, c_new


def _run_bilstm(g_ref, whh_bd, seqf_ref, seqb_ref):
    """Bidirectional recurrence over T. g_ref: (T*B, 8H) f32 time-major rows
    (row = t*B + b), columns = [fwd i,f,g,o | bwd i,f,g,o]. whh_bd: (2H, 8H)
    bf16 block-diagonal. h/c are fori_loop-carried values (vregs)."""
    def step(s, carry):
        h_st, c_st = carry                                   # (B, 2H) [f|b]
        rec = jnp.dot(h_st.astype(jnp.bfloat16), whh_bd,
                      preferred_element_type=jnp.float32)    # (B, 8H)
        sb = SEQ_LEN - 1 - s
        rowf = g_ref[pl.ds(s * B, B), :]                     # time s   (B,8H)
        rowb = g_ref[pl.ds(sb * B, B), :]                    # time T-1-s
        hf, cf = _cell(rowf[:, 0:4 * H] + rec[:, 0:4 * H], c_st[:, 0:H])
        hb, cb = _cell(rowb[:, 4 * H:8 * H] + rec[:, 4 * H:8 * H],
                       c_st[:, H:2 * H])
        # f32 seq scratch (bf16 scratch is a further v5e micro-opt; dynamic
        # offset stores to packed bf16 left unverified on purpose).
        seqf_ref[pl.ds(s * B, B), :] = hf
        seqb_ref[pl.ds(sb * B, B), :] = hb
        return (jnp.concatenate([hf, hb], axis=1),
                jnp.concatenate([cf, cb], axis=1))

    zeros = jnp.zeros((B, 2 * H), jnp.float32)
    lax.fori_loop(0, SEQ_LEN, step, (zeros, zeros), unroll=True)


def lstm_stack_kernel(h2_ref, x_ref, wgat_ref, wx_ref, b1_ref, whh1_ref,
                      wih2f_ref, wih2b_ref, b2_ref, whh2_ref,
                      hw1f_ref, hw1b_ref, hb1_ref, hw2_ref, hb2_ref,
                      out_ref,
                      g1_ref, s1f_ref, s1b_ref, g2_ref, s2f_ref, s2b_ref):
    # --- LSTM1 input projection (hoisted out of the recurrence, 512 lanes).
    # gates1 = concat([gat_out, x]) @ W_ih1 + (b_ih + b_hh), via row-split W.
    g1_ref[...] = (
        jnp.dot(h2_ref[...], wgat_ref[...], preferred_element_type=jnp.float32)
        + jnp.dot(x_ref[...].astype(jnp.bfloat16), wx_ref[...],
                  preferred_element_type=jnp.float32)
        + b1_ref[...])

    # --- bi-LSTM layer 1 (weights read once, above the loop).
    _run_bilstm(g1_ref, whh1_ref[...], s1f_ref, s1b_ref)

    # --- LSTM2 input projection: [h_fwd | h_bwd] @ W_ih2 + b, split by half.
    g2_ref[...] = (
        jnp.dot(s1f_ref[...].astype(jnp.bfloat16), wih2f_ref[...],
                preferred_element_type=jnp.float32)
        + jnp.dot(s1b_ref[...].astype(jnp.bfloat16), wih2b_ref[...],
                  preferred_element_type=jnp.float32)
        + b2_ref[...])

    # --- bi-LSTM layer 2.
    _run_bilstm(g2_ref, whh2_ref[...], s2f_ref, s2b_ref)

    # --- MLP head: Linear(2H->HEAD) + ReLU + Linear(HEAD->OUT). Dropout = id.
    hidden = jnp.maximum(
        jnp.dot(s2f_ref[...].astype(jnp.bfloat16), hw1f_ref[...],
                preferred_element_type=jnp.float32)
        + jnp.dot(s2b_ref[...].astype(jnp.bfloat16), hw1b_ref[...],
                  preferred_element_type=jnp.float32)
        + hb1_ref[...], 0.0)
    out_ref[...] = (jnp.dot(hidden.astype(jnp.bfloat16), hw2_ref[...],
                            preferred_element_type=jnp.float32) + hb2_ref[...])


def lstm_head_fused(h2_t, x_t, p):
    vm = pl.BlockSpec(memory_space=pltpu.MemorySpace.VMEM)
    return pl.pallas_call(
        lstm_stack_kernel,
        out_shape=jax.ShapeDtypeStruct((TB, OUT), jnp.float32),
        in_specs=[vm] * 15,
        out_specs=vm,
        scratch_shapes=[
            pltpu.VMEM((TB, 8 * H), jnp.float32),   # gates1
            pltpu.VMEM((TB, H), jnp.float32),       # lstm1 fwd sequence
            pltpu.VMEM((TB, H), jnp.float32),       # lstm1 bwd sequence
            pltpu.VMEM((TB, 8 * H), jnp.float32),   # gates2
            pltpu.VMEM((TB, H), jnp.float32),       # lstm2 fwd sequence
            pltpu.VMEM((TB, H), jnp.float32),       # lstm2 bwd sequence
        ],
        compiler_params=pltpu.CompilerParams(vmem_limit_bytes=64 << 20),
    )(h2_t, x_t, p["w_gat"], p["w_x"], p["bias1"], p["whh1_bd"],
      p["wih2_f"], p["wih2_b"], p["bias2"], p["whh2_bd"],
      p["hw1_f"], p["hw1_b"], p["hb1"], p["hw2"], p["hb2"])


# ------------------------------ parameter init -------------------------------
def init_params(key):
    ks = iter(jax.random.split(key, 48))

    def rnd(shape, scale=0.1, dtype=jnp.float32):
        return (scale * jax.random.normal(next(ks), shape,
                                          jnp.float32)).astype(dtype)

    def bn_fold():
        gamma = 1.0 + rnd((1, G))
        beta = rnd((1, G))
        mean = rnd((1, G))
        var = jnp.abs(rnd((1, G))) + 1.0
        scale = gamma / jnp.sqrt(var + 1e-5)
        shift = beta - mean * scale
        return scale, shift

    def block_diag(w_f, w_b):
        bd = jnp.zeros((2 * H, 8 * H), jnp.float32)
        bd = bd.at[0:H, 0:4 * H].set(w_f)
        bd = bd.at[H:2 * H, 4 * H:8 * H].set(w_b)
        return bd.astype(jnp.bfloat16)

    p = {}
    # GAT layer 1 (Fin = F)
    p["w1"] = rnd((F, G))
    p["a1_src"] = rnd((1, G))
    p["a1_dst"] = rnd((1, G))
    p["b1"] = rnd((1, G))
    p["s1"], p["t1"] = bn_fold()
    # GAT layer 2 (G -> G), weight in bf16 for MXU
    p["w2"] = rnd((G, G), dtype=jnp.bfloat16)
    p["a2_src"] = rnd((1, G))
    p["a2_dst"] = rnd((1, G))
    p["b2"] = rnd((1, G))
    p["s2"], p["t2"] = bn_fold()
    # LSTM1: full W_ih (D1, 8H) [fwd 4H | bwd 4H], then host-side row split
    # into the rows consumed by the GAT features vs the raw-x features of each
    # keypoint (this absorbs torch.cat((gat_out, x), dim=1) into the weights).
    wih1_full = rnd((D1, 8 * H))
    idx = np.arange(D1).reshape(K, C)
    gat_rows = idx[:, :G].reshape(-1)          # (K*G,)
    x_rows = idx[:, G:].reshape(-1)            # (K*F,)
    p["w_gat"] = wih1_full[gat_rows].astype(jnp.bfloat16)   # (K*G, 8H)
    p["w_x"] = wih1_full[x_rows].astype(jnp.bfloat16)       # (K*F, 8H)
    p["bias1"] = rnd((1, 8 * H))               # b_ih + b_hh folded, both dirs
    p["whh1_bd"] = block_diag(rnd((H, 4 * H)), rnd((H, 4 * H)))
    # LSTM2: input weights split by which half (fwd/bwd hidden) they consume.
    p["wih2_f"] = rnd((H, 8 * H), dtype=jnp.bfloat16)
    p["wih2_b"] = rnd((H, 8 * H), dtype=jnp.bfloat16)
    p["bias2"] = rnd((1, 8 * H))
    p["whh2_bd"] = block_diag(rnd((H, 4 * H)), rnd((H, 4 * H)))
    # head MLP (Linear -> ReLU -> Linear); first layer split the same way.
    p["hw1_f"] = rnd((H, HEAD), dtype=jnp.bfloat16)
    p["hw1_b"] = rnd((H, HEAD), dtype=jnp.bfloat16)
    p["hb1"] = rnd((1, HEAD))
    p["hw2"] = rnd((HEAD, OUT), dtype=jnp.bfloat16)
    p["hb2"] = rnd((1, OUT))
    return p


# --------------------------------- forward -----------------------------------
def st_gat_forward(x_nodes, adj_bias, p):
    # GAT1 -> BN -> ReLU -> GAT2 -> BN -> ReLU          (kernel A, grid=(B,))
    h2 = gat_fused(x_nodes, adj_bias, p)                  # (B, N, G) bf16
    # batch-major -> time-major rows (row = t*B + b): one tiny (17 KB / 4 KB)
    # one-shot XLA transpose each, so every per-step slice inside kernel B is
    # a contiguous 2-row slab (no strided / masked accesses in the recurrence).
    h2_t = (h2.reshape(B, SEQ_LEN, K * G)
              .transpose(1, 0, 2).reshape(TB, K * G))       # (T*B, K*G) bf16
    x_t = (x_nodes.reshape(B, SEQ_LEN, K * F)
                  .transpose(1, 0, 2).reshape(TB, K * F))   # (T*B, K*F) f32
    # input proj -> bi-LSTM1 -> proj -> bi-LSTM2 -> head  (kernel B, 1 launch)
    y = lstm_head_fused(h2_t, x_t, p)                       # (T*B, OUT) f32
    return y.reshape(SEQ_LEN, B, OUT).transpose(1, 0, 2)    # (B, T, OUT)


# ----------------------------------- main -------------------------------------
if __name__ == "__main__":
    key = jax.random.PRNGKey(0)
    k_x, k_p = jax.random.split(key)

    x_nodes = jax.random.normal(k_x, (B, N, F), jnp.float32)   # batch.x / graph
    adj = build_adjacency(SEQ_LEN, K, CONNECTIONS_2D)
    # additive softmax mask: 0 on edges, -1e30 elsewhere (bf16 halves DMA)
    adj_bias = jnp.asarray(np.where(adj > 0, 0.0, -1e30).astype(np.float32)
                           ).astype(jnp.bfloat16)
    params = init_params(k_p)

    fwd = jax.jit(st_gat_forward)
    out = fwd(x_nodes, adj_bias, params)
    jax.block_until_ready(out)
    assert out.shape == (B, SEQ_LEN, OUT)
    assert bool(jnp.all(jnp.isfinite(out)))
    print("KERNEL_OK")
</pallas_src>

<mosaic_0001>
module attributes {stable_mosaic.version = 11 : i64} {
  func.func @gat_kernel(%arg0: i32, %arg1: memref<1x136x2xf32, #tpu.memory_space<vmem>>, %arg2: memref<136x136xbf16, #tpu.memory_space<vmem>>, %arg3: memref<2x32xf32, #tpu.memory_space<vmem>>, %arg4: memref<1x32xf32, #tpu.memory_space<vmem>>, %arg5: memref<1x32xf32, #tpu.memory_space<vmem>>, %arg6: memref<1x32xf32, #tpu.memory_space<vmem>>, %arg7: memref<1x32xf32, #tpu.memory_space<vmem>>, %arg8: memref<1x32xf32, #tpu.memory_space<vmem>>, %arg9: memref<32x32xbf16, #tpu.memory_space<vmem>>, %arg10: memref<1x32xf32, #tpu.memory_space<vmem>>, %arg11: memref<1x32xf32, #tpu.memory_space<vmem>>, %arg12: memref<1x32xf32, #tpu.memory_space<vmem>>, %arg13: memref<1x32xf32, #tpu.memory_space<vmem>>, %arg14: memref<1x32xf32, #tpu.memory_space<vmem>>, %arg15: memref<1x136x32xbf16, #tpu.memory_space<vmem>>) attributes {dimension_semantics = [#tpu.dimension_semantics<parallel>], iteration_bounds = array<i64: 2>, scalar_prefetch = 0 : i64, scratch_operands = 0 : i64, tpu.core_type = #tpu.core_type<tc>, window_params = [{transform_indices = @transform_0, window_bounds = array<i64: 1, 136, 2>}, {pipeline_mode = #tpu.pipeline_mode<synchronous>, transform_indices = @transform_1, window_bounds = array<i64: 136, 136>}, {pipeline_mode = #tpu.pipeline_mode<synchronous>, transform_indices = @transform_2, window_bounds = array<i64: 2, 32>}, {pipeline_mode = #tpu.pipeline_mode<synchronous>, transform_indices = @transform_3, window_bounds = array<i64: 1, 32>}, {pipeline_mode = #tpu.pipeline_mode<synchronous>, transform_indices = @transform_4, window_bounds = array<i64: 1, 32>}, {pipeline_mode = #tpu.pipeline_mode<synchronous>, transform_indices = @transform_5, window_bounds = array<i64: 1, 32>}, {pipeline_mode = #tpu.pipeline_mode<synchronous>, transform_indices = @transform_6, window_bounds = array<i64: 1, 32>}, {pipeline_mode = #tpu.pipeline_mode<synchronous>, transform_indices = @transform_7, window_bounds = array<i64: 1, 32>}, {pipeline_mode = #tpu.pipeline_mode<synchronous>, transform_indices = @transform_8, window_bounds = array<i64: 32, 32>}, {pipeline_mode = #tpu.pipeline_mode<synchronous>, transform_indices = @transform_9, window_bounds = array<i64: 1, 32>}, {pipeline_mode = #tpu.pipeline_mode<synchronous>, transform_indices = @transform_10, window_bounds = array<i64: 1, 32>}, {pipeline_mode = #tpu.pipeline_mode<synchronous>, transform_indices = @transform_11, window_bounds = array<i64: 1, 32>}, {pipeline_mode = #tpu.pipeline_mode<synchronous>, transform_indices = @transform_12, window_bounds = array<i64: 1, 32>}, {pipeline_mode = #tpu.pipeline_mode<synchronous>, transform_indices = @transform_13, window_bounds = array<i64: 1, 32>}, {transform_indices = @transform_14, window_bounds = array<i64: 1, 136, 32>}]} {
    %c0 = arith.constant 0 : index
    %c0_0 = arith.constant 0 : index
    %c0_1 = arith.constant 0 : index
    %0 = vector.load %arg1[%c0, %c0_0, %c0_1] : memref<1x136x2xf32, #tpu.memory_space<vmem>>, vector<1x136x2xf32>
    %1 = vector.shape_cast %0 : vector<1x136x2xf32> to vector<136x2xf32>
    %c0_2 = arith.constant 0 : index
    %c0_3 = arith.constant 0 : index
    %2 = vector.load %arg2[%c0_2, %c0_3] : memref<136x136xbf16, #tpu.memory_space<vmem>>, vector<136x136xbf16>
    %3 = arith.extf %2 : vector<136x136xbf16> to vector<136x136xf32>
    %c0_4 = arith.constant 0 : index
    %c0_5 = arith.constant 0 : index
    %4 = vector.load %arg3[%c0_4, %c0_5] : memref<2x32xf32, #tpu.memory_space<vmem>>, vector<2x32xf32>
    %5 = vector.extract_strided_slice %1 {offsets = [0, 0], sizes = [136, 1], strides = [1, 1]} : vector<136x2xf32> to vector<136x1xf32>
    %6 = vector.extract_strided_slice %4 {offsets = [0, 0], sizes = [1, 32], strides = [1, 1]} : vector<2x32xf32> to vector<1x32xf32>
    %7 = vector.broadcast %5 : vector<136x1xf32> to vector<136x32xf32>
    %8 = vector.broadcast %6 : vector<1x32xf32> to vector<136x32xf32>
    %9 = arith.mulf %7, %8 : vector<136x32xf32>
    %10 = vector.extract_strided_slice %1 {offsets = [0, 1], sizes = [136, 1], strides = [1, 1]} : vector<136x2xf32> to vector<136x1xf32>
    %11 = vector.extract_strided_slice %4 {offsets = [1, 0], sizes = [1, 32], strides = [1, 1]} : vector<2x32xf32> to vector<1x32xf32>
    %12 = vector.broadcast %10 : vector<136x1xf32> to vector<136x32xf32>
    %13 = vector.broadcast %11 : vector<1x32xf32> to vector<136x32xf32>
    %14 = arith.mulf %12, %13 : vector<136x32xf32>
    %15 = arith.addf %9, %14 : vector<136x32xf32>
    %c0_6 = arith.constant 0 : index
    %c0_7 = arith.constant 0 : index
    %16 = vector.load %arg4[%c0_6, %c0_7] : memref<1x32xf32, #tpu.memory_space<vmem>>, vector<1x32xf32>
    %c0_8 = arith.constant 0 : index
    %c0_9 = arith.constant 0 : index
    %17 = vector.load %arg5[%c0_8, %c0_9] : memref<1x32xf32, #tpu.memory_space<vmem>>, vector<1x32xf32>
    %c0_10 = arith.constant 0 : index
    %c0_11 = arith.constant 0 : index
    %18 = vector.load %arg6[%c0_10, %c0_11] : memref<1x32xf32, #tpu.memory_space<vmem>>, vector<1x32xf32>
    %19 = vector.broadcast %16 : vector<1x32xf32> to vector<136x32xf32>
    %20 = arith.mulf %15, %19 : vector<136x32xf32>
    %cst = arith.constant dense<0.000000e+00> : vector<136xf32>
    %21 = vector.multi_reduction <add>, %20, %cst [1] : vector<136x32xf32> to vector<136xf32>
    %22 = vector.shape_cast %21 : vector<136xf32> to vector<136x1xf32>
    %23 = vector.broadcast %17 : vector<1x32xf32> to vector<136x32xf32>
    %24 = arith.mulf %15, %23 : vector<136x32xf32>
    %cst_12 = arith.constant dense<0.000000e+00> : vector<136xf32>
    %25 = vector.multi_reduction <add>, %24, %cst_12 [1] : vector<136x32xf32> to vector<136xf32>
    %26 = vector.shape_cast %25 : vector<136xf32> to vector<136x1xf32>
    %27 = tpu.transpose %22, [1, 0] : vector<136x1xf32> -> vector<1x136xf32>
    %28 = vector.broadcast %26 : vector<136x1xf32> to vector<136x136xf32>
    %29 = vector.broadcast %27 : vector<1x136xf32> to vector<136x136xf32>
    %30 = arith.addf %28, %29 : vector<136x136xf32>
    %cst_13 = arith.constant 0.000000e+00 : f32
    %31 = vector.broadcast %cst_13 : f32 to vector<136x136xf32>
    %32 = arith.cmpf ogt, %30, %31 : vector<136x136xf32>
    %cst_14 = arith.constant 2.000000e-01 : f32
    %33 = vector.broadcast %cst_14 : f32 to vector<136x136xf32>
    %34 = arith.mulf %33, %30 : vector<136x136xf32>
    %35 = arith.select %32, %30, %34 : vector<136x136xi1>, vector<136x136xf32>
    %36 = arith.addf %35, %3 : vector<136x136xf32>
    %cst_15 = arith.constant dense<0xFF800000> : vector<136xf32>
    %37 = vector.multi_reduction <maximumf>, %36, %cst_15 [1] : vector<136x136xf32> to vector<136xf32>
    %38 = vector.shape_cast %37 : vector<136xf32> to vector<136x1xf32>
    %39 = vector.broadcast %38 : vector<136x1xf32> to vector<136x136xf32>
    %40 = arith.subf %36, %39 : vector<136x136xf32>
    %41 = math.exp %40 : vector<136x136xf32>
    %cst_16 = arith.constant dense<0.000000e+00> : vector<136xf32>
    %42 = vector.multi_reduction <add>, %41, %cst_16 [1] : vector<136x136xf32> to vector<136xf32>
    %43 = vector.shape_cast %42 : vector<136xf32> to vector<136x1xf32>
    %44 = tpu.reciprocal %43 {approx = true} : vector<136x1xf32> -> vector<136x1xf32>
    %45 = vector.broadcast %44 : vector<136x1xf32> to vector<136x136xf32>
    %46 = arith.mulf %41, %45 : vector<136x136xf32>
    %47 = arith.truncf %46 : vector<136x136xf32> to vector<136x136xbf16>
    %48 = arith.truncf %15 : vector<136x32xf32> to vector<136x32xbf16>
    %cst_17 = arith.constant dense<0.000000e+00> : vector<136x32xf32>
    %49 = tpu.matmul %47, %48, %cst_17 {dimension_numbers = #tpu.dot_dimension_numbers<[1], [0], [0], [1], [0, 0, 1, 1], [], []>} : vector<136x136xbf16>, vector<136x32xbf16>, vector<136x32xf32> -> vector<136x32xf32>
    %50 = vector.broadcast %18 : vector<1x32xf32> to vector<136x32xf32>
    %51 = arith.addf %49, %50 : vector<136x32xf32>
    %c0_18 = arith.constant 0 : index
    %c0_19 = arith.constant 0 : index
    %52 = vector.load %arg7[%c0_18, %c0_19] : memref<1x32xf32, #tpu.memory_space<vmem>>, vector<1x32xf32>
    %53 = vector.broadcast %52 : vector<1x32xf32> to vector<136x32xf32>
    %54 = arith.mulf %51, %53 : vector<136x32xf32>
    %c0_20 = arith.constant 0 : index
    %c0_21 = arith.constant 0 : index
    %55 = vector.load %arg8[%c0_20, %c0_21] : memref<1x32xf32, #tpu.memory_space<vmem>>, vector<1x32xf32>
    %56 = vector.broadcast %55 : vector<1x32xf32> to vector<136x32xf32>
    %57 = arith.addf %54, %56 : vector<136x32xf32>
    %cst_22 = arith.constant 0.000000e+00 : f32
    %58 = vector.broadcast %cst_22 : f32 to vector<136x32xf32>
    %59 = arith.maximumf %57, %58 : vector<136x32xf32>
    %60 = arith.truncf %59 : vector<136x32xf32> to vector<136x32xbf16>
    %c0_23 = arith.constant 0 : index
    %c0_24 = arith.constant 0 : index
    %61 = vector.load %arg9[%c0_23, %c0_24] : memref<32x32xbf16, #tpu.memory_space<vmem>>, vector<32x32xbf16>
    %cst_25 = arith.constant dense<0.000000e+00> : vector<136x32xf32>
    %62 = tpu.matmul %60, %61, %cst_25 {dimension_numbers = #tpu.dot_dimension_numbers<[1], [0], [0], [1], [0, 0, 1, 1], [], []>} : vector<136x32xbf16>, vector<32x32xbf16>, vector<136x32xf32> -> vector<136x32xf32>
    %c0_26 = arith.constant 0 : index
    %c0_27 = arith.constant 0 : index
    %63 = vector.load %arg10[%c0_26, %c0_27] : memref<1x32xf32, #tpu.memory_space<vmem>>, vector<1x32xf32>
    %c0_28 = arith.constant 0 : index
    %c0_29 = arith.constant 0 : index
    %64 = vector.load %arg11[%c0_28, %c0_29] : memref<1x32xf32, #tpu.memory_space<vmem>>, vector<1x32xf32>
    %c0_30 = arith.constant 0 : index
    %c0_31 = arith.constant 0 : index
    %65 = vector.load %arg12[%c0_30, %c0_31] : memref<1x32xf32, #tpu.memory_space<vmem>>, vector<1x32xf32>
    %66 = vector.broadcast %63 : vector<1x32xf32> to vector<136x32xf32>
    %67 = arith.mulf %62, %66 : vector<136x32xf32>
    %cst_32 = arith.constant dense<0.000000e+00> : vector<136xf32>
    %68 = vector.multi_reduction <add>, %67, %cst_32 [1] : vector<136x32xf32> to vector<136xf32>
    %69 = vector.shape_cast %68 : vector<136xf32> to vector<136x1xf32>
    %70 = vector.broadcast %64 : vector<1x32xf32> to vector<136x32xf32>
    %71 = arith.mulf %62, %70 : vector<136x32xf32>
    %cst_33 = arith.constant dense<0.000000e+00> : vector<136xf32>
    %72 = vector.multi_reduction <add>, %71, %cst_33 [1] : vector<136x32xf32> to vector<136xf32>
    %73 = vector.shape_cast %72 : vector<136xf32> to vector<136x1xf32>
    %74 = tpu.transpose %69, [1, 0] : vector<136x1xf32> -> vector<1x136xf32>
    %75 = vector.broadcast %73 : vector<136x1xf32> to vector<136x136xf32>
    %76 = vector.broadcast %74 : vector<1x136xf32> to vector<136x136xf32>
    %77 = arith.addf %75, %76 : vector<136x136xf32>
    %cst_34 = arith.constant 0.000000e+00 : f32
    %78 = vector.broadcast %cst_34 : f32 to vector<136x136xf32>
    %79 = arith.cmpf ogt, %77, %78 : vector<136x136xf32>
    %cst_35 = arith.constant 2.000000e-01 : f32
    %80 = vector.broadcast %cst_35 : f32 to vector<136x136xf32>
    %81 = arith.mulf %80, %77 : vector<136x136xf32>
    %82 = arith.select %79, %77, %81 : vector<136x136xi1>, vector<136x136xf32>
    %83 = arith.addf %82, %3 : vector<136x136xf32>
    %cst_36 = arith.constant dense<0xFF800000> : vector<136xf32>
    %84 = vector.multi_reduction <maximumf>, %83, %cst_36 [1] : vector<136x136xf32> to vector<136xf32>
    %85 = vector.shape_cast %84 : vector<136xf32> to vector<136x1xf32>
    %86 = vector.broadcast %85 : vector<136x1xf32> to vector<136x136xf32>
    %87 = arith.subf %83, %86 : vector<136x136xf32>
    %88 = math.exp %87 : vector<136x136xf32>
    %cst_37 = arith.constant dense<0.000000e+00> : vector<136xf32>
    %89 = vector.multi_reduction <add>, %88, %cst_37 [1] : vector<136x136xf32> to vector<136xf32>
    %90 = vector.shape_cast %89 : vector<136xf32> to vector<136x1xf32>
    %91 = tpu.reciprocal %90 {approx = true} : vector<136x1xf32> -> vector<136x1xf32>
    %92 = vector.broadcast %91 : vector<136x1xf32> to vector<136x136xf32>
    %93 = arith.mulf %88, %92 : vector<136x136xf32>
    %94 = arith.truncf %93 : vector<136x136xf32> to vector<136x136xbf16>
    %95 = arith.truncf %62 : vector<136x32xf32> to vector<136x32xbf16>
    %cst_38 = arith.constant dense<0.000000e+00> : vector<136x32xf32>
    %96 = tpu.matmul %94, %95, %cst_38 {dimension_numbers = #tpu.dot_dimension_numbers<[1], [0], [0], [1], [0, 0, 1, 1], [], []>} : vector<136x136xbf16>, vector<136x32xbf16>, vector<136x32xf32> -> vector<136x32xf32>
    %97 = vector.broadcast %65 : vector<1x32xf32> to vector<136x32xf32>
    %98 = arith.addf %96, %97 : vector<136x32xf32>
    %c0_39 = arith.constant 0 : index
    %c0_40 = arith.constant 0 : index
    %99 = vector.load %arg13[%c0_39, %c0_40] : memref<1x32xf32, #tpu.memory_space<vmem>>, vector<1x32xf32>
    %100 = vector.broadcast %99 : vector<1x32xf32> to vector<136x32xf32>
    %101 = arith.mulf %98, %100 : vector<136x32xf32>
    %c0_41 = arith.constant 0 : index
    %c0_42 = arith.constant 0 : index
    %102 = vector.load %arg14[%c0_41, %c0_42] : memref<1x32xf32, #tpu.memory_space<vmem>>, vector<1x32xf32>
    %103 = vector.broadcast %102 : vector<1x32xf32> to vector<136x32xf32>
    %104 = arith.addf %101, %103 : vector<136x32xf32>
    %cst_43 = arith.constant 0.000000e+00 : f32
    %105 = vector.broadcast %cst_43 : f32 to vector<136x32xf32>
    %106 = arith.maximumf %104, %105 : vector<136x32xf32>
    %107 = arith.truncf %106 : vector<136x32xf32> to vector<136x32xbf16>
    %c0_44 = arith.constant 0 : index
    %c0_45 = arith.constant 0 : index
    %c0_46 = arith.constant 0 : index
    %108 = vector.load %arg15[%c0_44, %c0_45, %c0_46] : memref<1x136x32xbf16, #tpu.memory_space<vmem>>, vector<1x136x32xbf16>
    %109 = vector.shape_cast %108 : vector<1x136x32xbf16> to vector<136x32xbf16>
    %110 = vector.shape_cast %107 : vector<136x32xbf16> to vector<1x136x32xbf16>
    tpu.vector_store %arg15[%c0_44, %c0_45, %c0_46], %110 {strides = array<i32>} : memref<1x136x32xbf16, #tpu.memory_space<vmem>>, vector<1x136x32xbf16>,
    return
  }
  func.func @transform_0(%arg0: i32) -> (i32, i32, i32) {
    %c0_i32 = arith.constant 0 : i32
    %c0_i32_0 = arith.constant 0 : i32
    %c0_i32_1 = arith.constant 0 : i32
    return %arg0, %c0_i32, %c0_i32_0 : i32, i32, i32
  }
  func.func @transform_1(%arg0: i32) -> (i32, i32) {
    %c0_i32 = arith.constant 0 : i32
    %c0_i32_0 = arith.constant 0 : i32
    %c0_i32_1 = arith.constant 0 : i32
    return %c0_i32, %c0_i32_0 : i32, i32
  }
  func.func @transform_2(%arg0: i32) -> (i32, i32) {
    %c0_i32 = arith.constant 0 : i32
    %c0_i32_0 = arith.constant 0 : i32
    %c0_i32_1 = arith.constant 0 : i32
    return %c0_i32, %c0_i32_0 : i32, i32
  }
  func.func @transform_3(%arg0: i32) -> (i32, i32) {
    %c0_i32 = arith.constant 0 : i32
    %c0_i32_0 = arith.constant 0 : i32
    %c0_i32_1 = arith.constant 0 : i32
    return %c0_i32, %c0_i32_0 : i32, i32
  }
  func.func @transform_4(%arg0: i32) -> (i32, i32) {
    %c0_i32 = arith.constant 0 : i32
    %c0_i32_0 = arith.constant 0 : i32
    %c0_i32_1 = arith.constant 0 : i32
    return %c0_i32, %c0_i32_0 : i32, i32
  }
  func.func @transform_5(%arg0: i32) -> (i32, i32) {
    %c0_i32 = arith.constant 0 : i32
    %c0_i32_0 = arith.constant 0 : i32
    %c0_i32_1 = arith.constant 0 : i32
    return %c0_i32, %c0_i32_0 : i32, i32
  }
  func.func @transform_6(%arg0: i32) -> (i32, i32) {
    %c0_i32 = arith.constant 0 : i32
    %c0_i32_0 = arith.constant 0 : i32
    %c0_i32_1 = arith.constant 0 : i32
    return %c0_i32, %c0_i32_0 : i32, i32
  }
  func.func @transform_7(%arg0: i32) -> (i32, i32) {
    %c0_i32 = arith.constant 0 : i32
    %c0_i32_0 = arith.constant 0 : i32
    %c0_i32_1 = arith.constant 0 : i32
    return %c0_i32, %c0_i32_0 : i32, i32
  }
  func.func @transform_8(%arg0: i32) -> (i32, i32) {
    %c0_i32 = arith.constant 0 : i32
    %c0_i32_0 = arith.constant 0 : i32
    %c0_i32_1 = arith.constant 0 : i32
    return %c0_i32, %c0_i32_0 : i32, i32
  }
  func.func @transform_9(%arg0: i32) -> (i32, i32) {
    %c0_i32 = arith.constant 0 : i32
    %c0_i32_0 = arith.constant 0 : i32
    %c0_i32_1 = arith.constant 0 : i32
    return %c0_i32, %c0_i32_0 : i32, i32
  }
  func.func @transform_10(%arg0: i32) -> (i32, i32) {
    %c0_i32 = arith.constant 0 : i32
    %c0_i32_0 = arith.constant 0 : i32
    %c0_i32_1 = arith.constant 0 : i32
    return %c0_i32, %c0_i32_0 : i32, i32
  }
  func.func @transform_11(%arg0: i32) -> (i32, i32) {
    %c0_i32 = arith.constant 0 : i32
    %c0_i32_0 = arith.constant 0 : i32
    %c0_i32_1 = arith.constant 0 : i32
    return %c0_i32, %c0_i32_0 : i32, i32
  }
  func.func @transform_12(%arg0: i32) -> (i32, i32) {
    %c0_i32 = arith.constant 0 : i32
    %c0_i32_0 = arith.constant 0 : i32
    %c0_i32_1 = arith.constant 0 : i32
    return %c0_i32, %c0_i32_0 : i32, i32
  }
  func.func @transform_13(%arg0: i32) -> (i32, i32) {
    %c0_i32 = arith.constant 0 : i32
    %c0_i32_0 = arith.constant 0 : i32
    %c0_i32_1 = arith.constant 0 : i32
    return %c0_i32, %c0_i32_0 : i32, i32
  }
  func.func @transform_14(%arg0: i32) -> (i32, i32, i32) {
    %c0_i32 = arith.constant 0 : i32
    %c0_i32_0 = arith.constant 0 : i32
    %c0_i32_1 = arith.constant 0 : i32
    return %arg0, %c0_i32, %c0_i32_0 : i32, i32, i32
  }
}

module attributes {stable_mosaic.version = 11 : i64} {
  func.func @lstm_stack_kernel(%arg0: memref<16x544xbf16, #tpu.memory_space<vmem>>, %arg1: memref<16x34xf32, #tpu.memory_space<vmem>>, %arg2: memref<544x512xbf16, #tpu.memory_space<vmem>>, %arg3: memref<34x512xbf16, #tpu.memory_space<vmem>>, %arg4: memref<1x512xf32, #tpu.memory_space<vmem>>, %arg5: memref<128x512xbf16, #tpu.memory_space<vmem>>, %arg6: memref<64x512xbf16, #tpu.memory_space<vmem>>, %arg7: memref<64x512xbf16, #tpu.memory_space<vmem>>, %arg8: memref<1x512xf32, #tpu.memory_space<vmem>>, %arg9: memref<128x512xbf16, #tpu.memory_space<vmem>>, %arg10: memref<64x32xbf16, #tpu.memory_space<vmem>>, %arg11: memref<64x32xbf16, #tpu.memory_space<vmem>>, %arg12: memref<1x32xf32, #tpu.memory_space<vmem>>, %arg13: memref<32x16xbf16, #tpu.memory_space<vmem>>, %arg14: memref<1x16xf32, #tpu.memory_space<vmem>>, %arg15: memref<16x16xf32, #tpu.memory_space<vmem>>, %arg16: memref<16x512xf32, #tpu.memory_space<vmem>>, %arg17: memref<16x64xf32, #tpu.memory_space<vmem>>, %arg18: memref<16x64xf32, #tpu.memory_space<vmem>>, %arg19: memref<16x512xf32, #tpu.memory_space<vmem>>, %arg20: memref<16x64xf32, #tpu.memory_space<vmem>>, %arg21: memref<16x64xf32, #tpu.memory_space<vmem>>) attributes {dimension_semantics = [], scalar_prefetch = 0 : i64, scratch_operands = 6 : i64, tpu.core_type = #tpu.core_type<tc>} {
    %c0 = arith.constant 0 : index
    %c0_0 = arith.constant 0 : index
    %0 = vector.load %arg0[%c0, %c0_0] : memref<16x544xbf16, #tpu.memory_space<vmem>>, vector<16x544xbf16>
    %c0_1 = arith.constant 0 : index
    %c0_2 = arith.constant 0 : index
    %1 = vector.load %arg2[%c0_1, %c0_2] : memref<544x512xbf16, #tpu.memory_space<vmem>>, vector<544x512xbf16>
    %cst = arith.constant dense<0.000000e+00> : vector<16x512xf32>
    %2 = tpu.matmul %0, %1, %cst {dimension_numbers = #tpu.dot_dimension_numbers<[1], [0], [0], [1], [0, 0, 1, 1], [], []>} : vector<16x544xbf16>, vector<544x512xbf16>, vector<16x512xf32> -> vector<16x512xf32>
    %c0_3 = arith.constant 0 : index
    %c0_4 = arith.constant 0 : index
    %3 = vector.load %arg1[%c0_3, %c0_4] : memref<16x34xf32, #tpu.memory_space<vmem>>, vector<16x34xf32>
    %4 = arith.truncf %3 : vector<16x34xf32> to vector<16x34xbf16>
    %c0_5 = arith.constant 0 : index
    %c0_6 = arith.constant 0 : index
    %5 = vector.load %arg3[%c0_5, %c0_6] : memref<34x512xbf16, #tpu.memory_space<vmem>>, vector<34x512xbf16>
    %cst_7 = arith.constant dense<0.000000e+00> : vector<16x512xf32>
    %6 = tpu.matmul %4, %5, %cst_7 {dimension_numbers = #tpu.dot_dimension_numbers<[1], [0], [0], [1], [0, 0, 1, 1], [], []>} : vector<16x34xbf16>, vector<34x512xbf16>, vector<16x512xf32> -> vector<16x512xf32>
    %7 = arith.addf %2, %6 : vector<16x512xf32>
    %c0_8 = arith.constant 0 : index
    %c0_9 = arith.constant 0 : index
    %8 = vector.load %arg4[%c0_8, %c0_9] : memref<1x512xf32, #tpu.memory_space<vmem>>, vector<1x512xf32>
    %9 = vector.broadcast %8 : vector<1x512xf32> to vector<16x512xf32>
    %10 = arith.addf %7, %9 : vector<16x512xf32>
    %c0_10 = arith.constant 0 : index
    %c0_11 = arith.constant 0 : index
    %11 = vector.load %arg16[%c0_10, %c0_11] : memref<16x512xf32, #tpu.memory_space<vmem>>, vector<16x512xf32>
    tpu.vector_store %arg16[%c0_10, %c0_11], %10 {strides = array<i32>} : memref<16x512xf32, #tpu.memory_space<vmem>>, vector<16x512xf32>,
    %c0_12 = arith.constant 0 : index
    %c0_13 = arith.constant 0 : index
    %12 = vector.load %arg5[%c0_12, %c0_13] : memref<128x512xbf16, #tpu.memory_space<vmem>>, vector<128x512xbf16>
    %cst_14 = arith.constant 0.000000e+00 : f32
    %13 = vector.broadcast %cst_14 : f32 to vector<2x128xf32>
    %c0_i32 = arith.constant 0 : i32
    %14 = arith.truncf %13 : vector<2x128xf32> to vector<2x128xbf16>
    %cst_15 = arith.constant dense<0.000000e+00> : vector<2x512xf32>
    %15 = tpu.matmul %14, %12, %cst_15 {dimension_numbers = #tpu.dot_dimension_numbers<[1], [0], [0], [1], [0, 0, 1, 1], [], []>} : vector<2x128xbf16>, vector<128x512xbf16>, vector<2x512xf32> -> vector<2x512xf32>
    %c7_i32 = arith.constant 7 : i32
    %16 = arith.subi %c7_i32, %c0_i32 : i32
    %c2_i32 = arith.constant 2 : i32
    %17 = arith.muli %c0_i32, %c2_i32 : i32
    %18 = arith.index_cast %17 : i32 to index
    %c0_16 = arith.constant 0 : index
    %19 = vector.load %arg16[%18, %c0_16] : memref<16x512xf32, #tpu.memory_space<vmem>>, vector<2x512xf32>
    %c2_i32_17 = arith.constant 2 : i32
    %20 = arith.muli %16, %c2_i32_17 : i32
    %21 = arith.index_cast %20 : i32 to index
    %c0_18 = arith.constant 0 : index
    %22 = vector.load %arg16[%21, %c0_18] : memref<16x512xf32, #tpu.memory_space<vmem>>, vector<2x512xf32>
    %23 = vector.extract_strided_slice %19 {offsets = [0, 0], sizes = [2, 256], strides = [1, 1]} : vector<2x512xf32> to vector<2x256xf32>
    %24 = vector.extract_strided_slice %15 {offsets = [0, 0], sizes = [2, 256], strides = [1, 1]} : vector<2x512xf32> to vector<2x256xf32>
    %25 = arith.addf %23, %24 : vector<2x256xf32>
    %26 = vector.extract_strided_slice %13 {offsets = [0, 0], sizes = [2, 64], strides = [1, 1]} : vector<2x128xf32> to vector<2x64xf32>
    %27 = vector.extract_strided_slice %25 {offsets = [0, 0], sizes = [2, 64], strides = [1, 1]} : vector<2x256xf32> to vector<2x64xf32>
    %cst_19 = arith.constant 5.000000e-01 : f32
    %28 = vector.broadcast %cst_19 : f32 to vector<2x64xf32>
    %29 = arith.mulf %28, %27 : vector<2x64xf32>
    %30 = math.tanh %29 : vector<2x64xf32>
    %cst_20 = arith.constant 5.000000e-01 : f32
    %31 = vector.broadcast %cst_20 : f32 to vector<2x64xf32>
    %32 = arith.mulf %31, %30 : vector<2x64xf32>
    %cst_21 = arith.constant 5.000000e-01 : f32
    %33 = vector.broadcast %cst_21 : f32 to vector<2x64xf32>
    %34 = arith.addf %32, %33 : vector<2x64xf32>
    %35 = vector.extract_strided_slice %25 {offsets = [0, 64], sizes = [2, 64], strides = [1, 1]} : vector<2x256xf32> to vector<2x64xf32>
    %cst_22 = arith.constant 5.000000e-01 : f32
    %36 = vector.broadcast %cst_22 : f32 to vector<2x64xf32>
    %37 = arith.mulf %36, %35 : vector<2x64xf32>
    %38 = math.tanh %37 : vector<2x64xf32>
    %cst_23 = arith.constant 5.000000e-01 : f32
    %39 = vector.broadcast %cst_23 : f32 to vector<2x64xf32>
    %40 = arith.mulf %39, %38 : vector<2x64xf32>
    %cst_24 = arith.constant 5.000000e-01 : f32
    %41 = vector.broadcast %cst_24 : f32 to vector<2x64xf32>
    %42 = arith.addf %40, %41 : vector<2x64xf32>
    %43 = vector.extract_strided_slice %25 {offsets = [0, 128], sizes = [2, 64], strides = [1, 1]} : vector<2x256xf32> to vector<2x64xf32>
    %44 = math.tanh %43 : vector<2x64xf32>
    %45 = vector.extract_strided_slice %25 {offsets = [0, 192], sizes = [2, 64], strides = [1, 1]} : vector<2x256xf32> to vector<2x64xf32>
    %cst_25 = arith.constant 5.000000e-01 : f32
    %46 = vector.broadcast %cst_25 : f32 to vector<2x64xf32>
    %47 = arith.mulf %46, %45 : vector<2x64xf32>
    %48 = math.tanh %47 : vector<2x64xf32>
    %cst_26 = arith.constant 5.000000e-01 : f32
    %49 = vector.broadcast %cst_26 : f32 to vector<2x64xf32>
    %50 = arith.mulf %49, %48 : vector<2x64xf32>
    %cst_27 = arith.constant 5.000000e-01 : f32
    %51 = vector.broadcast %cst_27 : f32 to vector<2x64xf32>
    %52 = arith.addf %50, %51 : vector<2x64xf32>
    %53 = arith.mulf %42, %26 : vector<2x64xf32>
    %54 = arith.mulf %34, %44 : vector<2x64xf32>
    %55 = arith.addf %53, %54 : vector<2x64xf32>
    %56 = math.tanh %55 : vector<2x64xf32>
    %57 = arith.mulf %52, %56 : vector<2x64xf32>
    %58 = vector.extract_strided_slice %22 {offsets = [0, 256], sizes = [2, 256], strides = [1, 1]} : vector<2x512xf32> to vector<2x256xf32>
    %59 = vector.extract_strided_slice %15 {offsets = [0, 256], sizes = [2, 256], strides = [1, 1]} : vector<2x512xf32> to vector<2x256xf32>
    %60 = arith.addf %58, %59 : vector<2x256xf32>
    %61 = vector.extract_strided_slice %13 {offsets = [0, 64], sizes = [2, 64], strides = [1, 1]} : vector<2x128xf32> to vector<2x64xf32>
    %62 = vector.extract_strided_slice %60 {offsets = [0, 0], sizes = [2, 64], strides = [1, 1]} : vector<2x256xf32> to vector<2x64xf32>
    %cst_28 = arith.constant 5.000000e-01 : f32
    %63 = vector.broadcast %cst_28 : f32 to vector<2x64xf32>
    %64 = arith.mulf %63, %62 : vector<2x64xf32>
    %65 = math.tanh %64 : vector<2x64xf32>
    %cst_29 = arith.constant 5.000000e-01 : f32
    %66 = vector.broadcast %cst_29 : f32 to vector<2x64xf32>
    %67 = arith.mulf %66, %65 : vector<2x64xf32>
    %cst_30 = arith.constant 5.000000e-01 : f32
    %68 = vector.broadcast %cst_30 : f32 to vector<2x64xf32>
    %69 = arith.addf %67, %68 : vector<2x64xf32>
    %70 = vector.extract_strided_slice %60 {offsets = [0, 64], sizes = [2, 64], strides = [1, 1]} : vector<2x256xf32> to vector<2x64xf32>
    %cst_31 = arith.constant 5.000000e-01 : f32
    %71 = vector.broadcast %cst_31 : f32 to vector<2x64xf32>
    %72 = arith.mulf %71, %70 : vector<2x64xf32>
    %73 = math.tanh %72 : vector<2x64xf32>
    %cst_32 = arith.constant 5.000000e-01 : f32
    %74 = vector.broadcast %cst_32 : f32 to vector<2x64xf32>
    %75 = arith.mulf %74, %73 : vector<2x64xf32>
    %cst_33 = arith.constant 5.000000e-01 : f32
    %76 = vector.broadcast %cst_33 : f32 to vector<2x64xf32>
    %77 = arith.addf %75, %76 : vector<2x64xf32>
    %78 = vector.extract_strided_slice %60 {offsets = [0, 128], sizes = [2, 64], strides = [1, 1]} : vector<2x256xf32> to vector<2x64xf32>
    %79 = math.tanh %78 : vector<2x64xf32>
    %80 = vector.extract_strided_slice %60 {offsets = [0, 192], sizes = [2, 64], strides = [1, 1]} : vector<2x256xf32> to vector<2x64xf32>
    %cst_34 = arith.constant 5.000000e-01 : f32
    %81 = vector.broadcast %cst_34 : f32 to vector<2x64xf32>
    %82 = arith.mulf %81, %80 : vector<2x64xf32>
    %83 = math.tanh %82 : vector<2x64xf32>
    %cst_35 = arith.constant 5.000000e-01 : f32
    %84 = vector.broadcast %cst_35 : f32 to vector<2x64xf32>
    %85 = arith.mulf %84, %83 : vector<2x64xf32>
    %cst_36 = arith.constant 5.000000e-01 : f32
    %86 = vector.broadcast %cst_36 : f32 to vector<2x64xf32>
    %87 = arith.addf %85, %86 : vector<2x64xf32>
    %88 = arith.mulf %77, %61 : vector<2x64xf32>
    %89 = arith.mulf %69, %79 : vector<2x64xf32>
    %90 = arith.addf %88, %89 : vector<2x64xf32>
    %91 = math.tanh %90 : vector<2x64xf32>
    %92 = arith.mulf %87, %91 : vector<2x64xf32>
    %c2_i32_37 = arith.constant 2 : i32
    %93 = arith.muli %c0_i32, %c2_i32_37 : i32
    %94 = arith.index_cast %93 : i32 to index
    %c0_38 = arith.constant 0 : index
    %95 = vector.load %arg17[%94, %c0_38] : memref<16x64xf32, #tpu.memory_space<vmem>>, vector<2x64xf32>
    tpu.vector_store %arg17[%94, %c0_38], %57 {strides = array<i32>} : memref<16x64xf32, #tpu.memory_space<vmem>>, vector<2x64xf32>,
    %c2_i32_39 = arith.constant 2 : i32
    %96 = arith.muli %16, %c2_i32_39 : i32
    %97 = arith.index_cast %96 : i32 to index
    %c0_40 = arith.constant 0 : index
    %98 = vector.load %arg18[%97, %c0_40] : memref<16x64xf32, #tpu.memory_space<vmem>>, vector<2x64xf32>
    tpu.vector_store %arg18[%97, %c0_40], %92 {strides = array<i32>} : memref<16x64xf32, #tpu.memory_space<vmem>>, vector<2x64xf32>,
    %99 = tpu.concatenate %57, %92 in 1 : vector<2x64xf32>, vector<2x64xf32> -> vector<2x128xf32>
    %100 = tpu.concatenate %55, %90 in 1 : vector<2x64xf32>, vector<2x64xf32> -> vector<2x128xf32>
    %c1_i32 = arith.constant 1 : i32
    %101 = arith.truncf %99 : vector<2x128xf32> to vector<2x128xbf16>
    %cst_41 = arith.constant dense<0.000000e+00> : vector<2x512xf32>
    %102 = tpu.matmul %101, %12, %cst_41 {dimension_numbers = #tpu.dot_dimension_numbers<[1], [0], [0], [1], [0, 0, 1, 1], [], []>} : vector<2x128xbf16>, vector<128x512xbf16>, vector<2x512xf32> -> vector<2x512xf32>
    %c7_i32_42 = arith.constant 7 : i32
    %103 = arith.subi %c7_i32_42, %c1_i32 : i32
    %c2_i32_43 = arith.constant 2 : i32
    %104 = arith.muli %c1_i32, %c2_i32_43 : i32
    %105 = arith.index_cast %104 : i32 to index
    %c0_44 = arith.constant 0 : index
    %106 = vector.load %arg16[%105, %c0_44] : memref<16x512xf32, #tpu.memory_space<vmem>>, vector<2x512xf32>
    %c2_i32_45 = arith.constant 2 : i32
    %107 = arith.muli %103, %c2_i32_45 : i32
    %108 = arith.index_cast %107 : i32 to index
    %c0_46 = arith.constant 0 : index
    %109 = vector.load %arg16[%108, %c0_46] : memref<16x512xf32, #tpu.memory_space<vmem>>, vector<2x512xf32>
    %110 = vector.extract_strided_slice %106 {offsets = [0, 0], sizes = [2, 256], strides = [1, 1]} : vector<2x512xf32> to vector<2x256xf32>
    %111 = vector.extract_strided_slice %102 {offsets = [0, 0], sizes = [2, 256], strides = [1, 1]} : vector<2x512xf32> to vector<2x256xf32>
    %112 = arith.addf %110, %111 : vector<2x256xf32>
    %113 = vector.extract_strided_slice %100 {offsets = [0, 0], sizes = [2, 64], strides = [1, 1]} : vector<2x128xf32> to vector<2x64xf32>
    %114 = vector.extract_strided_slice %112 {offsets = [0, 0], sizes = [2, 64], strides = [1, 1]} : vector<2x256xf32> to vector<2x64xf32>
    %cst_47 = arith.constant 5.000000e-01 : f32
    %115 = vector.broadcast %cst_47 : f32 to vector<2x64xf32>
    %116 = arith.mulf %115, %114 : vector<2x64xf32>
    %117 = math.tanh %116 : vector<2x64xf32>
    %cst_48 = arith.constant 5.000000e-01 : f32
    %118 = vector.broadcast %cst_48 : f32 to vector<2x64xf32>
    %119 = arith.mulf %118, %117 : vector<2x64xf32>
    %cst_49 = arith.constant 5.000000e-01 : f32
    %120 = vector.broadcast %cst_49 : f32 to vector<2x64xf32>
    %121 = arith.addf %119, %120 : vector<2x64xf32>
    %122 = vector.extract_strided_slice %112 {offsets = [0, 64], sizes = [2, 64], strides = [1, 1]} : vector<2x256xf32> to vector<2x64xf32>
    %cst_50 = arith.constant 5.000000e-01 : f32
    %123 = vector.broadcast %cst_50 : f32 to vector<2x64xf32>
    %124 = arith.mulf %123, %122 : vector<2x64xf32>
    %125 = math.tanh %124 : vector<2x64xf32>
    %cst_51 = arith.constant 5.000000e-01 : f32
    %126 = vector.broadcast %cst_51 : f32 to vector<2x64xf32>
    %127 = arith.mulf %126, %125 : vector<2x64xf32>
    %cst_52 = arith.constant 5.000000e-01 : f32
    %128 = vector.broadcast %cst_52 : f32 to vector<2x64xf32>
    %129 = arith.addf %127, %128 : vector<2x64xf32>
    %130 = vector.extract_strided_slice %112 {offsets = [0, 128], sizes = [2, 64], strides = [1, 1]} : vector<2x256xf32> to vector<2x64xf32>
    %131 = math.tanh %130 : vector<2x64xf32>
    %132 = vector.extract_strided_slice %112 {offsets = [0, 192], sizes = [2, 64], strides = [1, 1]} : vector<2x256xf32> to vector<2x64xf32>
    %cst_53 = arith.constant 5.000000e-01 : f32
    %133 = vector.broadcast %cst_53 : f32 to vector<2x64xf32>
    %134 = arith.mulf %133, %132 : vector<2x64xf32>
    %135 = math.tanh %134 : vector<2x64xf32>
    %cst_54 = arith.constant 5.000000e-01 : f32
    %136 = vector.broadcast %cst_54 : f32 to vector<2x64xf32>
    %137 = arith.mulf %136, %135 : vector<2x64xf32>
    %cst_55 = arith.constant 5.000000e-01 : f32
    %138 = vector.broadcast %cst_55 : f32 to vector<2x64xf32>
    %139 = arith.addf %137, %138 : vector<2x64xf32>
    %140 = arith.mulf %129, %113 : vector<2x64xf32>
    %141 = arith.mulf %121, %131 : vector<2x64xf32>
    %142 = arith.addf %140, %141 : vector<2x64xf32>
    %143 = math.tanh %142 : vector<2x64xf32>
    %144 = arith.mulf %139, %143 : vector<2x64xf32>
    %145 = vector.extract_strided_slice %109 {offsets = [0, 256], sizes = [2, 256], strides = [1, 1]} : vector<2x512xf32> to vector<2x256xf32>
    %146 = vector.extract_strided_slice %102 {offsets = [0, 256], sizes = [2, 256], strides = [1, 1]} : vector<2x512xf32> to vector<2x256xf32>
    %147 = arith.addf %145, %146 : vector<2x256xf32>
    %148 = vector.extract_strided_slice %100 {offsets = [0, 64], sizes = [2, 64], strides = [1, 1]} : vector<2x128xf32> to vector<2x64xf32>
    %149 = vector.extract_strided_slice %147 {offsets = [0, 0], sizes = [2, 64], strides = [1, 1]} : vector<2x256xf32> to vector<2x64xf32>
    %cst_56 = arith.constant 5.000000e-01 : f32
    %150 = vector.broadcast %cst_56 : f32 to vector<2x64xf32>
    %151 = arith.mulf %150, %149 : vector<2x64xf32>
    %152 = math.tanh %151 : vector<2x64xf32>
    %cst_57 = arith.constant 5.000000e-01 : f32
    %153 = vector.broadcast %cst_57 : f32 to vector<2x64xf32>
    %154 = arith.mulf %153, %152 : vector<2x64xf32>
    %cst_58 = arith.constant 5.000000e-01 : f32
    %155 = vector.broadcast %cst_58 : f32 to vector<2x64xf32>
    %156 = arith.addf %154, %155 : vector<2x64xf32>
    %157 = vector.extract_strided_slice %147 {offsets = [0, 64], sizes = [2, 64], strides = [1, 1]} : vector<2x256xf32> to vector<2x64xf32>
    %cst_59 = arith.constant 5.000000e-01 : f32
    %158 = vector.broadcast %cst_59 : f32 to vector<2x64xf32>
    %159 = arith.mulf %158, %157 : vector<2x64xf32>
    %160 = math.tanh %159 : vector<2x64xf32>
    %cst_60 = arith.constant 5.000000e-01 : f32
    %161 = vector.broadcast %cst_60 : f32 to vector<2x64xf32>
    %162 = arith.mulf %161, %160 : vector<2x64xf32>
    %cst_61 = arith.constant 5.000000e-01 : f32
    %163 = vector.broadcast %cst_61 : f32 to vector<2x64xf32>
    %164 = arith.addf %162, %163 : vector<2x64xf32>
    %165 = vector.extract_strided_slice %147 {offsets = [0, 128], sizes = [2, 64], strides = [1, 1]} : vector<2x256xf32> to vector<2x64xf32>
    %166 = math.tanh %165 : vector<2x64xf32>
    %167 = vector.extract_strided_slice %147 {offsets = [0, 192], sizes = [2, 64], strides = [1, 1]} : vector<2x256xf32> to vector<2x64xf32>
    %cst_62 = arith.constant 5.000000e-01 : f32
    %168 = vector.broadcast %cst_62 : f32 to vector<2x64xf32>
    %169 = arith.mulf %168, %167 : vector<2x64xf32>
    %170 = math.tanh %169 : vector<2x64xf32>
    %cst_63 = arith.constant 5.000000e-01 : f32
    %171 = vector.broadcast %cst_63 : f32 to vector<2x64xf32>
    %172 = arith.mulf %171, %170 : vector<2x64xf32>
    %cst_64 = arith.constant 5.000000e-01 : f32
    %173 = vector.broadcast %cst_64 : f32 to vector<2x64xf32>
    %174 = arith.addf %172, %173 : vector<2x64xf32>
    %175 = arith.mulf %164, %148 : vector<2x64xf32>
    %176 = arith.mulf %156, %166 : vector<2x64xf32>
    %177 = arith.addf %175, %176 : vector<2x64xf32>
    %178 = math.tanh %177 : vector<2x64xf32>
    %179 = arith.mulf %174, %178 : vector<2x64xf32>
    %c2_i32_65 = arith.constant 2 : i32
    %180 = arith.muli %c1_i32, %c2_i32_65 : i32
    %181 = arith.index_cast %180 : i32 to index
    %c0_66 = arith.constant 0 : index
    %182 = vector.load %arg17[%181, %c0_66] : memref<16x64xf32, #tpu.memory_space<vmem>>, vector<2x64xf32>
    tpu.vector_store %arg17[%181, %c0_66], %144 {strides = array<i32>} : memref<16x64xf32, #tpu.memory_space<vmem>>, vector<2x64xf32>,
    %c2_i32_67 = arith.constant 2 : i32
    %183 = arith.muli %103, %c2_i32_67 : i32
    %184 = arith.index_cast %183 : i32 to index
    %c0_68 = arith.constant 0 : index
    %185 = vector.load %arg18[%184, %c0_68] : memref<16x64xf32, #tpu.memory_space<vmem>>, vector<2x64xf32>
    tpu.vector_store %arg18[%184, %c0_68], %179 {strides = array<i32>} : memref<16x64xf32, #tpu.memory_space<vmem>>, vector<2x64xf32>,
    %186 = tpu.concatenate %144, %179 in 1 : vector<2x64xf32>, vector<2x64xf32> -> vector<2x128xf32>
    %187 = tpu.concatenate %142, %177 in 1 : vector<2x64xf32>, vector<2x64xf32> -> vector<2x128xf32>
    %c2_i32_69 = arith.constant 2 : i32
    %188 = arith.truncf %186 : vector<2x128xf32> to vector<2x128xbf16>
    %cst_70 = arith.constant dense<0.000000e+00> : vector<2x512xf32>
    %189 = tpu.matmul %188, %12, %cst_70 {dimension_numbers = #tpu.dot_dimension_numbers<[1], [0], [0], [1], [0, 0, 1, 1], [], []>} : vector<2x128xbf16>, vector<128x512xbf16>, vector<2x512xf32> -> vector<2x512xf32>
    %c7_i32_71 = arith.constant 7 : i32
    %190 = arith.subi %c7_i32_71, %c2_i32_69 : i32
    %c2_i32_72 = arith.constant 2 : i32
    %191 = arith.muli %c2_i32_69, %c2_i32_72 : i32
    %192 = arith.index_cast %191 : i32 to index
    %c0_73 = arith.constant 0 : index
    %193 = vector.load %arg16[%192, %c0_73] : memref<16x512xf32, #tpu.memory_space<vmem>>, vector<2x512xf32>
    %c2_i32_74 = arith.constant 2 : i32
    %194 = arith.muli %190, %c2_i32_74 : i32
    %195 = arith.index_cast %194 : i32 to index
    %c0_75 = arith.constant 0 : index
    %196 = vector.load %arg16[%195, %c0_75] : memref<16x512xf32, #tpu.memory_space<vmem>>, vector<2x512xf32>
    %197 = vector.extract_strided_slice %193 {offsets = [0, 0], sizes = [2, 256], strides = [1, 1]} : vector<2x512xf32> to vector<2x256xf32>
    %198 = vector.extract_strided_slice %189 {offsets = [0, 0], sizes = [2, 256], strides = [1, 1]} : vector<2x512xf32> to vector<2x256xf32>
    %199 = arith.addf %197, %198 : vector<2x256xf32>
    %200 = vector.extract_strided_slice %187 {offsets = [0, 0], sizes = [2, 64], strides = [1, 1]} : vector<2x128xf32> to vector<2x64xf32>
    %201 = vector.extract_strided_slice %199 {offsets = [0, 0], sizes = [2, 64], strides = [1, 1]} : vector<2x256xf32> to vector<2x64xf32>
    %cst_76 = arith.constant 5.000000e-01 : f32
    %202 = vector.broadcast %cst_76 : f32 to vector<2x64xf32>
    %203 = arith.mulf %202, %201 : vector<2x64xf32>
    %204 = math.tanh %203 : vector<2x64xf32>
    %cst_77 = arith.constant 5.000000e-01 : f32
    %205 = vector.broadcast %cst_77 : f32 to vector<2x64xf32>
    %206 = arith.mulf %205, %204 : vector<2x64xf32>
    %cst_78 = arith.constant 5.000000e-01 : f32
    %207 = vector.broadcast %cst_78 : f32 to vector<2x64xf32>
    %208 = arith.addf %206, %207 : vector<2x64xf32>
    %209 = vector.extract_strided_slice %199 {offsets = [0, 64], sizes = [2, 64], strides = [1, 1]} : vector<2x256xf32> to vector<2x64xf32>
    %cst_79 = arith.constant 5.000000e-01 : f32
    %210 = vector.broadcast %cst_79 : f32 to vector<2x64xf32>
    %211 = arith.mulf %210, %209 : vector<2x64xf32>
    %212 = math.tanh %211 : vector<2x64xf32>
    %cst_80 = arith.constant 5.000000e-01 : f32
    %213 = vector.broadcast %cst_80 : f32 to vector<2x64xf32>
    %214 = arith.mulf %213, %212 : vector<2x64xf32>
    %cst_81 = arith.constant 5.000000e-01 : f32
    %215 = vector.broadcast %cst_81 : f32 to vector<2x64xf32>
    %216 = arith.addf %214, %215 : vector<2x64xf32>
    %217 = vector.extract_strided_slice %199 {offsets = [0, 128], sizes = [2, 64], strides = [1, 1]} : vector<2x256xf32> to vector<2x64xf32>
    %218 = math.tanh %217 : vector<2x64xf32>
    %219 = vector.extract_strided_slice %199 {offsets = [0, 192], sizes = [2, 64], strides = [1, 1]} : vector<2x256xf32> to vector<2x64xf32>
    %cst_82 = arith.constant 5.000000e-01 : f32
    %220 = vector.broadcast %cst_82 : f32 to vector<2x64xf32>
    %221 = arith.mulf %220, %219 : vector<2x64xf32>
    %222 = math.tanh %221 : vector<2x64xf32>
    %cst_83 = arith.constant 5.000000e-01 : f32
    %223 = vector.broadcast %cst_83 : f32 to vector<2x64xf32>
    %224 = arith.mulf %223, %222 : vector<2x64xf32>
    %cst_84 = arith.constant 5.000000e-01 : f32
    %225 = vector.broadcast %cst_84 : f32 to vector<2x64xf32>
    %226 = arith.addf %224, %225 : vector<2x64xf32>
    %227 = arith.mulf %216, %200 : vector<2x64xf32>
    %228 = arith.mulf %208, %218 : vector<2x64xf32>
    %229 = arith.addf %227, %228 : vector<2x64xf32>
    %230 = math.tanh %229 : vector<2x64xf32>
    %231 = arith.mulf %226, %230 : vector<2x64xf32>
    %232 = vector.extract_strided_slice %196 {offsets = [0, 256], sizes = [2, 256], strides = [1, 1]} : vector<2x512xf32> to vector<2x256xf32>
    %233 = vector.extract_strided_slice %189 {offsets = [0, 256], sizes = [2, 256], strides = [1, 1]} : vector<2x512xf32> to vector<2x256xf32>
    %234 = arith.addf %232, %233 : vector<2x256xf32>
    %235 = vector.extract_strided_slice %187 {offsets = [0, 64], sizes = [2, 64], strides = [1, 1]} : vector<2x128xf32> to vector<2x64xf32>
    %236 = vector.extract_strided_slice %234 {offsets = [0, 0], sizes = [2, 64], strides = [1, 1]} : vector<2x256xf32> to vector<2x64xf32>
    %cst_85 = arith.constant 5.000000e-01 : f32
    %237 = vector.broadcast %cst_85 : f32 to vector<2x64xf32>
    %238 = arith.mulf %237, %236 : vector<2x64xf32>
    %239 = math.tanh %238 : vector<2x64xf32>
    %cst_86 = arith.constant 5.000000e-01 : f32
    %240 = vector.broadcast %cst_86 : f32 to vector<2x64xf32>
    %241 = arith.mulf %240, %239 : vector<2x64xf32>
    %cst_87 = arith.constant 5.000000e-01 : f32
    %242 = vector.broadcast %cst_87 : f32 to vector<2x64xf32>
    %243 = arith.addf %241, %242 : vector<2x64xf32>
    %244 = vector.extract_strided_slice %234 {offsets = [0, 64], sizes = [2, 64], strides = [1, 1]} : vector<2x256xf32> to vector<2x64xf32>
    %cst_88 = arith.constant 5.000000e-01 : f32
    %245 = vector.broadcast %cst_88 : f32 to vector<2x64xf32>
    %246 = arith.mulf %245, %244 : vector<2x64xf32>
    %247 = math.tanh %246 : vector<2x64xf32>
    %cst_89 = arith.constant 5.000000e-01 : f32
    %248 = vector.broadcast %cst_89 : f32 to vector<2x64xf32>
    %249 = arith.mulf %248, %247 : vector<2x64xf32>
    %cst_90 = arith.constant 5.000000e-01 : f32
    %250 = vector.broadcast %cst_90 : f32 to vector<2x64xf32>
    %251 = arith.addf %249, %250 : vector<2x64xf32>
    %252 = vector.extract_strided_slice %234 {offsets = [0, 128], sizes = [2, 64], strides = [1, 1]} : vector<2x256xf32> to vector<2x64xf32>
    %253 = math.tanh %252 : vector<2x64xf32>
    %254 = vector.extract_strided_slice %234 {offsets = [0, 192], sizes = [2, 64], strides = [1, 1]} : vector<2x256xf32> to vector<2x64xf32>
    %cst_91 = arith.constant 5.000000e-01 : f32
    %255 = vector.broadcast %cst_91 : f32 to vector<2x64xf32>
    %256 = arith.mulf %255, %254 : vector<2x64xf32>
    %257 = math.tanh %256 : vector<2x64xf32>
    %cst_92 = arith.constant 5.000000e-01 : f32
    %258 = vector.broadcast %cst_92 : f32 to vector<2x64xf32>
    %259 = arith.mulf %258, %257 : vector<2x64xf32>
    %cst_93 = arith.constant 5.000000e-01 : f32
    %260 = vector.broadcast %cst_93 : f32 to vector<2x64xf32>
    %261 = arith.addf %259, %260 : vector<2x64xf32>
    %262 = arith.mulf %251, %235 : vector<2x64xf32>
    %263 = arith.mulf %243, %253 : vector<2x64xf32>
    %264 = arith.addf %262, %263 : vector<2x64xf32>
    %265 = math.tanh %264 : vector<2x64xf32>
    %266 = arith.mulf %261, %265 : vector<2x64xf32>
    %c2_i32_94 = arith.constant 2 : i32
    %267 = arith.muli %c2_i32_69, %c2_i32_94 : i32
    %268 = arith.index_cast %267 : i32 to index
    %c0_95 = arith.constant 0 : index
    %269 = vector.load %arg17[%268, %c0_95] : memref<16x64xf32, #tpu.memory_space<vmem>>, vector<2x64xf32>
    tpu.vector_store %arg17[%268, %c0_95], %231 {strides = array<i32>} : memref<16x64xf32, #tpu.memory_space<vmem>>, vector<2x64xf32>,
    %c2_i32_96 = arith.constant 2 : i32
    %270 = arith.muli %190, %c2_i32_96 : i32
    %271 = arith.index_cast %270 : i32 to index
    %c0_97 = arith.constant 0 : index
    %272 = vector.load %arg18[%271, %c0_97] : memref<16x64xf32, #tpu.memory_space<vmem>>, vector<2x64xf32>
    tpu.vector_store %arg18[%271, %c0_97], %266 {strides = array<i32>} : memref<16x64xf32, #tpu.memory_space<vmem>>, vector<2x64xf32>,
    %273 = tpu.concatenate %231, %266 in 1 : vector<2x64xf32>, vector<2x64xf32> -> vector<2x128xf32>
    %274 = tpu.concatenate %229, %264 in 1 : vector<2x64xf32>, vector<2x64xf32> -> vector<2x128xf32>
    %c3_i32 = arith.constant 3 : i32
    %275 = arith.truncf %273 : vector<2x128xf32> to vector<2x128xbf16>
    %cst_98 = arith.constant dense<0.000000e+00> : vector<2x512xf32>
    %276 = tpu.matmul %275, %12, %cst_98 {dimension_numbers = #tpu.dot_dimension_numbers<[1], [0], [0], [1], [0, 0, 1, 1], [], []>} : vector<2x128xbf16>, vector<128x512xbf16>, vector<2x512xf32> -> vector<2x512xf32>
    %c7_i32_99 = arith.constant 7 : i32
    %277 = arith.subi %c7_i32_99, %c3_i32 : i32
    %c2_i32_100 = arith.constant 2 : i32
    %278 = arith.muli %c3_i32, %c2_i32_100 : i32
    %279 = arith.index_cast %278 : i32 to index
    %c0_101 = arith.constant 0 : index
    %280 = vector.load %arg16[%279, %c0_101] : memref<16x512xf32, #tpu.memory_space<vmem>>, vector<2x512xf32>
    %c2_i32_102 = arith.constant 2 : i32
    %281 = arith.muli %277, %c2_i32_102 : i32
    %282 = arith.index_cast %281 : i32 to index
    %c0_103 = arith.constant 0 : index
    %283 = vector.load %arg16[%282, %c0_103] : memref<16x512xf32, #tpu.memory_space<vmem>>, vector<2x512xf32>
    %284 = vector.extract_strided_slice %280 {offsets = [0, 0], sizes = [2, 256], strides = [1, 1]} : vector<2x512xf32> to vector<2x256xf32>
    %285 = vector.extract_strided_slice %276 {offsets = [0, 0], sizes = [2, 256], strides = [1, 1]} : vector<2x512xf32> to vector<2x256xf32>
    %286 = arith.addf %284, %285 : vector<2x256xf32>
    %287 = vector.extract_strided_slice %274 {offsets = [0, 0], sizes = [2, 64], strides = [1, 1]} : vector<2x128xf32> to vector<2x64xf32>
    %288 = vector.extract_strided_slice %286 {offsets = [0, 0], sizes = [2, 64], strides = [1, 1]} : vector<2x256xf32> to vector<2x64xf32>
    %cst_104 = arith.constant 5.000000e-01 : f32
    %289 = vector.broadcast %cst_104 : f32 to vector<2x64xf32>
    %290 = arith.mulf %289, %288 : vector<2x64xf32>
    %291 = math.tanh %290 : vector<2x64xf32>
    %cst_105 = arith.constant 5.000000e-01 : f32
    %292 = vector.broadcast %cst_105 : f32 to vector<2x64xf32>
    %293 = arith.mulf %292, %291 : vector<2x64xf32>
    %cst_106 = arith.constant 5.000000e-01 : f32
    %294 = vector.broadcast %cst_106 : f32 to vector<2x64xf32>
    %295 = arith.addf %293, %294 : vector<2x64xf32>
    %296 = vector.extract_strided_slice %286 {offsets = [0, 64], sizes = [2, 64], strides = [1, 1]} : vector<2x256xf32> to vector<2x64xf32>
    %cst_107 = arith.constant 5.000000e-01 : f32
    %297 = vector.broadcast %cst_107 : f32 to vector<2x64xf32>
    %298 = arith.mulf %297, %296 : vector<2x64xf32>
    %299 = math.tanh %298 : vector<2x64xf32>
    %cst_108 = arith.constant 5.000000e-01 : f32
    %300 = vector.broadcast %cst_108 : f32 to vector<2x64xf32>
    %301 = arith.mulf %300, %299 : vector<2x64xf32>
    %cst_109 = arith.constant 5.000000e-01 : f32
    %302 = vector.broadcast %cst_109 : f32 to vector<2x64xf32>
    %303 = arith.addf %301, %302 : vector<2x64xf32>
    %304 = vector.extract_strided_slice %286 {offsets = [0, 128], sizes = [2, 64], strides = [1, 1]} : vector<2x256xf32> to vector<2x64xf32>
    %305 = math.tanh %304 : vector<2x64xf32>
    %306 = vector.extract_strided_slice %286 {offsets = [0, 192], sizes = [2, 64], strides = [1, 1]} : vector<2x256xf32> to vector<2x64xf32>
    %cst_110 = arith.constant 5.000000e-01 : f32
    %307 = vector.broadcast %cst_110 : f32 to vector<2x64xf32>
    %308 = arith.mulf %307, %306 : vector<2x64xf32>
    %309 = math.tanh %308 : vector<2x64xf32>
    %cst_111 = arith.constant 5.000000e-01 : f32
    %310 = vector.broadcast %cst_111 : f32 to vector<2x64xf32>
    %311 = arith.mulf %310, %309 : vector<2x64xf32>
    %cst_112 = arith.constant 5.000000e-01 : f32
    %312 = vector.broadcast %cst_112 : f32 to vector<2x64xf32>
    %313 = arith.addf %311, %312 : vector<2x64xf32>
    %314 = arith.mulf %303, %287 : vector<2x64xf32>
    %315 = arith.mulf %295, %305 : vector<2x64xf32>
    %316 = arith.addf %314, %315 : vector<2x64xf32>
    %317 = math.tanh %316 : vector<2x64xf32>
    %318 = arith.mulf %313, %317 : vector<2x64xf32>
    %319 = vector.extract_strided_slice %283 {offsets = [0, 256], sizes = [2, 256], strides = [1, 1]} : vector<2x512xf32> to vector<2x256xf32>
    %320 = vector.extract_strided_slice %276 {offsets = [0, 256], sizes = [2, 256], strides = [1, 1]} : vector<2x512xf32> to vector<2x256xf32>
    %321 = arith.addf %319, %320 : vector<2x256xf32>
    %322 = vector.extract_strided_slice %274 {offsets = [0, 64], sizes = [2, 64], strides = [1, 1]} : vector<2x128xf32> to vector<2x64xf32>
    %323 = vector.extract_strided_slice %321 {offsets = [0, 0], sizes = [2, 64], strides = [1, 1]} : vector<2x256xf32> to vector<2x64xf32>
    %cst_113 = arith.constant 5.000000e-01 : f32
    %324 = vector.broadcast %cst_113 : f32 to vector<2x64xf32>
    %325 = arith.mulf %324, %323 : vector<2x64xf32>
    %326 = math.tanh %325 : vector<2x64xf32>
    %cst_114 = arith.constant 5.000000e-01 : f32
    %327 = vector.broadcast %cst_114 : f32 to vector<2x64xf32>
    %328 = arith.mulf %327, %326 : vector<2x64xf32>
    %cst_115 = arith.constant 5.000000e-01 : f32
    %329 = vector.broadcast %cst_115 : f32 to vector<2x64xf32>
    %330 = arith.addf %328, %329 : vector<2x64xf32>
    %331 = vector.extract_strided_slice %321 {offsets = [0, 64], sizes = [2, 64], strides = [1, 1]} : vector<2x256xf32> to vector<2x64xf32>
    %cst_116 = arith.constant 5.000000e-01 : f32
    %332 = vector.broadcast %cst_116 : f32 to vector<2x64xf32>
    %333 = arith.mulf %332, %331 : vector<2x64xf32>
    %334 = math.tanh %333 : vector<2x64xf32>
    %cst_117 = arith.constant 5.000000e-01 : f32
    %335 = vector.broadcast %cst_117 : f32 to vector<2x64xf32>
    %336 = arith.mulf %335, %334 : vector<2x64xf32>
    %cst_118 = arith.constant 5.000000e-01 : f32
    %337 = vector.broadcast %cst_118 : f32 to vector<2x64xf32>
    %338 = arith.addf %336, %337 : vector<2x64xf32>
    %339 = vector.extract_strided_slice %321 {offsets = [0, 128], sizes = [2, 64], strides = [1, 1]} : vector<2x256xf32> to vector<2x64xf32>
    %340 = math.tanh %339 : vector<2x64xf32>
    %341 = vector.extract_strided_slice %321 {offsets = [0, 192], sizes = [2, 64], strides = [1, 1]} : vector<2x256xf32> to vector<2x64xf32>
    %cst_119 = arith.constant 5.000000e-01 : f32
    %342 = vector.broadcast %cst_119 : f32 to vector<2x64xf32>
    %343 = arith.mulf %342, %341 : vector<2x64xf32>
    %344 = math.tanh %343 : vector<2x64xf32>
    %cst_120 = arith.constant 5.000000e-01 : f32
    %345 = vector.broadcast %cst_120 : f32 to vector<2x64xf32>
    %346 = arith.mulf %345, %344 : vector<2x64xf32>
    %cst_121 = arith.constant 5.000000e-01 : f32
    %347 = vector.broadcast %cst_121 : f32 to vector<2x64xf32>
    %348 = arith.addf %346, %347 : vector<2x64xf32>
    %349 = arith.mulf %338, %322 : vector<2x64xf32>
    %350 = arith.mulf %330, %340 : vector<2x64xf32>
    %351 = arith.addf %349, %350 : vector<2x64xf32>
    %352 = math.tanh %351 : vector<2x64xf32>
    %353 = arith.mulf %348, %352 : vector<2x64xf32>
    %c2_i32_122 = arith.constant 2 : i32
    %354 = arith.muli %c3_i32, %c2_i32_122 : i32
    %355 = arith.index_cast %354 : i32 to index
    %c0_123 = arith.constant 0 : index
    %356 = vector.load %arg17[%355, %c0_123] : memref<16x64xf32, #tpu.memory_space<vmem>>, vector<2x64xf32>
    tpu.vector_store %arg17[%355, %c0_123], %318 {strides = array<i32>} : memref<16x64xf32, #tpu.memory_space<vmem>>, vector<2x64xf32>,
    %c2_i32_124 = arith.constant 2 : i32
    %357 = arith.muli %277, %c2_i32_124 : i32
    %358 = arith.index_cast %357 : i32 to index
    %c0_125 = arith.constant 0 : index
    %359 = vector.load %arg18[%358, %c0_125] : memref<16x64xf32, #tpu.memory_space<vmem>>, vector<2x64xf32>
    tpu.vector_store %arg18[%358, %c0_125], %353 {strides = array<i32>} : memref<16x64xf32, #tpu.memory_space<vmem>>, vector<2x64xf32>,
    %360 = tpu.concatenate %318, %353 in 1 : vector<2x64xf32>, vector<2x64xf32> -> vector<2x128xf32>
    %361 = tpu.concatenate %316, %351 in 1 : vector<2x64xf32>, vector<2x64xf32> -> vector<2x128xf32>
    %c4_i32 = arith.constant 4 : i32
    %362 = arith.truncf %360 : vector<2x128xf32> to vector<2x128xbf16>
    %cst_126 = arith.constant dense<0.000000e+00> : vector<2x512xf32>
    %363 = tpu.matmul %362, %12, %cst_126 {dimension_numbers = #tpu.dot_dimension_numbers<[1], [0], [0], [1], [0, 0, 1, 1], [], []>} : vector<2x128xbf16>, vector<128x512xbf16>, vector<2x512xf32> -> vector<2x512xf32>
    %c7_i32_127 = arith.constant 7 : i32
    %364 = arith.subi %c7_i32_127, %c4_i32 : i32
    %c2_i32_128 = arith.constant 2 : i32
    %365 = arith.muli %c4_i32, %c2_i32_128 : i32
    %366 = arith.index_cast %365 : i32 to index
    %c0_129 = arith.constant 0 : index
    %367 = vector.load %arg16[%366, %c0_129] : memref<16x512xf32, #tpu.memory_space<vmem>>, vector<2x512xf32>
    %c2_i32_130 = arith.constant 2 : i32
    %368 = arith.muli %364, %c2_i32_130 : i32
    %369 = arith.index_cast %368 : i32 to index
    %c0_131 = arith.constant 0 : index
    %370 = vector.load %arg16[%369, %c0_131] : memref<16x512xf32, #tpu.memory_space<vmem>>, vector<2x512xf32>
    %371 = vector.extract_strided_slice %367 {offsets = [0, 0], sizes = [2, 256], strides = [1, 1]} : vector<2x512xf32> to vector<2x256xf32>
    %372 = vector.extract_strided_slice %363 {offsets = [0, 0], sizes = [2, 256], strides = [1, 1]} : vector<2x512xf32> to vector<2x256xf32>
    %373 = arith.addf %371, %372 : vector<2x256xf32>
    %374 = vector.extract_strided_slice %361 {offsets = [0, 0], sizes = [2, 64], strides = [1, 1]} : vector<2x128xf32> to vector<2x64xf32>
    %375 = vector.extract_strided_slice %373 {offsets = [0, 0], sizes = [2, 64], strides = [1, 1]} : vector<2x256xf32> to vector<2x64xf32>
    %cst_132 = arith.constant 5.000000e-01 : f32
    %376 = vector.broadcast %cst_132 : f32 to vector<2x64xf32>
    %377 = arith.mulf %376, %375 : vector<2x64xf32>
    %378 = math.tanh %377 : vector<2x64xf32>
    %cst_133 = arith.constant 5.000000e-01 : f32
    %379 = vector.broadcast %cst_133 : f32 to vector<2x64xf32>
    %380 = arith.mulf %379, %378 : vector<2x64xf32>
    %cst_134 = arith.constant 5.000000e-01 : f32
    %381 = vector.broadcast %cst_134 : f32 to vector<2x64xf32>
    %382 = arith.addf %380, %381 : vector<2x64xf32>
    %383 = vector.extract_strided_slice %373 {offsets = [0, 64], sizes = [2, 64], strides = [1, 1]} : vector<2x256xf32> to vector<2x64xf32>
    %cst_135 = arith.constant 5.000000e-01 : f32
    %384 = vector.broadcast %cst_135 : f32 to vector<2x64xf32>
    %385 = arith.mulf %384, %383 : vector<2x64xf32>
    %386 = math.tanh %385 : vector<2x64xf32>
    %cst_136 = arith.constant 5.000000e-01 : f32
    %387 = vector.broadcast %cst_136 : f32 to vector<2x64xf32>
    %388 = arith.mulf %387, %386 : vector<2x64xf32>
    %cst_137 = arith.constant 5.000000e-01 : f32
    %389 = vector.broadcast %cst_137 : f32 to vector<2x64xf32>
    %390 = arith.addf %388, %389 : vector<2x64xf32>
    %391 = vector.extract_strided_slice %373 {offsets = [0, 128], sizes = [2, 64], strides = [1, 1]} : vector<2x256xf32> to vector<2x64xf32>
    %392 = math.tanh %391 : vector<2x64xf32>
    %393 = vector.extract_strided_slice %373 {offsets = [0, 192], sizes = [2, 64], strides = [1, 1]} : vector<2x256xf32> to vector<2x64xf32>
    %cst_138 = arith.constant 5.000000e-01 : f32
    %394 = vector.broadcast %cst_138 : f32 to vector<2x64xf32>
    %395 = arith.mulf %394, %393 : vector<2x64xf32>
    %396 = math.tanh %395 : vector<2x64xf32>
    %cst_139 = arith.constant 5.000000e-01 : f32
    %397 = vector.broadcast %cst_139 : f32 to vector<2x64xf32>
    %398 = arith.mulf %397, %396 : vector<2x64xf32>
    %cst_140 = arith.constant 5.000000e-01 : f32
    %399 = vector.broadcast %cst_140 : f32 to vector<2x64xf32>
    %400 = arith.addf %398, %399 : vector<2x64xf32>
    %401 = arith.mulf %390, %374 : vector<2x64xf32>
    %402 = arith.mulf %382, %392 : vector<2x64xf32>
    %403 = arith.addf %401, %402 : vector<2x64xf32>
    %404 = math.tanh %403 : vector<2x64xf32>
    %405 = arith.mulf %400, %404 : vector<2x64xf32>
    %406 = vector.extract_strided_slice %370 {offsets = [0, 256], sizes = [2, 256], strides = [1, 1]} : vector<2x512xf32> to vector<2x256xf32>
    %407 = vector.extract_strided_slice %363 {offsets = [0, 256], sizes = [2, 256], strides = [1, 1]} : vector<2x512xf32> to vector<2x256xf32>
    %408 = arith.addf %406, %407 : vector<2x256xf32>
    %409 = vector.extract_strided_slice %361 {offsets = [0, 64], sizes = [2, 64], strides = [1, 1]} : vector<2x128xf32> to vector<2x64xf32>
    %410 = vector.extract_strided_slice %408 {offsets = [0, 0], sizes = [2, 64], strides = [1, 1]} : vector<2x256xf32> to vector<2x64xf32>
    %cst_141 = arith.constant 5.000000e-01 : f32
    %411 = vector.broadcast %cst_141 : f32 to vector<2x64xf32>
    %412 = arith.mulf %411, %410 : vector<2x64xf32>
    %413 = math.tanh %412 : vector<2x64xf32>
    %cst_142 = arith.constant 5.000000e-01 : f32
    %414 = vector.broadcast %cst_142 : f32 to vector<2x64xf32>
    %415 = arith.mulf %414, %413 : vector<2x64xf32>
    %cst_143 = arith.constant 5.000000e-01 : f32
    %416 = vector.broadcast %cst_143 : f32 to vector<2x64xf32>
    %417 = arith.addf %415, %416 : vector<2x64xf32>
    %418 = vector.extract_strided_slice %408 {offsets = [0, 64], sizes = [2, 64], strides = [1, 1]} : vector<2x256xf32> to vector<2x64xf32>
    %cst_144 = arith.constant 5.000000e-01 : f32
    %419 = vector.broadcast %cst_144 : f32 to vector<2x64xf32>
    %420 = arith.mulf %419, %418 : vector<2x64xf32>
    %421 = math.tanh %420 : vector<2x64xf32>
    %cst_145 = arith.constant 5.000000e-01 : f32
    %422 = vector.broadcast %cst_145 : f32 to vector<2x64xf32>
    %423 = arith.mulf %422, %421 : vector<2x64xf32>
    %cst_146 = arith.constant 5.000000e-01 : f32
    %424 = vector.broadcast %cst_146 : f32 to vector<2x64xf32>
    %425 = arith.addf %423, %424 : vector<2x64xf32>
    %426 = vector.extract_strided_slice %408 {offsets = [0, 128], sizes = [2, 64], strides = [1, 1]} : vector<2x256xf32> to vector<2x64xf32>
    %427 = math.tanh %426 : vector<2x64xf32>
    %428 = vector.extract_strided_slice %408 {offsets = [0, 192], sizes = [2, 64], strides = [1, 1]} : vector<2x256xf32> to vector<2x64xf32>
    %cst_147 = arith.constant 5.000000e-01 : f32
    %429 = vector.broadcast %cst_147 : f32 to vector<2x64xf32>
    %430 = arith.mulf %429, %428 : vector<2x64xf32>
    %431 = math.tanh %430 : vector<2x64xf32>
    %cst_148 = arith.constant 5.000000e-01 : f32
    %432 = vector.broadcast %cst_148 : f32 to vector<2x64xf32>
    %433 = arith.mulf %432, %431 : vector<2x64xf32>
    %cst_149 = arith.constant 5.000000e-01 : f32
    %434 = vector.broadcast %cst_149 : f32 to vector<2x64xf32>
    %435 = arith.addf %433, %434 : vector<2x64xf32>
    %436 = arith.mulf %425, %409 : vector<2x64xf32>
    %437 = arith.mulf %417, %427 : vector<2x64xf32>
    %438 = arith.addf %436, %437 : vector<2x64xf32>
    %439 = math.tanh %438 : vector<2x64xf32>
    %440 = arith.mulf %435, %439 : vector<2x64xf32>
    %c2_i32_150 = arith.constant 2 : i32
    %441 = arith.muli %c4_i32, %c2_i32_150 : i32
    %442 = arith.index_cast %441 : i32 to index
    %c0_151 = arith.constant 0 : index
    %443 = vector.load %arg17[%442, %c0_151] : memref<16x64xf32, #tpu.memory_space<vmem>>, vector<2x64xf32>
    tpu.vector_store %arg17[%442, %c0_151], %405 {strides = array<i32>} : memref<16x64xf32, #tpu.memory_space<vmem>>, vector<2x64xf32>,
    %c2_i32_152 = arith.constant 2 : i32
    %444 = arith.muli %364, %c2_i32_152 : i32
    %445 = arith.index_cast %444 : i32 to index
    %c0_153 = arith.constant 0 : index
    %446 = vector.load %arg18[%445, %c0_153] : memref<16x64xf32, #tpu.memory_space<vmem>>, vector<2x64xf32>
    tpu.vector_store %arg18[%445, %c0_153], %440 {strides = array<i32>} : memref<16x64xf32, #tpu.memory_space<vmem>>, vector<2x64xf32>,
    %447 = tpu.concatenate %405, %440 in 1 : vector<2x64xf32>, vector<2x64xf32> -> vector<2x128xf32>
    %448 = tpu.concatenate %403, %438 in 1 : vector<2x64xf32>, vector<2x64xf32> -> vector<2x128xf32>
    %c5_i32 = arith.constant 5 : i32
    %449 = arith.truncf %447 : vector<2x128xf32> to vector<2x128xbf16>
    %cst_154 = arith.constant dense<0.000000e+00> : vector<2x512xf32>
    %450 = tpu.matmul %449, %12, %cst_154 {dimension_numbers = #tpu.dot_dimension_numbers<[1], [0], [0], [1], [0, 0, 1, 1], [], []>} : vector<2x128xbf16>, vector<128x512xbf16>, vector<2x512xf32> -> vector<2x512xf32>
    %c7_i32_155 = arith.constant 7 : i32
    %451 = arith.subi %c7_i32_155, %c5_i32 : i32
    %c2_i32_156 = arith.constant 2 : i32
    %452 = arith.muli %c5_i32, %c2_i32_156 : i32
    %453 = arith.index_cast %452 : i32 to index
    %c0_157 = arith.constant 0 : index
    %454 = vector.load %arg16[%453, %c0_157] : memref<16x512xf32, #tpu.memory_space<vmem>>, vector<2x512xf32>
    %c2_i32_158 = arith.constant 2 : i32
    %455 = arith.muli %451, %c2_i32_158 : i32
    %456 = arith.index_cast %455 : i32 to index
    %c0_159 = arith.constant 0 : index
    %457 = vector.load %arg16[%456, %c0_159] : memref<16x512xf32, #tpu.memory_space<vmem>>, vector<2x512xf32>
    %458 = vector.extract_strided_slice %454 {offsets = [0, 0], sizes = [2, 256], strides = [1, 1]} : vector<2x512xf32> to vector<2x256xf32>
    %459 = vector.extract_strided_slice %450 {offsets = [0, 0], sizes = [2, 256], strides = [1, 1]} : vector<2x512xf32> to vector<2x256xf32>
    %460 = arith.addf %458, %459 : vector<2x256xf32>
    %461 = vector.extract_strided_slice %448 {offsets = [0, 0], sizes = [2, 64], strides = [1, 1]} : vector<2x128xf32> to vector<2x64xf32>
    %462 = vector.extract_strided_slice %460 {offsets = [0, 0], sizes = [2, 64], strides = [1, 1]} : vector<2x256xf32> to vector<2x64xf32>
    %cst_160 = arith.constant 5.000000e-01 : f32
    %463 = vector.broadcast %cst_160 : f32 to vector<2x64xf32>
    %464 = arith.mulf %463, %462 : vector<2x64xf32>
    %465 = math.tanh %464 : vector<2x64xf32>
    %cst_161 = arith.constant 5.000000e-01 : f32
    %466 = vector.broadcast %cst_161 : f32 to vector<2x64xf32>
    %467 = arith.mulf %466, %465 : vector<2x64xf32>
    %cst_162 = arith.constant 5.000000e-01 : f32
    %468 = vector.broadcast %cst_162 : f32 to vector<2x64xf32>
    %469 = arith.addf %467, %468 : vector<2x64xf32>
    %470 = vector.extract_strided_slice %460 {offsets = [0, 64], sizes = [2, 64], strides = [1, 1]} : vector<2x256xf32> to vector<2x64xf32>
    %cst_163 = arith.constant 5.000000e-01 : f32
    %471 = vector.broadcast %cst_163 : f32 to vector<2x64xf32>
    %472 = arith.mulf %471, %470 : vector<2x64xf32>
    %473 = math.tanh %472 : vector<2x64xf32>
    %cst_164 = arith.constant 5.000000e-01 : f32
    %474 = vector.broadcast %cst_164 : f32 to vector<2x64xf32>
    %475 = arith.mulf %474, %473 : vector<2x64xf32>
    %cst_165 = arith.constant 5.000000e-01 : f32
    %476 = vector.broadcast %cst_165 : f32 to vector<2x64xf32>
    %477 = arith.addf %475, %476 : vector<2x64xf32>
    %478 = vector.extract_strided_slice %460 {offsets = [0, 128], sizes = [2, 64], strides = [1, 1]} : vector<2x256xf32> to vector<2x64xf32>
    %479 = math.tanh %478 : vector<2x64xf32>
    %480 = vector.extract_strided_slice %460 {offsets = [0, 192], sizes = [2, 64], strides = [1, 1]} : vector<2x256xf32> to vector<2x64xf32>
    %cst_166 = arith.constant 5.000000e-01 : f32
    %481 = vector.broadcast %cst_166 : f32 to vector<2x64xf32>
    %482 = arith.mulf %481, %480 : vector<2x64xf32>
    %483 = math.tanh %482 : vector<2x64xf32>
    %cst_167 = arith.constant 5.000000e-01 : f32
    %484 = vector.broadcast %cst_167 : f32 to vector<2x64xf32>
    %485 = arith.mulf %484, %483 : vector<2x64xf32>
    %cst_168 = arith.constant 5.000000e-01 : f32
    %486 = vector.broadcast %cst_168 : f32 to vector<2x64xf32>
    %487 = arith.addf %485, %486 : vector<2x64xf32>
    %488 = arith.mulf %477, %461 : vector<2x64xf32>
    %489 = arith.mulf %469, %479 : vector<2x64xf32>
    %490 = arith.addf %488, %489 : vector<2x64xf32>
    %491 = math.tanh %490 : vector<2x64xf32>
    %492 = arith.mulf %487, %491 : vector<2x64xf32>
    %493 = vector.extract_strided_slice %457 {offsets = [0, 256], sizes = [2, 256], strides = [1, 1]} : vector<2x512xf32> to vector<2x256xf32>
    %494 = vector.extract_strided_slice %450 {offsets = [0, 256], sizes = [2, 256], strides = [1, 1]} : vector<2x512xf32> to vector<2x256xf32>
    %495 = arith.addf %493, %494 : vector<2x256xf32>
    %496 = vector.extract_strided_slice %448 {offsets = [0, 64], sizes = [2, 64], strides = [1, 1]} : vector<2x128xf32> to vector<2x64xf32>
    %497 = vector.extract_strided_slice %495 {offsets = [0, 0], sizes = [2, 64], strides = [1, 1]} : vector<2x256xf32> to vector<2x64xf32>
    %cst_169 = arith.constant 5.000000e-01 : f32
    %498 = vector.broadcast %cst_169 : f32 to vector<2x64xf32>
    %499 = arith.mulf %498, %497 : vector<2x64xf32>
    %500 = math.tanh %499 : vector<2x64xf32>
    %cst_170 = arith.constant 5.000000e-01 : f32
    %501 = vector.broadcast %cst_170 : f32 to vector<2x64xf32>
    %502 = arith.mulf %501, %500 : vector<2x64xf32>
    %cst_171 = arith.constant 5.000000e-01 : f32
    %503 = vector.broadcast %cst_171 : f32 to vector<2x64xf32>
    %504 = arith.addf %502, %503 : vector<2x64xf32>
    %505 = vector.extract_strided_slice %495 {offsets = [0, 64], sizes = [2, 64], strides = [1, 1]} : vector<2x256xf32> to vector<2x64xf32>
    %cst_172 = arith.constant 5.000000e-01 : f32
    %506 = vector.broadcast %cst_172 : f32 to vector<2x64xf32>
    %507 = arith.mulf %506, %505 : vector<2x64xf32>
    %508 = math.tanh %507 : vector<2x64xf32>
    %cst_173 = arith.constant 5.000000e-01 : f32
    %509 = vector.broadcast %cst_173 : f32 to vector<2x64xf32>
    %510 = arith.mulf %509, %508 : vector<2x64xf32>
    %cst_174 = arith.constant 5.000000e-01 : f32
    %511 = vector.broadcast %cst_174 : f32 to vector<2x64xf32>
    %512 = arith.addf %510, %511 : vector<2x64xf32>
    %513 = vector.extract_strided_slice %495 {offsets = [0, 128], sizes = [2, 64], strides = [1, 1]} : vector<2x256xf32> to vector<2x64xf32>
    %514 = math.tanh %513 : vector<2x64xf32>
    %515 = vector.extract_strided_slice %495 {offsets = [0, 192], sizes = [2, 64], strides = [1, 1]} : vector<2x256xf32> to vector<2x64xf32>
    %cst_175 = arith.constant 5.000000e-01 : f32
    %516 = vector.broadcast %cst_175 : f32 to vector<2x64xf32>
    %517 = arith.mulf %516, %515 : vector<2x64xf32>
    %518 = math.tanh %517 : vector<2x64xf32>
    %cst_176 = arith.constant 5.000000e-01 : f32
    %519 = vector.broadcast %cst_176 : f32 to vector<2x64xf32>
    %520 = arith.mulf %519, %518 : vector<2x64xf32>
    %cst_177 = arith.constant 5.000000e-01 : f32
    %521 = vector.broadcast %cst_177 : f32 to vector<2x64xf32>
    %522 = arith.addf %520, %521 : vector<2x64xf32>
    %523 = arith.mulf %512, %496 : vector<2x64xf32>
    %524 = arith.mulf %504, %514 : vector<2x64xf32>
    %525 = arith.addf %523, %524 : vector<2x64xf32>
    %526 = math.tanh %525 : vector<2x64xf32>
    %527 = arith.mulf %522, %526 : vector<2x64xf32>
    %c2_i32_178 = arith.constant 2 : i32
    %528 = arith.muli %c5_i32, %c2_i32_178 : i32
    %529 = arith.index_cast %528 : i32 to index
    %c0_179 = arith.constant 0 : index
    %530 = vector.load %arg17[%529, %c0_179] : memref<16x64xf32, #tpu.memory_space<vmem>>, vector<2x64xf32>
    tpu.vector_store %arg17[%529, %c0_179], %492 {strides = array<i32>} : memref<16x64xf32, #tpu.memory_space<vmem>>, vector<2x64xf32>,
    %c2_i32_180 = arith.constant 2 : i32
    %531 = arith.muli %451, %c2_i32_180 : i32
    %532 = arith.index_cast %531 : i32 to index
    %c0_181 = arith.constant 0 : index
    %533 = vector.load %arg18[%532, %c0_181] : memref<16x64xf32, #tpu.memory_space<vmem>>, vector<2x64xf32>
    tpu.vector_store %arg18[%532, %c0_181], %527 {strides = array<i32>} : memref<16x64xf32, #tpu.memory_space<vmem>>, vector<2x64xf32>,
    %534 = tpu.concatenate %492, %527 in 1 : vector<2x64xf32>, vector<2x64xf32> -> vector<2x128xf32>
    %535 = tpu.concatenate %490, %525 in 1 : vector<2x64xf32>, vector<2x64xf32> -> vector<2x128xf32>
    %c6_i32 = arith.constant 6 : i32
    %536 = arith.truncf %534 : vector<2x128xf32> to vector<2x128xbf16>
    %cst_182 = arith.constant dense<0.000000e+00> : vector<2x512xf32>
    %537 = tpu.matmul %536, %12, %cst_182 {dimension_numbers = #tpu.dot_dimension_numbers<[1], [0], [0], [1], [0, 0, 1, 1], [], []>} : vector<2x128xbf16>, vector<128x512xbf16>, vector<2x512xf32> -> vector<2x512xf32>
    %c7_i32_183 = arith.constant 7 : i32
    %538 = arith.subi %c7_i32_183, %c6_i32 : i32
    %c2_i32_184 = arith.constant 2 : i32
    %539 = arith.muli %c6_i32, %c2_i32_184 : i32
    %540 = arith.index_cast %539 : i32 to index
    %c0_185 = arith.constant 0 : index
    %541 = vector.load %arg16[%540, %c0_185] : memref<16x512xf32, #tpu.memory_space<vmem>>, vector<2x512xf32>
    %c2_i32_186 = arith.constant 2 : i32
    %542 = arith.muli %538, %c2_i32_186 : i32
    %543 = arith.index_cast %542 : i32 to index
    %c0_187 = arith.constant 0 : index
    %544 = vector.load %arg16[%543, %c0_187] : memref<16x512xf32, #tpu.memory_space<vmem>>, vector<2x512xf32>
    %545 = vector.extract_strided_slice %541 {offsets = [0, 0], sizes = [2, 256], strides = [1, 1]} : vector<2x512xf32> to vector<2x256xf32>
    %546 = vector.extract_strided_slice %537 {offsets = [0, 0], sizes = [2, 256], strides = [1, 1]} : vector<2x512xf32> to vector<2x256xf32>
    %547 = arith.addf %545, %546 : vector<2x256xf32>
    %548 = vector.extract_strided_slice %535 {offsets = [0, 0], sizes = [2, 64], strides = [1, 1]} : vector<2x128xf32> to vector<2x64xf32>
    %549 = vector.extract_strided_slice %547 {offsets = [0, 0], sizes = [2, 64], strides = [1, 1]} : vector<2x256xf32> to vector<2x64xf32>
    %cst_188 = arith.constant 5.000000e-01 : f32
    %550 = vector.broadcast %cst_188 : f32 to vector<2x64xf32>
    %551 = arith.mulf %550, %549 : vector<2x64xf32>
    %552 = math.tanh %551 : vector<2x64xf32>
    %cst_189 = arith.constant 5.000000e-01 : f32
    %553 = vector.broadcast %cst_189 : f32 to vector<2x64xf32>
    %554 = arith.mulf %553, %552 : vector<2x64xf32>
    %cst_190 = arith.constant 5.000000e-01 : f32
    %555 = vector.broadcast %cst_190 : f32 to vector<2x64xf32>
    %556 = arith.addf %554, %555 : vector<2x64xf32>
    %557 = vector.extract_strided_slice %547 {offsets = [0, 64], sizes = [2, 64], strides = [1, 1]} : vector<2x256xf32> to vector<2x64xf32>
    %cst_191 = arith.constant 5.000000e-01 : f32
    %558 = vector.broadcast %cst_191 : f32 to vector<2x64xf32>
    %559 = arith.mulf %558, %557 : vector<2x64xf32>
    %560 = math.tanh %559 : vector<2x64xf32>
    %cst_192 = arith.constant 5.000000e-01 : f32
    %561 = vector.broadcast %cst_192 : f32 to vector<2x64xf32>
    %562 = arith.mulf %561, %560 : vector<2x64xf32>
    %cst_193 = arith.constant 5.000000e-01 : f32
    %563 = vector.broadcast %cst_193 : f32 to vector<2x64xf32>
    %564 = arith.addf %562, %563 : vector<2x64xf32>
    %565 = vector.extract_strided_slice %547 {offsets = [0, 128], sizes = [2, 64], strides = [1, 1]} : vector<2x256xf32> to vector<2x64xf32>
    %566 = math.tanh %565 : vector<2x64xf32>
    %567 = vector.extract_strided_slice %547 {offsets = [0, 192], sizes = [2, 64], strides = [1, 1]} : vector<2x256xf32> to vector<2x64xf32>
    %cst_194 = arith.constant 5.000000e-01 : f32
    %568 = vector.broadcast %cst_194 : f32 to vector<2x64xf32>
    %569 = arith.mulf %568, %567 : vector<2x64xf32>
    %570 = math.tanh %569 : vector<2x64xf32>
    %cst_195 = arith.constant 5.000000e-01 : f32
    %571 = vector.broadcast %cst_195 : f32 to vector<2x64xf32>
    %572 = arith.mulf %571, %570 : vector<2x64xf32>
    %cst_196 = arith.constant 5.000000e-01 : f32
    %573 = vector.broadcast %cst_196 : f32 to vector<2x64xf32>
    %574 = arith.addf %572, %573 : vector<2x64xf32>
    %575 = arith.mulf %564, %548 : vector<2x64xf32>
    %576 = arith.mulf %556, %566 : vector<2x64xf32>
    %577 = arith.addf %575, %576 : vector<2x64xf32>
    %578 = math.tanh %577 : vector<2x64xf32>
    %579 = arith.mulf %574, %578 : vector<2x64xf32>
    %580 = vector.extract_strided_slice %544 {offsets = [0, 256], sizes = [2, 256], strides = [1, 1]} : vector<2x512xf32> to vector<2x256xf32>
    %581 = vector.extract_strided_slice %537 {offsets = [0, 256], sizes = [2, 256], strides = [1, 1]} : vector<2x512xf32> to vector<2x256xf32>
    %582 = arith.addf %580, %581 : vector<2x256xf32>
    %583 = vector.extract_strided_slice %535 {offsets = [0, 64], sizes = [2, 64], strides = [1, 1]} : vector<2x128xf32> to vector<2x64xf32>
    %584 = vector.extract_strided_slice %582 {offsets = [0, 0], sizes = [2, 64], strides = [1, 1]} : vector<2x256xf32> to vector<2x64xf32>
    %cst_197 = arith.constant 5.000000e-01 : f32
    %585 = vector.broadcast %cst_197 : f32 to vector<2x64xf32>
    %586 = arith.mulf %585, %584 : vector<2x64xf32>
    %587 = math.tanh %586 : vector<2x64xf32>
    %cst_198 = arith.constant 5.000000e-01 : f32
    %588 = vector.broadcast %cst_198 : f32 to vector<2x64xf32>
    %589 = arith.mulf %588, %587 : vector<2x64xf32>
    %cst_199 = arith.constant 5.000000e-01 : f32
    %590 = vector.broadcast %cst_199 : f32 to vector<2x64xf32>
    %591 = arith.addf %589, %590 : vector<2x64xf32>
    %592 = vector.extract_strided_slice %582 {offsets = [0, 64], sizes = [2, 64], strides = [1, 1]} : vector<2x256xf32> to vector<2x64xf32>
    %cst_200 = arith.constant 5.000000e-01 : f32
    %593 = vector.broadcast %cst_200 : f32 to vector<2x64xf32>
    %594 = arith.mulf %593, %592 : vector<2x64xf32>
    %595 = math.tanh %594 : vector<2x64xf32>
    %cst_201 = arith.constant 5.000000e-01 : f32
    %596 = vector.broadcast %cst_201 : f32 to vector<2x64xf32>
    %597 = arith.mulf %596, %595 : vector<2x64xf32>
    %cst_202 = arith.constant 5.000000e-01 : f32
    %598 = vector.broadcast %cst_202 : f32 to vector<2x64xf32>
    %599 = arith.addf %597, %598 : vector<2x64xf32>
    %600 = vector.extract_strided_slice %582 {offsets = [0, 128], sizes = [2, 64], strides = [1, 1]} : vector<2x256xf32> to vector<2x64xf32>
    %601 = math.tanh %600 : vector<2x64xf32>
    %602 = vector.extract_strided_slice %582 {offsets = [0, 192], sizes = [2, 64], strides = [1, 1]} : vector<2x256xf32> to vector<2x64xf32>
    %cst_203 = arith.constant 5.000000e-01 : f32
    %603 = vector.broadcast %cst_203 : f32 to vector<2x64xf32>
    %604 = arith.mulf %603, %602 : vector<2x64xf32>
    %605 = math.tanh %604 : vector<2x64xf32>
    %cst_204 = arith.constant 5.000000e-01 : f32
    %606 = vector.broadcast %cst_204 : f32 to vector<2x64xf32>
    %607 = arith.mulf %606, %605 : vector<2x64xf32>
    %cst_205 = arith.constant 5.000000e-01 : f32
    %608 = vector.broadcast %cst_205 : f32 to vector<2x64xf32>
    %609 = arith.addf %607, %608 : vector<2x64xf32>
    %610 = arith.mulf %599, %583 : vector<2x64xf32>
    %611 = arith.mulf %591, %601 : vector<2x64xf32>
    %612 = arith.addf %610, %611 : vector<2x64xf32>
    %613 = math.tanh %612 : vector<2x64xf32>
    %614 = arith.mulf %609, %613 : vector<2x64xf32>
    %c2_i32_206 = arith.constant 2 : i32
    %615 = arith.muli %c6_i32, %c2_i32_206 : i32
    %616 = arith.index_cast %615 : i32 to index
    %c0_207 = arith.constant 0 : index
    %617 = vector.load %arg17[%616, %c0_207] : memref<16x64xf32, #tpu.memory_space<vmem>>, vector<2x64xf32>
    tpu.vector_store %arg17[%616, %c0_207], %579 {strides = array<i32>} : memref<16x64xf32, #tpu.memory_space<vmem>>, vector<2x64xf32>,
    %c2_i32_208 = arith.constant 2 : i32
    %618 = arith.muli %538, %c2_i32_208 : i32
    %619 = arith.index_cast %618 : i32 to index
    %c0_209 = arith.constant 0 : index
    %620 = vector.load %arg18[%619, %c0_209] : memref<16x64xf32, #tpu.memory_space<vmem>>, vector<2x64xf32>
    tpu.vector_store %arg18[%619, %c0_209], %614 {strides = array<i32>} : memref<16x64xf32, #tpu.memory_space<vmem>>, vector<2x64xf32>,
    %621 = tpu.concatenate %579, %614 in 1 : vector<2x64xf32>, vector<2x64xf32> -> vector<2x128xf32>
    %622 = tpu.concatenate %577, %612 in 1 : vector<2x64xf32>, vector<2x64xf32> -> vector<2x128xf32>
    %c7_i32_210 = arith.constant 7 : i32
    %623 = arith.truncf %621 : vector<2x128xf32> to vector<2x128xbf16>
    %cst_211 = arith.constant dense<0.000000e+00> : vector<2x512xf32>
    %624 = tpu.matmul %623, %12, %cst_211 {dimension_numbers = #tpu.dot_dimension_numbers<[1], [0], [0], [1], [0, 0, 1, 1], [], []>} : vector<2x128xbf16>, vector<128x512xbf16>, vector<2x512xf32> -> vector<2x512xf32>
    %c7_i32_212 = arith.constant 7 : i32
    %625 = arith.subi %c7_i32_212, %c7_i32_210 : i32
    %c2_i32_213 = arith.constant 2 : i32
    %626 = arith.muli %c7_i32_210, %c2_i32_213 : i32
    %627 = arith.index_cast %626 : i32 to index
    %c0_214 = arith.constant 0 : index
    %628 = vector.load %arg16[%627, %c0_214] : memref<16x512xf32, #tpu.memory_space<vmem>>, vector<2x512xf32>
    %c2_i32_215 = arith.constant 2 : i32
    %629 = arith.muli %625, %c2_i32_215 : i32
    %630 = arith.index_cast %629 : i32 to index
    %c0_216 = arith.constant 0 : index
    %631 = vector.load %arg16[%630, %c0_216] : memref<16x512xf32, #tpu.memory_space<vmem>>, vector<2x512xf32>
    %632 = vector.extract_strided_slice %628 {offsets = [0, 0], sizes = [2, 256], strides = [1, 1]} : vector<2x512xf32> to vector<2x256xf32>
    %633 = vector.extract_strided_slice %624 {offsets = [0, 0], sizes = [2, 256], strides = [1, 1]} : vector<2x512xf32> to vector<2x256xf32>
    %634 = arith.addf %632, %633 : vector<2x256xf32>
    %635 = vector.extract_strided_slice %622 {offsets = [0, 0], sizes = [2, 64], strides = [1, 1]} : vector<2x128xf32> to vector<2x64xf32>
    %636 = vector.extract_strided_slice %634 {offsets = [0, 0], sizes = [2, 64], strides = [1, 1]} : vector<2x256xf32> to vector<2x64xf32>
    %cst_217 = arith.constant 5.000000e-01 : f32
    %637 = vector.broadcast %cst_217 : f32 to vector<2x64xf32>
    %638 = arith.mulf %637, %636 : vector<2x64xf32>
    %639 = math.tanh %638 : vector<2x64xf32>
    %cst_218 = arith.constant 5.000000e-01 : f32
    %640 = vector.broadcast %cst_218 : f32 to vector<2x64xf32>
    %641 = arith.mulf %640, %639 : vector<2x64xf32>
    %cst_219 = arith.constant 5.000000e-01 : f32
    %642 = vector.broadcast %cst_219 : f32 to vector<2x64xf32>
    %643 = arith.addf %641, %642 : vector<2x64xf32>
    %644 = vector.extract_strided_slice %634 {offsets = [0, 64], sizes = [2, 64], strides = [1, 1]} : vector<2x256xf32> to vector<2x64xf32>
    %cst_220 = arith.constant 5.000000e-01 : f32
    %645 = vector.broadcast %cst_220 : f32 to vector<2x64xf32>
    %646 = arith.mulf %645, %644 : vector<2x64xf32>
    %647 = math.tanh %646 : vector<2x64xf32>
    %cst_221 = arith.constant 5.000000e-01 : f32
    %648 = vector.broadcast %cst_221 : f32 to vector<2x64xf32>
    %649 = arith.mulf %648, %647 : vector<2x64xf32>
    %cst_222 = arith.constant 5.000000e-01 : f32
    %650 = vector.broadcast %cst_222 : f32 to vector<2x64xf32>
    %651 = arith.addf %649, %650 : vector<2x64xf32>
    %652 = vector.extract_strided_slice %634 {offsets = [0, 128], sizes = [2, 64], strides = [1, 1]} : vector<2x256xf32> to vector<2x64xf32>
    %653 = math.tanh %652 : vector<2x64xf32>
    %654 = vector.extract_strided_slice %634 {offsets = [0, 192], sizes = [2, 64], strides = [1, 1]} : vector<2x256xf32> to vector<2x64xf32>
    %cst_223 = arith.constant 5.000000e-01 : f32
    %655 = vector.broadcast %cst_223 : f32 to vector<2x64xf32>
    %656 = arith.mulf %655, %654 : vector<2x64xf32>
    %657 = math.tanh %656 : vector<2x64xf32>
    %cst_224 = arith.constant 5.000000e-01 : f32
    %658 = vector.broadcast %cst_224 : f32 to vector<2x64xf32>
    %659 = arith.mulf %658, %657 : vector<2x64xf32>
    %cst_225 = arith.constant 5.000000e-01 : f32
    %660 = vector.broadcast %cst_225 : f32 to vector<2x64xf32>
    %661 = arith.addf %659, %660 : vector<2x64xf32>
    %662 = arith.mulf %651, %635 : vector<2x64xf32>
    %663 = arith.mulf %643, %653 : vector<2x64xf32>
    %664 = arith.addf %662, %663 : vector<2x64xf32>
    %665 = math.tanh %664 : vector<2x64xf32>
    %666 = arith.mulf %661, %665 : vector<2x64xf32>
    %667 = vector.extract_strided_slice %631 {offsets = [0, 256], sizes = [2, 256], strides = [1, 1]} : vector<2x512xf32> to vector<2x256xf32>
    %668 = vector.extract_strided_slice %624 {offsets = [0, 256], sizes = [2, 256], strides = [1, 1]} : vector<2x512xf32> to vector<2x256xf32>
    %669 = arith.addf %667, %668 : vector<2x256xf32>
    %670 = vector.extract_strided_slice %622 {offsets = [0, 64], sizes = [2, 64], strides = [1, 1]} : vector<2x128xf32> to vector<2x64xf32>
    %671 = vector.extract_strided_slice %669 {offsets = [0, 0], sizes = [2, 64], strides = [1, 1]} : vector<2x256xf32> to vector<2x64xf32>
    %cst_226 = arith.constant 5.000000e-01 : f32
    %672 = vector.broadcast %cst_226 : f32 to vector<2x64xf32>
    %673 = arith.mulf %672, %671 : vector<2x64xf32>
    %674 = math.tanh %673 : vector<2x64xf32>
    %cst_227 = arith.constant 5.000000e-01 : f32
    %675 = vector.broadcast %cst_227 : f32 to vector<2x64xf32>
    %676 = arith.mulf %675, %674 : vector<2x64xf32>
    %cst_228 = arith.constant 5.000000e-01 : f32
    %677 = vector.broadcast %cst_228 : f32 to vector<2x64xf32>
    %678 = arith.addf %676, %677 : vector<2x64xf32>
    %679 = vector.extract_strided_slice %669 {offsets = [0, 64], sizes = [2, 64], strides = [1, 1]} : vector<2x256xf32> to vector<2x64xf32>
    %cst_229 = arith.constant 5.000000e-01 : f32
    %680 = vector.broadcast %cst_229 : f32 to vector<2x64xf32>
    %681 = arith.mulf %680, %679 : vector<2x64xf32>
    %682 = math.tanh %681 : vector<2x64xf32>
    %cst_230 = arith.constant 5.000000e-01 : f32
    %683 = vector.broadcast %cst_230 : f32 to vector<2x64xf32>
    %684 = arith.mulf %683, %682 : vector<2x64xf32>
    %cst_231 = arith.constant 5.000000e-01 : f32
    %685 = vector.broadcast %cst_231 : f32 to vector<2x64xf32>
    %686 = arith.addf %684, %685 : vector<2x64xf32>
    %687 = vector.extract_strided_slice %669 {offsets = [0, 128], sizes = [2, 64], strides = [1, 1]} : vector<2x256xf32> to vector<2x64xf32>
    %688 = math.tanh %687 : vector<2x64xf32>
    %689 = vector.extract_strided_slice %669 {offsets = [0, 192], sizes = [2, 64], strides = [1, 1]} : vector<2x256xf32> to vector<2x64xf32>
    %cst_232 = arith.constant 5.000000e-01 : f32
    %690 = vector.broadcast %cst_232 : f32 to vector<2x64xf32>
    %691 = arith.mulf %690, %689 : vector<2x64xf32>
    %692 = math.tanh %691 : vector<2x64xf32>
    %cst_233 = arith.constant 5.000000e-01 : f32
    %693 = vector.broadcast %cst_233 : f32 to vector<2x64xf32>
    %694 = arith.mulf %693, %692 : vector<2x64xf32>
    %cst_234 = arith.constant 5.000000e-01 : f32
    %695 = vector.broadcast %cst_234 : f32 to vector<2x64xf32>
    %696 = arith.addf %694, %695 : vector<2x64xf32>
    %697 = arith.mulf %686, %670 : vector<2x64xf32>
    %698 = arith.mulf %678, %688 : vector<2x64xf32>
    %699 = arith.addf %697, %698 : vector<2x64xf32>
    %700 = math.tanh %699 : vector<2x64xf32>
    %701 = arith.mulf %696, %700 : vector<2x64xf32>
    %c2_i32_235 = arith.constant 2 : i32
    %702 = arith.muli %c7_i32_210, %c2_i32_235 : i32
    %703 = arith.index_cast %702 : i32 to index
    %c0_236 = arith.constant 0 : index
    %704 = vector.load %arg17[%703, %c0_236] : memref<16x64xf32, #tpu.memory_space<vmem>>, vector<2x64xf32>
    tpu.vector_store %arg17[%703, %c0_236], %666 {strides = array<i32>} : memref<16x64xf32, #tpu.memory_space<vmem>>, vector<2x64xf32>,
    %c2_i32_237 = arith.constant 2 : i32
    %705 = arith.muli %625, %c2_i32_237 : i32
    %706 = arith.index_cast %705 : i32 to index
    %c0_238 = arith.constant 0 : index
    %707 = vector.load %arg18[%706, %c0_238] : memref<16x64xf32, #tpu.memory_space<vmem>>, vector<2x64xf32>
    tpu.vector_store %arg18[%706, %c0_238], %701 {strides = array<i32>} : memref<16x64xf32, #tpu.memory_space<vmem>>, vector<2x64xf32>,
    %708 = tpu.concatenate %666, %701 in 1 : vector<2x64xf32>, vector<2x64xf32> -> vector<2x128xf32>
    %709 = tpu.concatenate %664, %699 in 1 : vector<2x64xf32>, vector<2x64xf32> -> vector<2x128xf32>
    %c8_i32 = arith.constant 8 : i32
    %c0_239 = arith.constant 0 : index
    %c0_240 = arith.constant 0 : index
    %710 = vector.load %arg17[%c0_239, %c0_240] : memref<16x64xf32, #tpu.memory_space<vmem>>, vector<16x64xf32>
    %711 = arith.truncf %710 : vector<16x64xf32> to vector<16x64xbf16>
    %c0_241 = arith.constant 0 : index
    %c0_242 = arith.constant 0 : index
    %712 = vector.load %arg6[%c0_241, %c0_242] : memref<64x512xbf16, #tpu.memory_space<vmem>>, vector<64x512xbf16>
    %cst_243 = arith.constant dense<0.000000e+00> : vector<16x512xf32>
    %713 = tpu.matmul %711, %712, %cst_243 {dimension_numbers = #tpu.dot_dimension_numbers<[1], [0], [0], [1], [0, 0, 1, 1], [], []>} : vector<16x64xbf16>, vector<64x512xbf16>, vector<16x512xf32> -> vector<16x512xf32>
    %c0_244 = arith.constant 0 : index
    %c0_245 = arith.constant 0 : index
    %714 = vector.load %arg18[%c0_244, %c0_245] : memref<16x64xf32, #tpu.memory_space<vmem>>, vector<16x64xf32>
    %715 = arith.truncf %714 : vector<16x64xf32> to vector<16x64xbf16>
    %c0_246 = arith.constant 0 : index
    %c0_247 = arith.constant 0 : index
    %716 = vector.load %arg7[%c0_246, %c0_247] : memref<64x512xbf16, #tpu.memory_space<vmem>>, vector<64x512xbf16>
    %cst_248 = arith.constant dense<0.000000e+00> : vector<16x512xf32>
    %717 = tpu.matmul %715, %716, %cst_248 {dimension_numbers = #tpu.dot_dimension_numbers<[1], [0], [0], [1], [0, 0, 1, 1], [], []>} : vector<16x64xbf16>, vector<64x512xbf16>, vector<16x512xf32> -> vector<16x512xf32>
    %718 = arith.addf %713, %717 : vector<16x512xf32>
    %c0_249 = arith.constant 0 : index
    %c0_250 = arith.constant 0 : index
    %719 = vector.load %arg8[%c0_249, %c0_250] : memref<1x512xf32, #tpu.memory_space<vmem>>, vector<1x512xf32>
    %720 = vector.broadcast %719 : vector<1x512xf32> to vector<16x512xf32>
    %721 = arith.addf %718, %720 : vector<16x512xf32>
    %c0_251 = arith.constant 0 : index
    %c0_252 = arith.constant 0 : index
    %722 = vector.load %arg19[%c0_251, %c0_252] : memref<16x512xf32, #tpu.memory_space<vmem>>, vector<16x512xf32>
    tpu.vector_store %arg19[%c0_251, %c0_252], %721 {strides = array<i32>} : memref<16x512xf32, #tpu.memory_space<vmem>>, vector<16x512xf32>,
    %c0_253 = arith.constant 0 : index
    %c0_254 = arith.constant 0 : index
    %723 = vector.load %arg9[%c0_253, %c0_254] : memref<128x512xbf16, #tpu.memory_space<vmem>>, vector<128x512xbf16>
    %cst_255 = arith.constant 0.000000e+00 : f32
    %724 = vector.broadcast %cst_255 : f32 to vector<2x128xf32>
    %c0_i32_256 = arith.constant 0 : i32
    %725 = arith.truncf %724 : vector<2x128xf32> to vector<2x128xbf16>
    %cst_257 = arith.constant dense<0.000000e+00> : vector<2x512xf32>
    %726 = tpu.matmul %725, %723, %cst_257 {dimension_numbers = #tpu.dot_dimension_numbers<[1], [0], [0], [1], [0, 0, 1, 1], [], []>} : vector<2x128xbf16>, vector<128x512xbf16>, vector<2x512xf32> -> vector<2x512xf32>
    %c7_i32_258 = arith.constant 7 : i32
    %727 = arith.subi %c7_i32_258, %c0_i32_256 : i32
    %c2_i32_259 = arith.constant 2 : i32
    %728 = arith.muli %c0_i32_256, %c2_i32_259 : i32
    %729 = arith.index_cast %728 : i32 to index
    %c0_260 = arith.constant 0 : index
    %730 = vector.load %arg19[%729, %c0_260] : memref<16x512xf32, #tpu.memory_space<vmem>>, vector<2x512xf32>
    %c2_i32_261 = arith.constant 2 : i32
    %731 = arith.muli %727, %c2_i32_261 : i32
    %732 = arith.index_cast %731 : i32 to index
    %c0_262 = arith.constant 0 : index
    %733 = vector.load %arg19[%732, %c0_262] : memref<16x512xf32, #tpu.memory_space<vmem>>, vector<2x512xf32>
    %734 = vector.extract_strided_slice %730 {offsets = [0, 0], sizes = [2, 256], strides = [1, 1]} : vector<2x512xf32> to vector<2x256xf32>
    %735 = vector.extract_strided_slice %726 {offsets = [0, 0], sizes = [2, 256], strides = [1, 1]} : vector<2x512xf32> to vector<2x256xf32>
    %736 = arith.addf %734, %735 : vector<2x256xf32>
    %737 = vector.extract_strided_slice %724 {offsets = [0, 0], sizes = [2, 64], strides = [1, 1]} : vector<2x128xf32> to vector<2x64xf32>
    %738 = vector.extract_strided_slice %736 {offsets = [0, 0], sizes = [2, 64], strides = [1, 1]} : vector<2x256xf32> to vector<2x64xf32>
    %cst_263 = arith.constant 5.000000e-01 : f32
    %739 = vector.broadcast %cst_263 : f32 to vector<2x64xf32>
    %740 = arith.mulf %739, %738 : vector<2x64xf32>
    %741 = math.tanh %740 : vector<2x64xf32>
    %cst_264 = arith.constant 5.000000e-01 : f32
    %742 = vector.broadcast %cst_264 : f32 to vector<2x64xf32>
    %743 = arith.mulf %742, %741 : vector<2x64xf32>
    %cst_265 = arith.constant 5.000000e-01 : f32
    %744 = vector.broadcast %cst_265 : f32 to vector<2x64xf32>
    %745 = arith.addf %743, %744 : vector<2x64xf32>
    %746 = vector.extract_strided_slice %736 {offsets = [0, 64], sizes = [2, 64], strides = [1, 1]} : vector<2x256xf32> to vector<2x64xf32>
    %cst_266 = arith.constant 5.000000e-01 : f32
    %747 = vector.broadcast %cst_266 : f32 to vector<2x64xf32>
    %748 = arith.mulf %747, %746 : vector<2x64xf32>
    %749 = math.tanh %748 : vector<2x64xf32>
    %cst_267 = arith.constant 5.000000e-01 : f32
    %750 = vector.broadcast %cst_267 : f32 to vector<2x64xf32>
    %751 = arith.mulf %750, %749 : vector<2x64xf32>
    %cst_268 = arith.constant 5.000000e-01 : f32
    %752 = vector.broadcast %cst_268 : f32 to vector<2x64xf32>
    %753 = arith.addf %751, %752 : vector<2x64xf32>
    %754 = vector.extract_strided_slice %736 {offsets = [0, 128], sizes = [2, 64], strides = [1, 1]} : vector<2x256xf32> to vector<2x64xf32>
    %755 = math.tanh %754 : vector<2x64xf32>
    %756 = vector.extract_strided_slice %736 {offsets = [0, 192], sizes = [2, 64], strides = [1, 1]} : vector<2x256xf32> to vector<2x64xf32>
    %cst_269 = arith.constant 5.000000e-01 : f32
    %757 = vector.broadcast %cst_269 : f32 to vector<2x64xf32>
    %758 = arith.mulf %757, %756 : vector<2x64xf32>
    %759 = math.tanh %758 : vector<2x64xf32>
    %cst_270 = arith.constant 5.000000e-01 : f32
    %760 = vector.broadcast %cst_270 : f32 to vector<2x64xf32>
    %761 = arith.mulf %760, %759 : vector<2x64xf32>
    %cst_271 = arith.constant 5.000000e-01 : f32
    %762 = vector.broadcast %cst_271 : f32 to vector<2x64xf32>
    %763 = arith.addf %761, %762 : vector<2x64xf32>
    %764 = arith.mulf %753, %737 : vector<2x64xf32>
    %765 = arith.mulf %745, %755 : vector<2x64xf32>
    %766 = arith.addf %764, %765 : vector<2x64xf32>
    %767 = math.tanh %766 : vector<2x64xf32>
    %768 = arith.mulf %763, %767 : vector<2x64xf32>
    %769 = vector.extract_strided_slice %733 {offsets = [0, 256], sizes = [2, 256], strides = [1, 1]} : vector<2x512xf32> to vector<2x256xf32>
    %770 = vector.extract_strided_slice %726 {offsets = [0, 256], sizes = [2, 256], strides = [1, 1]} : vector<2x512xf32> to vector<2x256xf32>
    %771 = arith.addf %769, %770 : vector<2x256xf32>
    %772 = vector.extract_strided_slice %724 {offsets = [0, 64], sizes = [2, 64], strides = [1, 1]} : vector<2x128xf32> to vector<2x64xf32>
    %773 = vector.extract_strided_slice %771 {offsets = [0, 0], sizes = [2, 64], strides = [1, 1]} : vector<2x256xf32> to vector<2x64xf32>
    %cst_272 = arith.constant 5.000000e-01 : f32
    %774 = vector.broadcast %cst_272 : f32 to vector<2x64xf32>
    %775 = arith.mulf %774, %773 : vector<2x64xf32>
    %776 = math.tanh %775 : vector<2x64xf32>
    %cst_273 = arith.constant 5.000000e-01 : f32
    %777 = vector.broadcast %cst_273 : f32 to vector<2x64xf32>
    %778 = arith.mulf %777, %776 : vector<2x64xf32>
    %cst_274 = arith.constant 5.000000e-01 : f32
    %779 = vector.broadcast %cst_274 : f32 to vector<2x64xf32>
    %780 = arith.addf %778, %779 : vector<2x64xf32>
    %781 = vector.extract_strided_slice %771 {offsets = [0, 64], sizes = [2, 64], strides = [1, 1]} : vector<2x256xf32> to vector<2x64xf32>
    %cst_275 = arith.constant 5.000000e-01 : f32
    %782 = vector.broadcast %cst_275 : f32 to vector<2x64xf32>
    %783 = arith.mulf %782, %781 : vector<2x64xf32>
    %784 = math.tanh %783 : vector<2x64xf32>
    %cst_276 = arith.constant 5.000000e-01 : f32
    %785 = vector.broadcast %cst_276 : f32 to vector<2x64xf32>
    %786 = arith.mulf %785, %784 : vector<2x64xf32>
    %cst_277 = arith.constant 5.000000e-01 : f32
    %787 = vector.broadcast %cst_277 : f32 to vector<2x64xf32>
    %788 = arith.addf %786, %787 : vector<2x64xf32>
    %789 = vector.extract_strided_slice %771 {offsets = [0, 128], sizes = [2, 64], strides = [1, 1]} : vector<2x256xf32> to vector<2x64xf32>
    %790 = math.tanh %789 : vector<2x64xf32>
    %791 = vector.extract_strided_slice %771 {offsets = [0, 192], sizes = [2, 64], strides = [1, 1]} : vector<2x256xf32> to vector<2x64xf32>
    %cst_278 = arith.constant 5.000000e-01 : f32
    %792 = vector.broadcast %cst_278 : f32 to vector<2x64xf32>
    %793 = arith.mulf %792, %791 : vector<2x64xf32>
    %794 = math.tanh %793 : vector<2x64xf32>
    %cst_279 = arith.constant 5.000000e-01 : f32
    %795 = vector.broadcast %cst_279 : f32 to vector<2x64xf32>
    %796 = arith.mulf %795, %794 : vector<2x64xf32>
    %cst_280 = arith.constant 5.000000e-01 : f32
    %797 = vector.broadcast %cst_280 : f32 to vector<2x64xf32>
    %798 = arith.addf %796, %797 : vector<2x64xf32>
    %799 = arith.mulf %788, %772 : vector<2x64xf32>
    %800 = arith.mulf %780, %790 : vector<2x64xf32>
    %801 = arith.addf %799, %800 : vector<2x64xf32>
    %802 = math.tanh %801 : vector<2x64xf32>
    %803 = arith.mulf %798, %802 : vector<2x64xf32>
    %c2_i32_281 = arith.constant 2 : i32
    %804 = arith.muli %c0_i32_256, %c2_i32_281 : i32
    %805 = arith.index_cast %804 : i32 to index
    %c0_282 = arith.constant 0 : index
    %806 = vector.load %arg20[%805, %c0_282] : memref<16x64xf32, #tpu.memory_space<vmem>>, vector<2x64xf32>
    tpu.vector_store %arg20[%805, %c0_282], %768 {strides = array<i32>} : memref<16x64xf32, #tpu.memory_space<vmem>>, vector<2x64xf32>,
    %c2_i32_283 = arith.constant 2 : i32
    %807 = arith.muli %727, %c2_i32_283 : i32
    %808 = arith.index_cast %807 : i32 to index
    %c0_284 = arith.constant 0 : index
    %809 = vector.load %arg21[%808, %c0_284] : memref<16x64xf32, #tpu.memory_space<vmem>>, vector<2x64xf32>
    tpu.vector_store %arg21[%808, %c0_284], %803 {strides = array<i32>} : memref<16x64xf32, #tpu.memory_space<vmem>>, vector<2x64xf32>,
    %810 = tpu.concatenate %768, %803 in 1 : vector<2x64xf32>, vector<2x64xf32> -> vector<2x128xf32>
    %811 = tpu.concatenate %766, %801 in 1 : vector<2x64xf32>, vector<2x64xf32> -> vector<2x128xf32>
    %c1_i32_285 = arith.constant 1 : i32
    %812 = arith.truncf %810 : vector<2x128xf32> to vector<2x128xbf16>
    %cst_286 = arith.constant dense<0.000000e+00> : vector<2x512xf32>
    %813 = tpu.matmul %812, %723, %cst_286 {dimension_numbers = #tpu.dot_dimension_numbers<[1], [0], [0], [1], [0, 0, 1, 1], [], []>} : vector<2x128xbf16>, vector<128x512xbf16>, vector<2x512xf32> -> vector<2x512xf32>
    %c7_i32_287 = arith.constant 7 : i32
    %814 = arith.subi %c7_i32_287, %c1_i32_285 : i32
    %c2_i32_288 = arith.constant 2 : i32
    %815 = arith.muli %c1_i32_285, %c2_i32_288 : i32
    %816 = arith.index_cast %815 : i32 to index
    %c0_289 = arith.constant 0 : index
    %817 = vector.load %arg19[%816, %c0_289] : memref<16x512xf32, #tpu.memory_space<vmem>>, vector<2x512xf32>
    %c2_i32_290 = arith.constant 2 : i32
    %818 = arith.muli %814, %c2_i32_290 : i32
    %819 = arith.index_cast %818 : i32 to index
    %c0_291 = arith.constant 0 : index
    %820 = vector.load %arg19[%819, %c0_291] : memref<16x512xf32, #tpu.memory_space<vmem>>, vector<2x512xf32>
    %821 = vector.extract_strided_slice %817 {offsets = [0, 0], sizes = [2, 256], strides = [1, 1]} : vector<2x512xf32> to vector<2x256xf32>
    %822 = vector.extract_strided_slice %813 {offsets = [0, 0], sizes = [2, 256], strides = [1, 1]} : vector<2x512xf32> to vector<2x256xf32>
    %823 = arith.addf %821, %822 : vector<2x256xf32>
    %824 = vector.extract_strided_slice %811 {offsets = [0, 0], sizes = [2, 64], strides = [1, 1]} : vector<2x128xf32> to vector<2x64xf32>
    %825 = vector.extract_strided_slice %823 {offsets = [0, 0], sizes = [2, 64], strides = [1, 1]} : vector<2x256xf32> to vector<2x64xf32>
    %cst_292 = arith.constant 5.000000e-01 : f32
    %826 = vector.broadcast %cst_292 : f32 to vector<2x64xf32>
    %827 = arith.mulf %826, %825 : vector<2x64xf32>
    %828 = math.tanh %827 : vector<2x64xf32>
    %cst_293 = arith.constant 5.000000e-01 : f32
    %829 = vector.broadcast %cst_293 : f32 to vector<2x64xf32>
    %830 = arith.mulf %829, %828 : vector<2x64xf32>
    %cst_294 = arith.constant 5.000000e-01 : f32
    %831 = vector.broadcast %cst_294 : f32 to vector<2x64xf32>
    %832 = arith.addf %830, %831 : vector<2x64xf32>
    %833 = vector.extract_strided_slice %823 {offsets = [0, 64], sizes = [2, 64], strides = [1, 1]} : vector<2x256xf32> to vector<2x64xf32>
    %cst_295 = arith.constant 5.000000e-01 : f32
    %834 = vector.broadcast %cst_295 : f32 to vector<2x64xf32>
    %835 = arith.mulf %834, %833 : vector<2x64xf32>
    %836 = math.tanh %835 : vector<2x64xf32>
    %cst_296 = arith.constant 5.000000e-01 : f32
    %837 = vector.broadcast %cst_296 : f32 to vector<2x64xf32>
    %838 = arith.mulf %837, %836 : vector<2x64xf32>
    %cst_297 = arith.constant 5.000000e-01 : f32
    %839 = vector.broadcast %cst_297 : f32 to vector<2x64xf32>
    %840 = arith.addf %838, %839 : vector<2x64xf32>
    %841 = vector.extract_strided_slice %823 {offsets = [0, 128], sizes = [2, 64], strides = [1, 1]} : vector<2x256xf32> to vector<2x64xf32>
    %842 = math.tanh %841 : vector<2x64xf32>
    %843 = vector.extract_strided_slice %823 {offsets = [0, 192], sizes = [2, 64], strides = [1, 1]} : vector<2x256xf32> to vector<2x64xf32>
    %cst_298 = arith.constant 5.000000e-01 : f32
    %844 = vector.broadcast %cst_298 : f32 to vector<2x64xf32>
    %845 = arith.mulf %844, %843 : vector<2x64xf32>
    %846 = math.tanh %845 : vector<2x64xf32>
    %cst_299 = arith.constant 5.000000e-01 : f32
    %847 = vector.broadcast %cst_299 : f32 to vector<2x64xf32>
    %848 = arith.mulf %847, %846 : vector<2x64xf32>
    %cst_300 = arith.constant 5.000000e-01 : f32
    %849 = vector.broadcast %cst_300 : f32 to vector<2x64xf32>
    %850 = arith.addf %848, %849 : vector<2x64xf32>
    %851 = arith.mulf %840, %824 : vector<2x64xf32>
    %852 = arith.mulf %832, %842 : vector<2x64xf32>
    %853 = arith.addf %851, %852 : vector<2x64xf32>
    %854 = math.tanh %853 : vector<2x64xf32>
    %855 = arith.mulf %850, %854 : vector<2x64xf32>
    %856 = vector.extract_strided_slice %820 {offsets = [0, 256], sizes = [2, 256], strides = [1, 1]} : vector<2x512xf32> to vector<2x256xf32>
    %857 = vector.extract_strided_slice %813 {offsets = [0, 256], sizes = [2, 256], strides = [1, 1]} : vector<2x512xf32> to vector<2x256xf32>
    %858 = arith.addf %856, %857 : vector<2x256xf32>
    %859 = vector.extract_strided_slice %811 {offsets = [0, 64], sizes = [2, 64], strides = [1, 1]} : vector<2x128xf32> to vector<2x64xf32>
    %860 = vector.extract_strided_slice %858 {offsets = [0, 0], sizes = [2, 64], strides = [1, 1]} : vector<2x256xf32> to vector<2x64xf32>
    %cst_301 = arith.constant 5.000000e-01 : f32
    %861 = vector.broadcast %cst_301 : f32 to vector<2x64xf32>
    %862 = arith.mulf %861, %860 : vector<2x64xf32>
    %863 = math.tanh %862 : vector<2x64xf32>
    %cst_302 = arith.constant 5.000000e-01 : f32
    %864 = vector.broadcast %cst_302 : f32 to vector<2x64xf32>
    %865 = arith.mulf %864, %863 : vector<2x64xf32>
    %cst_303 = arith.constant 5.000000e-01 : f32
    %866 = vector.broadcast %cst_303 : f32 to vector<2x64xf32>
    %867 = arith.addf %865, %866 : vector<2x64xf32>
    %868 = vector.extract_strided_slice %858 {offsets = [0, 64], sizes = [2, 64], strides = [1, 1]} : vector<2x256xf32> to vector<2x64xf32>
    %cst_304 = arith.constant 5.000000e-01 : f32
    %869 = vector.broadcast %cst_304 : f32 to vector<2x64xf32>
    %870 = arith.mulf %869, %868 : vector<2x64xf32>
    %871 = math.tanh %870 : vector<2x64xf32>
    %cst_305 = arith.constant 5.000000e-01 : f32
    %872 = vector.broadcast %cst_305 : f32 to vector<2x64xf32>
    %873 = arith.mulf %872, %871 : vector<2x64xf32>
    %cst_306 = arith.constant 5.000000e-01 : f32
    %874 = vector.broadcast %cst_306 : f32 to vector<2x64xf32>
    %875 = arith.addf %873, %874 : vector<2x64xf32>
    %876 = vector.extract_strided_slice %858 {offsets = [0, 128], sizes = [2, 64], strides = [1, 1]} : vector<2x256xf32> to vector<2x64xf32>
    %877 = math.tanh %876 : vector<2x64xf32>
    %878 = vector.extract_strided_slice %858 {offsets = [0, 192], sizes = [2, 64], strides = [1, 1]} : vector<2x256xf32> to vector<2x64xf32>
    %cst_307 = arith.constant 5.000000e-01 : f32
    %879 = vector.broadcast %cst_307 : f32 to vector<2x64xf32>
    %880 = arith.mulf %879, %878 : vector<2x64xf32>
    %881 = math.tanh %880 : vector<2x64xf32>
    %cst_308 = arith.constant 5.000000e-01 : f32
    %882 = vector.broadcast %cst_308 : f32 to vector<2x64xf32>
    %883 = arith.mulf %882, %881 : vector<2x64xf32>
    %cst_309 = arith.constant 5.000000e-01 : f32
    %884 = vector.broadcast %cst_309 : f32 to vector<2x64xf32>
    %885 = arith.addf %883, %884 : vector<2x64xf32>
    %886 = arith.mulf %875, %859 : vector<2x64xf32>
    %887 = arith.mulf %867, %877 : vector<2x64xf32>
    %888 = arith.addf %886, %887 : vector<2x64xf32>
    %889 = math.tanh %888 : vector<2x64xf32>
    %890 = arith.mulf %885, %889 : vector<2x64xf32>
    %c2_i32_310 = arith.constant 2 : i32
    %891 = arith.muli %c1_i32_285, %c2_i32_310 : i32
    %892 = arith.index_cast %891 : i32 to index
    %c0_311 = arith.constant 0 : index
    %893 = vector.load %arg20[%892, %c0_311] : memref<16x64xf32, #tpu.memory_space<vmem>>, vector<2x64xf32>
    tpu.vector_store %arg20[%892, %c0_311], %855 {strides = array<i32>} : memref<16x64xf32, #tpu.memory_space<vmem>>, vector<2x64xf32>,
    %c2_i32_312 = arith.constant 2 : i32
    %894 = arith.muli %814, %c2_i32_312 : i32
    %895 = arith.index_cast %894 : i32 to index
    %c0_313 = arith.constant 0 : index
    %896 = vector.load %arg21[%895, %c0_313] : memref<16x64xf32, #tpu.memory_space<vmem>>, vector<2x64xf32>
    tpu.vector_store %arg21[%895, %c0_313], %890 {strides = array<i32>} : memref<16x64xf32, #tpu.memory_space<vmem>>, vector<2x64xf32>,
    %897 = tpu.concatenate %855, %890 in 1 : vector<2x64xf32>, vector<2x64xf32> -> vector<2x128xf32>
    %898 = tpu.concatenate %853, %888 in 1 : vector<2x64xf32>, vector<2x64xf32> -> vector<2x128xf32>
    %c2_i32_314 = arith.constant 2 : i32
    %899 = arith.truncf %897 : vector<2x128xf32> to vector<2x128xbf16>
    %cst_315 = arith.constant dense<0.000000e+00> : vector<2x512xf32>
    %900 = tpu.matmul %899, %723, %cst_315 {dimension_numbers = #tpu.dot_dimension_numbers<[1], [0], [0], [1], [0, 0, 1, 1], [], []>} : vector<2x128xbf16>, vector<128x512xbf16>, vector<2x512xf32> -> vector<2x512xf32>
    %c7_i32_316 = arith.constant 7 : i32
    %901 = arith.subi %c7_i32_316, %c2_i32_314 : i32
    %c2_i32_317 = arith.constant 2 : i32
    %902 = arith.muli %c2_i32_314, %c2_i32_317 : i32
    %903 = arith.index_cast %902 : i32 to index
    %c0_318 = arith.constant 0 : index
    %904 = vector.load %arg19[%903, %c0_318] : memref<16x512xf32, #tpu.memory_space<vmem>>, vector<2x512xf32>
    %c2_i32_319 = arith.constant 2 : i32
    %905 = arith.muli %901, %c2_i32_319 : i32
    %906 = arith.index_cast %905 : i32 to index
    %c0_320 = arith.constant 0 : index
    %907 = vector.load %arg19[%906, %c0_320] : memref<16x512xf32, #tpu.memory_space<vmem>>, vector<2x512xf32>
    %908 = vector.extract_strided_slice %904 {offsets = [0, 0], sizes = [2, 256], strides = [1, 1]} : vector<2x512xf32> to vector<2x256xf32>
    %909 = vector.extract_strided_slice %900 {offsets = [0, 0], sizes = [2, 256], strides = [1, 1]} : vector<2x512xf32> to vector<2x256xf32>
    %910 = arith.addf %908, %909 : vector<2x256xf32>
    %911 = vector.extract_strided_slice %898 {offsets = [0, 0], sizes = [2, 64], strides = [1, 1]} : vector<2x128xf32> to vector<2x64xf32>
    %912 = vector.extract_strided_slice %910 {offsets = [0, 0], sizes = [2, 64], strides = [1, 1]} : vector<2x256xf32> to vector<2x64xf32>
    %cst_321 = arith.constant 5.000000e-01 : f32
    %913 = vector.broadcast %cst_321 : f32 to vector<2x64xf32>
    %914 = arith.mulf %913, %912 : vector<2x64xf32>
    %915 = math.tanh %914 : vector<2x64xf32>
    %cst_322 = arith.constant 5.000000e-01 : f32
    %916 = vector.broadcast %cst_322 : f32 to vector<2x64xf32>
    %917 = arith.mulf %916, %915 : vector<2x64xf32>
    %cst_323 = arith.constant 5.000000e-01 : f32
    %918 = vector.broadcast %cst_323 : f32 to vector<2x64xf32>
    %919 = arith.addf %917, %918 : vector<2x64xf32>
    %920 = vector.extract_strided_slice %910 {offsets = [0, 64], sizes = [2, 64], strides = [1, 1]} : vector<2x256xf32> to vector<2x64xf32>
    %cst_324 = arith.constant 5.000000e-01 : f32
    %921 = vector.broadcast %cst_324 : f32 to vector<2x64xf32>
    %922 = arith.mulf %921, %920 : vector<2x64xf32>
    %923 = math.tanh %922 : vector<2x64xf32>
    %cst_325 = arith.constant 5.000000e-01 : f32
    %924 = vector.broadcast %cst_325 : f32 to vector<2x64xf32>
    %925 = arith.mulf %924, %923 : vector<2x64xf32>
    %cst_326 = arith.constant 5.000000e-01 : f32
    %926 = vector.broadcast %cst_326 : f32 to vector<2x64xf32>
    %927 = arith.addf %925, %926 : vector<2x64xf32>
    %928 = vector.extract_strided_slice %910 {offsets = [0, 128], sizes = [2, 64], strides = [1, 1]} : vector<2x256xf32> to vector<2x64xf32>
    %929 = math.tanh %928 : vector<2x64xf32>
    %930 = vector.extract_strided_slice %910 {offsets = [0, 192], sizes = [2, 64], strides = [1, 1]} : vector<2x256xf32> to vector<2x64xf32>
    %cst_327 = arith.constant 5.000000e-01 : f32
    %931 = vector.broadcast %cst_327 : f32 to vector<2x64xf32>
    %932 = arith.mulf %931, %930 : vector<2x64xf32>
    %933 = math.tanh %932 : vector<2x64xf32>
    %cst_328 = arith.constant 5.000000e-01 : f32
    %934 = vector.broadcast %cst_328 : f32 to vector<2x64xf32>
    %935 = arith.mulf %934, %933 : vector<2x64xf32>
    %cst_329 = arith.constant 5.000000e-01 : f32
    %936 = vector.broadcast %cst_329 : f32 to vector<2x64xf32>
    %937 = arith.addf %935, %936 : vector<2x64xf32>
    %938 = arith.mulf %927, %911 : vector<2x64xf32>
    %939 = arith.mulf %919, %929 : vector<2x64xf32>
    %940 = arith.addf %938, %939 : vector<2x64xf32>
    %941 = math.tanh %940 : vector<2x64xf32>
    %942 = arith.mulf %937, %941 : vector<2x64xf32>
    %943 = vector.extract_strided_slice %907 {offsets = [0, 256], sizes = [2, 256], strides = [1, 1]} : vector<2x512xf32> to vector<2x256xf32>
    %944 = vector.extract_strided_slice %900 {offsets = [0, 256], sizes = [2, 256], strides = [1, 1]} : vector<2x512xf32> to vector<2x256xf32>
    %945 = arith.addf %943, %944 : vector<2x256xf32>
    %946 = vector.extract_strided_slice %898 {offsets = [0, 64], sizes = [2, 64], strides = [1, 1]} : vector<2x128xf32> to vector<2x64xf32>
    %947 = vector.extract_strided_slice %945 {offsets = [0, 0], sizes = [2, 64], strides = [1, 1]} : vector<2x256xf32> to vector<2x64xf32>
    %cst_330 = arith.constant 5.000000e-01 : f32
    %948 = vector.broadcast %cst_330 : f32 to vector<2x64xf32>
    %949 = arith.mulf %948, %947 : vector<2x64xf32>
    %950 = math.tanh %949 : vector<2x64xf32>
    %cst_331 = arith.constant 5.000000e-01 : f32
    %951 = vector.broadcast %cst_331 : f32 to vector<2x64xf32>
    %952 = arith.mulf %951, %950 : vector<2x64xf32>
    %cst_332 = arith.constant 5.000000e-01 : f32
    %953 = vector.broadcast %cst_332 : f32 to vector<2x64xf32>
    %954 = arith.addf %952, %953 : vector<2x64xf32>
    %955 = vector.extract_strided_slice %945 {offsets = [0, 64], sizes = [2, 64], strides = [1, 1]} : vector<2x256xf32> to vector<2x64xf32>
    %cst_333 = arith.constant 5.000000e-01 : f32
    %956 = vector.broadcast %cst_333 : f32 to vector<2x64xf32>
    %957 = arith.mulf %956, %955 : vector<2x64xf32>
    %958 = math.tanh %957 : vector<2x64xf32>
    %cst_334 = arith.constant 5.000000e-01 : f32
    %959 = vector.broadcast %cst_334 : f32 to vector<2x64xf32>
    %960 = arith.mulf %959, %958 : vector<2x64xf32>
    %cst_335 = arith.constant 5.000000e-01 : f32
    %961 = vector.broadcast %cst_335 : f32 to vector<2x64xf32>
    %962 = arith.addf %960, %961 : vector<2x64xf32>
    %963 = vector.extract_strided_slice %945 {offsets = [0, 128], sizes = [2, 64], strides = [1, 1]} : vector<2x256xf32> to vector<2x64xf32>
    %964 = math.tanh %963 : vector<2x64xf32>
    %965 = vector.extract_strided_slice %945 {offsets = [0, 192], sizes = [2, 64], strides = [1, 1]} : vector<2x256xf32> to vector<2x64xf32>
    %cst_336 = arith.constant 5.000000e-01 : f32
    %966 = vector.broadcast %cst_336 : f32 to vector<2x64xf32>
    %967 = arith.mulf %966, %965 : vector<2x64xf32>
    %968 = math.tanh %967 : vector<2x64xf32>
    %cst_337 = arith.constant 5.000000e-01 : f32
    %969 = vector.broadcast %cst_337 : f32 to vector<2x64xf32>
    %970 = arith.mulf %969, %968 : vector<2x64xf32>
    %cst_338 = arith.constant 5.000000e-01 : f32
    %971 = vector.broadcast %cst_338 : f32 to vector<2x64xf32>
    %972 = arith.addf %970, %971 : vector<2x64xf32>
    %973 = arith.mulf %962, %946 : vector<2x64xf32>
    %974 = arith.mulf %954, %964 : vector<2x64xf32>
    %975 = arith.addf %973, %974 : vector<2x64xf32>
    %976 = math.tanh %975 : vector<2x64xf32>
    %977 = arith.mulf %972, %976 : vector<2x64xf32>
    %c2_i32_339 = arith.constant 2 : i32
    %978 = arith.muli %c2_i32_314, %c2_i32_339 : i32
    %979 = arith.index_cast %978 : i32 to index
    %c0_340 = arith.constant 0 : index
    %980 = vector.load %arg20[%979, %c0_340] : memref<16x64xf32, #tpu.memory_space<vmem>>, vector<2x64xf32>
    tpu.vector_store %arg20[%979, %c0_340], %942 {strides = array<i32>} : memref<16x64xf32, #tpu.memory_space<vmem>>, vector<2x64xf32>,
    %c2_i32_341 = arith.constant 2 : i32
    %981 = arith.muli %901, %c2_i32_341 : i32
    %982 = arith.index_cast %981 : i32 to index
    %c0_342 = arith.constant 0 : index
    %983 = vector.load %arg21[%982, %c0_342] : memref<16x64xf32, #tpu.memory_space<vmem>>, vector<2x64xf32>
    tpu.vector_store %arg21[%982, %c0_342], %977 {strides = array<i32>} : memref<16x64xf32, #tpu.memory_space<vmem>>, vector<2x64xf32>,
    %984 = tpu.concatenate %942, %977 in 1 : vector<2x64xf32>, vector<2x64xf32> -> vector<2x128xf32>
    %985 = tpu.concatenate %940, %975 in 1 : vector<2x64xf32>, vector<2x64xf32> -> vector<2x128xf32>
    %c3_i32_343 = arith.constant 3 : i32
    %986 = arith.truncf %984 : vector<2x128xf32> to vector<2x128xbf16>
    %cst_344 = arith.constant dense<0.000000e+00> : vector<2x512xf32>
    %987 = tpu.matmul %986, %723, %cst_344 {dimension_numbers = #tpu.dot_dimension_numbers<[1], [0], [0], [1], [0, 0, 1, 1], [], []>} : vector<2x128xbf16>, vector<128x512xbf16>, vector<2x512xf32> -> vector<2x512xf32>
    %c7_i32_345 = arith.constant 7 : i32
    %988 = arith.subi %c7_i32_345, %c3_i32_343 : i32
    %c2_i32_346 = arith.constant 2 : i32
    %989 = arith.muli %c3_i32_343, %c2_i32_346 : i32
    %990 = arith.index_cast %989 : i32 to index
    %c0_347 = arith.constant 0 : index
    %991 = vector.load %arg19[%990, %c0_347] : memref<16x512xf32, #tpu.memory_space<vmem>>, vector<2x512xf32>
    %c2_i32_348 = arith.constant 2 : i32
    %992 = arith.muli %988, %c2_i32_348 : i32
    %993 = arith.index_cast %992 : i32 to index
    %c0_349 = arith.constant 0 : index
    %994 = vector.load %arg19[%993, %c0_349] : memref<16x512xf32, #tpu.memory_space<vmem>>, vector<2x512xf32>
    %995 = vector.extract_strided_slice %991 {offsets = [0, 0], sizes = [2, 256], strides = [1, 1]} : vector<2x512xf32> to vector<2x256xf32>
    %996 = vector.extract_strided_slice %987 {offsets = [0, 0], sizes = [2, 256], strides = [1, 1]} : vector<2x512xf32> to vector<2x256xf32>
    %997 = arith.addf %995, %996 : vector<2x256xf32>
    %998 = vector.extract_strided_slice %985 {offsets = [0, 0], sizes = [2, 64], strides = [1, 1]} : vector<2x128xf32> to vector<2x64xf32>
    %999 = vector.extract_strided_slice %997 {offsets = [0, 0], sizes = [2, 64], strides = [1, 1]} : vector<2x256xf32> to vector<2x64xf32>
    %cst_350 = arith.constant 5.000000e-01 : f32
    %1000 = vector.broadcast %cst_350 : f32 to vector<2x64xf32>
    %1001 = arith.mulf %1000, %999 : vector<2x64xf32>
    %1002 = math.tanh %1001 : vector<2x64xf32>
    %cst_351 = arith.constant 5.000000e-01 : f32
    %1003 = vector.broadcast %cst_351 : f32 to vector<2x64xf32>
    %1004 = arith.mulf %1003, %1002 : vector<2x64xf32>
    %cst_352 = arith.constant 5.000000e-01 : f32
    %1005 = vector.broadcast %cst_352 : f32 to vector<2x64xf32>
    %1006 = arith.addf %1004, %1005 : vector<2x64xf32>
    %1007 = vector.extract_strided_slice %997 {offsets = [0, 64], sizes = [2, 64], strides = [1, 1]} : vector<2x256xf32> to vector<2x64xf32>
    %cst_353 = arith.constant 5.000000e-01 : f32
    %1008 = vector.broadcast %cst_353 : f32 to vector<2x64xf32>
    %1009 = arith.mulf %1008, %1007 : vector<2x64xf32>
    %1010 = math.tanh %1009 : vector<2x64xf32>
    %cst_354 = arith.constant 5.000000e-01 : f32
    %1011 = vector.broadcast %cst_354 : f32 to vector<2x64xf32>
    %1012 = arith.mulf %1011, %1010 : vector<2x64xf32>
    %cst_355 = arith.constant 5.000000e-01 : f32
    %1013 = vector.broadcast %cst_355 : f32 to vector<2x64xf32>
    %1014 = arith.addf %1012, %1013 : vector<2x64xf32>
    %1015 = vector.extract_strided_slice %997 {offsets = [0, 128], sizes = [2, 64], strides = [1, 1]} : vector<2x256xf32> to vector<2x64xf32>
    %1016 = math.tanh %1015 : vector<2x64xf32>
    %1017 = vector.extract_strided_slice %997 {offsets = [0, 192], sizes = [2, 64], strides = [1, 1]} : vector<2x256xf32> to vector<2x64xf32>
    %cst_356 = arith.constant 5.000000e-01 : f32
    %1018 = vector.broadcast %cst_356 : f32 to vector<2x64xf32>
    %1019 = arith.mulf %1018, %1017 : vector<2x64xf32>
    %1020 = math.tanh %1019 : vector<2x64xf32>
    %cst_357 = arith.constant 5.000000e-01 : f32
    %1021 = vector.broadcast %cst_357 : f32 to vector<2x64xf32>
    %1022 = arith.mulf %1021, %1020 : vector<2x64xf32>
    %cst_358 = arith.constant 5.000000e-01 : f32
    %1023 = vector.broadcast %cst_358 : f32 to vector<2x64xf32>
    %1024 = arith.addf %1022, %1023 : vector<2x64xf32>
    %1025 = arith.mulf %1014, %998 : vector<2x64xf32>
    %1026 = arith.mulf %1006, %1016 : vector<2x64xf32>
    %1027 = arith.addf %1025, %1026 : vector<2x64xf32>
    %1028 = math.tanh %1027 : vector<2x64xf32>
    %1029 = arith.mulf %1024, %1028 : vector<2x64xf32>
    %1030 = vector.extract_strided_slice %994 {offsets = [0, 256], sizes = [2, 256], strides = [1, 1]} : vector<2x512xf32> to vector<2x256xf32>
    %1031 = vector.extract_strided_slice %987 {offsets = [0, 256], sizes = [2, 256], strides = [1, 1]} : vector<2x512xf32> to vector<2x256xf32>
    %1032 = arith.addf %1030, %1031 : vector<2x256xf32>
    %1033 = vector.extract_strided_slice %985 {offsets = [0, 64], sizes = [2, 64], strides = [1, 1]} : vector<2x128xf32> to vector<2x64xf32>
    %1034 = vector.extract_strided_slice %1032 {offsets = [0, 0], sizes = [2, 64], strides = [1, 1]} : vector<2x256xf32> to vector<2x64xf32>
    %cst_359 = arith.constant 5.000000e-01 : f32
    %1035 = vector.broadcast %cst_359 : f32 to vector<2x64xf32>
    %1036 = arith.mulf %1035, %1034 : vector<2x64xf32>
    %1037 = math.tanh %1036 : vector<2x64xf32>
    %cst_360 = arith.constant 5.000000e-01 : f32
    %1038 = vector.broadcast %cst_360 : f32 to vector<2x64xf32>
    %1039 = arith.mulf %1038, %1037 : vector<2x64xf32>
    %cst_361 = arith.constant 5.000000e-01 : f32
    %1040 = vector.broadcast %cst_361 : f32 to vector<2x64xf32>
    %1041 = arith.addf %1039, %1040 : vector<2x64xf32>
    %1042 = vector.extract_strided_slice %1032 {offsets = [0, 64], sizes = [2, 64], strides = [1, 1]} : vector<2x256xf32> to vector<2x64xf32>
    %cst_362 = arith.constant 5.000000e-01 : f32
    %1043 = vector.broadcast %cst_362 : f32 to vector<2x64xf32>
    %1044 = arith.mulf %1043, %1042 : vector<2x64xf32>
    %1045 = math.tanh %1044 : vector<2x64xf32>
    %cst_363 = arith.constant 5.000000e-01 : f32
    %1046 = vector.broadcast %cst_363 : f32 to vector<2x64xf32>
    %1047 = arith.mulf %1046, %1045 : vector<2x64xf32>
    %cst_364 = arith.constant 5.000000e-01 : f32
    %1048 = vector.broadcast %cst_364 : f32 to vector<2x64xf32>
    %1049 = arith.addf %1047, %1048 : vector<2x64xf32>
    %1050 = vector.extract_strided_slice %1032 {offsets = [0, 128], sizes = [2, 64], strides = [1, 1]} : vector<2x256xf32> to vector<2x64xf32>
    %1051 = math.tanh %1050 : vector<2x64xf32>
    %1052 = vector.extract_strided_slice %1032 {offsets = [0, 192], sizes = [2, 64], strides = [1, 1]} : vector<2x256xf32> to vector<2x64xf32>
    %cst_365 = arith.constant 5.000000e-01 : f32
    %1053 = vector.broadcast %cst_365 : f32 to vector<2x64xf32>
    %1054 = arith.mulf %1053, %1052 : vector<2x64xf32>
    %1055 = math.tanh %1054 : vector<2x64xf32>
    %cst_366 = arith.constant 5.000000e-01 : f32
    %1056 = vector.broadcast %cst_366 : f32 to vector<2x64xf32>
    %1057 = arith.mulf %1056, %1055 : vector<2x64xf32>
    %cst_367 = arith.constant 5.000000e-01 : f32
    %1058 = vector.broadcast %cst_367 : f32 to vector<2x64xf32>
    %1059 = arith.addf %1057, %1058 : vector<2x64xf32>
    %1060 = arith.mulf %1049, %1033 : vector<2x64xf32>
    %1061 = arith.mulf %1041, %1051 : vector<2x64xf32>
    %1062 = arith.addf %1060, %1061 : vector<2x64xf32>
    %1063 = math.tanh %1062 : vector<2x64xf32>
    %1064 = arith.mulf %1059, %1063 : vector<2x64xf32>
    %c2_i32_368 = arith.constant 2 : i32
    %1065 = arith.muli %c3_i32_343, %c2_i32_368 : i32
    %1066 = arith.index_cast %1065 : i32 to index
    %c0_369 = arith.constant 0 : index
    %1067 = vector.load %arg20[%1066, %c0_369] : memref<16x64xf32, #tpu.memory_space<vmem>>, vector<2x64xf32>
    tpu.vector_store %arg20[%1066, %c0_369], %1029 {strides = array<i32>} : memref<16x64xf32, #tpu.memory_space<vmem>>, vector<2x64xf32>,
    %c2_i32_370 = arith.constant 2 : i32
    %1068 = arith.muli %988, %c2_i32_370 : i32
    %1069 = arith.index_cast %1068 : i32 to index
    %c0_371 = arith.constant 0 : index
    %1070 = vector.load %arg21[%1069, %c0_371] : memref<16x64xf32, #tpu.memory_space<vmem>>, vector<2x64xf32>
    tpu.vector_store %arg21[%1069, %c0_371], %1064 {strides = array<i32>} : memref<16x64xf32, #tpu.memory_space<vmem>>, vector<2x64xf32>,
    %1071 = tpu.concatenate %1029, %1064 in 1 : vector<2x64xf32>, vector<2x64xf32> -> vector<2x128xf32>
    %1072 = tpu.concatenate %1027, %1062 in 1 : vector<2x64xf32>, vector<2x64xf32> -> vector<2x128xf32>
    %c4_i32_372 = arith.constant 4 : i32
    %1073 = arith.truncf %1071 : vector<2x128xf32> to vector<2x128xbf16>
    %cst_373 = arith.constant dense<0.000000e+00> : vector<2x512xf32>
    %1074 = tpu.matmul %1073, %723, %cst_373 {dimension_numbers = #tpu.dot_dimension_numbers<[1], [0], [0], [1], [0, 0, 1, 1], [], []>} : vector<2x128xbf16>, vector<128x512xbf16>, vector<2x512xf32> -> vector<2x512xf32>
    %c7_i32_374 = arith.constant 7 : i32
    %1075 = arith.subi %c7_i32_374, %c4_i32_372 : i32
    %c2_i32_375 = arith.constant 2 : i32
    %1076 = arith.muli %c4_i32_372, %c2_i32_375 : i32
    %1077 = arith.index_cast %1076 : i32 to index
    %c0_376 = arith.constant 0 : index
    %1078 = vector.load %arg19[%1077, %c0_376] : memref<16x512xf32, #tpu.memory_space<vmem>>, vector<2x512xf32>
    %c2_i32_377 = arith.constant 2 : i32
    %1079 = arith.muli %1075, %c2_i32_377 : i32
    %1080 = arith.index_cast %1079 : i32 to index
    %c0_378 = arith.constant 0 : index
    %1081 = vector.load %arg19[%1080, %c0_378] : memref<16x512xf32, #tpu.memory_space<vmem>>, vector<2x512xf32>
    %1082 = vector.extract_strided_slice %1078 {offsets = [0, 0], sizes = [2, 256], strides = [1, 1]} : vector<2x512xf32> to vector<2x256xf32>
    %1083 = vector.extract_strided_slice %1074 {offsets = [0, 0], sizes = [2, 256], strides = [1, 1]} : vector<2x512xf32> to vector<2x256xf32>
    %1084 = arith.addf %1082, %1083 : vector<2x256xf32>
    %1085 = vector.extract_strided_slice %1072 {offsets = [0, 0], sizes = [2, 64], strides = [1, 1]} : vector<2x128xf32> to vector<2x64xf32>
    %1086 = vector.extract_strided_slice %1084 {offsets = [0, 0], sizes = [2, 64], strides = [1, 1]} : vector<2x256xf32> to vector<2x64xf32>
    %cst_379 = arith.constant 5.000000e-01 : f32
    %1087 = vector.broadcast %cst_379 : f32 to vector<2x64xf32>
    %1088 = arith.mulf %1087, %1086 : vector<2x64xf32>
    %1089 = math.tanh %1088 : vector<2x64xf32>
    %cst_380 = arith.constant 5.000000e-01 : f32
    %1090 = vector.broadcast %cst_380 : f32 to vector<2x64xf32>
    %1091 = arith.mulf %1090, %1089 : vector<2x64xf32>
    %cst_381 = arith.constant 5.000000e-01 : f32
    %1092 = vector.broadcast %cst_381 : f32 to vector<2x64xf32>
    %1093 = arith.addf %1091, %1092 : vector<2x64xf32>
    %1094 = vector.extract_strided_slice %1084 {offsets = [0, 64], sizes = [2, 64], strides = [1, 1]} : vector<2x256xf32> to vector<2x64xf32>
    %cst_382 = arith.constant 5.000000e-01 : f32
    %1095 = vector.broadcast %cst_382 : f32 to vector<2x64xf32>
    %1096 = arith.mulf %1095, %1094 : vector<2x64xf32>
    %1097 = math.tanh %1096 : vector<2x64xf32>
    %cst_383 = arith.constant 5.000000e-01 : f32
    %1098 = vector.broadcast %cst_383 : f32 to vector<2x64xf32>
    %1099 = arith.mulf %1098, %1097 : vector<2x64xf32>
    %cst_384 = arith.constant 5.000000e-01 : f32
    %1100 = vector.broadcast %cst_384 : f32 to vector<2x64xf32>
    %1101 = arith.addf %1099, %1100 : vector<2x64xf32>
    %1102 = vector.extract_strided_slice %1084 {offsets = [0, 128], sizes = [2, 64], strides = [1, 1]} : vector<2x256xf32> to vector<2x64xf32>
    %1103 = math.tanh %1102 : vector<2x64xf32>
    %1104 = vector.extract_strided_slice %1084 {offsets = [0, 192], sizes = [2, 64], strides = [1, 1]} : vector<2x256xf32> to vector<2x64xf32>
    %cst_385 = arith.constant 5.000000e-01 : f32
    %1105 = vector.broadcast %cst_385 : f32 to vector<2x64xf32>
    %1106 = arith.mulf %1105, %1104 : vector<2x64xf32>
    %1107 = math.tanh %1106 : vector<2x64xf32>
    %cst_386 = arith.constant 5.000000e-01 : f32
    %1108 = vector.broadcast %cst_386 : f32 to vector<2x64xf32>
    %1109 = arith.mulf %1108, %1107 : vector<2x64xf32>
    %cst_387 = arith.constant 5.000000e-01 : f32
    %1110 = vector.broadcast %cst_387 : f32 to vector<2x64xf32>
    %1111 = arith.addf %1109, %1110 : vector<2x64xf32>
    %1112 = arith.mulf %1101, %1085 : vector<2x64xf32>
    %1113 = arith.mulf %1093, %1103 : vector<2x64xf32>
    %1114 = arith.addf %1112, %1113 : vector<2x64xf32>
    %1115 = math.tanh %1114 : vector<2x64xf32>
    %1116 = arith.mulf %1111, %1115 : vector<2x64xf32>
    %1117 = vector.extract_strided_slice %1081 {offsets = [0, 256], sizes = [2, 256], strides = [1, 1]} : vector<2x512xf32> to vector<2x256xf32>
    %1118 = vector.extract_strided_slice %1074 {offsets = [0, 256], sizes = [2, 256], strides = [1, 1]} : vector<2x512xf32> to vector<2x256xf32>
    %1119 = arith.addf %1117, %1118 : vector<2x256xf32>
    %1120 = vector.extract_strided_slice %1072 {offsets = [0, 64], sizes = [2, 64], strides = [1, 1]} : vector<2x128xf32> to vector<2x64xf32>
    %1121 = vector.extract_strided_slice %1119 {offsets = [0, 0], sizes = [2, 64], strides = [1, 1]} : vector<2x256xf32> to vector<2x64xf32>
    %cst_388 = arith.constant 5.000000e-01 : f32
    %1122 = vector.broadcast %cst_388 : f32 to vector<2x64xf32>
    %1123 = arith.mulf %1122, %1121 : vector<2x64xf32>
    %1124 = math.tanh %1123 : vector<2x64xf32>
    %cst_389 = arith.constant 5.000000e-01 : f32
    %1125 = vector.broadcast %cst_389 : f32 to vector<2x64xf32>
    %1126 = arith.mulf %1125, %1124 : vector<2x64xf32>
    %cst_390 = arith.constant 5.000000e-01 : f32
    %1127 = vector.broadcast %cst_390 : f32 to vector<2x64xf32>
    %1128 = arith.addf %1126, %1127 : vector<2x64xf32>
    %1129 = vector.extract_strided_slice %1119 {offsets = [0, 64], sizes = [2, 64], strides = [1, 1]} : vector<2x256xf32> to vector<2x64xf32>
    %cst_391 = arith.constant 5.000000e-01 : f32
    %1130 = vector.broadcast %cst_391 : f32 to vector<2x64xf32>
    %1131 = arith.mulf %1130, %1129 : vector<2x64xf32>
    %1132 = math.tanh %1131 : vector<2x64xf32>
    %cst_392 = arith.constant 5.000000e-01 : f32
    %1133 = vector.broadcast %cst_392 : f32 to vector<2x64xf32>
    %1134 = arith.mulf %1133, %1132 : vector<2x64xf32>
    %cst_393 = arith.constant 5.000000e-01 : f32
    %1135 = vector.broadcast %cst_393 : f32 to vector<2x64xf32>
    %1136 = arith.addf %1134, %1135 : vector<2x64xf32>
    %1137 = vector.extract_strided_slice %1119 {offsets = [0, 128], sizes = [2, 64], strides = [1, 1]} : vector<2x256xf32> to vector<2x64xf32>
    %1138 = math.tanh %1137 : vector<2x64xf32>
    %1139 = vector.extract_strided_slice %1119 {offsets = [0, 192], sizes = [2, 64], strides = [1, 1]} : vector<2x256xf32> to vector<2x64xf32>
    %cst_394 = arith.constant 5.000000e-01 : f32
    %1140 = vector.broadcast %cst_394 : f32 to vector<2x64xf32>
    %1141 = arith.mulf %1140, %1139 : vector<2x64xf32>
    %1142 = math.tanh %1141 : vector<2x64xf32>
    %cst_395 = arith.constant 5.000000e-01 : f32
    %1143 = vector.broadcast %cst_395 : f32 to vector<2x64xf32>
    %1144 = arith.mulf %1143, %1142 : vector<2x64xf32>
    %cst_396 = arith.constant 5.000000e-01 : f32
    %1145 = vector.broadcast %cst_396 : f32 to vector<2x64xf32>
    %1146 = arith.addf %1144, %1145 : vector<2x64xf32>
    %1147 = arith.mulf %1136, %1120 : vector<2x64xf32>
    %1148 = arith.mulf %1128, %1138 : vector<2x64xf32>
    %1149 = arith.addf %1147, %1148 : vector<2x64xf32>
    %1150 = math.tanh %1149 : vector<2x64xf32>
    %1151 = arith.mulf %1146, %1150 : vector<2x64xf32>
    %c2_i32_397 = arith.constant 2 : i32
    %1152 = arith.muli %c4_i32_372, %c2_i32_397 : i32
    %1153 = arith.index_cast %1152 : i32 to index
    %c0_398 = arith.constant 0 : index
    %1154 = vector.load %arg20[%1153, %c0_398] : memref<16x64xf32, #tpu.memory_space<vmem>>, vector<2x64xf32>
    tpu.vector_store %arg20[%1153, %c0_398], %1116 {strides = array<i32>} : memref<16x64xf32, #tpu.memory_space<vmem>>, vector<2x64xf32>,
    %c2_i32_399 = arith.constant 2 : i32
    %1155 = arith.muli %1075, %c2_i32_399 : i32
    %1156 = arith.index_cast %1155 : i32 to index
    %c0_400 = arith.constant 0 : index
    %1157 = vector.load %arg21[%1156, %c0_400] : memref<16x64xf32, #tpu.memory_space<vmem>>, vector<2x64xf32>
    tpu.vector_store %arg21[%1156, %c0_400], %1151 {strides = array<i32>} : memref<16x64xf32, #tpu.memory_space<vmem>>, vector<2x64xf32>,
    %1158 = tpu.concatenate %1116, %1151 in 1 : vector<2x64xf32>, vector<2x64xf32> -> vector<2x128xf32>
    %1159 = tpu.concatenate %1114, %1149 in 1 : vector<2x64xf32>, vector<2x64xf32> -> vector<2x128xf32>
    %c5_i32_401 = arith.constant 5 : i32
    %1160 = arith.truncf %1158 : vector<2x128xf32> to vector<2x128xbf16>
    %cst_402 = arith.constant dense<0.000000e+00> : vector<2x512xf32>
    %1161 = tpu.matmul %1160, %723, %cst_402 {dimension_numbers = #tpu.dot_dimension_numbers<[1], [0], [0], [1], [0, 0, 1, 1], [], []>} : vector<2x128xbf16>, vector<128x512xbf16>, vector<2x512xf32> -> vector<2x512xf32>
    %c7_i32_403 = arith.constant 7 : i32
    %1162 = arith.subi %c7_i32_403, %c5_i32_401 : i32
    %c2_i32_404 = arith.constant 2 : i32
    %1163 = arith.muli %c5_i32_401, %c2_i32_404 : i32
    %1164 = arith.index_cast %1163 : i32 to index
    %c0_405 = arith.constant 0 : index
    %1165 = vector.load %arg19[%1164, %c0_405] : memref<16x512xf32, #tpu.memory_space<vmem>>, vector<2x512xf32>
    %c2_i32_406 = arith.constant 2 : i32
    %1166 = arith.muli %1162, %c2_i32_406 : i32
    %1167 = arith.index_cast %1166 : i32 to index
    %c0_407 = arith.constant 0 : index
    %1168 = vector.load %arg19[%1167, %c0_407] : memref<16x512xf32, #tpu.memory_space<vmem>>, vector<2x512xf32>
    %1169 = vector.extract_strided_slice %1165 {offsets = [0, 0], sizes = [2, 256], strides = [1, 1]} : vector<2x512xf32> to vector<2x256xf32>
    %1170 = vector.extract_strided_slice %1161 {offsets = [0, 0], sizes = [2, 256], strides = [1, 1]} : vector<2x512xf32> to vector<2x256xf32>
    %1171 = arith.addf %1169, %1170 : vector<2x256xf32>
    %1172 = vector.extract_strided_slice %1159 {offsets = [0, 0], sizes = [2, 64], strides = [1, 1]} : vector<2x128xf32> to vector<2x64xf32>
    %1173 = vector.extract_strided_slice %1171 {offsets = [0, 0], sizes = [2, 64], strides = [1, 1]} : vector<2x256xf32> to vector<2x64xf32>
    %cst_408 = arith.constant 5.000000e-01 : f32
    %1174 = vector.broadcast %cst_408 : f32 to vector<2x64xf32>
    %1175 = arith.mulf %1174, %1173 : vector<2x64xf32>
    %1176 = math.tanh %1175 : vector<2x64xf32>
    %cst_409 = arith.constant 5.000000e-01 : f32
    %1177 = vector.broadcast %cst_409 : f32 to vector<2x64xf32>
    %1178 = arith.mulf %1177, %1176 : vector<2x64xf32>
    %cst_410 = arith.constant 5.000000e-01 : f32
    %1179 = vector.broadcast %cst_410 : f32 to vector<2x64xf32>
    %1180 = arith.addf %1178, %1179 : vector<2x64xf32>
    %1181 = vector.extract_strided_slice %1171 {offsets = [0, 64], sizes = [2, 64], strides = [1, 1]} : vector<2x256xf32> to vector<2x64xf32>
    %cst_411 = arith.constant 5.000000e-01 : f32
    %1182 = vector.broadcast %cst_411 : f32 to vector<2x64xf32>
    %1183 = arith.mulf %1182, %1181 : vector<2x64xf32>
    %1184 = math.tanh %1183 : vector<2x64xf32>
    %cst_412 = arith.constant 5.000000e-01 : f32
    %1185 = vector.broadcast %cst_412 : f32 to vector<2x64xf32>
    %1186 = arith.mulf %1185, %1184 : vector<2x64xf32>
    %cst_413 = arith.constant 5.000000e-01 : f32
    %1187 = vector.broadcast %cst_413 : f32 to vector<2x64xf32>
    %1188 = arith.addf %1186, %1187 : vector<2x64xf32>
    %1189 = vector.extract_strided_slice %1171 {offsets = [0, 128], sizes = [2, 64], strides = [1, 1]} : vector<2x256xf32> to vector<2x64xf32>
    %1190 = math.tanh %1189 : vector<2x64xf32>
    %1191 = vector.extract_strided_slice %1171 {offsets = [0, 192], sizes = [2, 64], strides = [1, 1]} : vector<2x256xf32> to vector<2x64xf32>
    %cst_414 = arith.constant 5.000000e-01 : f32
    %1192 = vector.broadcast %cst_414 : f32 to vector<2x64xf32>
    %1193 = arith.mulf %1192, %1191 : vector<2x64xf32>
    %1194 = math.tanh %1193 : vector<2x64xf32>
    %cst_415 = arith.constant 5.000000e-01 : f32
    %1195 = vector.broadcast %cst_415 : f32 to vector<2x64xf32>
    %1196 = arith.mulf %1195, %1194 : vector<2x64xf32>
    %cst_416 = arith.constant 5.000000e-01 : f32
    %1197 = vector.broadcast %cst_416 : f32 to vector<2x64xf32>
    %1198 = arith.addf %1196, %1197 : vector<2x64xf32>
    %1199 = arith.mulf %1188, %1172 : vector<2x64xf32>
    %1200 = arith.mulf %1180, %1190 : vector<2x64xf32>
    %1201 = arith.addf %1199, %1200 : vector<2x64xf32>
    %1202 = math.tanh %1201 : vector<2x64xf32>
    %1203 = arith.mulf %1198, %1202 : vector<2x64xf32>
    %1204 = vector.extract_strided_slice %1168 {offsets = [0, 256], sizes = [2, 256], strides = [1, 1]} : vector<2x512xf32> to vector<2x256xf32>
    %1205 = vector.extract_strided_slice %1161 {offsets = [0, 256], sizes = [2, 256], strides = [1, 1]} : vector<2x512xf32> to vector<2x256xf32>
    %1206 = arith.addf %1204, %1205 : vector<2x256xf32>
    %1207 = vector.extract_strided_slice %1159 {offsets = [0, 64], sizes = [2, 64], strides = [1, 1]} : vector<2x128xf32> to vector<2x64xf32>
    %1208 = vector.extract_strided_slice %1206 {offsets = [0, 0], sizes = [2, 64], strides = [1, 1]} : vector<2x256xf32> to vector<2x64xf32>
    %cst_417 = arith.constant 5.000000e-01 : f32
    %1209 = vector.broadcast %cst_417 : f32 to vector<2x64xf32>
    %1210 = arith.mulf %1209, %1208 : vector<2x64xf32>
    %1211 = math.tanh %1210 : vector<2x64xf32>
    %cst_418 = arith.constant 5.000000e-01 : f32
    %1212 = vector.broadcast %cst_418 : f32 to vector<2x64xf32>
    %1213 = arith.mulf %1212, %1211 : vector<2x64xf32>
    %cst_419 = arith.constant 5.000000e-01 : f32
    %1214 = vector.broadcast %cst_419 : f32 to vector<2x64xf32>
    %1215 = arith.addf %1213, %1214 : vector<2x64xf32>
    %1216 = vector.extract_strided_slice %1206 {offsets = [0, 64], sizes = [2, 64], strides = [1, 1]} : vector<2x256xf32> to vector<2x64xf32>
    %cst_420 = arith.constant 5.000000e-01 : f32
    %1217 = vector.broadcast %cst_420 : f32 to vector<2x64xf32>
    %1218 = arith.mulf %1217, %1216 : vector<2x64xf32>
    %1219 = math.tanh %1218 : vector<2x64xf32>
    %cst_421 = arith.constant 5.000000e-01 : f32
    %1220 = vector.broadcast %cst_421 : f32 to vector<2x64xf32>
    %1221 = arith.mulf %1220, %1219 : vector<2x64xf32>
    %cst_422 = arith.constant 5.000000e-01 : f32
    %1222 = vector.broadcast %cst_422 : f32 to vector<2x64xf32>
    %1223 = arith.addf %1221, %1222 : vector<2x64xf32>
    %1224 = vector.extract_strided_slice %1206 {offsets = [0, 128], sizes = [2, 64], strides = [1, 1]} : vector<2x256xf32> to vector<2x64xf32>
    %1225 = math.tanh %1224 : vector<2x64xf32>
    %1226 = vector.extract_strided_slice %1206 {offsets = [0, 192], sizes = [2, 64], strides = [1, 1]} : vector<2x256xf32> to vector<2x64xf32>
    %cst_423 = arith.constant 5.000000e-01 : f32
    %1227 = vector.broadcast %cst_423 : f32 to vector<2x64xf32>
    %1228 = arith.mulf %1227, %1226 : vector<2x64xf32>
    %1229 = math.tanh %1228 : vector<2x64xf32>
    %cst_424 = arith.constant 5.000000e-01 : f32
    %1230 = vector.broadcast %cst_424 : f32 to vector<2x64xf32>
    %1231 = arith.mulf %1230, %1229 : vector<2x64xf32>
    %cst_425 = arith.constant 5.000000e-01 : f32
    %1232 = vector.broadcast %cst_425 : f32 to vector<2x64xf32>
    %1233 = arith.addf %1231, %1232 : vector<2x64xf32>
    %1234 = arith.mulf %1223, %1207 : vector<2x64xf32>
    %1235 = arith.mulf %1215, %1225 : vector<2x64xf32>
    %1236 = arith.addf %1234, %1235 : vector<2x64xf32>
    %1237 = math.tanh %1236 : vector<2x64xf32>
    %1238 = arith.mulf %1233, %1237 : vector<2x64xf32>
    %c2_i32_426 = arith.constant 2 : i32
    %1239 = arith.muli %c5_i32_401, %c2_i32_426 : i32
    %1240 = arith.index_cast %1239 : i32 to index
    %c0_427 = arith.constant 0 : index
    %1241 = vector.load %arg20[%1240, %c0_427] : memref<16x64xf32, #tpu.memory_space<vmem>>, vector<2x64xf32>
    tpu.vector_store %arg20[%1240, %c0_427], %1203 {strides = array<i32>} : memref<16x64xf32, #tpu.memory_space<vmem>>, vector<2x64xf32>,
    %c2_i32_428 = arith.constant 2 : i32
    %1242 = arith.muli %1162, %c2_i32_428 : i32
    %1243 = arith.index_cast %1242 : i32 to index
    %c0_429 = arith.constant 0 : index
    %1244 = vector.load %arg21[%1243, %c0_429] : memref<16x64xf32, #tpu.memory_space<vmem>>, vector<2x64xf32>
    tpu.vector_store %arg21[%1243, %c0_429], %1238 {strides = array<i32>} : memref<16x64xf32, #tpu.memory_space<vmem>>, vector<2x64xf32>,
    %1245 = tpu.concatenate %1203, %1238 in 1 : vector<2x64xf32>, vector<2x64xf32> -> vector<2x128xf32>
    %1246 = tpu.concatenate %1201, %1236 in 1 : vector<2x64xf32>, vector<2x64xf32> -> vector<2x128xf32>
    %c6_i32_430 = arith.constant 6 : i32
    %1247 = arith.truncf %1245 : vector<2x128xf32> to vector<2x128xbf16>
    %cst_431 = arith.constant dense<0.000000e+00> : vector<2x512xf32>
    %1248 = tpu.matmul %1247, %723, %cst_431 {dimension_numbers = #tpu.dot_dimension_numbers<[1], [0], [0], [1], [0, 0, 1, 1], [], []>} : vector<2x128xbf16>, vector<128x512xbf16>, vector<2x512xf32> -> vector<2x512xf32>
    %c7_i32_432 = arith.constant 7 : i32
    %1249 = arith.subi %c7_i32_432, %c6_i32_430 : i32
    %c2_i32_433 = arith.constant 2 : i32
    %1250 = arith.muli %c6_i32_430, %c2_i32_433 : i32
    %1251 = arith.index_cast %1250 : i32 to index
    %c0_434 = arith.constant 0 : index
    %1252 = vector.load %arg19[%1251, %c0_434] : memref<16x512xf32, #tpu.memory_space<vmem>>, vector<2x512xf32>
    %c2_i32_435 = arith.constant 2 : i32
    %1253 = arith.muli %1249, %c2_i32_435 : i32
    %1254 = arith.index_cast %1253 : i32 to index
    %c0_436 = arith.constant 0 : index
    %1255 = vector.load %arg19[%1254, %c0_436] : memref<16x512xf32, #tpu.memory_space<vmem>>, vector<2x512xf32>
    %1256 = vector.extract_strided_slice %1252 {offsets = [0, 0], sizes = [2, 256], strides = [1, 1]} : vector<2x512xf32> to vector<2x256xf32>
    %1257 = vector.extract_strided_slice %1248 {offsets = [0, 0], sizes = [2, 256], strides = [1, 1]} : vector<2x512xf32> to vector<2x256xf32>
    %1258 = arith.addf %1256, %1257 : vector<2x256xf32>
    %1259 = vector.extract_strided_slice %1246 {offsets = [0, 0], sizes = [2, 64], strides = [1, 1]} : vector<2x128xf32> to vector<2x64xf32>
    %1260 = vector.extract_strided_slice %1258 {offsets = [0, 0], sizes = [2, 64], strides = [1, 1]} : vector<2x256xf32> to vector<2x64xf32>
    %cst_437 = arith.constant 5.000000e-01 : f32
    %1261 = vector.broadcast %cst_437 : f32 to vector<2x64xf32>
    %1262 = arith.mulf %1261, %1260 : vector<2x64xf32>
    %1263 = math.tanh %1262 : vector<2x64xf32>
    %cst_438 = arith.constant 5.000000e-01 : f32
    %1264 = vector.broadcast %cst_438 : f32 to vector<2x64xf32>
    %1265 = arith.mulf %1264, %1263 : vector<2x64xf32>
    %cst_439 = arith.constant 5.000000e-01 : f32
    %1266 = vector.broadcast %cst_439 : f32 to vector<2x64xf32>
    %1267 = arith.addf %1265, %1266 : vector<2x64xf32>
    %1268 = vector.extract_strided_slice %1258 {offsets = [0, 64], sizes = [2, 64], strides = [1, 1]} : vector<2x256xf32> to vector<2x64xf32>
    %cst_440 = arith.constant 5.000000e-01 : f32
    %1269 = vector.broadcast %cst_440 : f32 to vector<2x64xf32>
    %1270 = arith.mulf %1269, %1268 : vector<2x64xf32>
    %1271 = math.tanh %1270 : vector<2x64xf32>
    %cst_441 = arith.constant 5.000000e-01 : f32
    %1272 = vector.broadcast %cst_441 : f32 to vector<2x64xf32>
    %1273 = arith.mulf %1272, %1271 : vector<2x64xf32>
    %cst_442 = arith.constant 5.000000e-01 : f32
    %1274 = vector.broadcast %cst_442 : f32 to vector<2x64xf32>
    %1275 = arith.addf %1273, %1274 : vector<2x64xf32>
    %1276 = vector.extract_strided_slice %1258 {offsets = [0, 128], sizes = [2, 64], strides = [1, 1]} : vector<2x256xf32> to vector<2x64xf32>
    %1277 = math.tanh %1276 : vector<2x64xf32>
    %1278 = vector.extract_strided_slice %1258 {offsets = [0, 192], sizes = [2, 64], strides = [1, 1]} : vector<2x256xf32> to vector<2x64xf32>
    %cst_443 = arith.constant 5.000000e-01 : f32
    %1279 = vector.broadcast %cst_443 : f32 to vector<2x64xf32>
    %1280 = arith.mulf %1279, %1278 : vector<2x64xf32>
    %1281 = math.tanh %1280 : vector<2x64xf32>
    %cst_444 = arith.constant 5.000000e-01 : f32
    %1282 = vector.broadcast %cst_444 : f32 to vector<2x64xf32>
    %1283 = arith.mulf %1282, %1281 : vector<2x64xf32>
    %cst_445 = arith.constant 5.000000e-01 : f32
    %1284 = vector.broadcast %cst_445 : f32 to vector<2x64xf32>
    %1285 = arith.addf %1283, %1284 : vector<2x64xf32>
    %1286 = arith.mulf %1275, %1259 : vector<2x64xf32>
    %1287 = arith.mulf %1267, %1277 : vector<2x64xf32>
    %1288 = arith.addf %1286, %1287 : vector<2x64xf32>
    %1289 = math.tanh %1288 : vector<2x64xf32>
    %1290 = arith.mulf %1285, %1289 : vector<2x64xf32>
    %1291 = vector.extract_strided_slice %1255 {offsets = [0, 256], sizes = [2, 256], strides = [1, 1]} : vector<2x512xf32> to vector<2x256xf32>
    %1292 = vector.extract_strided_slice %1248 {offsets = [0, 256], sizes = [2, 256], strides = [1, 1]} : vector<2x512xf32> to vector<2x256xf32>
    %1293 = arith.addf %1291, %1292 : vector<2x256xf32>
    %1294 = vector.extract_strided_slice %1246 {offsets = [0, 64], sizes = [2, 64], strides = [1, 1]} : vector<2x128xf32> to vector<2x64xf32>
    %1295 = vector.extract_strided_slice %1293 {offsets = [0, 0], sizes = [2, 64], strides = [1, 1]} : vector<2x256xf32> to vector<2x64xf32>
    %cst_446 = arith.constant 5.000000e-01 : f32
    %1296 = vector.broadcast %cst_446 : f32 to vector<2x64xf32>
    %1297 = arith.mulf %1296, %1295 : vector<2x64xf32>
    %1298 = math.tanh %1297 : vector<2x64xf32>
    %cst_447 = arith.constant 5.000000e-01 : f32
    %1299 = vector.broadcast %cst_447 : f32 to vector<2x64xf32>
    %1300 = arith.mulf %1299, %1298 : vector<2x64xf32>
    %cst_448 = arith.constant 5.000000e-01 : f32
    %1301 = vector.broadcast %cst_448 : f32 to vector<2x64xf32>
    %1302 = arith.addf %1300, %1301 : vector<2x64xf32>
    %1303 = vector.extract_strided_slice %1293 {offsets = [0, 64], sizes = [2, 64], strides = [1, 1]} : vector<2x256xf32> to vector<2x64xf32>
    %cst_449 = arith.constant 5.000000e-01 : f32
    %1304 = vector.broadcast %cst_449 : f32 to vector<2x64xf32>
    %1305 = arith.mulf %1304, %1303 : vector<2x64xf32>
    %1306 = math.tanh %1305 : vector<2x64xf32>
    %cst_450 = arith.constant 5.000000e-01 : f32
    %1307 = vector.broadcast %cst_450 : f32 to vector<2x64xf32>
    %1308 = arith.mulf %1307, %1306 : vector<2x64xf32>
    %cst_451 = arith.constant 5.000000e-01 : f32
    %1309 = vector.broadcast %cst_451 : f32 to vector<2x64xf32>
    %1310 = arith.addf %1308, %1309 : vector<2x64xf32>
    %1311 = vector.extract_strided_slice %1293 {offsets = [0, 128], sizes = [2, 64], strides = [1, 1]} : vector<2x256xf32> to vector<2x64xf32>
    %1312 = math.tanh %1311 : vector<2x64xf32>
    %1313 = vector.extract_strided_slice %1293 {offsets = [0, 192], sizes = [2, 64], strides = [1, 1]} : vector<2x256xf32> to vector<2x64xf32>
    %cst_452 = arith.constant 5.000000e-01 : f32
    %1314 = vector.broadcast %cst_452 : f32 to vector<2x64xf32>
    %1315 = arith.mulf %1314, %1313 : vector<2x64xf32>
    %1316 = math.tanh %1315 : vector<2x64xf32>
    %cst_453 = arith.constant 5.000000e-01 : f32
    %1317 = vector.broadcast %cst_453 : f32 to vector<2x64xf32>
    %1318 = arith.mulf %1317, %1316 : vector<2x64xf32>
    %cst_454 = arith.constant 5.000000e-01 : f32
    %1319 = vector.broadcast %cst_454 : f32 to vector<2x64xf32>
    %1320 = arith.addf %1318, %1319 : vector<2x64xf32>
    %1321 = arith.mulf %1310, %1294 : vector<2x64xf32>
    %1322 = arith.mulf %1302, %1312 : vector<2x64xf32>
    %1323 = arith.addf %1321, %1322 : vector<2x64xf32>
    %1324 = math.tanh %1323 : vector<2x64xf32>
    %1325 = arith.mulf %1320, %1324 : vector<2x64xf32>
    %c2_i32_455 = arith.constant 2 : i32
    %1326 = arith.muli %c6_i32_430, %c2_i32_455 : i32
    %1327 = arith.index_cast %1326 : i32 to index
    %c0_456 = arith.constant 0 : index
    %1328 = vector.load %arg20[%1327, %c0_456] : memref<16x64xf32, #tpu.memory_space<vmem>>, vector<2x64xf32>
    tpu.vector_store %arg20[%1327, %c0_456], %1290 {strides = array<i32>} : memref<16x64xf32, #tpu.memory_space<vmem>>, vector<2x64xf32>,
    %c2_i32_457 = arith.constant 2 : i32
    %1329 = arith.muli %1249, %c2_i32_457 : i32
    %1330 = arith.index_cast %1329 : i32 to index
    %c0_458 = arith.constant 0 : index
    %1331 = vector.load %arg21[%1330, %c0_458] : memref<16x64xf32, #tpu.memory_space<vmem>>, vector<2x64xf32>
    tpu.vector_store %arg21[%1330, %c0_458], %1325 {strides = array<i32>} : memref<16x64xf32, #tpu.memory_space<vmem>>, vector<2x64xf32>,
    %1332 = tpu.concatenate %1290, %1325 in 1 : vector<2x64xf32>, vector<2x64xf32> -> vector<2x128xf32>
    %1333 = tpu.concatenate %1288, %1323 in 1 : vector<2x64xf32>, vector<2x64xf32> -> vector<2x128xf32>
    %c7_i32_459 = arith.constant 7 : i32
    %1334 = arith.truncf %1332 : vector<2x128xf32> to vector<2x128xbf16>
    %cst_460 = arith.constant dense<0.000000e+00> : vector<2x512xf32>
    %1335 = tpu.matmul %1334, %723, %cst_460 {dimension_numbers = #tpu.dot_dimension_numbers<[1], [0], [0], [1], [0, 0, 1, 1], [], []>} : vector<2x128xbf16>, vector<128x512xbf16>, vector<2x512xf32> -> vector<2x512xf32>
    %c7_i32_461 = arith.constant 7 : i32
    %1336 = arith.subi %c7_i32_461, %c7_i32_459 : i32
    %c2_i32_462 = arith.constant 2 : i32
    %1337 = arith.muli %c7_i32_459, %c2_i32_462 : i32
    %1338 = arith.index_cast %1337 : i32 to index
    %c0_463 = arith.constant 0 : index
    %1339 = vector.load %arg19[%1338, %c0_463] : memref<16x512xf32, #tpu.memory_space<vmem>>, vector<2x512xf32>
    %c2_i32_464 = arith.constant 2 : i32
    %1340 = arith.muli %1336, %c2_i32_464 : i32
    %1341 = arith.index_cast %1340 : i32 to index
    %c0_465 = arith.constant 0 : index
    %1342 = vector.load %arg19[%1341, %c0_465] : memref<16x512xf32, #tpu.memory_space<vmem>>, vector<2x512xf32>
    %1343 = vector.extract_strided_slice %1339 {offsets = [0, 0], sizes = [2, 256], strides = [1, 1]} : vector<2x512xf32> to vector<2x256xf32>
    %1344 = vector.extract_strided_slice %1335 {offsets = [0, 0], sizes = [2, 256], strides = [1, 1]} : vector<2x512xf32> to vector<2x256xf32>
    %1345 = arith.addf %1343, %1344 : vector<2x256xf32>
    %1346 = vector.extract_strided_slice %1333 {offsets = [0, 0], sizes = [2, 64], strides = [1, 1]} : vector<2x128xf32> to vector<2x64xf32>
    %1347 = vector.extract_strided_slice %1345 {offsets = [0, 0], sizes = [2, 64], strides = [1, 1]} : vector<2x256xf32> to vector<2x64xf32>
    %cst_466 = arith.constant 5.000000e-01 : f32
    %1348 = vector.broadcast %cst_466 : f32 to vector<2x64xf32>
    %1349 = arith.mulf %1348, %1347 : vector<2x64xf32>
    %1350 = math.tanh %1349 : vector<2x64xf32>
    %cst_467 = arith.constant 5.000000e-01 : f32
    %1351 = vector.broadcast %cst_467 : f32 to vector<2x64xf32>
    %1352 = arith.mulf %1351, %1350 : vector<2x64xf32>
    %cst_468 = arith.constant 5.000000e-01 : f32
    %1353 = vector.broadcast %cst_468 : f32 to vector<2x64xf32>
    %1354 = arith.addf %1352, %1353 : vector<2x64xf32>
    %1355 = vector.extract_strided_slice %1345 {offsets = [0, 64], sizes = [2, 64], strides = [1, 1]} : vector<2x256xf32> to vector<2x64xf32>
    %cst_469 = arith.constant 5.000000e-01 : f32
    %1356 = vector.broadcast %cst_469 : f32 to vector<2x64xf32>
    %1357 = arith.mulf %1356, %1355 : vector<2x64xf32>
    %1358 = math.tanh %1357 : vector<2x64xf32>
    %cst_470 = arith.constant 5.000000e-01 : f32
    %1359 = vector.broadcast %cst_470 : f32 to vector<2x64xf32>
    %1360 = arith.mulf %1359, %1358 : vector<2x64xf32>
    %cst_471 = arith.constant 5.000000e-01 : f32
    %1361 = vector.broadcast %cst_471 : f32 to vector<2x64xf32>
    %1362 = arith.addf %1360, %1361 : vector<2x64xf32>
    %1363 = vector.extract_strided_slice %1345 {offsets = [0, 128], sizes = [2, 64], strides = [1, 1]} : vector<2x256xf32> to vector<2x64xf32>
    %1364 = math.tanh %1363 : vector<2x64xf32>
    %1365 = vector.extract_strided_slice %1345 {offsets = [0, 192], sizes = [2, 64], strides = [1, 1]} : vector<2x256xf32> to vector<2x64xf32>
    %cst_472 = arith.constant 5.000000e-01 : f32
    %1366 = vector.broadcast %cst_472 : f32 to vector<2x64xf32>
    %1367 = arith.mulf %1366, %1365 : vector<2x64xf32>
    %1368 = math.tanh %1367 : vector<2x64xf32>
    %cst_473 = arith.constant 5.000000e-01 : f32
    %1369 = vector.broadcast %cst_473 : f32 to vector<2x64xf32>
    %1370 = arith.mulf %1369, %1368 : vector<2x64xf32>
    %cst_474 = arith.constant 5.000000e-01 : f32
    %1371 = vector.broadcast %cst_474 : f32 to vector<2x64xf32>
    %1372 = arith.addf %1370, %1371 : vector<2x64xf32>
    %1373 = arith.mulf %1362, %1346 : vector<2x64xf32>
    %1374 = arith.mulf %1354, %1364 : vector<2x64xf32>
    %1375 = arith.addf %1373, %1374 : vector<2x64xf32>
    %1376 = math.tanh %1375 : vector<2x64xf32>
    %1377 = arith.mulf %1372, %1376 : vector<2x64xf32>
    %1378 = vector.extract_strided_slice %1342 {offsets = [0, 256], sizes = [2, 256], strides = [1, 1]} : vector<2x512xf32> to vector<2x256xf32>
    %1379 = vector.extract_strided_slice %1335 {offsets = [0, 256], sizes = [2, 256], strides = [1, 1]} : vector<2x512xf32> to vector<2x256xf32>
    %1380 = arith.addf %1378, %1379 : vector<2x256xf32>
    %1381 = vector.extract_strided_slice %1333 {offsets = [0, 64], sizes = [2, 64], strides = [1, 1]} : vector<2x128xf32> to vector<2x64xf32>
    %1382 = vector.extract_strided_slice %1380 {offsets = [0, 0], sizes = [2, 64], strides = [1, 1]} : vector<2x256xf32> to vector<2x64xf32>
    %cst_475 = arith.constant 5.000000e-01 : f32
    %1383 = vector.broadcast %cst_475 : f32 to vector<2x64xf32>
    %1384 = arith.mulf %1383, %1382 : vector<2x64xf32>
    %1385 = math.tanh %1384 : vector<2x64xf32>
    %cst_476 = arith.constant 5.000000e-01 : f32
    %1386 = vector.broadcast %cst_476 : f32 to vector<2x64xf32>
    %1387 = arith.mulf %1386, %1385 : vector<2x64xf32>
    %cst_477 = arith.constant 5.000000e-01 : f32
    %1388 = vector.broadcast %cst_477 : f32 to vector<2x64xf32>
    %1389 = arith.addf %1387, %1388 : vector<2x64xf32>
    %1390 = vector.extract_strided_slice %1380 {offsets = [0, 64], sizes = [2, 64], strides = [1, 1]} : vector<2x256xf32> to vector<2x64xf32>
    %cst_478 = arith.constant 5.000000e-01 : f32
    %1391 = vector.broadcast %cst_478 : f32 to vector<2x64xf32>
    %1392 = arith.mulf %1391, %1390 : vector<2x64xf32>
    %1393 = math.tanh %1392 : vector<2x64xf32>
    %cst_479 = arith.constant 5.000000e-01 : f32
    %1394 = vector.broadcast %cst_479 : f32 to vector<2x64xf32>
    %1395 = arith.mulf %1394, %1393 : vector<2x64xf32>
    %cst_480 = arith.constant 5.000000e-01 : f32
    %1396 = vector.broadcast %cst_480 : f32 to vector<2x64xf32>
    %1397 = arith.addf %1395, %1396 : vector<2x64xf32>
    %1398 = vector.extract_strided_slice %1380 {offsets = [0, 128], sizes = [2, 64], strides = [1, 1]} : vector<2x256xf32> to vector<2x64xf32>
    %1399 = math.tanh %1398 : vector<2x64xf32>
    %1400 = vector.extract_strided_slice %1380 {offsets = [0, 192], sizes = [2, 64], strides = [1, 1]} : vector<2x256xf32> to vector<2x64xf32>
    %cst_481 = arith.constant 5.000000e-01 : f32
    %1401 = vector.broadcast %cst_481 : f32 to vector<2x64xf32>
    %1402 = arith.mulf %1401, %1400 : vector<2x64xf32>
    %1403 = math.tanh %1402 : vector<2x64xf32>
    %cst_482 = arith.constant 5.000000e-01 : f32
    %1404 = vector.broadcast %cst_482 : f32 to vector<2x64xf32>
    %1405 = arith.mulf %1404, %1403 : vector<2x64xf32>
    %cst_483 = arith.constant 5.000000e-01 : f32
    %1406 = vector.broadcast %cst_483 : f32 to vector<2x64xf32>
    %1407 = arith.addf %1405, %1406 : vector<2x64xf32>
    %1408 = arith.mulf %1397, %1381 : vector<2x64xf32>
    %1409 = arith.mulf %1389, %1399 : vector<2x64xf32>
    %1410 = arith.addf %1408, %1409 : vector<2x64xf32>
    %1411 = math.tanh %1410 : vector<2x64xf32>
    %1412 = arith.mulf %1407, %1411 : vector<2x64xf32>
    %c2_i32_484 = arith.constant 2 : i32
    %1413 = arith.muli %c7_i32_459, %c2_i32_484 : i32
    %1414 = arith.index_cast %1413 : i32 to index
    %c0_485 = arith.constant 0 : index
    %1415 = vector.load %arg20[%1414, %c0_485] : memref<16x64xf32, #tpu.memory_space<vmem>>, vector<2x64xf32>
    tpu.vector_store %arg20[%1414, %c0_485], %1377 {strides = array<i32>} : memref<16x64xf32, #tpu.memory_space<vmem>>, vector<2x64xf32>,
    %c2_i32_486 = arith.constant 2 : i32
    %1416 = arith.muli %1336, %c2_i32_486 : i32
    %1417 = arith.index_cast %1416 : i32 to index
    %c0_487 = arith.constant 0 : index
    %1418 = vector.load %arg21[%1417, %c0_487] : memref<16x64xf32, #tpu.memory_space<vmem>>, vector<2x64xf32>
    tpu.vector_store %arg21[%1417, %c0_487], %1412 {strides = array<i32>} : memref<16x64xf32, #tpu.memory_space<vmem>>, vector<2x64xf32>,
    %1419 = tpu.concatenate %1377, %1412 in 1 : vector<2x64xf32>, vector<2x64xf32> -> vector<2x128xf32>
    %1420 = tpu.concatenate %1375, %1410 in 1 : vector<2x64xf32>, vector<2x64xf32> -> vector<2x128xf32>
    %c8_i32_488 = arith.constant 8 : i32
    %c0_489 = arith.constant 0 : index
    %c0_490 = arith.constant 0 : index
    %1421 = vector.load %arg20[%c0_489, %c0_490] : memref<16x64xf32, #tpu.memory_space<vmem>>, vector<16x64xf32>
    %1422 = arith.truncf %1421 : vector<16x64xf32> to vector<16x64xbf16>
    %c0_491 = arith.constant 0 : index
    %c0_492 = arith.constant 0 : index
    %1423 = vector.load %arg10[%c0_491, %c0_492] : memref<64x32xbf16, #tpu.memory_space<vmem>>, vector<64x32xbf16>
    %cst_493 = arith.constant dense<0.000000e+00> : vector<16x32xf32>
    %1424 = tpu.matmul %1422, %1423, %cst_493 {dimension_numbers = #tpu.dot_dimension_numbers<[1], [0], [0], [1], [0, 0, 1, 1], [], []>} : vector<16x64xbf16>, vector<64x32xbf16>, vector<16x32xf32> -> vector<16x32xf32>
    %c0_494 = arith.constant 0 : index
    %c0_495 = arith.constant 0 : index
    %1425 = vector.load %arg21[%c0_494, %c0_495] : memref<16x64xf32, #tpu.memory_space<vmem>>, vector<16x64xf32>
    %1426 = arith.truncf %1425 : vector<16x64xf32> to vector<16x64xbf16>
    %c0_496 = arith.constant 0 : index
    %c0_497 = arith.constant 0 : index
    %1427 = vector.load %arg11[%c0_496, %c0_497] : memref<64x32xbf16, #tpu.memory_space<vmem>>, vector<64x32xbf16>
    %cst_498 = arith.constant dense<0.000000e+00> : vector<16x32xf32>
    %1428 = tpu.matmul %1426, %1427, %cst_498 {dimension_numbers = #tpu.dot_dimension_numbers<[1], [0], [0], [1], [0, 0, 1, 1], [], []>} : vector<16x64xbf16>, vector<64x32xbf16>, vector<16x32xf32> -> vector<16x32xf32>
    %1429 = arith.addf %1424, %1428 : vector<16x32xf32>
    %c0_499 = arith.constant 0 : index
    %c0_500 = arith.constant 0 : index
    %1430 = vector.load %arg12[%c0_499, %c0_500] : memref<1x32xf32, #tpu.memory_space<vmem>>, vector<1x32xf32>
    %1431 = vector.broadcast %1430 : vector<1x32xf32> to vector<16x32xf32>
    %1432 = arith.addf %1429, %1431 : vector<16x32xf32>
    %cst_501 = arith.constant 0.000000e+00 : f32
    %1433 = vector.broadcast %cst_501 : f32 to vector<16x32xf32>
    %1434 = arith.maximumf %1432, %1433 : vector<16x32xf32>
    %1435 = arith.truncf %1434 : vector<16x32xf32> to vector<16x32xbf16>
    %c0_502 = arith.constant 0 : index
    %c0_503 = arith.constant 0 : index
    %1436 = vector.load %arg13[%c0_502, %c0_503] : memref<32x16xbf16, #tpu.memory_space<vmem>>, vector<32x16xbf16>
    %cst_504 = arith.constant dense<0.000000e+00> : vector<16x16xf32>
    %1437 = tpu.matmul %1435, %1436, %cst_504 {dimension_numbers = #tpu.dot_dimension_numbers<[1], [0], [0], [1], [0, 0, 1, 1], [], []>} : vector<16x32xbf16>, vector<32x16xbf16>, vector<16x16xf32> -> vector<16x16xf32>
    %c0_505 = arith.constant 0 : index
    %c0_506 = arith.constant 0 : index
    %1438 = vector.load %arg14[%c0_505, %c0_506] : memref<1x16xf32, #tpu.memory_space<vmem>>, vector<1x16xf32>
    %1439 = vector.broadcast %1438 : vector<1x16xf32> to vector<16x16xf32>
    %1440 = arith.addf %1437, %1439 : vector<16x16xf32>
    %c0_507 = arith.constant 0 : index
    %c0_508 = arith.constant 0 : index
    %1441 = vector.load %arg15[%c0_507, %c0_508] : memref<16x16xf32, #tpu.memory_space<vmem>>, vector<16x16xf32>
    tpu.vector_store %arg15[%c0_507, %c0_508], %1440 {strides = array<i32>} : memref<16x16xf32, #tpu.memory_space<vmem>>, vector<16x16xf32>,
    return
  }
}

</mosaic_0001>

<bundles_post_ra>
// kernel: st_gat_forward.2
= control target key start
LH: loop header
LB: loop body
LE: loop exit
PB: predicated region body
PF: predicated region fallthrough
CT: control target
= control target key end

     0   :  { %19 = vsyncpa [#allocation3], 0  ;;  %s5315_s0 = inlined_call_operand.vmem [shape: f32[2,136,2], index: 0, kind: input, shape index: {}]   ;;  %s5316_s1 = inlined_call_operand.hbm [shape: bf16[136,136], index: 1, kind: input, shape index: {}]   ;;  %s5317_s2 = inlined_call_operand.vmem [shape: f32[2,32], index: 2, kind: input, shape index: {}]   ;;  %s5318_s3 = inlined_call_operand.vmem [shape: f32[1,32], index: 3, kind: input, shape index: {}]   ;;  %s5319_s4 = inlined_call_operand.vmem [shape: f32[1,32], index: 4, kind: input, shape index: {}]   ;;  %s5320_s5 = inlined_call_operand.vmem [shape: f32[1,32], index: 5, kind: input, shape index: {}]   ;;  %s5321_s6 = inlined_call_operand.vmem [shape: f32[1,32], index: 6, kind: input, shape index: {}]   ;;  %s5322_s7 = inlined_call_operand.hbm [shape: f32[1,32], index: 7, kind: input, shape index: {}]   ;;  %s5323_s8 = inlined_call_operand.vmem [shape: bf16[32,32], index: 8, kind: input, shape index: {}]   ;;  %s5324_s9 = inlined_call_operand.vmem [shape: f32[1,32], index: 9, kind: input, shape index: {}]   ;;  %s5325_s10 = inlined_call_operand.vmem [shape: f32[1,32], index: 10, kind: input, shape index: {}]   ;;  %s5326_s11 = inlined_call_operand.vmem [shape: f32[1,32], index: 11, kind: input, shape index: {}]   ;;  %s5327_s12 = inlined_call_operand.hbm [shape: f32[1,32], index: 12, kind: input, shape index: {}]   ;;  %s5328_s13 = inlined_call_operand.hbm [shape: f32[1,32], index: 13, kind: input, shape index: {}]   ;;  %s5329_s14 = inlined_call_operand.vmem [shape: bf16[2,136,32], index: 14, kind: output, shape index: {}]  }
   0x1   :  { %20 = vsyncpa [#allocation5], 0 }
   0x2   :  { %21 = vsyncpa [#allocation8], 0  ;;  %s3595_s29 = smov 0  }
   0x3 LB: > { %s3510_s30 = smov [#allocation4]   ;;  %s3601_s16 = sadd.s32 4294967295, %s3508_s29   ;;  %s3508_s29 = sphi %s3595_s29, %s27_s29  }
   0x4   : > { %s398_s15 = sshll.u32 %s3510_s30, 4  ;;  %p2975_p0 = scmp.ge.s32.totalorder %s3508_s29, 1  ;;  %s399_s15 = int_to_ptr.vmem [resolvable:$true] %s398_s15 }
   0x5   : > { %p357_p1 = scmp.lt.s32.totalorder %s3508_s29, 3  ;;  %p3149_p2 = scmp.eq.s32.totalorder %s3601_s16, 0 }
   0x6   : > { %s3511_s18 = smov [#allocation2]   ;;  %s3512_s21 = smov [#allocation6]  }
   0x7   : > { %p3606_p3 = pnand %p2975_p0, %p357_p1  ;;  %s369_s19 = sshll.u32 %s3511_s18, 4  ;;  %s3612_s19 = int_to_ptr.vmem [resolvable:$true] %s369_s19 }
   0x8   : > { %s421_s22 = sshll.u32 %s3512_s21, 4  ;;  %s3513_s23 = smov [#allocation7]   ;;  %s3620_s22 = int_to_ptr.vmem [resolvable:$true] %s421_s22 }
   0x9   : > { %p3136_p4 = pneg %p3606_p3  ;;  %s3622_s24 = sshll.u32 %s3513_s23, 4  ;;  %s433_s24 = int_to_ptr.vmem [resolvable:$true] %s3622_s24 }
   0xa   : > { %s3397_s25 = scalar_lea.vmem %s399_s15, 16  ;;  %s3404_s26 = scalar_lea.vmem %s399_s15, 32 }
   0xb   : > { %p3616_p5 = pnand %p3149_p2, %p3136_p4  ;;  %p3398_p7 = scmp.ne.s32.totalorder %s399_s15, %s3397_s25 }
   0xc   : > { %p3405_p10 = scmp.lt.s32.totalorder %s399_s15, %s399_s15  ;;  %p3406_p11 = scmp.lt.s32.totalorder %s3404_s26, %s3397_s25 }
   0xd   : > { %p3388_p6 = pneg %p3616_p5 }
   0xe   : > { %p3407_p12 = por %p3406_p11, %p3405_p10 }
   0xf   : > { %p3400_p8 = pnand %p3398_p7, %p3388_p6 }
  0x11   : > { %p3401_p9 = pneg %p3400_p8 }
  0x13   : > { %p3408_p13 = pnand %p3407_p12, %p3401_p9 }
  0x15   : > { %3411 = shalt.err (!%p3408_p13)
}
  0x16   : > { %3142 = dma.hbm_to_vmem [thread:$0]  (!%p3616_p5), %s5322_s7, 16, %s399_s15, [#allocation5]  }
  0x17   : > { %s3423_s30 = scalar_lea.vmem %s3612_s19, 2176  ;;  %p3431_p7 = scmp.lt.s32.totalorder %s3612_s19, %s3612_s19 }
  0x18   : > { %p3424_p0 = scmp.ne.s32.totalorder %s3612_s19, %s3423_s30  ;;  %p3432_p8 = scmp.lt.s32.totalorder %s3423_s30, %s3423_s30 }
  0x1a   : > { %p3426_p1 = pnand %p3424_p0, %p3388_p6  ;;  %p3433_p9 = por %p3432_p8, %p3431_p7 }
  0x1c   : > { %p3427_p4 = pneg %p3426_p1 }
  0x1e   : > { %p3434_p10 = pnand %p3433_p9, %p3427_p4 }
  0x20   : > { %3437 = shalt.err (!%p3434_p10)
}
  0x21   : > { %s3514_s18 = smov 128   ;;  %s3515_s15 = smov 8  }
  0x22   : > { %3139 = dma.hbm_to_vmem [thread:$0]  (!%p3616_p5), %s5316_s1, 2176, %s3612_s19, [#allocation3], %s3514_s18, %s3514_s18, %s3515_s15  }
  0x23   : > { %s3449_s25 = scalar_lea.vmem %s3620_s22, 16  ;;  %s3456_s26 = scalar_lea.vmem %s3620_s22, 32 }
  0x24   : > { %p3450_p11 = scmp.ne.s32.totalorder %s3620_s22, %s3449_s25  ;;  %p3457_p0 = scmp.lt.s32.totalorder %s3620_s22, %s3620_s22 }
  0x25   : > { %p3458_p1 = scmp.lt.s32.totalorder %s3456_s26, %s3449_s25 }
  0x26   : > { %p3452_p12 = pnand %p3450_p11, %p3388_p6 }
  0x27   : > { %p3459_p4 = por %p3458_p1, %p3457_p0 }
  0x28   : > { %p3453_p13 = pneg %p3452_p12 }
  0x2a   : > { %p3460_p7 = pnand %p3459_p4, %p3453_p13 }
  0x2c   : > { %3463 = shalt.err (!%p3460_p7)
}
  0x2d   : > { %3145 = dma.hbm_to_vmem [thread:$0]  (!%p3616_p5), %s5327_s12, 16, %s3620_s22, [#allocation5]  }
  0x2e   : > { %s3475_s19 = scalar_lea.vmem %s433_s24, 16  ;;  %s3482_s30 = scalar_lea.vmem %s433_s24, 32 }
  0x2f   : > { %p3476_p8 = scmp.ne.s32.totalorder %s433_s24, %s3475_s19  ;;  %p3483_p11 = scmp.lt.s32.totalorder %s433_s24, %s433_s24 }
  0x30   : > { %p3484_p12 = scmp.lt.s32.totalorder %s3482_s30, %s3475_s19 }
  0x31   : > { %p3478_p9 = pnand %p3476_p8, %p3388_p6 }
  0x32   : > { %p3485_p13 = por %p3484_p12, %p3483_p11 }
  0x33   : > { %p3479_p10 = pneg %p3478_p9 }
  0x35   : > { %p3486_p0 = pnand %p3485_p13, %p3479_p10 }
  0x37   : > { %3489 = shalt.err (!%p3486_p0)
}
  0x38   : > { %3148 = dma.hbm_to_vmem [thread:$0]  (!%p3616_p5), %s5328_s13, 16, %s433_s24, [#allocation8]  }
  0x39   : > { %453 = sbr.rel (%p3606_p3) target bundleno = 2192 (0x890), region = 76 }
  0x3e   : > { %3495 = dma.done.wait (%p3149_p2), [#allocation3], 2176  }
  0x3f   : > { %3497 = vsyncadd (%p3149_p2), [#allocation3], 4294965120 }
  0x40   : > { %3499 = dma.done.wait (%p3149_p2), [#allocation5], 32  }
  0x41   : > { %3501 = vsyncadd (%p3149_p2), [#allocation5], 4294967264 }
  0x42   : > { %3503 = dma.done.wait (%p3149_p2), [#allocation8], 16  }
  0x43   : > { %3505 = vsyncadd (%p3149_p2), [#allocation8], 4294967280  ;;  %p511_p3 = scmp.lt.s32.totalorder %s3601_s16, 1  ;;  %v5356_v0 = vmov 0   ;;  %v3517_v3 = vmov 1   ;;  %v676_v19 = vlaneseq  ;;  %vm829_vm0 = vcmask 261120  }
  0x44   : > { %3177 = vset.pattern.permute.xlu1 %v5356_v0  ;;  %3175 = vset.pattern.permute.xlu0 %v5356_v0  ;;  %v590_v23 = vld [vmem:[%s5317_s2] sm:$0x3]  ;;  %vm1547_vm1 = vcmask 1043456   ;;  %vm1197_vm4 = vcmask 64512  }
  0x45   : > { %s5423_s16 = smov (!%p511_p3, %s3601_s16), 1  ;;  %1551 = vmatprep.subr.bf16.mxu0 %v5356_v0  ;;  %v677_v20 = vshrl.u32 %v676_v19, 7  ;;  %v3732_v34 = vld [vmem:[%s5318_s3] ss:$0 sm:$0xff] }
  0x46   : > { %s3118_s17 = smul.u32 136, %s5423_s16 }
  0x47   : > { %v3715_v21 = vsub.s32 0, %v677_v20  ;;  %v767_v22 = vsub.s32 1, %v677_v20  ;;  %s3119_s19 = smul.u32 68, %s5423_s16 }
  0x48   : > { %s3695_s24 = scalar_lea.vmem %s5315_s0, %s3118_s17 }
  0x49   : > { %v523_v1 = vld [vmem:[%s3695_s24 + $0x8] sm:$0xff]  ;;  %v522_v2 = vld [vmem:[%s3695_s24] sm:$0xff]  ;;  %v524_v4 = vld [vmem:[%s3695_s24 + $0x10] sm:$0xff]  ;;  %v3721_v26 = vrot.slane %v590_v23, %v3715_v21  ;;  %v3723_v27 = vrot.slane %v590_v23, %v767_v22  ;;  %s5230_s15 = scalar_lea.vmem %s5329_s14, %s3119_s19 }
  0x4a   : > { %598 = vperm.xlu1 %3177, %v523_v1   ;;  %593 = vperm.xlu0 %3175, %v522_v2   ;;  %v525_v5 = vld [vmem:[%s3695_s24 + $0x18] sm:$0xff]  ;;  %v526_v6 = vld [vmem:[%s3695_s24 + $0x20] sm:$0xff]  ;;  %v527_v7 = vld [vmem:[%s3695_s24 + $0x28] sm:$0xff] }
  0x4b   : > { %v528_v8 = vld [vmem:[%s3695_s24 + $0x30] sm:$0xff]  ;;  %v529_v9 = vld [vmem:[%s3695_s24 + $0x38] sm:$0xff]  ;;  %v530_v10 = vld [vmem:[%s3695_s24 + $0x40] sm:$0xff] }
  0x4c   : > { %v531_v11 = vld [vmem:[%s3695_s24 + $0x48] sm:$0xff]  ;;  %v532_v12 = vld [vmem:[%s3695_s24 + $0x50] sm:$0xff]  ;;  %v533_v13 = vld [vmem:[%s3695_s24 + $0x58] sm:$0xff] }
  0x4d   : > { %v534_v14 = vld [vmem:[%s3695_s24 + $0x60] sm:$0xff]  ;;  %v535_v15 = vld [vmem:[%s3695_s24 + $0x68] sm:$0xff]  ;;  %v536_v16 = vld [vmem:[%s3695_s24 + $0x70] sm:$0xff] }
  0x4e   : > { %3178 = vset.pattern.permute.xlu1 %v3517_v3  ;;  %3176 = vset.pattern.permute.xlu0 %v3517_v3  ;;  %v538_v17 = vld [vmem:[%s3695_s24 + $0x80] sm:$0xff]  ;;  %v537_v18 = vld [vmem:[%s3695_s24 + $0x78] sm:$0xff] }
  0x4f   : > { %702 = vperm.xlu1 %3178, %v523_v1   ;;  %698 = vperm.xlu0 %3176, %v522_v2  }
  0x53   : > { %3179 = vset.pattern.permute.xlu1 %v5356_v0  ;;  %706 = vperm.xlu0 %3176, %v524_v4  }
  0x54   : > { %603 = vperm.xlu1 %3179, %v524_v4  }
  0x57   : > { %710 = vperm.xlu0 %3176, %v525_v5  }
  0x58   : > { %608 = vperm.xlu1 %3179, %v525_v5  }
  0x5b   : > { %714 = vperm.xlu0 %3176, %v526_v6  }
  0x5c   : > { %613 = vperm.xlu1 %3179, %v526_v6  }
  0x5f   : > { %718 = vperm.xlu0 %3176, %v527_v7  }
  0x60   : > { %618 = vperm.xlu1 %3179, %v527_v7  }
  0x63   : > { %722 = vperm.xlu0 %3176, %v528_v8  }
  0x64   : > { %623 = vperm.xlu1 %3179, %v528_v8  }
  0x67   : > { %726 = vperm.xlu0 %3176, %v529_v9  }
  0x68   : > { %628 = vperm.xlu1 %3179, %v529_v9  }
  0x6b   : > { %730 = vperm.xlu0 %3176, %v530_v10  }
  0x6c   : > { %633 = vperm.xlu1 %3179, %v530_v10  }
  0x6f   : > { %734 = vperm.xlu0 %3176, %v531_v11  }
  0x70   : > { %638 = vperm.xlu1 %3179, %v531_v11  }
  0x73   : > { %738 = vperm.xlu0 %3176, %v532_v12  }
  0x74   : > { %643 = vperm.xlu1 %3179, %v532_v12  }
  0x77   : > { %742 = vperm.xlu0 %3176, %v533_v13  }
  0x78   : > { %648 = vperm.xlu1 %3179, %v533_v13  }
  0x7b   : > { %746 = vperm.xlu0 %3176, %v534_v14  }
  0x7c   : > { %653 = vperm.xlu1 %3179, %v534_v14  }
  0x7f   : > { %750 = vperm.xlu0 %3176, %v535_v15  }
  0x80   : > { %658 = vperm.xlu1 %3179, %v535_v15  }
  0x83   : > { %754 = vperm.xlu0 %3176, %v536_v16  }
  0x84   : > { %663 = vperm.xlu1 %3179, %v536_v16  }
  0x87   : > { %762 = vperm.xlu0 %3176, %v538_v17  }
  0x88   : > { %673 = vperm.xlu1 %3179, %v538_v17  }
  0x8b   : > { %758 = vperm.xlu0 %3176, %v537_v18  }
  0x8c   : > { %668 = vperm.xlu1 %3179, %v537_v18  }
  0xc5   : > { %v599_v24 = vpop.permute.xlu1 %598  ;;  %v594_v25 = vpop.permute.xlu0 %593 }
  0xc6   : > { %v681_v30 = vmul.f32 %v3721_v26, %v599_v24  ;;  %v680_v31 = vmul.f32 %v3721_v26, %v594_v25 }
  0xca   : > { %v703_v28 = vpop.permute.xlu1 %702  ;;  %v699_v29 = vpop.permute.xlu0 %698 }
  0xcb   : > { %v770_v32 = vmul.f32 %v3723_v27, %v703_v28  ;;  %v769_v33 = vmul.f32 %v3723_v27, %v699_v29 }
  0xcd   : > { %v3734_v35 = vadd.f32 %v770_v32, %v681_v30  ;;  %v3736_v36 = vadd.f32 %v769_v33, %v680_v31 }
  0xce   : > { %v707_v37 = vpop.permute.xlu0 %706 }
  0xcf   : > { %v771_v38 = vmul.f32 %v3723_v27, %v707_v37  ;;  %v604_v39 = vpop.permute.xlu1 %603  ;;  %v813_v40 = vmul.f32 %v3732_v34, %v3734_v35  ;;  %v812_v41 = vmul.f32 %v3732_v34, %v3736_v36  ;;  %v1505_v43 = vpack.c.bf16 %v3734_v35, %v3736_v36 }
  0xd0   : > { %v682_v42 = vmul.f32 %v3721_v26, %v604_v39 }
  0xd1   : > { %v833_v44 = vsel %vm829_vm0, %v813_v40, 0.0  ;;  %v830_v45 = vsel %vm829_vm0, %v812_v41, 0.0 }
  0xd2   : > { %v3748_v46 = vadd.f32 %v771_v38, %v682_v42  ;;  %834 = vadd.xlane.f32.xlu0 %v833_v44  ;;  %831 = vadd.xlane.f32.xlu1 %v830_v45  ;;  %v711_v47 = vpop.permute.xlu0 %710 }
  0xd3   : > { %v772_v48 = vmul.f32 %v3723_v27, %v711_v47  ;;  %v609_v49 = vpop.permute.xlu1 %608 }
  0xd4   : > { %v683_v50 = vmul.f32 %v3721_v26, %v609_v49  ;;  %v814_v51 = vmul.f32 %v3732_v34, %v3748_v46 }
  0xd6   : > { %v3754_v52 = vadd.f32 %v772_v48, %v683_v50  ;;  %v715_v53 = vpop.permute.xlu0 %714  ;;  %v836_v54 = vsel %vm829_vm0, %v814_v51, 0.0 }
  0xd7   : > { %v773_v55 = vmul.f32 %v3723_v27, %v715_v53  ;;  %v614_v56 = vpop.permute.xlu1 %613  ;;  %837 = vadd.xlane.f32.xlu0 %v836_v54 }
  0xd8   : > { %v684_v57 = vmul.f32 %v3721_v26, %v614_v56  ;;  %v815_v58 = vmul.f32 %v3732_v34, %v3754_v52  ;;  %v1506_v59 = vpack.c.bf16 %v3754_v52, %v3748_v46 }
  0xda   : > { %v3763_v60 = vadd.f32 %v773_v55, %v684_v57  ;;  %v719_v61 = vpop.permute.xlu0 %718  ;;  %v839_v62 = vsel %vm829_vm0, %v815_v58, 0.0 }
  0xdb   : > { %v774_v63 = vmul.f32 %v3723_v27, %v719_v61  ;;  %v619_v1 = vpop.permute.xlu1 %618  ;;  %840 = vadd.xlane.f32.xlu1 %v839_v62 }
  0xdc   : > { %v685_v2 = vmul.f32 %v3721_v26, %v619_v1  ;;  %v816_v3 = vmul.f32 %v3732_v34, %v3763_v60 }
  0xde   : > { %v3770_v4 = vadd.f32 %v774_v63, %v685_v2  ;;  %v723_v5 = vpop.permute.xlu0 %722  ;;  %v842_v6 = vsel %vm829_vm0, %v816_v3, 0.0 }
  0xdf   : > { %v775_v7 = vmul.f32 %v3723_v27, %v723_v5  ;;  %v624_v8 = vpop.permute.xlu1 %623  ;;  %843 = vadd.xlane.f32.xlu0 %v842_v6 }
  0xe0   : > { %v686_v9 = vmul.f32 %v3721_v26, %v624_v8  ;;  %v817_v10 = vmul.f32 %v3732_v34, %v3770_v4  ;;  %v1507_v11 = vpack.c.bf16 %v3770_v4, %v3763_v60 }
  0xe2   : > { %v3779_v12 = vadd.f32 %v775_v7, %v686_v9  ;;  %v727_v13 = vpop.permute.xlu0 %726  ;;  %v845_v14 = vsel %vm829_vm0, %v817_v10, 0.0 }
  0xe3   : > { %v776_v15 = vmul.f32 %v3723_v27, %v727_v13  ;;  %v629_v16 = vpop.permute.xlu1 %628  ;;  %846 = vadd.xlane.f32.xlu1 %v845_v14 }
  0xe4   : > { %v687_v17 = vmul.f32 %v3721_v26, %v629_v16  ;;  %v818_v18 = vmul.f32 %v3732_v34, %v3779_v12 }
  0xe6   : > { %v3786_v19 = vadd.f32 %v776_v15, %v687_v17  ;;  %v731_v20 = vpop.permute.xlu0 %730  ;;  %v848_v22 = vsel %vm829_vm0, %v818_v18, 0.0 }
  0xe7   : > { %v777_v23 = vmul.f32 %v3723_v27, %v731_v20  ;;  %v634_v24 = vpop.permute.xlu1 %633  ;;  %849 = vadd.xlane.f32.xlu0 %v848_v22 }
  0xe8   : > { %v688_v25 = vmul.f32 %v3721_v26, %v634_v24  ;;  %v819_v28 = vmul.f32 %v3732_v34, %v3786_v19 }
  0xea   : > { %v3793_v29 = vadd.f32 %v777_v23, %v688_v25  ;;  %v735_v30 = vpop.permute.xlu0 %734  ;;  %v851_v31 = vsel %vm829_vm0, %v819_v28, 0.0 }
  0xeb   : > { %v778_v32 = vmul.f32 %v3723_v27, %v735_v30  ;;  %v639_v33 = vpop.permute.xlu1 %638  ;;  %852 = vadd.xlane.f32.xlu1 %v851_v31 }
  0xec   : > { %v689_v37 = vmul.f32 %v3721_v26, %v639_v33  ;;  %v820_v38 = vmul.f32 %v3732_v34, %v3793_v29 }
  0xee   : > { %v3800_v39 = vadd.f32 %v778_v32, %v689_v37  ;;  %v739_v40 = vpop.permute.xlu0 %738  ;;  %v854_v41 = vsel %vm829_vm0, %v820_v38, 0.0 }
  0xef   : > { %v779_v42 = vmul.f32 %v3723_v27, %v739_v40  ;;  %v644_v44 = vpop.permute.xlu1 %643  ;;  %855 = vadd.xlane.f32.xlu0 %v854_v41  ;;  %v3849_v40 = vld [vmem:[%s5319_s4] ss:$0 sm:$0xff] }
  0xf0   : > { %v690_v45 = vmul.f32 %v3721_v26, %v644_v44  ;;  %v821_v47 = vmul.f32 %v3732_v34, %v3800_v39 }
  0xf2   : > { %v3807_v48 = vadd.f32 %v779_v42, %v690_v45  ;;  %v743_v49 = vpop.permute.xlu0 %742  ;;  %v857_v50 = vsel %vm829_vm0, %v821_v47, 0.0 }
  0xf3   : > { %v780_v51 = vmul.f32 %v3723_v27, %v743_v49  ;;  %v649_v53 = vpop.permute.xlu1 %648  ;;  %858 = vadd.xlane.f32.xlu1 %v857_v50 }
  0xf4   : > { %v691_v54 = vmul.f32 %v3721_v26, %v649_v53  ;;  %v822_v55 = vmul.f32 %v3732_v34, %v3807_v48 }
  0xf6   : > { %v3814_v56 = vadd.f32 %v780_v51, %v691_v54  ;;  %v747_v57 = vpop.permute.xlu0 %746  ;;  %v860_v58 = vsel %vm829_vm0, %v822_v55, 0.0  ;;  %v889_v54 = vmul.f32 %v3849_v40, %v3748_v46  ;;  %v888_v55 = vmul.f32 %v3849_v40, %v3734_v35 }
  0xf7   : > { %v781_v61 = vmul.f32 %v3723_v27, %v747_v57  ;;  %v654_v62 = vpop.permute.xlu1 %653  ;;  %861 = vadd.xlane.f32.xlu0 %v860_v58 }
  0xf8   : > { %v692_v63 = vmul.f32 %v3721_v26, %v654_v62  ;;  %v823_v1 = vmul.f32 %v3732_v34, %v3814_v56  ;;  %v910_v57 = vsel %vm829_vm0, %v889_v54, 0.0  ;;  %v907_v58 = vsel %vm829_vm0, %v888_v55, 0.0 }
  0xf9   : > { %v890_v62 = vmul.f32 %v3849_v40, %v3754_v52 }
  0xfa   : > { %v3821_v2 = vadd.f32 %v781_v61, %v692_v63  ;;  %v751_v3 = vpop.permute.xlu0 %750  ;;  %v863_v5 = vsel %vm829_vm0, %v823_v1, 0.0  ;;  %v891_v61 = vmul.f32 %v3849_v40, %v3763_v60  ;;  %v1510_v63 = vpack.c.bf16 %v3814_v56, %v3807_v48 }
  0xfb   : > { %v782_v6 = vmul.f32 %v3723_v27, %v751_v3  ;;  %v659_v7 = vpop.permute.xlu1 %658  ;;  %864 = vadd.xlane.f32.xlu1 %v863_v5  ;;  %v913_v3 = vsel %vm829_vm0, %v890_v62, 0.0  ;;  %v893_v5 = vmul.f32 %v3849_v40, %v3779_v12 }
  0xfc   : > { %v693_v8 = vmul.f32 %v3721_v26, %v659_v7  ;;  %v824_v9 = vmul.f32 %v3732_v34, %v3821_v2  ;;  %v916_v1 = vsel %vm829_vm0, %v891_v61, 0.0  ;;  %v1509_v7 = vpack.c.bf16 %v3800_v39, %v3793_v29 }
  0xfd   : > { %v899_v60 = vmul.f32 %v3849_v40, %v3821_v2 }
  0xfe   : > { %v3828_v10 = vadd.f32 %v782_v6, %v693_v8  ;;  %v755_v13 = vpop.permute.xlu0 %754  ;;  %v866_v14 = vsel %vm829_vm0, %v824_v9, 0.0  ;;  %v892_v6 = vmul.f32 %v3849_v40, %v3770_v4  ;;  %v922_v8 = vsel %vm829_vm0, %v893_v5, 0.0  ;;  %v3965_v5 = vld [vmem:[#allocation2] sm:$0xff] }
  0xff   : > { %v783_v15 = vmul.f32 %v3723_v27, %v755_v13  ;;  %v664_v16 = vpop.permute.xlu1 %663  ;;  %867 = vadd.xlane.f32.xlu0 %v866_v14  ;;  %v895_v13 = vmul.f32 %v3849_v40, %v3793_v29  ;;  %v894_v14 = vmul.f32 %v3849_v40, %v3786_v19  ;;  %v896_v29 = vmul.f32 %v3849_v40, %v3800_v39 }
 0x100   : > { %v694_v17 = vmul.f32 %v3721_v26, %v664_v16  ;;  %v825_v18 = vmul.f32 %v3732_v34, %v3828_v10  ;;  %v919_v9 = vsel %vm829_vm0, %v892_v6, 0.0  ;;  %v900_v46 = vmul.f32 %v3849_v40, %v3828_v10  ;;  %v3967_v6 = vld [vmem:[#allocation2 + $0x68] sm:$0xff] }
 0x101   : > { %v928_v16 = vsel %vm829_vm0, %v895_v13, 0.0  ;;  %v3971_v13 = vld [vmem:[#allocation2 + $0x10] sm:$0xff] }
 0x102   : > { %v3835_v20 = vadd.f32 %v783_v15, %v694_v17  ;;  %v763_v22 = vpop.permute.xlu0 %762  ;;  %v869_v23 = vsel %vm829_vm0, %v825_v18, 0.0  ;;  %v1508_v15 = vpack.c.bf16 %v3786_v19, %v3779_v12  ;;  %v925_v17 = vsel %vm829_vm0, %v894_v14, 0.0 }
 0x103   : > { %v785_v24 = vmul.f32 %v3723_v27, %v763_v22  ;;  %v674_v25 = vpop.permute.xlu1 %673  ;;  %870 = vadd.xlane.f32.xlu1 %v869_v23  ;;  %v897_v18 = vmul.f32 %v3849_v40, %v3807_v48  ;;  %v931_v19 = vsel %vm829_vm0, %v896_v29, 0.0  ;;  %v898_v22 = vmul.f32 %v3849_v40, %v3814_v56 }
 0x104   : > { %v696_v28 = vmul.f32 %v3721_v26, %v674_v25  ;;  %v826_v30 = vmul.f32 %v3732_v34, %v3835_v20  ;;  %v901_v48 = vmul.f32 %v3849_v40, %v3835_v20  ;;  %v5332_v29 = vunpack.c.l.bf16 %v3967_v6 }
 0x105   : > { %v934_v12 = vsel %vm829_vm0, %v897_v18, 0.0  ;;  %v937_v39 = vsel %vm829_vm0, %v898_v22, 0.0  ;;  %v5349_v18 = vunpack.c.l.bf16 %v3965_v5  ;;  %v5348_v22 = vunpack.c.l.bf16 %v3971_v13 }
 0x106   : > { %v3842_v31 = vadd.f32 %v785_v24, %v696_v28  ;;  %v759_v32 = vpop.permute.xlu0 %758  ;;  %v872_v33 = vsel %vm829_vm0, %v826_v30, 0.0  ;;  %v946_v35 = vsel %vm829_vm0, %v901_v48, 0.0 }
 0x107   : > { %v784_v37 = vmul.f32 %v3723_v27, %v759_v32  ;;  %v669_v38 = vpop.permute.xlu1 %668  ;;  %873 = vadd.xlane.f32.xlu0 %v872_v33  ;;  %v887_v27 = vmul.f32 %v3849_v40, %v3736_v36 }
 0x108   : > { %v695_v41 = vmul.f32 %v3721_v26, %v669_v38  ;;  %v828_v42 = vmul.f32 %v3732_v34, %v3842_v31  ;;  %v3856_v44 = vmul.f32 %v3849_v40, %v3842_v31  ;;  %v1513_v4 = vpack.c.bf16 %v3842_v31, %v3842_v31 }
 0x109   : > { %v904_v51 = vsel %vm829_vm0, %v887_v27, 0.0 }
 0x10a   : > { %v801_v45 = vadd.f32 %v784_v37, %v695_v41  ;;  %v878_v47 = vsel %vm829_vm0, %v828_v42, 0.0  ;;  %v1549_v52 = vsel %vm1547_vm1, %v1513_v4, 0  ;;  %v952_v42 = vsel %vm829_vm0, %v3856_v44, 0.0 }
 0x10b   : > { %879 = vadd.xlane.f32.xlu1 %v878_v47  ;;  %v5340_v4 = vunpack.c.h.bf16 %v3965_v5 }
 0x10c   : > { %v1512_v49 = vpack.c.bf16 %v801_v45, %v3835_v20  ;;  %v827_v50 = vmul.f32 %v3732_v34, %v801_v45  ;;  %v3864_v26 = vmul.f32 %v3849_v40, %v801_v45  ;;  %v1511_v34 = vpack.c.bf16 %v3828_v10, %v3821_v2 }
 0x10e   : > { %1552 = vmatpush1.bf16.msra.mxu0 %v1512_v49  ;;  %v875_v53 = vsel %vm829_vm0, %v827_v50, 0.0  ;;  %v949_v41 = vsel %vm829_vm0, %v3864_v26, 0.0 }
 0x10f   : > { %905 = vadd.xlane.f32.xlu1 %v904_v51  ;;  %876 = vadd.xlane.f32.xlu0 %v875_v53 }
 0x110   : > { %1553 = vmatprep.subr.bf16.mxu0 %v5356_v0 }
 0x112   : > { %1554 = vmatpush1.bf16.msra.mxu0 %v1511_v34 }
 0x113   : > { %911 = vadd.xlane.f32.xlu1 %v910_v57  ;;  %908 = vadd.xlane.f32.xlu0 %v907_v58 }
 0x114   : > { %1555 = vmatprep.subr.bf16.mxu0 %v5356_v0 }
 0x116   : > { %1556 = vmatpush1.bf16.msra.mxu0 %v1510_v63 }
 0x117   : > { %917 = vadd.xlane.f32.xlu1 %v916_v1  ;;  %914 = vadd.xlane.f32.xlu0 %v913_v3  ;;  %v3963_v3 = vld [vmem:[#allocation2 + $0x58] sm:$0xff] }
 0x118   : > { %1557 = vmatprep.subr.bf16.mxu0 %v5356_v0 }
 0x11a   : > { %1558 = vmatpush1.bf16.msra.mxu0 %v1509_v7 }
 0x11b   : > { %923 = vadd.xlane.f32.xlu1 %v922_v8  ;;  %920 = vadd.xlane.f32.xlu0 %v919_v9  ;;  %v3969_v9 = vld [vmem:[#allocation2 + $0x8] sm:$0xff] }
 0x11c   : > { %1559 = vmatprep.subr.bf16.mxu0 %v5356_v0  ;;  %v5343_v48 = vunpack.c.h.bf16 %v3969_v9 }
 0x11e   : > { %1560 = vmatpush1.bf16.msra.mxu0 %v1508_v15 }
 0x11f   : > { %929 = vadd.xlane.f32.xlu1 %v928_v16  ;;  %926 = vadd.xlane.f32.xlu0 %v925_v17  ;;  %v5347_v17 = vunpack.c.l.bf16 %v3963_v3 }
 0x120   : > { %1561 = vmatprep.subr.bf16.mxu0 %v5356_v0 }
 0x122   : > { %1562 = vmatpush1.bf16.msra.mxu0 %v1507_v11  ;;  %v940_v11 = vsel %vm829_vm0, %v899_v60, 0.0 }
 0x123   : > { %935 = vadd.xlane.f32.xlu1 %v934_v12  ;;  %932 = vadd.xlane.f32.xlu0 %v931_v19  ;;  %v5336_v12 = vunpack.c.h.bf16 %v3963_v3  ;;  %v5352_v19 = vunpack.c.l.bf16 %v3969_v9 }
 0x124   : > { %1563 = vmatprep.subr.bf16.mxu0 %v5356_v0 }
 0x126   : > { %1564 = vmatpush1.bf16.msra.mxu0 %v1506_v59  ;;  %v943_v59 = vsel %vm829_vm0, %v900_v46, 0.0  ;;  %v5331_v46 = vunpack.c.h.bf16 %v3967_v6 }
 0x127   : > { %938 = vadd.xlane.f32.xlu1 %v937_v39  ;;  %1565 = vmatprep.subr.bf16.mxu0 %v5356_v0 }
 0x12a   : > { %1566 = vmatpush1.bf16.msra.mxu0 %v1505_v43 }
 0x12b   : > { %941 = vadd.xlane.f32.xlu1 %v940_v11  ;;  %1581 = vmatprep.subr.bf16.mxu0 %v5356_v0 }
 0x12e   : > { %1582 = vmatpush2.bf16.msra.mxu0 %v1549_v52 }
 0x12f   : > { %944 = vadd.xlane.f32.xlu1 %v943_v59 }
 0x133   : > { %947 = vadd.xlane.f32.xlu1 %v946_v35 }
 0x15b   : > { %v832_v36 = vpop.xlane.xlu1 %831  ;;  %v835_v43 = vpop.xlane.xlu0 %834 }
 0x15c   : > { %955 = vxpose.xlu0.b32.start [1/16] (narrow) %v832_v36, 8  ;;  %v5339_v36 = vunpack.c.h.bf16 %v3971_v13 }
 0x160   : > { %956 = vxpose.xlu0.b32.cont [2/16] (narrow) %v835_v43, 8  ;;  %v838_v56 = vpop.xlane.xlu0 %837 }
 0x164   : > { %957 = vxpose.xlu0.b32.cont [3/16] (narrow) %v838_v56, 8  ;;  %v841_v2 = vpop.xlane.xlu1 %840 }
 0x168   : > { %958 = vxpose.xlu0.b32.cont [4/16] (narrow) %v841_v2, 8  ;;  %v844_v10 = vpop.xlane.xlu0 %843 }
 0x16c   : > { %959 = vxpose.xlu0.b32.cont [5/16] (narrow) %v844_v10, 8  ;;  %v847_v23 = vpop.xlane.xlu1 %846 }
 0x170   : > { %960 = vxpose.xlu0.b32.cont [6/16] (narrow) %v847_v23, 8  ;;  %v850_v24 = vpop.xlane.xlu0 %849 }
 0x174   : > { %961 = vxpose.xlu0.b32.cont [7/16] (narrow) %v850_v24, 8  ;;  %v853_v25 = vpop.xlane.xlu1 %852 }
 0x178   : > { %962 = vxpose.xlu0.b32.cont [8/16] (narrow) %v853_v25, 8  ;;  %v856_v20 = vpop.xlane.xlu0 %855 }
 0x17c   : > { %963 = vxpose.xlu0.b32.cont [9/16] (narrow) %v856_v20, 8  ;;  %v859_v28 = vpop.xlane.xlu1 %858 }
 0x180   : > { %964 = vxpose.xlu0.b32.cont [10/16] (narrow) %v859_v28, 8  ;;  %v862_v30 = vpop.xlane.xlu0 %861 }
 0x184   : > { %965 = vxpose.xlu0.b32.cont [11/16] (narrow) %v862_v30, 8  ;;  %v865_v31 = vpop.xlane.xlu1 %864 }
 0x188   : > { %966 = vxpose.xlu0.b32.cont [12/16] (narrow) %v865_v31, 8  ;;  %v868_v32 = vpop.xlane.xlu0 %867 }
 0x18c   : > { %967 = vxpose.xlu0.b32.cont [13/16] (narrow) %v868_v32, 8  ;;  %v871_v33 = vpop.xlane.xlu1 %870 }
 0x190   : > { %968 = vxpose.xlu0.b32.cont [14/16] (narrow) %v871_v33, 8  ;;  %v874_v37 = vpop.xlane.xlu0 %873 }
 0x194   : > { %v880_v38 = vpop.xlane.xlu1 %879  ;;  %969 = vxpose.xlu0.b32.cont [15/16] (narrow) %v874_v37, 8 }
 0x195   : > { %987 = vxpose.xlu1.b32.start.end [1/1] (short) (narrow) %v880_v38, 8 }
 0x198   : > { %v877_v40 = vpop.xlane.xlu0 %876  ;;  %v906_v45 = vpop.xlane.xlu1 %905 }
 0x199   : > { %970 = vxpose.xlu0.b32.end [16/16] (narrow) %v877_v40, 8 }
 0x19c   : > { %v912_v47 = vpop.xlane.xlu1 %911  ;;  %v909_v49 = vpop.xlane.xlu0 %908 }
 0x1a0   : > { %v3942_v27 = vpop.xlane.xlu1 %917  ;;  %v915_v51 = vpop.xlane.xlu0 %914 }
 0x1a4   : > { %v3944_v50 = vpop.xlane.xlu1 %923  ;;  %v3948_v54 = vpop.xlane.xlu0 %920 }
 0x1a8   : > { %v3946_v53 = vpop.xlane.xlu1 %929  ;;  %v3952_v26 = vpop.xlane.xlu0 %926 }
 0x1ac   : > { %v3950_v55 = vpop.xlane.xlu1 %935  ;;  %v3954_v57 = vpop.xlane.xlu0 %932 }
 0x1b0   : > { %v939_v34 = vpop.xlane.xlu1 %938 }
 0x1b4   : > { %v3956_v44 = vpop.xlane.xlu1 %941 }
 0x1b8   : > { %v945_v62 = vpop.xlane.xlu1 %944 }
 0x1bc   : > { %950 = vadd.xlane.f32.xlu1 %v949_v41  ;;  %v3973_v14 = vpop.xlane.xlu1 %947 }
 0x1c6   : > { %953 = vadd.xlane.f32.xlu0 %v952_v42 }
 0x1d9   : > { %v971_v58 = vpop.trf.xlu0 }
 0x1da   : > { %v3959_v61 = vrot.slane %v971_v58, %v3715_v21 }
 0x1dc   : > { %v1049_v63 = vadd.f32 %v3959_v61, %v939_v34  ;;  %v1027_v1 = vadd.f32 %v3959_v61, %v906_v45  ;;  %v1053_v15 = vadd.f32 %v3959_v61, %v945_v62  ;;  %v1029_v16 = vadd.f32 %v3959_v61, %v909_v49 }
 0x1dd   : > { %v3984_v39 = vadd.f32 %v3959_v61, %v912_v47  ;;  %v4003_v23 = vadd.f32 %v3959_v61, %v915_v51 }
 0x1de   : > { %v1117_v7 = vmul.f32 0.2, %v1049_v63  ;;  %v1095_v8 = vmul.f32 0.2, %v1027_v1  ;;  %vm1083_vm2 = vcmp.gt.f32.partialorder %v1049_v63, 0.0  ;;  %vm1061_vm3 = vcmp.gt.f32.partialorder %v1027_v1, 0.0 }
 0x1df   : > { %v1121_v59 = vmul.f32 0.2, %v1053_v15  ;;  %v1097_v35 = vmul.f32 0.2, %v1029_v16  ;;  %vm1087_vm5 = vcmp.gt.f32.partialorder %v1053_v15, 0.0  ;;  %vm1063_vm6 = vcmp.gt.f32.partialorder %v1029_v16, 0.0 }
 0x1e0   : > { %v1151_v60 = vsel %vm1083_vm2, %v1049_v63, %v1117_v7  ;;  %v1129_v11 = vsel %vm1061_vm3, %v1027_v1, %v1095_v8  ;;  %v1099_v10 = vmul.f32 0.2, %v3984_v39  ;;  %vm1065_vm13 = vcmp.gt.f32.partialorder %v3984_v39, 0.0 }
 0x1e1   : > { %v3995_v56 = vadd.f32 %v1151_v60, %v5347_v17  ;;  %v3999_v2 = vadd.f32 %v1129_v11, %v5349_v18  ;;  %v1155_v30 = vsel %vm1087_vm5, %v1053_v15, %v1121_v59  ;;  %v1131_v31 = vsel %vm1063_vm6, %v1029_v16, %v1097_v35  ;;  %v4033_v16 = vld [vmem:[#allocation2 + $0x18] sm:$0xff]  ;;  %v4197_v18 = vld [vmem:[#allocation2 + $0x60] sm:$0xff] }
 0x1e2   : > { %v5335_v59 = vunpack.c.h.bf16 %v4033_v16  ;;  %v4041_v35 = vadd.f32 %v1155_v30, %v5332_v29  ;;  %vm1067_vm15 = vcmp.gt.f32.partialorder %v4003_v23, 0.0  ;;  %v1041_v29 = vadd.f32 %v3959_v61, %v3952_v26  ;;  %5379 = vst [vmem:[#allocation13_spill] sm:$0xff] %v4197_v18 }
 0x211   : > { %v1003_v52 = vpop.trf.xlu1 }
 0x212   : > { %v3991_v43 = vrot.slane %v1003_v52, %v3715_v21 }
 0x214   : > { %v1050_v24 = vadd.f32 %v3991_v43, %v939_v34  ;;  %v1028_v25 = vadd.f32 %v3991_v43, %v906_v45  ;;  %v1054_v20 = vadd.f32 %v3991_v43, %v945_v62  ;;  %v1030_v28 = vadd.f32 %v3991_v43, %v909_v49 }
 0x215   : > { %v1032_v32 = vadd.f32 %v3991_v43, %v912_v47  ;;  %v1034_v33 = vadd.f32 %v3991_v43, %v915_v51  ;;  %v1036_v7 = vadd.f32 %v3991_v43, %v3942_v27  ;;  %v1038_v30 = vadd.f32 %v3991_v43, %v3948_v54 }
 0x216   : > { %vm1084_vm7 = vcmp.gt.f32.partialorder %v1050_v24, 0.0  ;;  %v1118_v37 = vmul.f32 0.2, %v1050_v24  ;;  %vm1062_vm8 = vcmp.gt.f32.partialorder %v1028_v25, 0.0  ;;  %v1096_v38 = vmul.f32 0.2, %v1028_v25 }
 0x217   : > { %vm1088_vm9 = vcmp.gt.f32.partialorder %v1054_v20, 0.0  ;;  %v1122_v40 = vmul.f32 0.2, %v1054_v20  ;;  %vm1064_vm10 = vcmp.gt.f32.partialorder %v1030_v28, 0.0  ;;  %v1098_v41 = vmul.f32 0.2, %v1030_v28 }
 0x218   : > { %v1152_v42 = vsel %vm1084_vm7, %v1050_v24, %v1118_v37  ;;  %v1130_v45 = vsel %vm1062_vm8, %v1028_v25, %v1096_v38  ;;  %vm1066_vm11 = vcmp.gt.f32.partialorder %v1032_v32, 0.0  ;;  %v1100_v34 = vmul.f32 0.2, %v1032_v32 }
 0x219   : > { %v4013_v49 = vadd.f32 %v1152_v42, %v5336_v12  ;;  %v4017_v47 = vadd.f32 %v1130_v45, %v5340_v4  ;;  %v1156_v51 = vsel %vm1088_vm9, %v1054_v20, %v1122_v40  ;;  %v1132_v58 = vsel %vm1064_vm10, %v1030_v28, %v1098_v41 }
 0x21a   : > { %v4021_v62 = vadd.f32 %v1156_v51, %v5331_v46  ;;  %v4025_v63 = vadd.f32 %v1132_v58, %v5343_v48  ;;  %v1134_v1 = vsel %vm1066_vm11, %v1032_v32, %v1100_v34  ;;  %vm1068_vm12 = vcmp.gt.f32.partialorder %v1034_v33, 0.0 }
 0x21b   : > { %v1242_v8 = vsel %vm1197_vm4, %v4013_v49, -inf  ;;  %v1198_v15 = vsel %vm1197_vm4, %v4017_v47, -inf  ;;  %v1102_v60 = vmul.f32 0.2, %v1034_v33  ;;  %v4049_v20 = vadd.f32 %v1134_v1, %v5339_v36 }
 0x21c   : > { %v1243_v11 = vmax.f32 %v3995_v56, %v1242_v8  ;;  %v1199_v52 = vmax.f32 %v3999_v2, %v1198_v15  ;;  %v1250_v24 = vsel %vm1197_vm4, %v4021_v62, -inf  ;;  %v1202_v25 = vsel %vm1197_vm4, %v4025_v63, -inf }
 0x21d   : > { %v4053_v28 = vadd.f32 %v1131_v31, %v5352_v19  ;;  %v1136_v32 = vsel %vm1068_vm12, %v1034_v33, %v1102_v60  ;;  %v1104_v37 = vmul.f32 0.2, %v1036_v7  ;;  %v1133_v38 = vsel %vm1065_vm13, %v3984_v39, %v1099_v10  ;;  %v4064_v31 = vld [vmem:[#allocation2 + $0x20] sm:$0xff] }
 0x21e   : > { %1244 = vmax.xlane.f32.xlu0 %v1243_v11  ;;  %1200 = vmax.xlane.f32.xlu1 %v1199_v52  ;;  %v1101_v40 = vmul.f32 0.2, %v4003_v23  ;;  %v1035_v41 = vadd.f32 %v3959_v61, %v3942_v27  ;;  %vm1070_vm14 = vcmp.gt.f32.partialorder %v1036_v7, 0.0  ;;  %v1251_v42 = vmax.f32 %v4041_v35, %v1250_v24  ;;  %v4084_v52 = vld [vmem:[#allocation2 + $0x28] sm:$0xff] }
 0x21f   : > { %v1203_v45 = vmax.f32 %v4053_v28, %v1202_v25  ;;  %v1206_v33 = vsel %vm1197_vm4, %v4049_v20, -inf  ;;  %v5344_v34 = vunpack.c.l.bf16 %v4033_v16  ;;  %v4071_v39 = vadd.f32 %v1136_v32, %v5335_v59 }
 0x220   : > { %v5330_v27 = vunpack.c.h.bf16 %v4064_v31  ;;  %v4076_v10 = vadd.f32 %v1133_v38, %v5348_v22  ;;  %v1138_v51 = vsel %vm1070_vm14, %v1036_v7, %v1104_v37  ;;  %v1106_v58 = vmul.f32 0.2, %v1038_v30 }
 0x221   : > { %v1040_v1 = vadd.f32 %v3991_v43, %v3944_v50  ;;  %v1135_v8 = vsel %vm1067_vm15, %v4003_v23, %v1101_v40  ;;  %v1103_v15 = vmul.f32 0.2, %v1035_v41  ;;  %v1037_v60 = vadd.f32 %v3959_v61, %v3948_v54 }
 0x222   : > { %1252 = vmax.xlane.f32.xlu0 %v1251_v42  ;;  %1204 = vmax.xlane.f32.xlu1 %v1203_v45  ;;  %vm1072_vm2 = vcmp.gt.f32.partialorder %v1038_v30, 0.0  ;;  %v1207_v11 = vmax.f32 %v4076_v10, %v1206_v33  ;;  %vm1069_vm3 = vcmp.gt.f32.partialorder %v1035_v41, 0.0  ;;  %v1210_v24 = vsel %vm1197_vm4, %v4071_v39, -inf }
 0x223   : > { %v5334_v7 = vunpack.c.l.bf16 %v4064_v31  ;;  %v4091_v25 = vadd.f32 %v1138_v51, %v5330_v27  ;;  %v5333_v23 = vunpack.c.h.bf16 %v4084_v52  ;;  %v4096_v54 = vadd.f32 %v1135_v8, %v5344_v34  ;;  %v4103_v51 = vld [vmem:[#allocation2 + $0x30] sm:$0xff] }
 0x224   : > { %v1140_v32 = vsel %vm1072_vm2, %v1038_v30, %v1106_v58  ;;  %v1108_v37 = vmul.f32 0.2, %v1040_v1  ;;  %v1042_v38 = vadd.f32 %v3991_v43, %v3952_v26  ;;  %v1137_v40 = vsel %vm1069_vm3, %v1035_v41, %v1103_v15  ;;  %v4176_v34 = vld [vmem:[#allocation2 + $0x50] sm:$0xff] }
 0x225   : > { %v1105_v42 = vmul.f32 0.2, %v1037_v60  ;;  %v1039_v45 = vadd.f32 %v3959_v61, %v3944_v50  ;;  %vm1074_vm5 = vcmp.gt.f32.partialorder %v1040_v1, 0.0  ;;  %v1211_v33 = vmax.f32 %v4096_v54, %v1210_v24  ;;  %5378 = vst [vmem:[#allocation12_spill] sm:$0xff] %v4176_v34 }
 0x226   : > { %1208 = vmax.xlane.f32.xlu1 %v1207_v11  ;;  %vm1071_vm6 = vcmp.gt.f32.partialorder %v1037_v60, 0.0  ;;  %v1214_v8 = vsel %vm1197_vm4, %v4091_v25, -inf  ;;  %v5338_v30 = vunpack.c.l.bf16 %v4084_v52  ;;  %v4110_v58 = vadd.f32 %v1140_v32, %v5333_v23  ;;  %v4122_v23 = vld [vmem:[#allocation2 + $0x38] sm:$0xff] }
 0x227   : > { %v5337_v41 = vunpack.c.h.bf16 %v4103_v51  ;;  %v4115_v50 = vadd.f32 %v1137_v40, %v5334_v7  ;;  %v1142_v15 = vsel %vm1074_vm5, %v1040_v1, %v1108_v37  ;;  %v1110_v11 = vmul.f32 0.2, %v1042_v38 }
 0x228   : > { %v1044_v24 = vadd.f32 %v3991_v43, %v3946_v53  ;;  %v1139_v27 = vsel %vm1071_vm6, %v1037_v60, %v1105_v42  ;;  %v1107_v46 = vmul.f32 0.2, %v1039_v45  ;;  %vm1076_vm7 = vcmp.gt.f32.partialorder %v1042_v38, 0.0 }
 0x229   : > { %v1215_v32 = vmax.f32 %v4115_v50, %v1214_v8  ;;  %vm1073_vm8 = vcmp.gt.f32.partialorder %v1039_v45, 0.0  ;;  %v1218_v40 = vsel %vm1197_vm4, %v4110_v58, -inf  ;;  %v5342_v1 = vunpack.c.l.bf16 %v4103_v51 }
 0x22a   : > { %1212 = vmax.xlane.f32.xlu1 %v1211_v33  ;;  %v4129_v37 = vadd.f32 %v1142_v15, %v5337_v41  ;;  %v5341_v60 = vunpack.c.h.bf16 %v4122_v23  ;;  %v4134_v26 = vadd.f32 %v1139_v27, %v5338_v30  ;;  %v1144_v42 = vsel %vm1076_vm7, %v1042_v38, %v1110_v11  ;;  %v4141_v41 = vld [vmem:[#allocation2 + $0x40] sm:$0xff] }
 0x22b   : > { %v1112_v33 = vmul.f32 0.2, %v1044_v24  ;;  %v1046_v8 = vadd.f32 %v3991_v43, %v3954_v57  ;;  %v1141_v7 = vsel %vm1073_vm8, %v1039_v45, %v1107_v46  ;;  %v1109_v59 = vmul.f32 0.2, %v1041_v29 }
 0x22c   : > { %v1043_v12 = vadd.f32 %v3959_v61, %v3946_v53  ;;  %vm1078_vm9 = vcmp.gt.f32.partialorder %v1044_v24, 0.0  ;;  %v1219_v15 = vmax.f32 %v4134_v26, %v1218_v40  ;;  %vm1075_vm10 = vcmp.gt.f32.partialorder %v1041_v29, 0.0 }
 0x22d   : > { %v1222_v27 = vsel %vm1197_vm4, %v4129_v37, -inf  ;;  %v5346_v38 = vunpack.c.l.bf16 %v4122_v23  ;;  %v4148_v11 = vadd.f32 %v1144_v42, %v5341_v60  ;;  %v5345_v46 = vunpack.c.h.bf16 %v4141_v41  ;;  %v4160_v60 = vld [vmem:[#allocation2 + $0x48] sm:$0xff] }
 0x22e   : > { %1216 = vmax.xlane.f32.xlu1 %v1215_v32  ;;  %v4153_v53 = vadd.f32 %v1141_v7, %v5342_v1  ;;  %v1146_v45 = vsel %vm1078_vm9, %v1044_v24, %v1112_v33  ;;  %v1114_v32 = vmul.f32 0.2, %v1046_v8  ;;  %v1048_v40 = vadd.f32 %v3991_v43, %v3950_v55 }
 0x22f   : > { %v1143_v30 = vsel %vm1075_vm10, %v1041_v29, %v1109_v59  ;;  %v1111_v36 = vmul.f32 0.2, %v1043_v12  ;;  %v1045_v4 = vadd.f32 %v3959_v61, %v3954_v57  ;;  %vm1080_vm11 = vcmp.gt.f32.partialorder %v1046_v8, 0.0 }
 0x230   : > { %v1223_v42 = vmax.f32 %v4153_v53, %v1222_v27  ;;  %vm1077_vm12 = vcmp.gt.f32.partialorder %v1043_v12, 0.0  ;;  %v1226_v7 = vsel %vm1197_vm4, %v4148_v11, -inf  ;;  %v4166_v24 = vadd.f32 %v1146_v45, %v5345_v46 }
 0x231   : > { %v5351_v33 = vunpack.c.h.bf16 %v4160_v60  ;;  %v1052_v29 = vadd.f32 %v3991_v43, %v3956_v44  ;;  %v4173_v57 = vadd.f32 %v1143_v30, %v5346_v38  ;;  %v5350_v59 = vunpack.c.l.bf16 %v4141_v41 }
 0x232   : > { %1220 = vmax.xlane.f32.xlu1 %v1219_v15  ;;  %v1148_v15 = vsel %vm1080_vm11, %v1046_v8, %v1114_v32  ;;  %v1116_v27 = vmul.f32 0.2, %v1048_v40  ;;  %v1145_v1 = vsel %vm1077_vm12, %v1043_v12, %v1111_v36  ;;  %v1113_v48 = vmul.f32 0.2, %v1045_v4 }
 0x233   : > { %v1047_v45 = vadd.f32 %v3959_v61, %v3950_v55  ;;  %vm1082_vm13 = vcmp.gt.f32.partialorder %v1048_v40, 0.0  ;;  %v1227_v46 = vmax.f32 %v4173_v57, %v1226_v7  ;;  %vm1079_vm14 = vcmp.gt.f32.partialorder %v1045_v4, 0.0 }
 0x234   : > { %v5355_v30 = vunpack.c.h.bf16 %v4176_v34  ;;  %v1230_v38 = vsel %vm1197_vm4, %v4166_v24, -inf  ;;  %v4187_v12 = vadd.f32 %v1148_v15, %v5351_v33  ;;  %v1051_v36 = vadd.f32 %v3959_v61, %v3956_v44 }
 0x235   : > { %v1120_v8 = vmul.f32 0.2, %v1052_v29  ;;  %v4193_v55 = vadd.f32 %v1145_v1, %v5350_v59  ;;  %v1150_v32 = vsel %vm1082_vm13, %v1048_v40, %v1116_v27  ;;  %vm1086_vm15 = vcmp.gt.f32.partialorder %v1052_v29, 0.0 }
 0x236   : > { %1224 = vmax.xlane.f32.xlu1 %v1223_v42  ;;  %v5354_v42 = vunpack.c.l.bf16 %v4160_v60  ;;  %v1056_v7 = vadd.f32 %v3991_v43, %v3973_v14  ;;  %v1147_v17 = vsel %vm1079_vm14, %v1045_v4, %v1113_v48  ;;  %v1115_v22 = vmul.f32 0.2, %v1047_v45 }
 0x237   : > { %v1231_v15 = vmax.f32 %v4193_v55, %v1230_v38  ;;  %vm1081_vm2 = vcmp.gt.f32.partialorder %v1047_v45, 0.0  ;;  %v5353_v44 = vunpack.c.h.bf16 %v4197_v18  ;;  %v4205_v1 = vadd.f32 %v1150_v32, %v5355_v30 }
 0x238   : > { %v1154_v40 = vsel %vm1086_vm15, %v1052_v29, %v1120_v8  ;;  %v4209_v4 = vadd.f32 %v1147_v17, %v5354_v42  ;;  %v5358_v48 = vunpack.c.l.bf16 %v4176_v34  ;;  %v1119_v27 = vmul.f32 0.2, %v1051_v36  ;;  %v4219_v8 = vld [vmem:[#allocation2 + $0x70] sm:$0xff]  ;;  %v4232_v42 = vld [vmem:[#allocation2 + $0x78] sm:$0xff] }
 0x239   : > { %v1124_v38 = vmul.f32 0.2, %v1056_v7  ;;  %v1149_v59 = vsel %vm1081_vm2, %v1047_v45, %v1115_v22  ;;  %vm1085_vm3 = vcmp.gt.f32.partialorder %v1051_v36, 0.0  ;;  %v1055_v33 = vadd.f32 %v3959_v61, %v3973_v14  ;;  %5380 = vst [vmem:[#allocation14_spill] sm:$0xff] %v4219_v8 }
 0x23a   : > { %1228 = vmax.xlane.f32.xlu1 %v1227_v46  ;;  %v1234_v46 = vsel %vm1197_vm4, %v4187_v12, -inf  ;;  %vm1090_vm5 = vcmp.gt.f32.partialorder %v1056_v7, 0.0  ;;  %v4217_v29 = vadd.f32 %v1154_v40, %v5353_v44  ;;  %v1238_v17 = vsel %vm1197_vm4, %v4205_v1, -inf }
 0x23b   : > { %v1235_v19 = vmax.f32 %v4209_v4, %v1234_v46  ;;  %v5359_v32 = vunpack.c.l.bf16 %v4197_v18  ;;  %v5360_v22 = vunpack.c.h.bf16 %v4219_v8  ;;  %v4227_v14 = vadd.f32 %v1149_v59, %v5358_v48 }
 0x23c   : > { %v1153_v45 = vsel %vm1085_vm3, %v1051_v36, %v1119_v27  ;;  %v1123_v46 = vmul.f32 0.2, %v1055_v33  ;;  %v1246_v44 = vsel %vm1197_vm4, %v4217_v29, -inf  ;;  %vm1089_vm6 = vcmp.gt.f32.partialorder %v1055_v33, 0.0 }
 0x23d   : > { %v1239_v40 = vmax.f32 %v4227_v14, %v1238_v17  ;;  %v4236_v0 = vadd.f32 %v1153_v45, %v5359_v32  ;;  %v5364_v17 = vunpack.c.l.bf16 %v4232_v42  ;;  %v5367_v48 = vunpack.c.h.bf16 %v4232_v42 }
 0x23e   : > { %1232 = vmax.xlane.f32.xlu1 %v1231_v15  ;;  %v1158_v15 = vsel %vm1090_vm5, %v1056_v7, %v1124_v38  ;;  %v5363_v7 = vunpack.c.l.bf16 %v4219_v8  ;;  %v1157_v38 = vsel %vm1089_vm6, %v1055_v33, %v1123_v46  ;;  %vm3519_vm11 = vmmov 0  }
 0x23f   : > { %v1247_v27 = vmax.f32 %v4236_v0, %v1246_v44 }
 0x242   : > { %1236 = vmax.xlane.f32.xlu1 %v1235_v19  ;;  %v4240_v19 = vadd.f32 %v1158_v15, %v5360_v22 }
 0x244   : > { %v1254_v15 = vsel %vm1197_vm4, %v4240_v19, -inf }
 0x245   : > { %v951_v30 = vpop.xlane.xlu1 %950 }
 0x246   : > { %v1057_v59 = vadd.f32 %v3959_v61, %v951_v30  ;;  %v1058_v36 = vadd.f32 %v3991_v43, %v951_v30  ;;  %1240 = vmax.xlane.f32.xlu1 %v1239_v40  ;;  %v4252_v30 = vadd.f32 %v1157_v38, %v5363_v7  ;;  %v4266_v38 = vld [vmem:[#allocation2 + $0x80] sm:$0xff] }
 0x247   : > { %5381 = vst [vmem:[#allocation15_spill] sm:$0xff] %v4266_v38 }
 0x248   : > { %v1125_v45 = vmul.f32 0.2, %v1057_v59  ;;  %v1126_v32 = vmul.f32 0.2, %v1058_v36  ;;  %vm1091_vm7 = vcmp.gt.f32.partialorder %v1057_v59, 0.0  ;;  %vm1092_vm8 = vcmp.gt.f32.partialorder %v1058_v36, 0.0 }
 0x249   : > { %v1255_v46 = vmax.f32 %v4252_v30, %v1254_v15 }
 0x24a   : > { %1248 = vmax.xlane.f32.xlu1 %v1247_v27  ;;  %v1159_v40 = vsel %vm1091_vm7, %v1057_v59, %v1125_v45  ;;  %v1160_v22 = vsel %vm1092_vm8, %v1058_v36, %v1126_v32  ;;  %v5365_v45 = vunpack.c.l.bf16 %v4266_v38 }
 0x24b   : > { %v4256_v33 = vadd.f32 %v1159_v40, %v5364_v17  ;;  %v4260_v44 = vadd.f32 %v1160_v22, %v5367_v48  ;;  %v5366_v22 = vunpack.c.h.bf16 %v4266_v38 }
 0x24d   : > { %v1258_v18 = vsel %vm1197_vm4, %v4260_v44, -inf }
 0x24e   : > { %1256 = vmax.xlane.f32.xlu1 %v1255_v46  ;;  %v1259_v27 = vmax.f32 %v4256_v33, %v1258_v18 }
 0x24f   : > { %v954_v59 = vpop.xlane.xlu0 %953 }
 0x250   : > { %v1059_v32 = vadd.f32 %v3959_v61, %v954_v59  ;;  %v1060_v36 = vadd.f32 %v3991_v43, %v954_v59  ;;  %1260 = vmax.xlane.f32.xlu0 %v1259_v27 }
 0x252   : > { %vm1093_vm9 = vcmp.gt.f32.partialorder %v1059_v32, 0.0  ;;  %vm1094_vm10 = vcmp.gt.f32.partialorder %v1060_v36, 0.0  ;;  %v1127_v15 = vmul.f32 0.2, %v1059_v32  ;;  %v1128_v40 = vmul.f32 0.2, %v1060_v36 }
 0x254   : > { %v1161_v7 = vsel %vm1093_vm9, %v1059_v32, %v1127_v15  ;;  %v1162_v46 = vsel %vm1094_vm10, %v1060_v36, %v1128_v40 }
 0x255   : > { %v4274_v18 = vadd.f32 %v1161_v7, %v5365_v45  ;;  %v4278_v61 = vadd.f32 %v1162_v46, %v5366_v22 }
 0x257   : > { %v1262_v43 = vsel %vm1197_vm4, %v4278_v61, -inf }
 0x258   : > { %v1263_v27 = vmax.f32 %v4274_v18, %v1262_v43 }
 0x25a   : > { %1264 = vmax.xlane.f32.xlu1 %v1263_v27 }
 0x2a7   : > { %v1201_v59 = vpop.xlane.xlu1 %1200 }
 0x2a8   : > { %v1266_v17 = vsub.f32 %v3999_v2, %v1201_v59  ;;  %v1267_v32 = vsub.f32 %v4017_v47, %v1201_v59 }
 0x2aa   : > { %v1300_v36 = vmul.f32 1.442695, %v1266_v17  ;;  %v1302_v15 = vmul.f32 1.442695, %v1267_v32 }
 0x2ab   : > { %v1205_v40 = vpop.xlane.xlu1 %1204 }
 0x2ac   : > { %3182 = vpow2.f32 %v1300_v36  ;;  %v1268_v7 = vsub.f32 %v4053_v28, %v1205_v40  ;;  %v1269_v46 = vsub.f32 %v4025_v63, %v1205_v40 }
 0x2ad   : > { %3184 = vpow2.f32 %v1302_v15 }
 0x2ae   : > { %v1304_v45 = vmul.f32 1.442695, %v1268_v7  ;;  %v1306_v22 = vmul.f32 1.442695, %v1269_v46 }
 0x2af   : > { %v1209_v48 = vpop.xlane.xlu1 %1208 }
 0x2b0   : > { %3186 = vpow2.f32 %v1304_v45  ;;  %v1270_v43 = vsub.f32 %v4076_v10, %v1209_v48  ;;  %v1271_v27 = vsub.f32 %v4049_v20, %v1209_v48 }
 0x2b1   : > { %3188 = vpow2.f32 %v1306_v22 }
 0x2b2   : > { %v1308_v2 = vmul.f32 1.442695, %v1270_v43  ;;  %v1310_v47 = vmul.f32 1.442695, %v1271_v27 }
 0x2b3   : > { %v1213_v17 = vpop.xlane.xlu1 %1212 }
 0x2b4   : > { %3190 = vpow2.f32 %v1308_v2  ;;  %v1272_v59 = vsub.f32 %v4096_v54, %v1213_v17  ;;  %v1273_v28 = vsub.f32 %v4071_v39, %v1213_v17 }
 0x2b5   : > { %3192 = vpow2.f32 %v1310_v47 }
 0x2b6   : > { %v1312_v63 = vmul.f32 1.442695, %v1272_v59  ;;  %v1314_v32 = vmul.f32 1.442695, %v1273_v28 }
 0x2b7   : > { %v1217_v36 = vpop.xlane.xlu1 %1216 }
 0x2b8   : > { %3194 = vpow2.f32 %v1312_v63  ;;  %v1274_v45 = vsub.f32 %v4115_v50, %v1217_v36  ;;  %v1275_v10 = vsub.f32 %v4091_v25, %v1217_v36  ;;  %v1245_v63 = vpop.xlane.xlu0 %1244 }
 0x2b9   : > { %v4293_v15 = vpop.eup %3182  ;;  %3196 = vpow2.f32 %v1314_v32 }
 0x2ba   : > { %v4295_v20 = vpop.eup %3184  ;;  %v1316_v48 = vmul.f32 1.442695, %v1274_v45  ;;  %v1318_v22 = vmul.f32 1.442695, %v1275_v10 }
 0x2bb   : > { %v1221_v40 = vpop.xlane.xlu1 %1220  ;;  %v1368_v39 = vsel %vm1197_vm4, %v4295_v20, 0.0 }
 0x2bc   : > { %3198 = vpow2.f32 %v1316_v48  ;;  %v1276_v54 = vsub.f32 %v4134_v26, %v1221_v40  ;;  %v1277_v7 = vsub.f32 %v4110_v58, %v1221_v40  ;;  %v1369_v50 = vadd.f32 %v4293_v15, %v1368_v39 }
 0x2bd   : > { %v4302_v46 = vpop.eup %3186  ;;  %3200 = vpow2.f32 %v1318_v22 }
 0x2be   : > { %v4304_v25 = vpop.eup %3188  ;;  %v1320_v43 = vmul.f32 1.442695, %v1276_v54  ;;  %v1322_v27 = vmul.f32 1.442695, %v1277_v7  ;;  %1370 = vadd.xlane.f32.xlu0 %v1369_v50  ;;  %v1289_v7 = vsub.f32 %v4013_v49, %v1245_v63 }
 0x2bf   : > { %v1225_v2 = vpop.xlane.xlu1 %1224  ;;  %v1372_v47 = vsel %vm1197_vm4, %v4304_v25, 0.0 }
 0x2c0   : > { %3202 = vpow2.f32 %v1320_v43  ;;  %v1278_v17 = vsub.f32 %v4153_v53, %v1225_v2  ;;  %v1279_v26 = vsub.f32 %v4129_v37, %v1225_v2  ;;  %v1373_v58 = vadd.f32 %v4302_v46, %v1372_v47 }
 0x2c1   : > { %v4311_v59 = vpop.eup %3190  ;;  %3204 = vpow2.f32 %v1322_v27  ;;  %v1253_v27 = vpop.xlane.xlu0 %1252 }
 0x2c2   : > { %v4313_v28 = vpop.eup %3192  ;;  %v1324_v32 = vmul.f32 1.442695, %v1278_v17  ;;  %v1326_v36 = vmul.f32 1.442695, %v1279_v26  ;;  %1374 = vadd.xlane.f32.xlu1 %v1373_v58  ;;  %v1288_v26 = vsub.f32 %v3995_v56, %v1245_v63 }
 0x2c3   : > { %v1229_v45 = vpop.xlane.xlu1 %1228  ;;  %v1376_v10 = vsel %vm1197_vm4, %v4313_v28, 0.0 }
 0x2c4   : > { %3206 = vpow2.f32 %v1324_v32  ;;  %v1280_v53 = vsub.f32 %v4173_v57, %v1229_v45  ;;  %v1281_v37 = vsub.f32 %v4148_v11, %v1229_v45  ;;  %v1377_v48 = vadd.f32 %v4311_v59, %v1376_v10 }
 0x2c5   : > { %v4320_v22 = vpop.eup %3194  ;;  %3208 = vpow2.f32 %v1326_v36  ;;  %v1346_v32 = vmul.f32 1.442695, %v1289_v7  ;;  %v1293_v36 = vsub.f32 %v4021_v62, %v1253_v27  ;;  %v1344_v63 = vmul.f32 1.442695, %v1288_v26 }
 0x2c6   : > { %v4322_v40 = vpop.eup %3196  ;;  %v1328_v39 = vmul.f32 1.442695, %v1280_v53  ;;  %v1330_v54 = vmul.f32 1.442695, %v1281_v37  ;;  %1378 = vadd.xlane.f32.xlu0 %v1377_v48  ;;  %v1292_v62 = vsub.f32 %v4041_v35, %v1253_v27 }
 0x2c7   : > { %v1233_v50 = vpop.xlane.xlu1 %1232  ;;  %v1380_v43 = vsel %vm1197_vm4, %v4322_v40, 0.0 }
 0x2c8   : > { %3210 = vpow2.f32 %v1328_v39  ;;  %v1282_v11 = vsub.f32 %v4193_v55, %v1233_v50  ;;  %v1283_v57 = vsub.f32 %v4166_v24, %v1233_v50  ;;  %v1381_v2 = vadd.f32 %v4320_v22, %v1380_v43 }
 0x2c9   : > { %v4330_v47 = vpop.eup %3198  ;;  %3212 = vpow2.f32 %v1330_v54  ;;  %v1354_v54 = vmul.f32 1.442695, %v1293_v36  ;;  %v1352_v27 = vmul.f32 1.442695, %v1292_v62 }
 0x2ca   : > { %v4332_v17 = vpop.eup %3200  ;;  %v1332_v49 = vmul.f32 1.442695, %v1282_v11  ;;  %v1334_v58 = vmul.f32 1.442695, %v1283_v57  ;;  %1382 = vadd.xlane.f32.xlu1 %v1381_v2 }
 0x2cb   : > { %v1237_v45 = vpop.xlane.xlu1 %1236  ;;  %v1384_v55 = vsel %vm1197_vm4, %v4332_v17, 0.0 }
 0x2cc   : > { %3214 = vpow2.f32 %v1332_v49  ;;  %v1284_v24 = vsub.f32 %v4209_v4, %v1237_v45  ;;  %v1285_v10 = vsub.f32 %v4187_v12, %v1237_v45  ;;  %v1385_v53 = vadd.f32 %v4330_v47, %v1384_v55 }
 0x2cd   : > { %v4341_v37 = vpop.eup %3202  ;;  %3216 = vpow2.f32 %v1334_v58 }
 0x2ce   : > { %v4343_v56 = vpop.eup %3204  ;;  %v1336_v48 = vmul.f32 1.442695, %v1284_v24  ;;  %v1338_v39 = vmul.f32 1.442695, %v1285_v10  ;;  %1386 = vadd.xlane.f32.xlu0 %v1385_v53  ;;  %3218 = vpow2.f32 %v1346_v32 }
 0x2cf   : > { %v1241_v7 = vpop.xlane.xlu1 %1240  ;;  %v1388_v4 = vsel %vm1197_vm4, %v4343_v56, 0.0 }
 0x2d0   : > { %3220 = vpow2.f32 %v1336_v48  ;;  %v1286_v12 = vsub.f32 %v4227_v14, %v1241_v7  ;;  %v1287_v50 = vsub.f32 %v4205_v1, %v1241_v7  ;;  %v1389_v43 = vadd.f32 %v4341_v37, %v1388_v4 }
 0x2d1   : > { %v4351_v11 = vpop.eup %3206  ;;  %3222 = vpow2.f32 %v1338_v39 }
 0x2d2   : > { %v4353_v57 = vpop.eup %3208  ;;  %3224 = vpow2.f32 %v1344_v63  ;;  %v1340_v2 = vmul.f32 1.442695, %v1286_v12  ;;  %v1342_v35 = vmul.f32 1.442695, %v1287_v50  ;;  %1390 = vadd.xlane.f32.xlu1 %v1389_v43 }
 0x2d3   : > { %3226 = vpow2.f32 %v1354_v54  ;;  %v1249_v26 = vpop.xlane.xlu1 %1248  ;;  %v1392_v49 = vsel %vm1197_vm4, %v4353_v57, 0.0 }
 0x2d4   : > { %3228 = vpow2.f32 %v1340_v2  ;;  %v1290_v1 = vsub.f32 %v4236_v0, %v1249_v26  ;;  %v1291_v14 = vsub.f32 %v4217_v29, %v1249_v26  ;;  %v1393_v58 = vadd.f32 %v4351_v11, %v1392_v49 }
 0x2d5   : > { %v4360_v32 = vpop.eup %3210  ;;  %3230 = vpow2.f32 %v1342_v35 }
 0x2d6   : > { %v4362_v36 = vpop.eup %3212  ;;  %v1348_v45 = vmul.f32 1.442695, %v1290_v1  ;;  %v1350_v55 = vmul.f32 1.442695, %v1291_v14  ;;  %1394 = vadd.xlane.f32.xlu0 %v1393_v58  ;;  %3232 = vpow2.f32 %v1352_v27 }
 0x2d7   : > { %v1257_v24 = vpop.xlane.xlu1 %1256  ;;  %v1396_v10 = vsel %vm1197_vm4, %v4362_v36, 0.0 }
 0x2d8   : > { %3234 = vpow2.f32 %v1348_v45  ;;  %v1294_v0 = vsub.f32 %v4252_v30, %v1257_v24  ;;  %v1295_v29 = vsub.f32 %v4240_v19, %v1257_v24  ;;  %v1397_v53 = vadd.f32 %v4360_v32, %v1396_v10 }
 0x2d9   : > { %v4369_v63 = vpop.eup %3214  ;;  %3236 = vpow2.f32 %v1350_v55  ;;  %v1261_v48 = vpop.xlane.xlu0 %1260 }
 0x2da   : > { %v4371_v39 = vpop.eup %3216  ;;  %v1356_v62 = vmul.f32 1.442695, %v1294_v0  ;;  %v1358_v54 = vmul.f32 1.442695, %v1295_v29  ;;  %1398 = vadd.xlane.f32.xlu1 %v1397_v53  ;;  %v1296_v7 = vsub.f32 %v4256_v33, %v1261_v48  ;;  %v1297_v4 = vsub.f32 %v4260_v44, %v1261_v48 }
 0x2db   : > { %v1400_v30 = vsel %vm1197_vm4, %v4371_v39, 0.0  ;;  %v4377_v12 = vpop.eup %3218 }
 0x2dc   : > { %3238 = vpow2.f32 %v1356_v62  ;;  %v1360_v19 = vmul.f32 1.442695, %v1296_v7  ;;  %v1362_v50 = vmul.f32 1.442695, %v1297_v4  ;;  %v1401_v43 = vadd.f32 %v4369_v63, %v1400_v30 }
 0x2dd   : > { %v4380_v2 = vpop.eup %3220  ;;  %3240 = vpow2.f32 %v1358_v54  ;;  %v1412_v1 = vsel %vm1197_vm4, %v4377_v12, 0.0 }
 0x2de   : > { %v4382_v35 = vpop.eup %3222  ;;  %3242 = vpow2.f32 %v1360_v19  ;;  %1402 = vadd.xlane.f32.xlu0 %v1401_v43 }
 0x2df   : > { %v4384_v33 = vpop.eup %3224  ;;  %3244 = vpow2.f32 %v1362_v50  ;;  %v1404_v44 = vsel %vm1197_vm4, %v4382_v35, 0.0 }
 0x2e0   : > { %v4388_v27 = vpop.eup %3226  ;;  %v1405_v26 = vadd.f32 %v4380_v2, %v1404_v44  ;;  %v1413_v29 = vadd.f32 %v4384_v33, %v1412_v1 }
 0x2e1   : > { %v4391_v49 = vpop.eup %3228  ;;  %v1420_v48 = vsel %vm1197_vm4, %v4388_v27, 0.0 }
 0x2e2   : > { %v4395_v14 = vpop.eup %3230  ;;  %1406 = vadd.xlane.f32.xlu1 %v1405_v26 }
 0x2e3   : > { %v1265_v58 = vpop.xlane.xlu1 %1264  ;;  %v1408_v45 = vsel %vm1197_vm4, %v4395_v14, 0.0  ;;  %v4399_v55 = vpop.eup %3232 }
 0x2e4   : > { %v1298_v24 = vsub.f32 %v4274_v18, %v1265_v58  ;;  %v1299_v10 = vsub.f32 %v4278_v61, %v1265_v58  ;;  %v1409_v0 = vadd.f32 %v4391_v49, %v1408_v45  ;;  %v1421_v4 = vadd.f32 %v4399_v55, %v1420_v48 }
 0x2e5   : > { %v4405_v53 = vpop.eup %3234  ;;  %v5368_v48 = vmov 0.0  }
 0x2e6   : > { %v4409_v62 = vpop.eup %3236  ;;  %v1364_v54 = vmul.f32 1.442695, %v1298_v24  ;;  %v1366_v7 = vmul.f32 1.442695, %v1299_v10  ;;  %1410 = vadd.xlane.f32.xlu0 %v1409_v0  ;;  %1414 = vadd.xlane.f32.xlu1 %v1413_v29  ;;  %v3180_v29 = vld [vmem:[%s5323_s8 + $0x8] sm:$0xff]  }
 0x2e7   : > { %v1416_v18 = vsel %vm1197_vm4, %v4409_v62, 0.0  ;;  %3074 = vmatprep.subr.bf16.mxu0 %v5368_v48  ;;  %3114 = vmatprep.subr.bf16.mxu1 %v5368_v48 }
 0x2e8   : > { %3246 = vpow2.f32 %v1364_v54  ;;  %v1417_v61 = vadd.f32 %v4405_v53, %v1416_v18  ;;  %3116 = vmatpush3.bf16.msra.mxu1 %v3180_v29  ;;  %v3181_v54 = vld [vmem:[%s5323_s8] sm:$0xff]  }
 0x2e9   : > { %v4415_v30 = vpop.eup %3238  ;;  %3248 = vpow2.f32 %v1366_v7  ;;  %3115 = vmatprep.subr.bf16.mxu1 %v5368_v48  ;;  %v5382_v7 = vmov 0  }
 0x2ea   : > { %v4417_v19 = vpop.eup %3240  ;;  %1418 = vadd.xlane.f32.xlu0 %v1417_v61  ;;  %1422 = vadd.xlane.f32.xlu1 %v1421_v4 }
 0x2eb   : > { %v4419_v50 = vpop.eup %3242  ;;  %v1424_v43 = vsel %vm1197_vm4, %v4417_v19, 0.0 }
 0x2ec   : > { %v4423_v44 = vpop.eup %3244  ;;  %v1425_v26 = vadd.f32 %v4415_v30, %v1424_v43  ;;  %3117 = vmatpush3.bf16.msra.mxu1 %v3181_v54 }
 0x2ed   : > { %v1428_v1 = vsel %vm1197_vm4, %v4423_v44, 0.0  ;;  %2621 = vmatprep.subr.bf16.mxu1 %v5382_v7 }
 0x2ee   : > { %1426 = vadd.xlane.f32.xlu0 %v1425_v26  ;;  %v1429_v58 = vadd.f32 %v4419_v50, %v1428_v1 }
 0x2f0   : > { %1430 = vadd.xlane.f32.xlu1 %v1429_v58 }
 0x2f5   : > { %v4429_v45 = vpop.eup %3246 }
 0x2f6   : > { %v4431_v24 = vpop.eup %3248 }
 0x2f7   : > { %v1432_v10 = vsel %vm1197_vm4, %v4431_v24, 0.0 }
 0x2f8   : > { %v1433_v0 = vadd.f32 %v4429_v45, %v1432_v10 }
 0x2fa   : > { %1434 = vadd.xlane.f32.xlu0 %v1433_v0 }
 0x347   : > { %v1371_v18 = vpop.xlane.xlu0 %1370 }
 0x348   : > { %3250 = vrcp.f32 %v1371_v18 }
 0x34b   : > { %v1375_v61 = vpop.xlane.xlu1 %1374 }
 0x34c   : > { %3252 = vrcp.f32 %v1375_v61 }
 0x34f   : > { %v1379_v4 = vpop.xlane.xlu0 %1378 }
 0x350   : > { %3254 = vrcp.f32 %v1379_v4 }
 0x353   : > { %v1383_v43 = vpop.xlane.xlu1 %1382 }
 0x354   : > { %3256 = vrcp.f32 %v1383_v43 }
 0x355   : > { %v3251_v26 = vpop.eup %3250 }
 0x356   : > { %v1454_v10 = vmul.f32 %v3251_v26, %v4295_v20  ;;  %v1453_v48 = vmul.f32 %v3251_v26, %v4293_v15 }
 0x357   : > { %v1387_v1 = vpop.xlane.xlu0 %1386 }
 0x358   : > { %3258 = vrcp.f32 %v1387_v1  ;;  %v5383_v1 = vmov 0.0  }
 0x359   : > { %v3253_v58 = vpop.eup %3252  ;;  %3086 = vmatprep.mubr.msk.bf16.mxu1 %vm3519_vm11, %v5383_v1 }
 0x35a   : > { %v1456_v0 = vmul.f32 %v3253_v58, %v4304_v25  ;;  %v1455_v38 = vmul.f32 %v3253_v58, %v4302_v46 }
 0x35b   : > { %v1391_v8 = vpop.xlane.xlu1 %1390 }
 0x35c   : > { %3260 = vrcp.f32 %v1391_v8  ;;  %v1488_v18 = vpack.c.bf16 %v1456_v0, %v1454_v10  ;;  %v1487_v61 = vpack.c.bf16 %v1455_v38, %v1453_v48 }
 0x35d   : > { %v3255_v34 = vpop.eup %3254 }
 0x35e   : > { %2991 = vmatprep.mubr.msk.bf16.mxu0 %vm1197_vm4, %v1488_v18  ;;  %v1458_v20 = vmul.f32 %v3255_v34, %v4313_v28  ;;  %v1457_v46 = vmul.f32 %v3255_v34, %v4311_v59 }
 0x35f   : > { %1584 = vmatmul.mubr.bf16.vlgmr.msra.gmra.mxu0 %v1487_v61  ;;  %v1395_v4 = vpop.xlane.xlu0 %1394 }
 0x360   : > { %3075 = vmatpush3.bf16.msra.mxu0 %v3180_v29  ;;  %3262 = vrcp.f32 %v1395_v4 }
 0x361   : > { %v3257_v43 = vpop.eup %3256  ;;  %3076 = vmatprep.subr.bf16.mxu0 %v5383_v1 }
 0x362   : > { %v1460_v15 = vmul.f32 %v3257_v43, %v4322_v40  ;;  %v1459_v8 = vmul.f32 %v3257_v43, %v4320_v22 }
 0x363   : > { %v1399_v25 = vpop.xlane.xlu1 %1398 }
 0x364   : > { %3264 = vrcp.f32 %v1399_v25  ;;  %v1490_v38 = vpack.c.bf16 %v1460_v15, %v1458_v20  ;;  %v1489_v48 = vpack.c.bf16 %v1459_v8, %v1457_v46  ;;  %3077 = vmatpush3.bf16.msra.mxu0 %v3181_v54 }
 0x365   : > { %v3259_v29 = vpop.eup %3258 }
 0x366   : > { %2992 = vmatprep.mubr.msk.bf16.mxu0 %vm1197_vm4, %v1490_v38  ;;  %v1462_v58 = vmul.f32 %v3259_v29, %v4332_v17  ;;  %v1461_v34 = vmul.f32 %v3259_v29, %v4330_v47 }
 0x367   : > { %1592 = vmatmul.mubr.bf16.gmra.mxu0 %v1489_v48  ;;  %v1403_v26 = vpop.xlane.xlu0 %1402 }
 0x368   : > { %3266 = vrcp.f32 %v1403_v26 }
 0x369   : > { %v3261_v28 = vpop.eup %3260 }
 0x36a   : > { %v1464_v40 = vmul.f32 %v3261_v28, %v4343_v56  ;;  %v1463_v59 = vmul.f32 %v3261_v28, %v4341_v37 }
 0x36b   : > { %v1407_v22 = vpop.xlane.xlu1 %1406 }
 0x36c   : > { %3268 = vrcp.f32 %v1407_v22  ;;  %v1492_v10 = vpack.c.bf16 %v1464_v40, %v1462_v58  ;;  %v1491_v0 = vpack.c.bf16 %v1463_v59, %v1461_v34 }
 0x36d   : > { %v3263_v54 = vpop.eup %3262 }
 0x36e   : > { %2993 = vmatprep.mubr.msk.bf16.mxu0 %vm1197_vm4, %v1492_v10  ;;  %v1466_v17 = vmul.f32 %v3263_v54, %v4353_v57  ;;  %v1465_v47 = vmul.f32 %v3263_v54, %v4351_v11 }
 0x36f   : > { %v1415_v18 = vpop.xlane.xlu1 %1414  ;;  %1600 = vmatmul.mubr.bf16.gmra.mxu0 %v1491_v0  ;;  %v1411_v61 = vpop.xlane.xlu0 %1410 }
 0x370   : > { %3270 = vrcp.f32 %v1415_v18 }
 0x371   : > { %v3265_v4 = vpop.eup %3264  ;;  %3272 = vrcp.f32 %v1411_v61 }
 0x372   : > { %v1468_v56 = vmul.f32 %v3265_v4, %v4362_v36  ;;  %v1467_v37 = vmul.f32 %v3265_v4, %v4360_v32 }
 0x373   : > { %v1423_v43 = vpop.xlane.xlu1 %1422  ;;  %v1419_v20 = vpop.xlane.xlu0 %1418 }
 0x374   : > { %3274 = vrcp.f32 %v1423_v43  ;;  %v1494_v15 = vpack.c.bf16 %v1468_v56, %v1466_v17  ;;  %v1493_v46 = vpack.c.bf16 %v1467_v37, %v1465_v47 }
 0x375   : > { %3276 = vrcp.f32 %v1419_v20  ;;  %v3267_v8 = vpop.eup %3266 }
 0x376   : > { %2994 = vmatprep.mubr.msk.bf16.mxu0 %vm1197_vm4, %v1494_v15  ;;  %v1470_v57 = vmul.f32 %v3267_v8, %v4371_v39  ;;  %v1469_v32 = vmul.f32 %v3267_v8, %v4369_v63  ;;  %v4506_v15 = vld [vmem:[#allocation4] ss:$0 sm:$0xff] }
 0x377   : > { %1608 = vmatmul.mubr.bf16.gmra.mxu0 %v1493_v46  ;;  %v1427_v38 = vpop.xlane.xlu0 %1426 }
 0x379   : > { %v3269_v25 = vpop.eup %3268  ;;  %v1431_v48 = vpop.xlane.xlu1 %1430 }
 0x37a   : > { %3278 = vrcp.f32 %v1431_v48  ;;  %v1472_v11 = vmul.f32 %v3269_v25, %v4382_v35  ;;  %v1471_v36 = vmul.f32 %v3269_v25, %v4380_v2 }
 0x37b   : > { %3280 = vrcp.f32 %v1427_v38 }
 0x37c   : > { %v1496_v29 = vpack.c.bf16 %v1472_v11, %v1470_v57  ;;  %v1495_v26 = vpack.c.bf16 %v1471_v36, %v1469_v32 }
 0x37d   : > { %v3271_v28 = vpop.eup %3270 }
 0x37e   : > { %v3273_v58 = vpop.eup %3272  ;;  %2995 = vmatprep.mubr.msk.bf16.mxu0 %vm1197_vm4, %v1496_v29  ;;  %v1476_v40 = vmul.f32 %v3271_v28, %v4377_v12  ;;  %v1475_v63 = vmul.f32 %v3271_v28, %v4384_v33 }
 0x37f   : > { %1616 = vmatmul.mubr.bf16.gmra.mxu0 %v1495_v26  ;;  %v1474_v34 = vmul.f32 %v3273_v58, %v4395_v14  ;;  %v1473_v35 = vmul.f32 %v3273_v58, %v4391_v49 }
 0x381   : > { %v3275_v39 = vpop.eup %3274  ;;  %v1498_v59 = vpack.c.bf16 %v1476_v40, %v1474_v34  ;;  %v1497_v54 = vpack.c.bf16 %v1475_v63, %v1473_v35 }
 0x382   : > { %v3277_v22 = vpop.eup %3276  ;;  %v1480_v2 = vmul.f32 %v3275_v39, %v4388_v27  ;;  %v1479_v33 = vmul.f32 %v3275_v39, %v4399_v55 }
 0x383   : > { %2996 = vmatprep.mubr.msk.bf16.mxu0 %vm1197_vm4, %v1498_v59  ;;  %v1435_v10 = vpop.xlane.xlu0 %1434  ;;  %v1478_v0 = vmul.f32 %v3277_v22, %v4409_v62  ;;  %v1477_v49 = vmul.f32 %v3277_v22, %v4405_v53 }
 0x384   : > { %3282 = vrcp.f32 %v1435_v10 }
 0x385   : > { %v1500_v12 = vpack.c.bf16 %v1480_v2, %v1478_v0  ;;  %v1499_v4 = vpack.c.bf16 %v1479_v33, %v1477_v49 }
 0x387   : > { %v3279_v18 = vpop.eup %3278  ;;  %1624 = vmatmul.mubr.bf16.gmra.mxu0 %v1497_v54 }
 0x388   : > { %2997 = vmatprep.mubr.msk.bf16.mxu0 %vm1197_vm4, %v1500_v12  ;;  %v3281_v14 = vpop.eup %3280  ;;  %v1484_v61 = vmul.f32 %v3279_v18, %v4423_v44  ;;  %v1483_v56 = vmul.f32 %v3279_v18, %v4419_v50  ;;  %v4502_v44 = vld [vmem:[%s5321_s6] ss:$0 sm:$0xff] }
 0x389   : > { %v1482_v27 = vmul.f32 %v3281_v14, %v4417_v19  ;;  %v1481_v37 = vmul.f32 %v3281_v14, %v4415_v30  ;;  %v4497_v30 = vld [vmem:[%s5320_s5] ss:$0 sm:$0xff] }
 0x38b   : > { %v1502_v17 = vpack.c.bf16 %v1484_v61, %v1482_v27  ;;  %v1501_v43 = vpack.c.bf16 %v1483_v56, %v1481_v37 }
 0x38f   : > { %1632 = vmatmul.mubr.bf16.gmra.mxu0 %v1499_v4 }
 0x390   : > { %2998 = vmatprep.mubr.msk.bf16.mxu0 %vm1197_vm4, %v1502_v17 }
 0x391   : > { %v3283_v62 = vpop.eup %3282 }
 0x392   : > { %v1486_v47 = vmul.f32 %v3283_v62, %v4431_v24  ;;  %v1485_v55 = vmul.f32 %v3283_v62, %v4429_v45 }
 0x394   : > { %v1504_v53 = vpack.c.bf16 %v1486_v47, %v1486_v47  ;;  %v1503_v19 = vpack.c.bf16 %v1485_v55, %v1485_v55 }
 0x397   : > { %1640 = vmatmul.mubr.bf16.gmra.mxu0 %v1501_v43 }
 0x398   : > { %2999 = vmatprep.mubr.msk.bf16.mxu0 %vm1197_vm4, %v1504_v53 }
 0x39f   : > { %1648 = vmatmul.mubr.bf16.gmra.mxu0 %v1503_v19 }
 0x3a0   : > { %3078 = vmatprep.mubr.msk.bf16.mxu0 %vm3519_vm11, %v5383_v1 }
 0x41f   : > { %v1585_v50 = vpop.f32.mrf.mxu0 }
 0x420   : > { %v1586_v45 = vadd.f32 %v4497_v30, %v1585_v50 }
 0x421   : > { %v1587_v24 = vpop.f32.mrf.mxu0 }
 0x422   : > { %v1662_v20 = vmul.f32 %v4502_v44, %v1586_v45 }
 0x423   : > { %v1588_v46 = vpop.f32.mrf.mxu0 }
 0x424   : > { %v1589_v8 = vadd.f32 %v4497_v30, %v1588_v46  ;;  %v1686_v38 = vadd.f32 %v4506_v15, %v1662_v20 }
 0x425   : > { %v1590_v25 = vpop.f32.mrf.mxu0 }
 0x426   : > { %v1663_v48 = vmul.f32 %v4502_v44, %v1589_v8  ;;  %v1703_v29 = vmax.f32 %v1686_v38, 0.0 }
 0x427   : > { %v1593_v57 = vpop.f32.mrf.mxu0 }
 0x428   : > { %v1687_v11 = vadd.f32 %v4506_v15, %v1663_v48  ;;  %v1594_v32 = vadd.f32 %v4497_v30, %v1593_v57 }
 0x429   : > { %v1595_v36 = vpop.f32.mrf.mxu0 }
 0x42a   : > { %v1704_v26 = vmax.f32 %v1687_v11, 0.0  ;;  %v1664_v28 = vmul.f32 %v4502_v44, %v1594_v32 }
 0x42b   : > { %v1596_v58 = vpop.f32.mrf.mxu0 }
 0x42c   : > { %v1720_v40 = vpack.c.bf16 %v1704_v26, %v1703_v29  ;;  %v1597_v34 = vadd.f32 %v4497_v30, %v1596_v58  ;;  %v1688_v59 = vadd.f32 %v4506_v15, %v1664_v28 }
 0x42d   : > { %v1598_v39 = vpop.f32.mrf.mxu0 }
 0x42e   : > { %v1665_v35 = vmul.f32 %v4502_v44, %v1597_v34  ;;  %3079 = vmatmul.mubr.msk.bf16.vlgmr.msra.gmra.mxu0 %vm829_vm0, %v1720_v40  ;;  %v1705_v0 = vmax.f32 %v1688_v59, 0.0 }
 0x42f   : > { %v1601_v63 = vpop.f32.mrf.mxu0  ;;  %3082 = vmatprep.mubr.msk.bf16.mxu0 %vm3519_vm11, %v5383_v1 }
 0x430   : > { %v1689_v22 = vadd.f32 %v4506_v15, %v1665_v35  ;;  %v1602_v2 = vadd.f32 %v4497_v30, %v1601_v63 }
 0x431   : > { %v1603_v10 = vpop.f32.mrf.mxu0 }
 0x432   : > { %v1706_v54 = vmax.f32 %v1689_v22, 0.0  ;;  %v1666_v12 = vmul.f32 %v4502_v44, %v1602_v2 }
 0x433   : > { %v1604_v18 = vpop.f32.mrf.mxu0 }
 0x434   : > { %v1721_v14 = vpack.c.bf16 %v1706_v54, %v1705_v0  ;;  %v1605_v49 = vadd.f32 %v4497_v30, %v1604_v18  ;;  %v1690_v61 = vadd.f32 %v4506_v15, %v1666_v12 }
 0x435   : > { %v1606_v33 = vpop.f32.mrf.mxu0 }
 0x436   : > { %v1667_v27 = vmul.f32 %v4502_v44, %v1605_v49  ;;  %3083 = vmatmul.mubr.msk.bf16.gmra.mxu0 %vm829_vm0, %v1721_v14  ;;  %v1707_v47 = vmax.f32 %v1690_v61, 0.0 }
 0x437   : > { %v1609_v4 = vpop.f32.mrf.mxu0 }
 0x438   : > { %v1691_v17 = vadd.f32 %v4506_v15, %v1667_v27  ;;  %v1610_v62 = vadd.f32 %v4497_v30, %v1609_v4 }
 0x439   : > { %v1611_v56 = vpop.f32.mrf.mxu0 }
 0x43a   : > { %v1708_v37 = vmax.f32 %v1691_v17, 0.0  ;;  %v1668_v43 = vmul.f32 %v4502_v44, %v1610_v62 }
 0x43b   : > { %v1612_v53 = vpop.f32.mrf.mxu0 }
 0x43c   : > { %v1722_v55 = vpack.c.bf16 %v1708_v37, %v1707_v47  ;;  %v1613_v19 = vadd.f32 %v4497_v30, %v1612_v53  ;;  %v1692_v45 = vadd.f32 %v4506_v15, %v1668_v43 }
 0x43d   : > { %v1614_v50 = vpop.f32.mrf.mxu0 }
 0x43e   : > { %v1669_v24 = vmul.f32 %v4502_v44, %v1613_v19  ;;  %3087 = vmatmul.mubr.msk.bf16.vlgmr.msra.gmra.mxu1 %vm829_vm0, %v1722_v55  ;;  %v1709_v38 = vmax.f32 %v1692_v45, 0.0 }
 0x43f   : > { %v1617_v20 = vpop.f32.mrf.mxu0  ;;  %3090 = vmatprep.mubr.msk.bf16.mxu1 %vm3519_vm11, %v5383_v1 }
 0x440   : > { %v1693_v46 = vadd.f32 %v4506_v15, %v1669_v24  ;;  %v1618_v8 = vadd.f32 %v4497_v30, %v1617_v20 }
 0x441   : > { %v1619_v25 = vpop.f32.mrf.mxu0 }
 0x442   : > { %v1710_v48 = vmax.f32 %v1693_v46, 0.0  ;;  %v1670_v57 = vmul.f32 %v4502_v44, %v1618_v8 }
 0x443   : > { %v1620_v11 = vpop.f32.mrf.mxu0 }
 0x444   : > { %v1723_v32 = vpack.c.bf16 %v1710_v48, %v1709_v38  ;;  %v1621_v36 = vadd.f32 %v4497_v30, %v1620_v11  ;;  %v1694_v26 = vadd.f32 %v4506_v15, %v1670_v57 }
 0x445   : > { %v1622_v29 = vpop.f32.mrf.mxu0 }
 0x446   : > { %v1671_v28 = vmul.f32 %v4502_v44, %v1621_v36  ;;  %3091 = vmatmul.mubr.msk.bf16.gmra.mxu1 %vm829_vm0, %v1723_v32  ;;  %v1711_v59 = vmax.f32 %v1694_v26, 0.0 }
 0x447   : > { %v1625_v58 = vpop.f32.mrf.mxu0  ;;  %3094 = vmatprep.mubr.msk.bf16.mxu1 %vm3519_vm11, %v5383_v1 }
 0x448   : > { %v1695_v40 = vadd.f32 %v4506_v15, %v1671_v28  ;;  %v1626_v34 = vadd.f32 %v4497_v30, %v1625_v58 }
 0x449   : > { %v1627_v39 = vpop.f32.mrf.mxu0 }
 0x44a   : > { %v1712_v35 = vmax.f32 %v1695_v40, 0.0  ;;  %v1672_v63 = vmul.f32 %v4502_v44, %v1626_v34 }
 0x44b   : > { %v1628_v22 = vpop.f32.mrf.mxu0 }
 0x44c   : > { %v1724_v2 = vpack.c.bf16 %v1712_v35, %v1711_v59  ;;  %v1629_v10 = vadd.f32 %v4497_v30, %v1628_v22  ;;  %v1696_v54 = vadd.f32 %v4506_v15, %v1672_v63 }
 0x44d   : > { %v1630_v0 = vpop.f32.mrf.mxu0 }
 0x44e   : > { %v1673_v12 = vmul.f32 %v4502_v44, %v1629_v10  ;;  %3095 = vmatmul.mubr.msk.bf16.gmra.mxu1 %vm829_vm0, %v1724_v2  ;;  %v1713_v61 = vmax.f32 %v1696_v54, 0.0 }
 0x44f   : > { %v1633_v18 = vpop.f32.mrf.mxu0  ;;  %3098 = vmatprep.mubr.msk.bf16.mxu1 %vm3519_vm11, %v5383_v1 }
 0x450   : > { %v1697_v14 = vadd.f32 %v4506_v15, %v1673_v12  ;;  %v1634_v49 = vadd.f32 %v4497_v30, %v1633_v18 }
 0x451   : > { %v1635_v33 = vpop.f32.mrf.mxu0 }
 0x452   : > { %v1714_v27 = vmax.f32 %v1697_v14, 0.0  ;;  %v1674_v4 = vmul.f32 %v4502_v44, %v1634_v49 }
 0x453   : > { %v1636_v17 = vpop.f32.mrf.mxu0 }
 0x454   : > { %v1725_v62 = vpack.c.bf16 %v1714_v27, %v1713_v61  ;;  %v1637_v56 = vadd.f32 %v4497_v30, %v1636_v17  ;;  %v1698_v37 = vadd.f32 %v4506_v15, %v1674_v4 }
 0x455   : > { %v1638_v47 = vpop.f32.mrf.mxu0 }
 0x456   : > { %v1675_v43 = vmul.f32 %v4502_v44, %v1637_v56  ;;  %3099 = vmatmul.mubr.msk.bf16.gmra.mxu1 %vm829_vm0, %v1725_v62  ;;  %v1715_v45 = vmax.f32 %v1698_v37, 0.0 }
 0x457   : > { %v1641_v53 = vpop.f32.mrf.mxu0  ;;  %3102 = vmatprep.mubr.msk.bf16.mxu1 %vm3519_vm11, %v5383_v1 }
 0x458   : > { %v1699_v55 = vadd.f32 %v4506_v15, %v1675_v43  ;;  %v1642_v19 = vadd.f32 %v4497_v30, %v1641_v53 }
 0x459   : > { %v1643_v50 = vpop.f32.mrf.mxu0 }
 0x45a   : > { %v1716_v24 = vmax.f32 %v1699_v55, 0.0  ;;  %v1676_v20 = vmul.f32 %v4502_v44, %v1642_v19 }
 0x45b   : > { %v1644_v46 = vpop.f32.mrf.mxu0 }
 0x45c   : > { %v1726_v8 = vpack.c.bf16 %v1716_v24, %v1715_v45  ;;  %v1645_v25 = vadd.f32 %v4497_v30, %v1644_v46  ;;  %v1700_v48 = vadd.f32 %v4506_v15, %v1676_v20 }
 0x45d   : > { %v1646_v38 = vpop.f32.mrf.mxu0 }
 0x45e   : > { %v1677_v57 = vmul.f32 %v4502_v44, %v1645_v25  ;;  %3103 = vmatmul.mubr.msk.bf16.gmra.mxu1 %vm829_vm0, %v1726_v8  ;;  %v1717_v26 = vmax.f32 %v1700_v48, 0.0 }
 0x45f   : > { %v1649_v11 = vpop.f32.mrf.mxu0  ;;  %3106 = vmatprep.mubr.msk.bf16.mxu1 %vm3519_vm11, %v5383_v1 }
 0x460   : > { %v1701_v32 = vadd.f32 %v4506_v15, %v1677_v57  ;;  %v1650_v36 = vadd.f32 %v4497_v30, %v1649_v11  ;;  %v4583_v30 = vld [vmem:[%s5324_s9] ss:$0 sm:$0xff] }
 0x461   : > { %v1651_v29 = vpop.f32.mrf.mxu0 }
 0x462   : > { %v1718_v28 = vmax.f32 %v1701_v32, 0.0  ;;  %v1678_v58 = vmul.f32 %v4502_v44, %v1650_v36  ;;  %v4588_v44 = vld [vmem:[%s5325_s10] ss:$0 sm:$0xff] }
 0x463   : > { %v1652_v40 = vpop.f32.mrf.mxu0 }
 0x464   : > { %v1727_v34 = vpack.c.bf16 %v1718_v28, %v1717_v26  ;;  %v1702_v39 = vadd.f32 %v4506_v15, %v1678_v58 }
 0x465   : > { %v1653_v59 = vpop.f32.mrf.mxu0 }
 0x466   : > { %3107 = vmatmul.mubr.msk.bf16.gmra.mxu1 %vm829_vm0, %v1727_v34  ;;  %v1719_v35 = vmax.f32 %v1702_v39, 0.0 }
 0x467   : > { %3110 = vmatprep.mubr.msk.bf16.mxu1 %vm3519_vm11, %v5383_v1 }
 0x468   : > { %v1728_v63 = vpack.c.bf16 %v1719_v35, %v1719_v35 }
 0x46e   : > { %3111 = vmatmul.mubr.msk.bf16.gmra.mxu1 %vm829_vm0, %v1728_v63 }
 0x4ee   : > { %v4590_v15 = vpop.f32.mrf.mxu0 }
 0x4ef   : > { %v1885_v22 = vmul.f32 %v4583_v30, %v4590_v15  ;;  %v1959_v1 = vmul.f32 %v4588_v44, %v4590_v15 }
 0x4f0   : > { %v3080_v2 = vpop.f32.mrf.mxu0 }
 0x4f1   : > { %v1976_v10 = vsel %vm829_vm0, %v1959_v1, 0.0  ;;  %v1902_v0 = vsel %vm829_vm0, %v1885_v22, 0.0 }
 0x4f2   : > { %1977 = vadd.xlane.f32.xlu0 %v1976_v10  ;;  %1903 = vadd.xlane.f32.xlu1 %v1902_v0  ;;  %v4598_v54 = vpop.f32.mrf.mxu0 }
 0x4f3   : > { %v1960_v12 = vmul.f32 %v4588_v44, %v4598_v54  ;;  %v2576_v18 = vpack.c.bf16 %v4598_v54, %v4590_v15  ;;  %v1886_v14 = vmul.f32 %v4583_v30, %v4598_v54 }
 0x4f4   : > { %v3081_v49 = vpop.f32.mrf.mxu0 }
 0x4f5   : > { %v1979_v33 = vsel %vm829_vm0, %v1960_v12, 0.0  ;;  %v1905_v61 = vsel %vm829_vm0, %v1886_v14, 0.0 }
 0x4f6   : > { %1980 = vadd.xlane.f32.xlu1 %v1979_v33  ;;  %1906 = vadd.xlane.f32.xlu0 %v1905_v61  ;;  %v4608_v27 = vpop.f32.mrf.mxu0 }
 0x4f7   : > { %v1887_v4 = vmul.f32 %v4583_v30, %v4608_v27  ;;  %v1961_v17 = vmul.f32 %v4588_v44, %v4608_v27 }
 0x4f8   : > { %v3084_v62 = vpop.f32.mrf.mxu0 }
 0x4f9   : > { %v1982_v56 = vsel %vm829_vm0, %v1961_v17, 0.0  ;;  %v1908_v47 = vsel %vm829_vm0, %v1887_v4, 0.0 }
 0x4fa   : > { %1983 = vadd.xlane.f32.xlu0 %v1982_v56  ;;  %1909 = vadd.xlane.f32.xlu1 %v1908_v47  ;;  %v4616_v37 = vpop.f32.mrf.mxu0 }
 0x4fb   : > { %v1962_v43 = vmul.f32 %v4588_v44, %v4616_v37  ;;  %v2577_v53 = vpack.c.bf16 %v4616_v37, %v4608_v27  ;;  %v1888_v55 = vmul.f32 %v4583_v30, %v4616_v37 }
 0x4fc   : > { %v3085_v19 = vpop.f32.mrf.mxu0 }
 0x4fd   : > { %v1985_v50 = vsel %vm829_vm0, %v1962_v43, 0.0  ;;  %v1911_v45 = vsel %vm829_vm0, %v1888_v55, 0.0 }
 0x4fe   : > { %v4626_v24 = vpop.f32.mrf.mxu1  ;;  %1986 = vadd.xlane.f32.xlu1 %v1985_v50  ;;  %1912 = vadd.xlane.f32.xlu0 %v1911_v45 }
 0x4ff   : > { %v1889_v20 = vmul.f32 %v4583_v30, %v4626_v24  ;;  %v1963_v46 = vmul.f32 %v4588_v44, %v4626_v24 }
 0x500   : > { %v3088_v8 = vpop.f32.mrf.mxu1 }
 0x501   : > { %v1914_v25 = vsel %vm829_vm0, %v1889_v20, 0.0  ;;  %v1988_v38 = vsel %vm829_vm0, %v1963_v46, 0.0 }
 0x502   : > { %v4634_v48 = vpop.f32.mrf.mxu1  ;;  %1915 = vadd.xlane.f32.xlu1 %v1914_v25  ;;  %1989 = vadd.xlane.f32.xlu0 %v1988_v38 }
 0x503   : > { %v1890_v57 = vmul.f32 %v4583_v30, %v4634_v48  ;;  %v1964_v11 = vmul.f32 %v4588_v44, %v4634_v48 }
 0x504   : > { %v3089_v32 = vpop.f32.mrf.mxu1 }
 0x505   : > { %v1991_v36 = vsel %vm829_vm0, %v1964_v11, 0.0  ;;  %v1917_v29 = vsel %vm829_vm0, %v1890_v57, 0.0 }
 0x506   : > { %v4642_v26 = vpop.f32.mrf.mxu1  ;;  %1992 = vadd.xlane.f32.xlu1 %v1991_v36  ;;  %1918 = vadd.xlane.f32.xlu0 %v1917_v29 }
 0x507   : > { %v1891_v28 = vmul.f32 %v4583_v30, %v4642_v26  ;;  %v1965_v58 = vmul.f32 %v4588_v44, %v4642_v26 }
 0x508   : > { %v3092_v40 = vpop.f32.mrf.mxu1 }
 0x509   : > { %v1920_v34 = vsel %vm829_vm0, %v1891_v28, 0.0  ;;  %v1994_v39 = vsel %vm829_vm0, %v1965_v58, 0.0 }
 0x50a   : > { %v4650_v59 = vpop.f32.mrf.mxu1  ;;  %1921 = vadd.xlane.f32.xlu1 %v1920_v34  ;;  %1995 = vadd.xlane.f32.xlu0 %v1994_v39 }
 0x50b   : > { %v1892_v35 = vmul.f32 %v4583_v30, %v4650_v59  ;;  %v1966_v63 = vmul.f32 %v4588_v44, %v4650_v59 }
 0x50c   : > { %v3093_v22 = vpop.f32.mrf.mxu1 }
 0x50d   : > { %v1997_v1 = vsel %vm829_vm0, %v1966_v63, 0.0  ;;  %v1923_v2 = vsel %vm829_vm0, %v1892_v35, 0.0 }
 0x50e   : > { %v4658_v10 = vpop.f32.mrf.mxu1  ;;  %1998 = vadd.xlane.f32.xlu1 %v1997_v1  ;;  %1924 = vadd.xlane.f32.xlu0 %v1923_v2 }
 0x50f   : > { %v1893_v0 = vmul.f32 %v4583_v30, %v4658_v10  ;;  %v1967_v12 = vmul.f32 %v4588_v44, %v4658_v10 }
 0x510   : > { %v3096_v14 = vpop.f32.mrf.mxu1 }
 0x511   : > { %v1926_v49 = vsel %vm829_vm0, %v1893_v0, 0.0  ;;  %v2000_v33 = vsel %vm829_vm0, %v1967_v12, 0.0 }
 0x512   : > { %v1841_v61 = vpop.f32.mrf.mxu1  ;;  %1927 = vadd.xlane.f32.xlu1 %v1926_v49  ;;  %2001 = vadd.xlane.f32.xlu0 %v2000_v33 }
 0x513   : > { %v1894_v4 = vmul.f32 %v4583_v30, %v1841_v61  ;;  %v1968_v17 = vmul.f32 %v4588_v44, %v1841_v61 }
 0x514   : > { %v3097_v62 = vpop.f32.mrf.mxu1 }
 0x515   : > { %v2003_v56 = vsel %vm829_vm0, %v1968_v17, 0.0  ;;  %v1929_v47 = vsel %vm829_vm0, %v1894_v4, 0.0 }
 0x516   : > { %v1846_v43 = vpop.f32.mrf.mxu1  ;;  %2004 = vadd.xlane.f32.xlu1 %v2003_v56  ;;  %1930 = vadd.xlane.f32.xlu0 %v1929_v47 }
 0x517   : > { %v1895_v55 = vmul.f32 %v4583_v30, %v1846_v43  ;;  %v1969_v33 = vmul.f32 %v4588_v44, %v1846_v43 }
 0x518   : > { %v3100_v19 = vpop.f32.mrf.mxu1 }
 0x519   : > { %v1932_v50 = vsel %vm829_vm0, %v1895_v55, 0.0  ;;  %v2006_v55 = vsel %vm829_vm0, %v1969_v33, 0.0 }
 0x51a   : > { %v1849_v45 = vpop.f32.mrf.mxu1  ;;  %1933 = vadd.xlane.f32.xlu1 %v1932_v50 }
 0x51b   : > { %v1896_v20 = vmul.f32 %v4583_v30, %v1849_v45  ;;  %v2581_v62 = vpack.c.bf16 %v1849_v45, %v1846_v43  ;;  %v1970_v47 = vmul.f32 %v4588_v44, %v1849_v45  ;;  %v2579_v43 = vpack.c.bf16 %v4650_v59, %v4642_v26 }
 0x51c   : > { %v3101_v46 = vpop.f32.mrf.mxu1 }
 0x51d   : > { %v1935_v8 = vsel %vm829_vm0, %v1896_v20, 0.0  ;;  %v2009_v50 = vsel %vm829_vm0, %v1970_v47, 0.0 }
 0x51e   : > { %v1854_v25 = vpop.f32.mrf.mxu1  ;;  %1936 = vadd.xlane.f32.xlu0 %v1935_v8 }
 0x51f   : > { %v1897_v38 = vmul.f32 %v4583_v30, %v1854_v25  ;;  %v1971_v19 = vmul.f32 %v4588_v44, %v1854_v25 }
 0x520   : > { %v3104_v57 = vpop.f32.mrf.mxu1 }
 0x521   : > { %v1938_v11 = vsel %vm829_vm0, %v1897_v38, 0.0  ;;  %v2012_v20 = vsel %vm829_vm0, %v1971_v19, 0.0 }
 0x522   : > { %v1857_v32 = vpop.f32.mrf.mxu1  ;;  %1939 = vadd.xlane.f32.xlu1 %v1938_v11 }
 0x523   : > { %v1898_v36 = vmul.f32 %v4583_v30, %v1857_v32  ;;  %v2582_v12 = vpack.c.bf16 %v1857_v32, %v1854_v25  ;;  %v1972_v45 = vmul.f32 %v4588_v44, %v1857_v32 }
 0x524   : > { %v3105_v29 = vpop.f32.mrf.mxu1 }
 0x525   : > { %v1941_v28 = vsel %vm829_vm0, %v1898_v36, 0.0  ;;  %v2015_v46 = vsel %vm829_vm0, %v1972_v45, 0.0 }
 0x526   : > { %v1862_v58 = vpop.f32.mrf.mxu1  ;;  %1942 = vadd.xlane.f32.xlu0 %v1941_v28 }
 0x527   : > { %v1899_v40 = vmul.f32 %v4583_v30, %v1862_v58 }
 0x528   : > { %v3108_v34 = vpop.f32.mrf.mxu1 }
 0x529   : > { %v1944_v39 = vsel %vm829_vm0, %v1899_v40, 0.0 }
 0x52a   : > { %v1865_v35 = vpop.f32.mrf.mxu1  ;;  %1945 = vadd.xlane.f32.xlu1 %v1944_v39 }
 0x52b   : > { %v1900_v63 = vmul.f32 %v4583_v30, %v1865_v35  ;;  %v2583_v22 = vpack.c.bf16 %v1865_v35, %v1862_v58  ;;  %v1974_v26 = vmul.f32 %v4588_v44, %v1865_v35 }
 0x52c   : > { %v3109_v1 = vpop.f32.mrf.mxu1 }
 0x52d   : > { %2622 = vmatpush1.bf16.msra.mxu1 %v2583_v22  ;;  %v1947_v2 = vsel %vm829_vm0, %v1900_v63, 0.0  ;;  %v2021_v8 = vsel %vm829_vm0, %v1974_v26, 0.0 }
 0x52e   : > { %1948 = vadd.xlane.f32.xlu1 %v1947_v2  ;;  %v1870_v0 = vpop.f32.mrf.mxu1  ;;  %2623 = vmatprep.subr.bf16.mxu1 %v5382_v7 }
 0x52f   : > { %v1901_v14 = vmul.f32 %v4583_v30, %v1870_v0  ;;  %v2580_v30 = vpack.c.bf16 %v1841_v61, %v4658_v10  ;;  %v2578_v10 = vpack.c.bf16 %v4634_v48, %v4626_v24  ;;  %v1973_v61 = vmul.f32 %v4588_v44, %v1862_v58 }
 0x530   : > { %v3112_v49 = vpop.f32.mrf.mxu1  ;;  %v2584_v24 = vpack.c.bf16 %v1870_v0, %v1870_v0  ;;  %v1975_v48 = vmul.f32 %v4588_v44, %v1870_v0 }
 0x531   : > { %2624 = vmatpush1.bf16.msra.mxu1 %v2582_v12  ;;  %v1950_v4 = vsel %vm829_vm0, %v1901_v14, 0.0  ;;  %v2018_v59 = vsel %vm829_vm0, %v1973_v61, 0.0 }
 0x532   : > { %1951 = vadd.xlane.f32.xlu0 %v1950_v4  ;;  %v1873_v17 = vpop.f32.mrf.mxu1  ;;  %2625 = vmatprep.subr.bf16.mxu1 %v5382_v7  ;;  %v2619_v27 = vsel %vm1547_vm1, %v2584_v24, 0  ;;  %v2024_v37 = vsel %vm829_vm0, %v1975_v48, 0.0 }
 0x534   : > { %v3113_v56 = vpop.f32.mrf.mxu1 }
 0x535   : > { %2626 = vmatpush1.bf16.msra.mxu1 %v2581_v62 }
 0x536   : > { %2007 = vadd.xlane.f32.xlu0 %v2006_v55  ;;  %2627 = vmatprep.subr.bf16.mxu1 %v5382_v7 }
 0x539   : > { %2628 = vmatpush1.bf16.msra.mxu1 %v2580_v30 }
 0x53a   : > { %2010 = vadd.xlane.f32.xlu0 %v2009_v50  ;;  %2629 = vmatprep.subr.bf16.mxu1 %v5382_v7 }
 0x53d   : > { %2630 = vmatpush1.bf16.msra.mxu1 %v2579_v43 }
 0x53e   : > { %2013 = vadd.xlane.f32.xlu0 %v2012_v20  ;;  %2631 = vmatprep.subr.bf16.mxu1 %v5382_v7 }
 0x541   : > { %2632 = vmatpush1.bf16.msra.mxu1 %v2578_v10 }
 0x542   : > { %2016 = vadd.xlane.f32.xlu0 %v2015_v46  ;;  %2633 = vmatprep.subr.bf16.mxu1 %v5382_v7 }
 0x545   : > { %2634 = vmatpush1.bf16.msra.mxu1 %v2577_v53 }
 0x546   : > { %2019 = vadd.xlane.f32.xlu0 %v2018_v59  ;;  %2635 = vmatprep.subr.bf16.mxu1 %v5382_v7 }
 0x549   : > { %2636 = vmatpush1.bf16.msra.mxu1 %v2576_v18 }
 0x54a   : > { %2022 = vadd.xlane.f32.xlu0 %v2021_v8  ;;  %2651 = vmatprep.subr.bf16.mxu1 %v5382_v7 }
 0x54d   : > { %2652 = vmatpush2.bf16.msra.mxu1 %v2619_v27 }
 0x54e   : > { %2025 = vadd.xlane.f32.xlu0 %v2024_v37 }
 0x57b   : > { %v4718_v53 = vpop.xlane.xlu0 %1977  ;;  %v1904_v25 = vpop.xlane.xlu1 %1903 }
 0x57c   : > { %2027 = vxpose.xlu1.b32.start [1/16] (narrow) %v1904_v25, 8 }
 0x57f   : > { %v4720_v44 = vpop.xlane.xlu1 %1980  ;;  %v1907_v38 = vpop.xlane.xlu0 %1906 }
 0x580   : > { %2028 = vxpose.xlu1.b32.cont [2/16] (narrow) %v1907_v38, 8 }
 0x583   : > { %v4722_v15 = vpop.xlane.xlu0 %1983  ;;  %v1910_v54 = vpop.xlane.xlu1 %1909 }
 0x584   : > { %2029 = vxpose.xlu1.b32.cont [3/16] (narrow) %v1910_v54, 8 }
 0x587   : > { %v4724_v18 = vpop.xlane.xlu1 %1986  ;;  %v1913_v7 = vpop.xlane.xlu0 %1912 }
 0x588   : > { %2030 = vxpose.xlu1.b32.cont [4/16] (narrow) %v1913_v7, 8 }
 0x58b   : > { %v1916_v57 = vpop.xlane.xlu1 %1915  ;;  %v4726_v11 = vpop.xlane.xlu0 %1989 }
 0x58c   : > { %2031 = vxpose.xlu1.b32.cont [5/16] (narrow) %v1916_v57, 8 }
 0x58f   : > { %v4728_v32 = vpop.xlane.xlu1 %1992  ;;  %v1919_v36 = vpop.xlane.xlu0 %1918 }
 0x590   : > { %2032 = vxpose.xlu1.b32.cont [6/16] (narrow) %v1919_v36, 8  ;;  %v5384_v36 = vunpack.c.l.bf16 %v3969_v9 }
 0x593   : > { %v1922_v29 = vpop.xlane.xlu1 %1921  ;;  %v4730_v28 = vpop.xlane.xlu0 %1995 }
 0x594   : > { %2033 = vxpose.xlu1.b32.cont [7/16] (narrow) %v1922_v29, 8 }
 0x597   : > { %v4732_v58 = vpop.xlane.xlu1 %1998  ;;  %v1925_v40 = vpop.xlane.xlu0 %1924 }
 0x598   : > { %2034 = vxpose.xlu1.b32.cont [8/16] (narrow) %v1925_v40, 8  ;;  %v5385_v40 = vunpack.c.l.bf16 %v3965_v5 }
 0x59b   : > { %v1928_v34 = vpop.xlane.xlu1 %1927  ;;  %v4734_v39 = vpop.xlane.xlu0 %2001 }
 0x59c   : > { %2035 = vxpose.xlu1.b32.cont [9/16] (narrow) %v1928_v34, 8 }
 0x59f   : > { %v4736_v35 = vpop.xlane.xlu1 %2004  ;;  %v1931_v63 = vpop.xlane.xlu0 %1930 }
 0x5a0   : > { %2036 = vxpose.xlu1.b32.cont [10/16] (narrow) %v1931_v63, 8 }
 0x5a3   : > { %v1934_v22 = vpop.xlane.xlu1 %1933 }
 0x5a4   : > { %2037 = vxpose.xlu1.b32.cont [11/16] (narrow) %v1934_v22, 8 }
 0x5a7   : > { %v1937_v1 = vpop.xlane.xlu0 %1936 }
 0x5a8   : > { %2038 = vxpose.xlu1.b32.cont [12/16] (narrow) %v1937_v1, 8  ;;  %v5386_v1 = vunpack.c.l.bf16 %v3971_v13 }
 0x5ab   : > { %v1940_v2 = vpop.xlane.xlu1 %1939 }
 0x5ac   : > { %2039 = vxpose.xlu1.b32.cont [13/16] (narrow) %v1940_v2, 8 }
 0x5af   : > { %v1943_v0 = vpop.xlane.xlu0 %1942 }
 0x5b0   : > { %2040 = vxpose.xlu1.b32.cont [14/16] (narrow) %v1943_v0, 8  ;;  %v5387_v0 = vunpack.c.l.bf16 %v3963_v3 }
 0x5b3   : > { %v1946_v12 = vpop.xlane.xlu1 %1945 }
 0x5b4   : > { %2041 = vxpose.xlu1.b32.cont [15/16] (narrow) %v1946_v12, 8 }
 0x5b7   : > { %v1949_v14 = vpop.xlane.xlu1 %1948 }
 0x5b8   : > { %2042 = vxpose.xlu1.b32.end [16/16] (narrow) %v1949_v14, 8  ;;  %v5388_v14 = vunpack.c.l.bf16 %v4033_v16 }
 0x5bb   : > { %v1952_v49 = vpop.xlane.xlu0 %1951 }
 0x5bc   : > { %2059 = vxpose.xlu0.b32.start.end [1/1] (short) (narrow) %v1952_v49, 8 }
 0x5bf   : > { %v4738_v33 = vpop.xlane.xlu0 %2007 }
 0x5c3   : > { %v2011_v4 = vpop.xlane.xlu0 %2010 }
 0x5c7   : > { %v4740_v17 = vpop.xlane.xlu0 %2013 }
 0x5cb   : > { %v2017_v62 = vpop.xlane.xlu0 %2016 }
 0x5cf   : > { %v4742_v47 = vpop.xlane.xlu0 %2019 }
 0x5d3   : > { %v4751_v50 = vpop.xlane.xlu0 %2022 }
 0x5d7   : > { %v4758_v24 = vpop.xlane.xlu0 %2025 }
 0x5f8   : > { %v2043_v56 = vpop.trf.xlu1 }
 0x5f9   : > { %v4745_v55 = vrot.slane %v2043_v56, %v3715_v21 }
 0x5fb   : > { %v2101_v30 = vadd.f32 %v4745_v55, %v4720_v44  ;;  %v2099_v19 = vadd.f32 %v4745_v55, %v4718_v53  ;;  %v2103_v43 = vadd.f32 %v4745_v55, %v4722_v15  ;;  %v2121_v45 = vadd.f32 %v4745_v55, %v2011_v4 }
 0x5fc   : > { %v2105_v20 = vadd.f32 %v4745_v55, %v4724_v18  ;;  %v2125_v48 = vadd.f32 %v4745_v55, %v2017_v62  ;;  %v2107_v38 = vadd.f32 %v4745_v55, %v4726_v11  ;;  %v4765_v54 = vadd.f32 %v4745_v55, %v4751_v50 }
 0x5fd   : > { %v2169_v10 = vmul.f32 0.2, %v2101_v30  ;;  %v2167_v61 = vmul.f32 0.2, %v2099_v19  ;;  %vm2135_vm0 = vcmp.gt.f32.partialorder %v2101_v30, 0.0  ;;  %vm2133_vm1 = vcmp.gt.f32.partialorder %v2099_v19, 0.0 }
 0x5fe   : > { %v2171_v46 = vmul.f32 0.2, %v2103_v43  ;;  %v2189_v26 = vmul.f32 0.2, %v2121_v45  ;;  %vm2137_vm12 = vcmp.gt.f32.partialorder %v2103_v43, 0.0  ;;  %vm2155_vm13 = vcmp.gt.f32.partialorder %v2121_v45, 0.0 }
 0x5ff   : > { %v2173_v59 = vmul.f32 0.2, %v2105_v20  ;;  %vm2139_vm14 = vcmp.gt.f32.partialorder %v2105_v20, 0.0  ;;  %v2203_v8 = vsel %vm2135_vm0, %v2101_v30, %v2169_v10  ;;  %v2201_v27 = vsel %vm2133_vm1, %v2099_v19, %v2167_v61 }
 0x600   : > { %v2205_v37 = vsel %vm2137_vm12, %v2103_v43, %v2171_v46  ;;  %v2223_v25 = vsel %vm2155_vm13, %v2121_v45, %v2189_v26  ;;  %v4769_v29 = vadd.f32 %v2203_v8, %v5384_v36  ;;  %v4773_v34 = vadd.f32 %v2201_v27, %v5385_v40 }
 0x601   : > { %v2207_v7 = vsel %vm2139_vm14, %v2105_v20, %v2173_v59  ;;  %v2193_v63 = vmul.f32 0.2, %v2125_v48  ;;  %v4780_v2 = vadd.f32 %v2205_v37, %v5386_v1  ;;  %v4784_v12 = vadd.f32 %v2223_v25, %v5387_v0 }
 0x602   : > { %vm2159_vm15 = vcmp.gt.f32.partialorder %v2125_v48, 0.0  ;;  %v4788_v49 = vadd.f32 %v2207_v7, %v5388_v14  ;;  %vm2141_vm2 = vcmp.gt.f32.partialorder %v2107_v38, 0.0  ;;  %v2175_v56 = vmul.f32 0.2, %v2107_v38 }
 0x603   : > { %v4791_v30 = vmul.f32 0.2, %v4765_v54  ;;  %v2227_v61 = vsel %vm2159_vm15, %v2125_v48, %v2193_v63  ;;  %vm2163_vm9 = vcmp.gt.f32.partialorder %v4765_v54, 0.0  ;;  %v5391_v25 = vunpack.c.h.bf16 %v3971_v13 }
 0x638   : > { %v2075_v57 = vpop.trf.xlu0 }
 0x639   : > { %v4776_v22 = vrot.slane %v2075_v57, %v3715_v21  ;;  %v5392_v57 = vunpack.c.h.bf16 %v3963_v3  ;;  %v5393_v3 = vunpack.c.h.bf16 %v4033_v16  ;;  %v5395_v16 = vunpack.c.h.bf16 %v3967_v6 }
 0x63b   : > { %v2102_v21 = vadd.f32 %v4776_v22, %v4720_v44  ;;  %v2100_v19 = vadd.f32 %v4776_v22, %v4718_v53  ;;  %v2104_v43 = vadd.f32 %v4776_v22, %v4722_v15  ;;  %v2122_v45 = vadd.f32 %v4776_v22, %v2011_v4 }
 0x63c   : > { %v2106_v20 = vadd.f32 %v4776_v22, %v4724_v18  ;;  %v2126_v10 = vadd.f32 %v4776_v22, %v2017_v62  ;;  %v2108_v46 = vadd.f32 %v4776_v22, %v4726_v11  ;;  %v5389_v18 = vunpack.c.h.bf16 %v3969_v9 }
 0x63d   : > { %vm2136_vm3 = vcmp.gt.f32.partialorder %v2102_v21, 0.0  ;;  %v2170_v26 = vmul.f32 0.2, %v2102_v21  ;;  %vm2134_vm5 = vcmp.gt.f32.partialorder %v2100_v19, 0.0  ;;  %v2168_v44 = vmul.f32 0.2, %v2100_v19 }
 0x63e   : > { %vm2138_vm6 = vcmp.gt.f32.partialorder %v2104_v43, 0.0  ;;  %v2172_v53 = vmul.f32 0.2, %v2104_v43  ;;  %vm2156_vm7 = vcmp.gt.f32.partialorder %v2122_v45, 0.0  ;;  %v2190_v59 = vmul.f32 0.2, %v2122_v45 }
 0x63f   : > { %v2204_v15 = vsel %vm2136_vm3, %v2102_v21, %v2170_v26  ;;  %v2202_v8 = vsel %vm2134_vm5, %v2100_v19, %v2168_v44  ;;  %vm2140_vm8 = vcmp.gt.f32.partialorder %v2106_v20, 0.0  ;;  %v2174_v4 = vmul.f32 0.2, %v2106_v20 }
 0x640   : > { %v4808_v62 = vadd.f32 %v2204_v15, %v5389_v18  ;;  %v5390_v11 = vunpack.c.h.bf16 %v3965_v5  ;;  %v2206_v27 = vsel %vm2138_vm6, %v2104_v43, %v2172_v53  ;;  %v2224_v37 = vsel %vm2156_vm7, %v2122_v45, %v2190_v59 }
 0x641   : > { %v4816_v7 = vadd.f32 %v2206_v27, %v5391_v25  ;;  %v4820_v36 = vadd.f32 %v2224_v37, %v5392_v57  ;;  %v2208_v40 = vsel %vm2140_vm8, %v2106_v20, %v2174_v4  ;;  %vm2160_vm10 = vcmp.gt.f32.partialorder %v2126_v10, 0.0 }
 0x642   : > { %v4812_v48 = vadd.f32 %v2202_v8, %v5390_v11  ;;  %v2273_v9 = vsel %vm1197_vm4, %v4808_v62, -inf  ;;  %v2194_v63 = vmul.f32 0.2, %v2126_v10  ;;  %v2130_v1 = vadd.f32 %v4776_v22, %v4751_v50 }
 0x643   : > { %v2274_v13 = vmax.f32 %v4769_v29, %v2273_v9  ;;  %v4832_v14 = vadd.f32 %v2208_v40, %v5393_v3  ;;  %v2109_v21 = vadd.f32 %v4745_v55, %v4728_v32  ;;  %v2277_v19 = vsel %vm1197_vm4, %v4816_v7, -inf }
 0x644   : > { %v2269_v5 = vsel %vm1197_vm4, %v4812_v48, -inf  ;;  %v2313_v43 = vsel %vm1197_vm4, %v4820_v36, -inf  ;;  %v2228_v45 = vsel %vm2160_vm10, %v2126_v10, %v2194_v63  ;;  %v2209_v50 = vsel %vm2141_vm2, %v2107_v38, %v2175_v56 }
 0x645   : > { %v2270_v0 = vmax.f32 %v4773_v34, %v2269_v5  ;;  %2275 = vmax.xlane.f32.xlu0 %v2274_v13  ;;  %v5394_v20 = vunpack.c.l.bf16 %v3967_v6  ;;  %v4847_v44 = vadd.f32 %v2228_v45, %v5395_v16  ;;  %vm2142_vm11 = vcmp.gt.f32.partialorder %v2108_v46, 0.0 }
 0x646   : > { %v2176_v53 = vmul.f32 0.2, %v2108_v46  ;;  %vm2164_vm0 = vcmp.gt.f32.partialorder %v2130_v1, 0.0  ;;  %v2198_v59 = vmul.f32 0.2, %v2130_v1  ;;  %v2110_v15 = vadd.f32 %v4776_v22, %v4728_v32 }
 0x647   : > { %2271 = vmax.xlane.f32.xlu1 %v2270_v0  ;;  %v4843_v26 = vadd.f32 %v2227_v61, %v5394_v20  ;;  %v2112_v38 = vadd.f32 %v4776_v22, %v4730_v28  ;;  %v2278_v56 = vmax.f32 %v4780_v2, %v2277_v19  ;;  %v2314_v10 = vmax.f32 %v4784_v12, %v2313_v43 }
 0x648   : > { %v2281_v61 = vsel %vm1197_vm4, %v4832_v14, -inf  ;;  %v2210_v6 = vsel %vm2142_vm11, %v2108_v46, %v2176_v53  ;;  %v2321_v8 = vsel %vm1197_vm4, %v4847_v44, -inf  ;;  %v5396_v4 = vunpack.c.h.bf16 %v4064_v31 }
 0x649   : > { %v2232_v11 = vsel %vm2164_vm0, %v2130_v1, %v2198_v59  ;;  %vm2144_vm1 = vcmp.gt.f32.partialorder %v2110_v15, 0.0  ;;  %2279 = vmax.xlane.f32.xlu0 %v2278_v56  ;;  %v5397_v32 = vunpack.c.h.bf16 %v4232_v42  ;;  %v2178_v37 = vmul.f32 0.2, %v2110_v15 }
 0x64a   : > { %v4861_v18 = vadd.f32 %v2210_v6, %v5396_v4  ;;  %v2180_v25 = vmul.f32 0.2, %v2112_v38  ;;  %v2114_v46 = vadd.f32 %v4776_v22, %v4732_v58  ;;  %v2231_v57 = vsel %vm2163_vm9, %v4765_v54, %v4791_v30 }
 0x64b   : > { %2315 = vmax.xlane.f32.xlu1 %v2314_v10  ;;  %v4865_v27 = vadd.f32 %v2232_v11, %v5397_v32  ;;  %v2177_v40 = vmul.f32 0.2, %v2109_v21  ;;  %v2111_v9 = vadd.f32 %v4745_v55, %v4730_v28  ;;  %vm2146_vm12 = vcmp.gt.f32.partialorder %v2112_v38, 0.0 }
 0x64c   : > { %v2282_v5 = vmax.f32 %v4788_v49, %v2281_v61  ;;  %v2322_v63 = vmax.f32 %v4843_v26, %v2321_v8  ;;  %vm2143_vm13 = vcmp.gt.f32.partialorder %v2109_v21, 0.0  ;;  %v2212_v1 = vsel %vm2144_vm1, %v2110_v15, %v2178_v37 }
 0x64d   : > { %v5398_v13 = vunpack.c.l.bf16 %v4064_v31  ;;  %v2285_v3 = vsel %vm1197_vm4, %v4861_v18, -inf  ;;  %v2329_v54 = vsel %vm1197_vm4, %v4865_v27, -inf  ;;  %v5399_v30 = vunpack.c.h.bf16 %v4084_v52 }
 0x64e   : > { %2283 = vmax.xlane.f32.xlu0 %v2282_v5  ;;  %v5400_v19 = vunpack.c.l.bf16 %v4232_v42  ;;  %v2214_v45 = vsel %vm2146_vm12, %v2112_v38, %v2180_v25  ;;  %v2182_v31 = vmul.f32 0.2, %v2114_v46  ;;  %v2211_v20 = vsel %vm2143_vm13, %v2109_v21, %v2177_v40 }
 0x64f   : > { %v4879_v0 = vadd.f32 %v2209_v50, %v5398_v13  ;;  %v4887_v28 = vadd.f32 %v2212_v1, %v5399_v30  ;;  %2323 = vmax.xlane.f32.xlu1 %v2322_v63  ;;  %v2116_v50 = vadd.f32 %v4776_v22, %v4734_v39  ;;  %v2179_v16 = vmul.f32 0.2, %v2111_v9 }
 0x650   : > { %v4891_v43 = vadd.f32 %v2231_v57, %v5400_v19  ;;  %v2113_v53 = vadd.f32 %v4745_v55, %v4732_v58  ;;  %vm2148_vm14 = vcmp.gt.f32.partialorder %v2114_v46, 0.0  ;;  %vm2145_vm15 = vcmp.gt.f32.partialorder %v2111_v9, 0.0 }
 0x651   : > { %v2286_v59 = vmax.f32 %v4879_v0, %v2285_v3  ;;  %v2289_v42 = vsel %vm1197_vm4, %v4887_v28, -inf  ;;  %v5401_v38 = vunpack.c.h.bf16 %v4103_v51  ;;  %v5402_v21 = vunpack.c.l.bf16 %v4084_v52 }
 0x652   : > { %v2330_v15 = vmax.f32 %v4891_v43, %v2329_v54  ;;  %v2216_v58 = vsel %vm2148_vm14, %v2114_v46, %v2182_v31  ;;  %v2184_v61 = vmul.f32 0.2, %v2116_v50  ;;  %v2118_v6 = vadd.f32 %v4776_v22, %v4736_v35 }
 0x653   : > { %v4903_v56 = vadd.f32 %v2214_v45, %v5401_v38  ;;  %2287 = vmax.xlane.f32.xlu0 %v2286_v59  ;;  %v4907_v10 = vadd.f32 %v2211_v20, %v5402_v21  ;;  %v2213_v8 = vsel %vm2145_vm15, %v2111_v9, %v2179_v16  ;;  %v2181_v4 = vmul.f32 0.2, %v2113_v53 }
 0x654   : > { %2331 = vmax.xlane.f32.xlu1 %v2330_v15  ;;  %v2115_v11 = vadd.f32 %v4745_v55, %v4734_v39  ;;  %vm2150_vm2 = vcmp.gt.f32.partialorder %v2116_v50, 0.0  ;;  %vm2147_vm3 = vcmp.gt.f32.partialorder %v2113_v53, 0.0  ;;  %v5403_v52 = vunpack.c.h.bf16 %v4122_v23 }
 0x655   : > { %v2290_v32 = vmax.f32 %v4907_v10, %v2289_v42  ;;  %v2293_v37 = vsel %vm1197_vm4, %v4903_v56, -inf  ;;  %v5404_v46 = vunpack.c.l.bf16 %v4103_v51  ;;  %v2218_v40 = vsel %vm2150_vm2, %v2116_v50, %v2184_v61 }
 0x656   : > { %v4918_v25 = vadd.f32 %v2216_v58, %v5403_v52  ;;  %v2186_v9 = vmul.f32 0.2, %v2118_v6  ;;  %v2120_v39 = vadd.f32 %v4776_v22, %v4738_v33  ;;  %v2215_v5 = vsel %vm2147_vm3, %v2113_v53, %v2181_v4 }
 0x657   : > { %2291 = vmax.xlane.f32.xlu0 %v2290_v32  ;;  %v4922_v57 = vadd.f32 %v2213_v8, %v5404_v46  ;;  %v2183_v63 = vmul.f32 0.2, %v2115_v11  ;;  %v2117_v1 = vadd.f32 %v4745_v55, %v4736_v35  ;;  %vm2152_vm5 = vcmp.gt.f32.partialorder %v2118_v6, 0.0 }
 0x658   : > { %vm2149_vm6 = vcmp.gt.f32.partialorder %v2115_v11, 0.0  ;;  %v2297_v3 = vsel %vm1197_vm4, %v4918_v25, -inf  ;;  %v5405_v51 = vunpack.c.h.bf16 %v4141_v41  ;;  %v5406_v30 = vunpack.c.l.bf16 %v4122_v23 }
 0x659   : > { %v2294_v13 = vmax.f32 %v4922_v57, %v2293_v37  ;;  %v2220_v45 = vsel %vm2152_vm5, %v2118_v6, %v2186_v9  ;;  %v2188_v31 = vmul.f32 0.2, %v2120_v39  ;;  %v2124_v35 = vadd.f32 %v4776_v22, %v4740_v17 }
 0x65a   : > { %v4933_v54 = vadd.f32 %v2218_v40, %v5405_v51  ;;  %v4937_v19 = vadd.f32 %v2215_v5, %v5406_v30  ;;  %v2217_v50 = vsel %vm2149_vm6, %v2115_v11, %v2183_v63  ;;  %v2185_v20 = vmul.f32 0.2, %v2117_v1 }
 0x65b   : > { %2295 = vmax.xlane.f32.xlu0 %v2294_v13  ;;  %v2119_v16 = vadd.f32 %v4745_v55, %v4738_v33  ;;  %vm2154_vm7 = vcmp.gt.f32.partialorder %v2120_v39, 0.0  ;;  %vm2151_vm8 = vcmp.gt.f32.partialorder %v2117_v1, 0.0  ;;  %v5407_v23 = vunpack.c.h.bf16 %v4160_v60 }
 0x65c   : > { %v2298_v53 = vmax.f32 %v4937_v19, %v2297_v3  ;;  %v2301_v59 = vsel %vm1197_vm4, %v4933_v54, -inf  ;;  %v5408_v42 = vunpack.c.l.bf16 %v4141_v41  ;;  %v2222_v21 = vsel %vm2154_vm7, %v2120_v39, %v2188_v31  ;;  %v5409_v41 = vld [vmem:[#allocation12_spill] sm:$0xff] }
 0x65d   : > { %v4948_v15 = vadd.f32 %v2220_v45, %v5407_v23  ;;  %v2192_v58 = vmul.f32 0.2, %v2124_v35  ;;  %v2128_v33 = vadd.f32 %v4776_v22, %v4742_v47  ;;  %v2219_v61 = vsel %vm2151_vm8, %v2117_v1, %v2185_v20 }
 0x65e   : > { %v4952_v38 = vadd.f32 %v2217_v50, %v5408_v42  ;;  %v2187_v6 = vmul.f32 0.2, %v2119_v16  ;;  %v2123_v8 = vadd.f32 %v4745_v55, %v4740_v17  ;;  %vm2158_vm9 = vcmp.gt.f32.partialorder %v2124_v35, 0.0 }
 0x65f   : > { %2299 = vmax.xlane.f32.xlu0 %v2298_v53  ;;  %vm2153_vm10 = vcmp.gt.f32.partialorder %v2119_v16, 0.0  ;;  %v2305_v11 = vsel %vm1197_vm4, %v4948_v15, -inf  ;;  %v5410_v32 = vunpack.c.h.bf16 %v5409_v41  ;;  %v5411_v52 = vunpack.c.l.bf16 %v4160_v60  ;;  %v5412_v60 = vld [vmem:[#allocation13_spill] sm:$0xff]  ;;  %v5415_v53 = vld [vmem:[#allocation14_spill] sm:$0xff] }
 0x660   : > { %v2302_v4 = vmax.f32 %v4952_v38, %v2301_v59  ;;  %v2226_v40 = vsel %vm2158_vm9, %v2124_v35, %v2192_v58  ;;  %v2196_v9 = vmul.f32 0.2, %v2128_v33  ;;  %v2132_v17 = vadd.f32 %v4776_v22, %v4758_v24 }
 0x661   : > { %v4963_v37 = vadd.f32 %v2222_v21, %v5410_v32  ;;  %v4967_v46 = vadd.f32 %v2219_v61, %v5411_v52  ;;  %v2221_v39 = vsel %vm2153_vm10, %v2119_v16, %v2187_v6  ;;  %v2191_v5 = vmul.f32 0.2, %v2123_v8  ;;  %v5418_v6 = vld [vmem:[#allocation15_spill] sm:$0xff] }
 0x662   : > { %v2127_v63 = vadd.f32 %v4745_v55, %v4742_v47  ;;  %vm2162_vm11 = vcmp.gt.f32.partialorder %v2128_v33, 0.0  ;;  %vm2157_vm0 = vcmp.gt.f32.partialorder %v2123_v8, 0.0  ;;  %v5413_v3 = vunpack.c.h.bf16 %v5412_v60 }
 0x663   : > { %2303 = vmax.xlane.f32.xlu0 %v2302_v4  ;;  %v2306_v1 = vmax.f32 %v4967_v46, %v2305_v11  ;;  %v2309_v13 = vsel %vm1197_vm4, %v4963_v37, -inf  ;;  %v5414_v30 = vunpack.c.l.bf16 %v5409_v41  ;;  %v2230_v45 = vsel %vm2162_vm11, %v2128_v33, %v2196_v9 }
 0x664   : > { %v4978_v51 = vadd.f32 %v2226_v40, %v5413_v3  ;;  %v2200_v31 = vmul.f32 0.2, %v2132_v17  ;;  %v2225_v35 = vsel %vm2157_vm0, %v2123_v8, %v2191_v5  ;;  %v2195_v47 = vmul.f32 0.2, %v2127_v63 }
 0x665   : > { %v4982_v22 = vadd.f32 %v2221_v39, %v5414_v30  ;;  %v2131_v50 = vadd.f32 %v4745_v55, %v4758_v24  ;;  %vm2166_vm1 = vcmp.gt.f32.partialorder %v2132_v17, 0.0  ;;  %vm2161_vm12 = vcmp.gt.f32.partialorder %v2127_v63, 0.0 }
 0x666   : > { %v2317_v16 = vsel %vm1197_vm4, %v4978_v51, -inf  ;;  %v5416_v59 = vunpack.c.h.bf16 %v5415_v53  ;;  %v5417_v42 = vunpack.c.l.bf16 %v5412_v60  ;;  %v2234_v58 = vsel %vm2166_vm1, %v2132_v17, %v2200_v31 }
 0x667   : > { %2307 = vmax.xlane.f32.xlu0 %v2306_v1  ;;  %v2310_v20 = vmax.f32 %v4982_v22, %v2309_v13  ;;  %v2229_v33 = vsel %vm2161_vm12, %v2127_v63, %v2195_v47  ;;  %v2199_v61 = vmul.f32 0.2, %v2131_v50  ;;  %vm2165_vm13 = vcmp.gt.f32.partialorder %v2131_v50, 0.0 }
 0x668   : > { %v4991_v23 = vadd.f32 %v2230_v45, %v5416_v59  ;;  %v4995_v21 = vadd.f32 %v2225_v35, %v5417_v42  ;;  %v5419_v8 = vunpack.c.h.bf16 %v5418_v6  ;;  %v5420_v11 = vunpack.c.l.bf16 %v5415_v53 }
 0x669   : > { %v2233_v32 = vsel %vm2165_vm13, %v2131_v50, %v2199_v61  ;;  %v5421_v9 = vunpack.c.l.bf16 %v5418_v6 }
 0x66a   : > { %v2318_v55 = vmax.f32 %v4995_v21, %v2317_v16  ;;  %v2325_v24 = vsel %vm1197_vm4, %v4991_v23, -inf  ;;  %v5002_v4 = vadd.f32 %v2234_v58, %v5419_v8  ;;  %v5006_v41 = vadd.f32 %v2229_v33, %v5420_v11 }
 0x66b   : > { %2311 = vmax.xlane.f32.xlu0 %v2310_v20  ;;  %v5013_v17 = vadd.f32 %v2233_v32, %v5421_v9 }
 0x66c   : > { %v2326_v52 = vmax.f32 %v5006_v41, %v2325_v24  ;;  %v2333_v40 = vsel %vm1197_vm4, %v5002_v4, -inf }
 0x66d   : > { %v2334_v39 = vmax.f32 %v5013_v17, %v2333_v40 }
 0x66f   : > { %2319 = vmax.xlane.f32.xlu0 %v2318_v55 }
 0x673   : > { %2327 = vmax.xlane.f32.xlu0 %v2326_v52 }
 0x677   : > { %2335 = vmax.xlane.f32.xlu0 %v2334_v39 }
 0x6ce   : > { %v2276_v5 = vpop.xlane.xlu0 %2275 }
 0x6cf   : > { %v2339_v1 = vsub.f32 %v4769_v29, %v2276_v5  ;;  %v2340_v13 = vsub.f32 %v4808_v62, %v2276_v5 }
 0x6d0   : > { %v2272_v63 = vpop.xlane.xlu1 %2271 }
 0x6d1   : > { %v2337_v60 = vsub.f32 %v4773_v34, %v2272_v63  ;;  %v2338_v3 = vsub.f32 %v4812_v48, %v2272_v63  ;;  %v2375_v30 = vmul.f32 1.442695, %v2339_v1  ;;  %v2377_v45 = vmul.f32 1.442695, %v2340_v13 }
 0x6d2   : > { %v2280_v47 = vpop.xlane.xlu0 %2279 }
 0x6d3   : > { %v2371_v31 = vmul.f32 1.442695, %v2337_v60  ;;  %v2373_v35 = vmul.f32 1.442695, %v2338_v3  ;;  %3284 = vpow2.f32 %v2375_v30  ;;  %v2341_v50 = vsub.f32 %v4780_v2, %v2280_v47 }
 0x6d4   : > { %v2342_v20 = vsub.f32 %v4816_v7, %v2280_v47  ;;  %3286 = vpow2.f32 %v2377_v45  ;;  %v2316_v52 = vpop.xlane.xlu1 %2315 }
 0x6d5   : > { %3288 = vpow2.f32 %v2371_v31  ;;  %v2379_v16 = vmul.f32 1.442695, %v2341_v50 }
 0x6d6   : > { %v2381_v29 = vmul.f32 1.442695, %v2342_v20  ;;  %3290 = vpow2.f32 %v2373_v35  ;;  %v2360_v20 = vsub.f32 %v4820_v36, %v2316_v52 }
 0x6d7   : > { %v2284_v62 = vpop.xlane.xlu0 %2283  ;;  %3292 = vpow2.f32 %v2379_v16 }
 0x6d8   : > { %v2343_v34 = vsub.f32 %v4788_v49, %v2284_v62  ;;  %v2344_v48 = vsub.f32 %v4832_v14, %v2284_v62  ;;  %3294 = vpow2.f32 %v2381_v29  ;;  %v2324_v35 = vpop.xlane.xlu1 %2323 }
 0x6da   : > { %v2383_v53 = vmul.f32 1.442695, %v2343_v34  ;;  %v2385_v59 = vmul.f32 1.442695, %v2344_v48 }
 0x6dc   : > { %v2288_v42 = vpop.xlane.xlu0 %2287  ;;  %3296 = vpow2.f32 %v2383_v53  ;;  %v2359_v53 = vsub.f32 %v4784_v12, %v2316_v52 }
 0x6dd   : > { %v2345_v2 = vsub.f32 %v4879_v0, %v2288_v42  ;;  %v2346_v7 = vsub.f32 %v4861_v18, %v2288_v42  ;;  %3298 = vpow2.f32 %v2385_v59  ;;  %v2417_v42 = vmul.f32 1.442695, %v2360_v20 }
 0x6df   : > { %v2387_v58 = vmul.f32 1.442695, %v2345_v2  ;;  %v2389_v33 = vmul.f32 1.442695, %v2346_v7  ;;  %v2364_v2 = vsub.f32 %v4847_v44, %v2324_v35  ;;  %v2363_v44 = vsub.f32 %v4843_v26, %v2324_v35 }
 0x6e0   : > { %v2292_v61 = vpop.xlane.xlu0 %2291  ;;  %v5028_v24 = vpop.eup %3284 }
 0x6e1   : > { %3300 = vpow2.f32 %v2387_v58  ;;  %v2347_v55 = vsub.f32 %v4907_v10, %v2292_v61  ;;  %v2348_v49 = vsub.f32 %v4887_v28, %v2292_v61  ;;  %v5030_v14 = vpop.eup %3286 }
 0x6e2   : > { %3302 = vpow2.f32 %v2389_v33  ;;  %v5032_v11 = vpop.eup %3288  ;;  %v2443_v18 = vsel %vm1197_vm4, %v5030_v14, 0.0 }
 0x6e3   : > { %v2391_v6 = vmul.f32 1.442695, %v2347_v55  ;;  %v2393_v8 = vmul.f32 1.442695, %v2348_v49  ;;  %v5036_v32 = vpop.eup %3290  ;;  %v2444_v40 = vadd.f32 %v5028_v24, %v2443_v18  ;;  %v2415_v49 = vmul.f32 1.442695, %v2359_v53 }
 0x6e4   : > { %v2296_v0 = vpop.xlane.xlu0 %2295  ;;  %v5041_v9 = vpop.eup %3292  ;;  %v2439_v39 = vsel %vm1197_vm4, %v5036_v32, 0.0 }
 0x6e5   : > { %3304 = vpow2.f32 %v2391_v6  ;;  %v2349_v10 = vsub.f32 %v4922_v57, %v2296_v0  ;;  %v2350_v28 = vsub.f32 %v4903_v56, %v2296_v0  ;;  %v5045_v5 = vpop.eup %3294  ;;  %2445 = vadd.xlane.f32.xlu0 %v2444_v40  ;;  %v2440_v13 = vadd.f32 %v5032_v11, %v2439_v39 }
 0x6e6   : > { %3306 = vpow2.f32 %v2393_v8  ;;  %v2447_v57 = vsel %vm1197_vm4, %v5045_v5, 0.0  ;;  %v2425_v0 = vmul.f32 1.442695, %v2364_v2  ;;  %v2423_v39 = vmul.f32 1.442695, %v2363_v44 }
 0x6e7   : > { %v2395_v63 = vmul.f32 1.442695, %v2349_v10  ;;  %v2397_v1 = vmul.f32 1.442695, %v2350_v28  ;;  %2441 = vadd.xlane.f32.xlu1 %v2440_v13  ;;  %v2448_v30 = vadd.f32 %v5041_v9, %v2447_v57 }
 0x6e8   : > { %v2300_v60 = vpop.xlane.xlu0 %2299 }
 0x6e9   : > { %3308 = vpow2.f32 %v2395_v63  ;;  %v2351_v56 = vsub.f32 %v4937_v19, %v2300_v60  ;;  %v2352_v3 = vsub.f32 %v4918_v25, %v2300_v60  ;;  %v5053_v45 = vpop.eup %3296 }
 0x6ea   : > { %3310 = vpow2.f32 %v2397_v1  ;;  %v5055_v31 = vpop.eup %3298 }
 0x6eb   : > { %v2399_v47 = vmul.f32 1.442695, %v2351_v56  ;;  %v2401_v50 = vmul.f32 1.442695, %v2352_v3  ;;  %v2451_v29 = vsel %vm1197_vm4, %v5055_v31, 0.0  ;;  %2449 = vadd.xlane.f32.xlu1 %v2448_v30 }
 0x6ec   : > { %v2304_v16 = vpop.xlane.xlu0 %2303  ;;  %v2452_v62 = vadd.f32 %v5053_v45, %v2451_v29 }
 0x6ed   : > { %3312 = vpow2.f32 %v2399_v47  ;;  %v2353_v25 = vsub.f32 %v4952_v38, %v2304_v16  ;;  %v2354_v19 = vsub.f32 %v4933_v54, %v2304_v16  ;;  %v2332_v54 = vpop.xlane.xlu1 %2331 }
 0x6ee   : > { %v5063_v34 = vpop.eup %3300  ;;  %3314 = vpow2.f32 %v2401_v50  ;;  %2453 = vadd.xlane.f32.xlu0 %v2452_v62  ;;  %v2368_v18 = vsub.f32 %v4865_v27, %v2332_v54  ;;  %v2367_v1 = vsub.f32 %v4891_v43, %v2332_v54 }
 0x6ef   : > { %v5065_v48 = vpop.eup %3302  ;;  %v2403_v36 = vmul.f32 1.442695, %v2353_v25  ;;  %v2405_v59 = vmul.f32 1.442695, %v2354_v19 }
 0x6f0   : > { %v2308_v7 = vpop.xlane.xlu0 %2307  ;;  %v2455_v38 = vsel %vm1197_vm4, %v5065_v48, 0.0  ;;  %v2433_v13 = vmul.f32 1.442695, %v2368_v18  ;;  %v2431_v47 = vmul.f32 1.442695, %v2367_v1 }
 0x6f1   : > { %3316 = vpow2.f32 %v2403_v36  ;;  %v2355_v58 = vsub.f32 %v4967_v46, %v2308_v7  ;;  %v2356_v33 = vsub.f32 %v4948_v15, %v2308_v7  ;;  %v2456_v61 = vadd.f32 %v5063_v34, %v2455_v38 }
 0x6f2   : > { %v5074_v55 = vpop.eup %3304  ;;  %3318 = vpow2.f32 %v2405_v59 }
 0x6f3   : > { %v5076_v12 = vpop.eup %3306  ;;  %v2407_v6 = vmul.f32 1.442695, %v2355_v58  ;;  %v2409_v8 = vmul.f32 1.442695, %v2356_v33  ;;  %2457 = vadd.xlane.f32.xlu1 %v2456_v61  ;;  %3320 = vpow2.f32 %v2417_v42 }
 0x6f4   : > { %v2312_v46 = vpop.xlane.xlu0 %2311  ;;  %v2459_v15 = vsel %vm1197_vm4, %v5076_v12, 0.0 }
 0x6f5   : > { %3322 = vpow2.f32 %v2407_v6  ;;  %v2357_v52 = vsub.f32 %v4982_v22, %v2312_v46  ;;  %v2358_v10 = vsub.f32 %v4963_v37, %v2312_v46  ;;  %v2460_v28 = vadd.f32 %v5074_v55, %v2459_v15 }
 0x6f6   : > { %v5085_v40 = vpop.eup %3308  ;;  %3324 = vpow2.f32 %v2409_v8 }
 0x6f7   : > { %v5087_v26 = vpop.eup %3310  ;;  %3326 = vpow2.f32 %v2415_v49  ;;  %v2411_v63 = vmul.f32 1.442695, %v2357_v52  ;;  %v2413_v27 = vmul.f32 1.442695, %v2358_v10  ;;  %2461 = vadd.xlane.f32.xlu0 %v2460_v28 }
 0x6f8   : > { %3328 = vpow2.f32 %v2425_v0  ;;  %v2320_v60 = vpop.xlane.xlu0 %2319  ;;  %v2463_v37 = vsel %vm1197_vm4, %v5087_v26, 0.0 }
 0x6f9   : > { %3330 = vpow2.f32 %v2411_v63  ;;  %v2361_v22 = vsub.f32 %v4995_v21, %v2320_v60  ;;  %v2362_v57 = vsub.f32 %v4978_v51, %v2320_v60  ;;  %v2464_v56 = vadd.f32 %v5085_v40, %v2463_v37 }
 0x6fa   : > { %v5095_v3 = vpop.eup %3312  ;;  %3332 = vpow2.f32 %v2413_v27 }
 0x6fb   : > { %v5097_v30 = vpop.eup %3314  ;;  %3334 = vpow2.f32 %v2423_v39  ;;  %v2419_v35 = vmul.f32 1.442695, %v2361_v22  ;;  %v2421_v43 = vmul.f32 1.442695, %v2362_v57  ;;  %2465 = vadd.xlane.f32.xlu1 %v2464_v56 }
 0x6fc   : > { %3336 = vpow2.f32 %v2433_v13  ;;  %v2328_v50 = vpop.xlane.xlu0 %2327  ;;  %v2467_v20 = vsel %vm1197_vm4, %v5097_v30, 0.0 }
 0x6fd   : > { %3338 = vpow2.f32 %v2419_v35  ;;  %v2365_v51 = vsub.f32 %v5006_v41, %v2328_v50  ;;  %v2366_v21 = vsub.f32 %v4991_v23, %v2328_v50  ;;  %v2468_v16 = vadd.f32 %v5095_v3, %v2467_v20 }
 0x6fe   : > { %v5104_v29 = vpop.eup %3316  ;;  %3340 = vpow2.f32 %v2421_v43 }
 0x6ff   : > { %v5106_v25 = vpop.eup %3318  ;;  %v2427_v19 = vmul.f32 1.442695, %v2365_v51  ;;  %v2429_v62 = vmul.f32 1.442695, %v2366_v21  ;;  %2469 = vadd.xlane.f32.xlu0 %v2468_v16  ;;  %3342 = vpow2.f32 %v2431_v47 }
 0x700   : > { %v2336_v53 = vpop.xlane.xlu0 %2335  ;;  %v2471_v36 = vsel %vm1197_vm4, %v5106_v25, 0.0  ;;  %v5110_v59 = vpop.eup %3320 }
 0x701   : > { %3344 = vpow2.f32 %v2427_v19  ;;  %v2369_v23 = vsub.f32 %v5013_v17, %v2336_v53  ;;  %v2370_v41 = vsub.f32 %v5002_v4, %v2336_v53  ;;  %v2472_v42 = vadd.f32 %v5104_v29, %v2471_v36 }
 0x702   : > { %v5115_v2 = vpop.eup %3322  ;;  %3346 = vpow2.f32 %v2429_v62  ;;  %v2483_v49 = vsel %vm1197_vm4, %v5110_v59, 0.0 }
 0x703   : > { %v5117_v7 = vpop.eup %3324  ;;  %v2435_v38 = vmul.f32 1.442695, %v2369_v23  ;;  %v2437_v54 = vmul.f32 1.442695, %v2370_v41  ;;  %2473 = vadd.xlane.f32.xlu1 %v2472_v42 }
 0x704   : > { %v5119_v58 = vpop.eup %3326  ;;  %v2475_v33 = vsel %vm1197_vm4, %v5117_v7, 0.0 }
 0x705   : > { %v5123_v61 = vpop.eup %3328  ;;  %3348 = vpow2.f32 %v2435_v38  ;;  %v2476_v4 = vadd.f32 %v5115_v2, %v2475_v33  ;;  %v2484_v46 = vadd.f32 %v5119_v58, %v2483_v49 }
 0x706   : > { %v5126_v17 = vpop.eup %3330  ;;  %3350 = vpow2.f32 %v2437_v54  ;;  %v2491_v52 = vsel %vm1197_vm4, %v5123_v61, 0.0 }
 0x707   : > { %v5130_v44 = vpop.eup %3332  ;;  %2477 = vadd.xlane.f32.xlu0 %v2476_v4 }
 0x708   : > { %v5132_v6 = vpop.eup %3334  ;;  %v2479_v8 = vsel %vm1197_vm4, %v5130_v44, 0.0 }
 0x709   : > { %v5136_v0 = vpop.eup %3336  ;;  %v2480_v18 = vadd.f32 %v5126_v17, %v2479_v8  ;;  %v2492_v27 = vadd.f32 %v5132_v6, %v2491_v52 }
 0x70a   : > { %v5140_v15 = vpop.eup %3338  ;;  %v2499_v13 = vsel %vm1197_vm4, %v5136_v0, 0.0 }
 0x70b   : > { %v5144_v10 = vpop.eup %3340  ;;  %2481 = vadd.xlane.f32.xlu1 %v2480_v18  ;;  %2485 = vadd.xlane.f32.xlu0 %v2484_v46 }
 0x70c   : > { %v2487_v28 = vsel %vm1197_vm4, %v5144_v10, 0.0  ;;  %v5148_v39 = vpop.eup %3342 }
 0x70d   : > { %v2488_v63 = vadd.f32 %v5140_v15, %v2487_v28  ;;  %v2500_v57 = vadd.f32 %v5148_v39, %v2499_v13 }
 0x70e   : > { %v5152_v1 = vpop.eup %3344 }
 0x70f   : > { %v5156_v60 = vpop.eup %3346  ;;  %2489 = vadd.xlane.f32.xlu1 %v2488_v63  ;;  %2493 = vadd.xlane.f32.xlu0 %v2492_v27 }
 0x710   : > { %v2495_v37 = vsel %vm1197_vm4, %v5156_v60, 0.0 }
 0x711   : > { %v2496_v22 = vadd.f32 %v5152_v1, %v2495_v37 }
 0x712   : > { %v5162_v56 = vpop.eup %3348 }
 0x713   : > { %v5164_v35 = vpop.eup %3350  ;;  %2497 = vadd.xlane.f32.xlu1 %v2496_v22  ;;  %2501 = vadd.xlane.f32.xlu0 %v2500_v57 }
 0x714   : > { %v2503_v43 = vsel %vm1197_vm4, %v5164_v35, 0.0 }
 0x715   : > { %v2504_v47 = vadd.f32 %v5162_v56, %v2503_v43 }
 0x717   : > { %2505 = vadd.xlane.f32.xlu1 %v2504_v47 }
 0x76e   : > { %v2446_v50 = vpop.xlane.xlu0 %2445 }
 0x76f   : > { %3352 = vrcp.f32 %v2446_v50 }
 0x770   : > { %v2442_v20 = vpop.xlane.xlu1 %2441 }
 0x771   : > { %3354 = vrcp.f32 %v2442_v20 }
 0x774   : > { %v2450_v51 = vpop.xlane.xlu1 %2449 }
 0x775   : > { %3356 = vrcp.f32 %v2450_v51 }
 0x777   : > { %v2454_v21 = vpop.xlane.xlu0 %2453 }
 0x778   : > { %3358 = vrcp.f32 %v2454_v21 }
 0x77c   : > { %v2458_v16 = vpop.xlane.xlu1 %2457  ;;  %v3353_v19 = vpop.eup %3352 }
 0x77d   : > { %3360 = vrcp.f32 %v2458_v16  ;;  %v2527_v62 = vmul.f32 %v3353_v19, %v5030_v14  ;;  %v2526_v53 = vmul.f32 %v3353_v19, %v5028_v24 }
 0x77e   : > { %v3355_v36 = vpop.eup %3354 }
 0x77f   : > { %v2525_v41 = vmul.f32 %v3355_v36, %v5036_v32  ;;  %v2524_v42 = vmul.f32 %v3355_v36, %v5032_v11 }
 0x780   : > { %v2462_v23 = vpop.xlane.xlu0 %2461 }
 0x781   : > { %3362 = vrcp.f32 %v2462_v23  ;;  %v2559_v38 = vpack.c.bf16 %v2527_v62, %v2525_v41  ;;  %v2558_v54 = vpack.c.bf16 %v2526_v53, %v2524_v42 }
 0x782   : > { %v3357_v33 = vpop.eup %3356 }
 0x783   : > { %3016 = vmatprep.mubr.msk.bf16.mxu1 %vm1197_vm4, %v2559_v38  ;;  %v2529_v14 = vmul.f32 %v3357_v33, %v5045_v5  ;;  %v2528_v32 = vmul.f32 %v3357_v33, %v5041_v9 }
 0x784   : > { %v2466_v4 = vpop.xlane.xlu1 %2465  ;;  %2654 = vmatmul.mubr.bf16.vlgmr.msra.gmra.mxu1 %v2558_v54 }
 0x785   : > { %v3359_v49 = vpop.eup %3358  ;;  %3364 = vrcp.f32 %v2466_v4 }
 0x786   : > { %v2531_v24 = vmul.f32 %v3359_v49, %v5055_v31  ;;  %v2530_v8 = vmul.f32 %v3359_v49, %v5053_v45 }
 0x788   : > { %v2470_v18 = vpop.xlane.xlu0 %2469  ;;  %v2561_v11 = vpack.c.bf16 %v2531_v24, %v2529_v14  ;;  %v2560_v46 = vpack.c.bf16 %v2530_v8, %v2528_v32 }
 0x789   : > { %3366 = vrcp.f32 %v2470_v18 }
 0x78a   : > { %3017 = vmatprep.mubr.msk.bf16.mxu1 %vm1197_vm4, %v2561_v11  ;;  %v3361_v52 = vpop.eup %3360 }
 0x78b   : > { %v2533_v27 = vmul.f32 %v3361_v52, %v5065_v48  ;;  %v2532_v13 = vmul.f32 %v3361_v52, %v5063_v34 }
 0x78c   : > { %v2474_v28 = vpop.xlane.xlu1 %2473  ;;  %2662 = vmatmul.mubr.bf16.gmra.mxu1 %v2560_v46 }
 0x78d   : > { %3368 = vrcp.f32 %v2474_v28 }
 0x78e   : > { %v3363_v63 = vpop.eup %3362 }
 0x78f   : > { %v2535_v5 = vmul.f32 %v3363_v63, %v5076_v12  ;;  %v2534_v31 = vmul.f32 %v3363_v63, %v5074_v55 }
 0x790   : > { %v2478_v45 = vpop.xlane.xlu0 %2477 }
 0x791   : > { %3370 = vrcp.f32 %v2478_v45  ;;  %v2563_v9 = vpack.c.bf16 %v2535_v5, %v2533_v27  ;;  %v2562_v37 = vpack.c.bf16 %v2534_v31, %v2532_v13  ;;  %v5217_v27 = vld [vmem:[#allocation6] ss:$0 sm:$0xff] }
 0x792   : > { %v3365_v22 = vpop.eup %3364 }
 0x793   : > { %3018 = vmatprep.mubr.msk.bf16.mxu1 %vm1197_vm4, %v2563_v9  ;;  %v2537_v48 = vmul.f32 %v3365_v22, %v5087_v26  ;;  %v2536_v20 = vmul.f32 %v3365_v22, %v5085_v40 }
 0x794   : > { %v2486_v57 = vpop.xlane.xlu0 %2485  ;;  %v2482_v43 = vpop.xlane.xlu1 %2481  ;;  %2670 = vmatmul.mubr.bf16.gmra.mxu1 %v2562_v37 }
 0x795   : > { %3372 = vrcp.f32 %v2486_v57 }
 0x796   : > { %v3367_v47 = vpop.eup %3366  ;;  %3374 = vrcp.f32 %v2482_v43 }
 0x797   : > { %v2539_v12 = vmul.f32 %v3367_v47, %v5097_v30  ;;  %v2538_v55 = vmul.f32 %v3367_v47, %v5095_v3 }
 0x798   : > { %v2494_v50 = vpop.xlane.xlu0 %2493  ;;  %v2490_v34 = vpop.xlane.xlu1 %2489 }
 0x799   : > { %3376 = vrcp.f32 %v2494_v50  ;;  %v2565_v51 = vpack.c.bf16 %v2539_v12, %v2537_v48  ;;  %v2564_v21 = vpack.c.bf16 %v2538_v55, %v2536_v20 }
 0x79a   : > { %3378 = vrcp.f32 %v2490_v34  ;;  %v3369_v16 = vpop.eup %3368 }
 0x79b   : > { %3019 = vmatprep.mubr.msk.bf16.mxu1 %vm1197_vm4, %v2565_v51  ;;  %v2541_v26 = vmul.f32 %v3369_v16, %v5106_v25  ;;  %v2540_v40 = vmul.f32 %v3369_v16, %v5104_v29 }
 0x79c   : > { %v2502_v19 = vpop.xlane.xlu0 %2501  ;;  %2678 = vmatmul.mubr.bf16.gmra.mxu1 %v2564_v21  ;;  %v2498_v53 = vpop.xlane.xlu1 %2497 }
 0x79d   : > { %3380 = vrcp.f32 %v2502_v19 }
 0x79e   : > { %v3371_v62 = vpop.eup %3370  ;;  %3382 = vrcp.f32 %v2498_v53 }
 0x79f   : > { %v2543_v30 = vmul.f32 %v3371_v62, %v5117_v7  ;;  %v2542_v3 = vmul.f32 %v3371_v62, %v5115_v2 }
 0x7a0   : > { %v2506_v25 = vpop.xlane.xlu1 %2505 }
 0x7a1   : > { %v2567_v36 = vpack.c.bf16 %v2543_v30, %v2541_v26  ;;  %v2566_v41 = vpack.c.bf16 %v2542_v3, %v2540_v40  ;;  %3384 = vrcp.f32 %v2506_v25 }
 0x7a2   : > { %v3373_v23 = vpop.eup %3372 }
 0x7a3   : > { %v3375_v42 = vpop.eup %3374  ;;  %3020 = vmatprep.mubr.msk.bf16.mxu1 %vm1197_vm4, %v2567_v36  ;;  %v2547_v38 = vmul.f32 %v3373_v23, %v5110_v59  ;;  %v2546_v2 = vmul.f32 %v3373_v23, %v5119_v58 }
 0x7a4   : > { %v2545_v54 = vmul.f32 %v3375_v42, %v5130_v44  ;;  %2686 = vmatmul.mubr.bf16.gmra.mxu1 %v2566_v41  ;;  %v2544_v29 = vmul.f32 %v3375_v42, %v5126_v17 }
 0x7a6   : > { %v3377_v33 = vpop.eup %3376  ;;  %v2569_v7 = vpack.c.bf16 %v2547_v38, %v2545_v54  ;;  %v2568_v24 = vpack.c.bf16 %v2546_v2, %v2544_v29 }
 0x7a7   : > { %v3379_v4 = vpop.eup %3378  ;;  %v2551_v14 = vmul.f32 %v3377_v33, %v5123_v61  ;;  %v2550_v32 = vmul.f32 %v3377_v33, %v5132_v6 }
 0x7a8   : > { %3021 = vmatprep.mubr.msk.bf16.mxu1 %vm1197_vm4, %v2569_v7  ;;  %v2549_v49 = vmul.f32 %v3379_v4, %v5144_v10  ;;  %v2548_v18 = vmul.f32 %v3379_v4, %v5140_v15 }
 0x7aa   : > { %v3381_v59 = vpop.eup %3380  ;;  %v2571_v8 = vpack.c.bf16 %v2551_v14, %v2549_v49  ;;  %v2570_v11 = vpack.c.bf16 %v2550_v32, %v2548_v18 }
 0x7ab   : > { %v3383_v44 = vpop.eup %3382  ;;  %v2555_v58 = vmul.f32 %v3381_v59, %v5136_v0  ;;  %v2554_v52 = vmul.f32 %v3381_v59, %v5148_v39 }
 0x7ac   : > { %2694 = vmatmul.mubr.bf16.gmra.mxu1 %v2568_v24  ;;  %v2553_v17 = vmul.f32 %v3383_v44, %v5156_v60  ;;  %v2552_v61 = vmul.f32 %v3383_v44, %v5152_v1  ;;  %v5215_v60 = vld [vmem:[%s5326_s11] ss:$0 sm:$0xff] }
 0x7ad   : > { %3022 = vmatprep.mubr.msk.bf16.mxu1 %vm1197_vm4, %v2571_v8 }
 0x7ae   : > { %v2573_v46 = vpack.c.bf16 %v2555_v58, %v2553_v17  ;;  %v3385_v10 = vpop.eup %3384  ;;  %v2572_v15 = vpack.c.bf16 %v2554_v52, %v2552_v61 }
 0x7af   : > { %v2557_v28 = vmul.f32 %v3385_v10, %v5164_v35  ;;  %v2556_v6 = vmul.f32 %v3385_v10, %v5162_v56  ;;  %v5220_v35 = vld [vmem:[#allocation7] ss:$0 sm:$0xff] }
 0x7b1   : > { %v2575_v63 = vpack.c.bf16 %v2557_v28, %v2557_v28  ;;  %v2574_v0 = vpack.c.bf16 %v2556_v6, %v2556_v6 }
 0x7b4   : > { %2702 = vmatmul.mubr.bf16.gmra.mxu1 %v2570_v11 }
 0x7b5   : > { %3023 = vmatprep.mubr.msk.bf16.mxu1 %vm1197_vm4, %v2573_v46 }
 0x7bc   : > { %2710 = vmatmul.mubr.bf16.gmra.mxu1 %v2572_v15 }
 0x7bd   : > { %3024 = vmatprep.mubr.msk.bf16.mxu1 %vm1197_vm4, %v2575_v63  ;;  %vm2859_vm4 = vcmask 257024  }
 0x7c4   : > { %2718 = vmatmul.mubr.bf16.gmra.mxu1 %v2574_v0 }
 0x844   : > { %v2655_v1 = vpop.f32.mrf.mxu1 }
 0x845   : > { %v2656_v39 = vadd.f32 %v5215_v60, %v2655_v1 }
 0x846   : > { %v2657_v5 = vpop.f32.mrf.mxu1 }
 0x847   : > { %v2732_v31 = vmul.f32 %v5217_v27, %v2656_v39 }
 0x848   : > { %v2658_v45 = vpop.f32.mrf.mxu1 }
 0x849   : > { %v2756_v56 = vadd.f32 %v5220_v35, %v2732_v31  ;;  %v2659_v13 = vadd.f32 %v5215_v60, %v2658_v45 }
 0x84a   : > { %v2660_v9 = vpop.f32.mrf.mxu1 }
 0x84b   : > { %v2773_v37 = vmax.f32 %v2756_v56, 0.0  ;;  %v2733_v22 = vmul.f32 %v5217_v27, %v2659_v13 }
 0x84c   : > { %v2663_v57 = vpop.f32.mrf.mxu1 }
 0x84d   : > { %v3046_v43 = vpack.c.bf16 %v2773_v37, %v2773_v37  ;;  %v2757_v47 = vadd.f32 %v5220_v35, %v2733_v22  ;;  %v2664_v48 = vadd.f32 %v5215_v60, %v2663_v57 }
 0x84e   : > { %v2665_v12 = vpop.f32.mrf.mxu1 }
 0x84f   : > { %2860 = vst.msk [vmem:[%s5230_s15] sm:$0xf] %vm2859_vm4, %v3046_v43  ;;  %v2774_v55 = vmax.f32 %v2757_v47, 0.0  ;;  %v2734_v50 = vmul.f32 %v5217_v27, %v2664_v48 }
 0x850   : > { %v2666_v34 = vpop.f32.mrf.mxu1 }
 0x851   : > { %v3047_v20 = vpack.c.bf16 %v2774_v55, %v2774_v55  ;;  %v2758_v51 = vadd.f32 %v5220_v35, %v2734_v50  ;;  %v2667_v21 = vadd.f32 %v5215_v60, %v2666_v34 }
 0x852   : > { %v2668_v16 = vpop.f32.mrf.mxu1 }
 0x853   : > { %2861 = vst.msk [vmem:[%s5230_s15 + $0x4] sm:$0xf] %vm2859_vm4, %v3047_v20  ;;  %v2775_v19 = vmax.f32 %v2758_v51, 0.0  ;;  %v2735_v62 = vmul.f32 %v5217_v27, %v2667_v21 }
 0x854   : > { %v2671_v53 = vpop.f32.mrf.mxu1 }
 0x855   : > { %v3048_v26 = vpack.c.bf16 %v2775_v19, %v2775_v19  ;;  %v2759_v30 = vadd.f32 %v5220_v35, %v2735_v62  ;;  %v2672_v3 = vadd.f32 %v5215_v60, %v2671_v53 }
 0x856   : > { %v2673_v40 = vpop.f32.mrf.mxu1 }
 0x857   : > { %2862 = vst.msk [vmem:[%s5230_s15 + $0x8] sm:$0xf] %vm2859_vm4, %v3048_v26  ;;  %v2776_v36 = vmax.f32 %v2759_v30, 0.0  ;;  %v2736_v23 = vmul.f32 %v5217_v27, %v2672_v3 }
 0x858   : > { %v2674_v41 = vpop.f32.mrf.mxu1 }
 0x859   : > { %v3049_v42 = vpack.c.bf16 %v2776_v36, %v2776_v36  ;;  %v2760_v38 = vadd.f32 %v5220_v35, %v2736_v23  ;;  %v2675_v54 = vadd.f32 %v5215_v60, %v2674_v41 }
 0x85a   : > { %v2676_v33 = vpop.f32.mrf.mxu1 }
 0x85b   : > { %2863 = vst.msk [vmem:[%s5230_s15 + $0xc] sm:$0xf] %vm2859_vm4, %v3049_v42  ;;  %v2777_v25 = vmax.f32 %v2760_v38, 0.0  ;;  %v2737_v7 = vmul.f32 %v5217_v27, %v2675_v54 }
 0x85c   : > { %v2679_v4 = vpop.f32.mrf.mxu1 }
 0x85d   : > { %v3050_v29 = vpack.c.bf16 %v2777_v25, %v2777_v25  ;;  %v2761_v2 = vadd.f32 %v5220_v35, %v2737_v7  ;;  %v2680_v49 = vadd.f32 %v5215_v60, %v2679_v4 }
 0x85e   : > { %v2681_v14 = vpop.f32.mrf.mxu1 }
 0x85f   : > { %2864 = vst.msk [vmem:[%s5230_s15 + $0x10] sm:$0xf] %vm2859_vm4, %v3050_v29  ;;  %v2778_v24 = vmax.f32 %v2761_v2, 0.0  ;;  %v2738_v59 = vmul.f32 %v5217_v27, %v2680_v49 }
 0x860   : > { %v2682_v8 = vpop.f32.mrf.mxu1 }
 0x861   : > { %v3051_v44 = vpack.c.bf16 %v2778_v24, %v2778_v24  ;;  %v2762_v18 = vadd.f32 %v5220_v35, %v2738_v59  ;;  %v2683_v32 = vadd.f32 %v5215_v60, %v2682_v8 }
 0x862   : > { %v2684_v17 = vpop.f32.mrf.mxu1 }
 0x863   : > { %2865 = vst.msk [vmem:[%s5230_s15 + $0x14] sm:$0xf] %vm2859_vm4, %v3051_v44  ;;  %v2779_v58 = vmax.f32 %v2762_v18, 0.0  ;;  %v2739_v11 = vmul.f32 %v5217_v27, %v2683_v32 }
 0x864   : > { %v2687_v46 = vpop.f32.mrf.mxu1 }
 0x865   : > { %v3052_v10 = vpack.c.bf16 %v2779_v58, %v2779_v58  ;;  %v2763_v61 = vadd.f32 %v5220_v35, %v2739_v11  ;;  %v2688_v52 = vadd.f32 %v5215_v60, %v2687_v46 }
 0x866   : > { %v2689_v28 = vpop.f32.mrf.mxu1 }
 0x867   : > { %2866 = vst.msk [vmem:[%s5230_s15 + $0x18] sm:$0xf] %vm2859_vm4, %v3052_v10  ;;  %v2780_v15 = vmax.f32 %v2763_v61, 0.0  ;;  %v2740_v63 = vmul.f32 %v5217_v27, %v2688_v52 }
 0x868   : > { %v2690_v6 = vpop.f32.mrf.mxu1 }
 0x869   : > { %v3053_v0 = vpack.c.bf16 %v2780_v15, %v2780_v15  ;;  %v2764_v1 = vadd.f32 %v5220_v35, %v2740_v63  ;;  %v2691_v39 = vadd.f32 %v5215_v60, %v2690_v6 }
 0x86a   : > { %v2692_v5 = vpop.f32.mrf.mxu1 }
 0x86b   : > { %2867 = vst.msk [vmem:[%s5230_s15 + $0x1c] sm:$0xf] %vm2859_vm4, %v3053_v0  ;;  %v2781_v31 = vmax.f32 %v2764_v1, 0.0  ;;  %v2741_v45 = vmul.f32 %v5217_v27, %v2691_v39 }
 0x86c   : > { %v2695_v56 = vpop.f32.mrf.mxu1 }
 0x86d   : > { %v3054_v13 = vpack.c.bf16 %v2781_v31, %v2781_v31  ;;  %v2765_v9 = vadd.f32 %v5220_v35, %v2741_v45  ;;  %v2696_v37 = vadd.f32 %v5215_v60, %v2695_v56 }
 0x86e   : > { %v2697_v22 = vpop.f32.mrf.mxu1 }
 0x86f   : > { %2868 = vst.msk [vmem:[%s5230_s15 + $0x20] sm:$0xf] %vm2859_vm4, %v3054_v13  ;;  %v2782_v57 = vmax.f32 %v2765_v9, 0.0  ;;  %v2742_v43 = vmul.f32 %v5217_v27, %v2696_v37 }
 0x870   : > { %v2698_v47 = vpop.f32.mrf.mxu1 }
 0x871   : > { %v3055_v48 = vpack.c.bf16 %v2782_v57, %v2782_v57  ;;  %v2766_v12 = vadd.f32 %v5220_v35, %v2742_v43  ;;  %v2699_v55 = vadd.f32 %v5215_v60, %v2698_v47 }
 0x872   : > { %v2700_v50 = vpop.f32.mrf.mxu1 }
 0x873   : > { %2869 = vst.msk [vmem:[%s5230_s15 + $0x24] sm:$0xf] %vm2859_vm4, %v3055_v48  ;;  %v2783_v34 = vmax.f32 %v2766_v12, 0.0  ;;  %v2743_v20 = vmul.f32 %v5217_v27, %v2699_v55 }
 0x874   : > { %v2703_v51 = vpop.f32.mrf.mxu1 }
 0x875   : > { %v3056_v21 = vpack.c.bf16 %v2783_v34, %v2783_v34  ;;  %v2767_v16 = vadd.f32 %v5220_v35, %v2743_v20  ;;  %v2704_v19 = vadd.f32 %v5215_v60, %v2703_v51 }
 0x876   : > { %v2705_v62 = vpop.f32.mrf.mxu1 }
 0x877   : > { %2870 = vst.msk [vmem:[%s5230_s15 + $0x28] sm:$0xf] %vm2859_vm4, %v3056_v21  ;;  %v2784_v53 = vmax.f32 %v2767_v16, 0.0  ;;  %v2744_v26 = vmul.f32 %v5217_v27, %v2704_v19 }
 0x878   : > { %v2706_v30 = vpop.f32.mrf.mxu1 }
 0x879   : > { %v3057_v3 = vpack.c.bf16 %v2784_v53, %v2784_v53  ;;  %v2768_v40 = vadd.f32 %v5220_v35, %v2744_v26  ;;  %v2707_v36 = vadd.f32 %v5215_v60, %v2706_v30 }
 0x87a   : > { %v2708_v23 = vpop.f32.mrf.mxu1 }
 0x87b   : > { %2871 = vst.msk [vmem:[%s5230_s15 + $0x2c] sm:$0xf] %vm2859_vm4, %v3057_v3  ;;  %v2785_v41 = vmax.f32 %v2768_v40, 0.0  ;;  %v2745_v42 = vmul.f32 %v5217_v27, %v2707_v36 }
 0x87c   : > { %v2711_v38 = vpop.f32.mrf.mxu1 }
 0x87d   : > { %v3058_v54 = vpack.c.bf16 %v2785_v41, %v2785_v41  ;;  %v2769_v33 = vadd.f32 %v5220_v35, %v2745_v42  ;;  %v2712_v25 = vadd.f32 %v5215_v60, %v2711_v38 }
 0x87e   : > { %v2713_v7 = vpop.f32.mrf.mxu1 }
 0x87f   : > { %2872 = vst.msk [vmem:[%s5230_s15 + $0x30] sm:$0xf] %vm2859_vm4, %v3058_v54  ;;  %v2786_v4 = vmax.f32 %v2769_v33, 0.0  ;;  %v2746_v29 = vmul.f32 %v5217_v27, %v2712_v25 }
 0x880   : > { %v2714_v2 = vpop.f32.mrf.mxu1 }
 0x881   : > { %v3059_v49 = vpack.c.bf16 %v2786_v4, %v2786_v4  ;;  %v2770_v14 = vadd.f32 %v5220_v35, %v2746_v29  ;;  %v2715_v24 = vadd.f32 %v5215_v60, %v2714_v2 }
 0x882   : > { %v2716_v59 = vpop.f32.mrf.mxu1 }
 0x883   : > { %2873 = vst.msk [vmem:[%s5230_s15 + $0x34] sm:$0xf] %vm2859_vm4, %v3059_v49  ;;  %v2787_v8 = vmax.f32 %v2770_v14, 0.0  ;;  %v2747_v44 = vmul.f32 %v5217_v27, %v2715_v24 }
 0x884   : > { %v2719_v18 = vpop.f32.mrf.mxu1 }
 0x885   : > { %v3060_v32 = vpack.c.bf16 %v2787_v8, %v2787_v8  ;;  %v2771_v17 = vadd.f32 %v5220_v35, %v2747_v44  ;;  %v2720_v58 = vadd.f32 %v5215_v60, %v2719_v18 }
 0x886   : > { %v2721_v11 = vpop.f32.mrf.mxu1 }
 0x887   : > { %2874 = vst.msk [vmem:[%s5230_s15 + $0x38] sm:$0xf] %vm2859_vm4, %v3060_v32  ;;  %v2788_v46 = vmax.f32 %v2771_v17, 0.0  ;;  %v2748_v10 = vmul.f32 %v5217_v27, %v2720_v58 }
 0x888   : > { %v2722_v61 = vpop.f32.mrf.mxu1 }
 0x889   : > { %v3061_v52 = vpack.c.bf16 %v2788_v46, %v2788_v46  ;;  %v2772_v28 = vadd.f32 %v5220_v35, %v2748_v10 }
 0x88a   : > { %v2723_v15 = vpop.f32.mrf.mxu1 }
 0x88b   : > { %2875 = vst.msk [vmem:[%s5230_s15 + $0x3c] sm:$0xf] %vm2859_vm4, %v3061_v52  ;;  %v2789_v63 = vmax.f32 %v2772_v28, 0.0 }
 0x88d   : > { %v3062_v6 = vpack.c.bf16 %v2789_v63, %v2789_v63 }
 0x88f   : > { %2876 = vst.msk [vmem:[%s5230_s15 + $0x40] sm:$0xf] %vm2859_vm4, %v3062_v6 }
 0x890 PF: > { %s27_s29 = sadd.s32 1, %s3508_s29  }
 0x891   : > { %p24_p2 = scmp.ge.s32.totalorder %s27_s29, 4  }
 0x893   :  { %26 = sbr.rel (!%p24_p2) target bundleno = 3 (0x3), region = 123 }
 0x898   :  { %2898 = vsyncpa [#allocation3], 1 }
 0x899   :  { %2900 = vsyncpa [#allocation3 + $0x1], 1 }
 0x89a   :  { %2901 = vsyncpa [#allocation5], 1 }
 0x89b   :  { %2902 = vsyncpa [#allocation8], 1 }

// kernel: st_gat_forward.3
= control target key start
LH: loop header
LB: loop body
LE: loop exit
PB: predicated region body
PF: predicated region fallthrough
CT: control target
= control target key end

     0   :  { %20 = vsyncpa [#allocation9], 0  ;;  %s8393_s0 = inlined_call_operand.vmem [shape: bf16[16,544], index: 0, kind: input, shape index: {}]   ;;  %s8394_s1 = inlined_call_operand.vmem [shape: f32[16,34], index: 1, kind: input, shape index: {}]   ;;  %s8395_s2 = inlined_call_operand.vmem [shape: bf16[544,512], index: 2, kind: input, shape index: {}]   ;;  %s8396_s3 = inlined_call_operand.hbm [shape: bf16[34,512], index: 3, kind: input, shape index: {}]   ;;  %s8397_s4 = inlined_call_operand.hbm [shape: f32[1,512], index: 4, kind: input, shape index: {}]   ;;  %s8398_s5 = inlined_call_operand.vmem [shape: bf16[128,512], index: 5, kind: input, shape index: {}]   ;;  %s8399_s6 = inlined_call_operand.hbm [shape: bf16[64,512], index: 6, kind: input, shape index: {}]   ;;  %s8400_s7 = inlined_call_operand.hbm [shape: bf16[64,512], index: 7, kind: input, shape index: {}]   ;;  %s8401_s8 = inlined_call_operand.hbm [shape: f32[1,512], index: 8, kind: input, shape index: {}]   ;;  %s8402_s9 = inlined_call_operand.vmem [shape: bf16[128,512], index: 9, kind: input, shape index: {}]   ;;  %s8403_s10 = inlined_call_operand.vmem [shape: bf16[64,32], index: 10, kind: input, shape index: {}]   ;;  %s8404_s11 = inlined_call_operand.vmem [shape: bf16[64,32], index: 11, kind: input, shape index: {}]   ;;  %s8405_s12 = inlined_call_operand.hbm [shape: f32[1,32], index: 12, kind: input, shape index: {}]   ;;  %s8406_s13 = inlined_call_operand.vmem [shape: bf16[32,16], index: 13, kind: input, shape index: {}]   ;;  %s8407_s14 = inlined_call_operand.hbm [shape: f32[1,16], index: 14, kind: input, shape index: {}]   ;;  %s8408_s15 = inlined_call_operand.vmem [shape: f32[16,16], index: 15, kind: output, shape index: {}]  }
   0x1   :  { %21 = vsyncpa [#allocation11], 0 }
   0x2   :  { %22 = vsyncpa [#allocation14], 0 }
   0x3   :  { %23 = vsyncpa [#allocation17], 0  ;;  %s6287_s18 = smov [#allocation10]  }
   0x4   :  { %s48_s19 = sshll.u32 %s6287_s18, 4  ;;  %s49_s19 = int_to_ptr.vmem [resolvable:$true] %s48_s19 }
   0x5   :  { %s6147_s20 = scalar_lea.vmem %s49_s19, 64  ;;  %p6152_p1 = scmp.lt.s32.totalorder %s49_s19, %s49_s19 }
   0x6   :  { %p6148_p0 = scmp.ne.s32.totalorder %s49_s19, %s6147_s20  ;;  %p6153_p2 = scmp.lt.s32.totalorder %s6147_s20, %s6147_s20 }
   0x8   :  { %p6154_p3 = por %p6153_p2, %p6152_p1 }
   0xa   :  { %p6155_p4 = pnand %p6154_p3, %p6148_p0 }
   0xc   :  { %6158 = shalt.err (!%p6155_p4)
}
   0xd   :  { %51 = dma.hbm_to_vmem [thread:$0]  %s8397_s4, 64, %s49_s19, [#allocation11]  }
   0xe   :  { %s6288_s23 = smov [#allocation13]   ;;  %s6289_s25 = smov [#allocation16]  }
   0xf   :  { %s71_s24 = sshll.u32 %s6288_s23, 4  ;;  %s100_s26 = sshll.u32 %s6289_s25, 4  ;;  %s72_s24 = int_to_ptr.vmem [resolvable:$true] %s71_s24  ;;  %s101_s26 = int_to_ptr.vmem [resolvable:$true] %s100_s26 }
  0x10   :  { %s6167_s27 = scalar_lea.vmem %s72_s24, 2048  ;;  %p6172_p6 = scmp.lt.s32.totalorder %s72_s24, %s72_s24 }
  0x11   :  { %p6168_p5 = scmp.ne.s32.totalorder %s72_s24, %s6167_s27  ;;  %p6173_p7 = scmp.lt.s32.totalorder %s6167_s27, %s6167_s27 }
  0x13   :  { %p6174_p8 = por %p6173_p7, %p6172_p6 }
  0x15   :  { %p6175_p9 = pnand %p6174_p8, %p6168_p5 }
  0x17   :  { %6178 = shalt.err (!%p6175_p9)
}
  0x18   :  { %s6290_s28 = smov 256   ;;  %s6291_s29 = smov 16  }
  0x19   :  { %77 = dma.hbm_to_vmem [thread:$0]  %s8400_s7, 2048, %s72_s24, [#allocation14], %s6290_s28, %s6290_s28, %s6291_s29  }
  0x1a   :  { %s6187_s4 = scalar_lea.vmem %s101_s26, 16  ;;  %s6191_s17 = scalar_lea.vmem %s101_s26, 32 }
  0x1b   :  { %p6188_p10 = scmp.ne.s32.totalorder %s101_s26, %s6187_s4  ;;  %p6192_p11 = scmp.lt.s32.totalorder %s101_s26, %s101_s26 }
  0x1c   :  { %p6193_p12 = scmp.lt.s32.totalorder %s6191_s17, %s6187_s4 }
  0x1e   :  { %p6194_p13 = por %p6193_p12, %p6192_p11 }
  0x20   :  { %p6195_p0 = pnand %p6194_p13, %p6188_p10 }
  0x22   :  { %6198 = shalt.err (!%p6195_p0)
}
  0x23   :  { %103 = dma.hbm_to_vmem [thread:$0]  %s8405_s12, 16, %s101_s26, [#allocation17]  }
  0x24   :  { %s6292_s20 = smov [#allocation8]   ;;  %s6293_s22 = smov [#allocation12]  }
  0x25   :  { %s35_s21 = sshll.u32 %s6292_s20, 4  ;;  %s59_s23 = sshll.u32 %s6293_s22, 4  ;;  %s36_s21 = int_to_ptr.vmem [resolvable:$true] %s35_s21  ;;  %s60_s23 = int_to_ptr.vmem [resolvable:$true] %s59_s23 }
  0x26   :  { %s6207_s25 = scalar_lea.vmem %s36_s21, 1280  ;;  %p6212_p2 = scmp.lt.s32.totalorder %s36_s21, %s36_s21 }
  0x27   :  { %p6208_p1 = scmp.ne.s32.totalorder %s36_s21, %s6207_s25  ;;  %p6213_p3 = scmp.lt.s32.totalorder %s6207_s25, %s6207_s25 }
  0x29   :  { %p6214_p4 = por %p6213_p3, %p6212_p2 }
  0x2b   :  { %p6215_p5 = pnand %p6214_p4, %p6208_p1 }
  0x2d   :  { %6218 = shalt.err (!%p6215_p5)
}
  0x2e   :  { %41 = dma.hbm_to_vmem [thread:$0]  %s8396_s3, 1280, %s36_s21, [#allocation9], %s6290_s28, %s6290_s28, %s6291_s29  }
  0x2f   :  { %s6227_s12 = scalar_lea.vmem %s60_s23, 2048  ;;  %p6232_p7 = scmp.lt.s32.totalorder %s60_s23, %s60_s23 }
  0x30   :  { %p6228_p6 = scmp.ne.s32.totalorder %s60_s23, %s6227_s12  ;;  %p6233_p8 = scmp.lt.s32.totalorder %s6227_s12, %s6227_s12 }
  0x32   :  { %p6234_p9 = por %p6233_p8, %p6232_p7 }
  0x34   :  { %p6235_p10 = pnand %p6234_p9, %p6228_p6 }
  0x36   :  { %6238 = shalt.err (!%p6235_p10)
}
  0x37   :  { %65 = dma.hbm_to_vmem [thread:$0]  %s8399_s6, 2048, %s60_s23, [#allocation11], %s6290_s28, %s6290_s28, %s6291_s29  }
  0x38   :  { %s6294_s30 = smov [#allocation15]   ;;  %s6295_s4 = smov [#allocation18]  }
  0x39   :  { %s84_s16 = sshll.u32 %s6294_s30, 4  ;;  %s112_s3 = sshll.u32 %s6295_s4, 4  ;;  %s85_s16 = int_to_ptr.vmem [resolvable:$true] %s84_s16  ;;  %s113_s3 = int_to_ptr.vmem [resolvable:$true] %s112_s3 }
  0x3a   :  { %s6247_s17 = scalar_lea.vmem %s85_s16, 64  ;;  %p6252_p12 = scmp.lt.s32.totalorder %s85_s16, %s85_s16 }
  0x3b   :  { %p6248_p11 = scmp.ne.s32.totalorder %s85_s16, %s6247_s17  ;;  %p6253_p13 = scmp.lt.s32.totalorder %s6247_s17, %s6247_s17 }
  0x3d   :  { %p6254_p0 = por %p6253_p13, %p6252_p12 }
  0x3f   :  { %p6255_p1 = pnand %p6254_p0, %p6248_p11 }
  0x41   :  { %6258 = shalt.err (!%p6255_p1)
}
  0x42   :  { %87 = dma.hbm_to_vmem [thread:$0]  %s8401_s8, 64, %s85_s16, [#allocation14]  }
  0x43   :  { %s6267_s20 = scalar_lea.vmem %s113_s3, 16  ;;  %s6271_s6 = scalar_lea.vmem %s113_s3, 32 }
  0x44   :  { %p6268_p2 = scmp.ne.s32.totalorder %s113_s3, %s6267_s20  ;;  %p6272_p3 = scmp.lt.s32.totalorder %s113_s3, %s113_s3 }
  0x45   :  { %p6273_p4 = scmp.lt.s32.totalorder %s6271_s6, %s6267_s20 }
  0x47   :  { %p6274_p5 = por %p6273_p4, %p6272_p3 }
  0x49   :  { %p6275_p6 = pnand %p6274_p5, %p6268_p2 }
  0x4b   :  { %6278 = shalt.err (!%p6275_p6)
}
  0x4c   :  { %115 = dma.hbm_to_vmem [thread:$0]  %s8407_s14, 16, %s113_s3, [#allocation17]  }
  0x4d   :  { %6279 = dma.done.wait [#allocation9], 1280  }
  0x4e   :  { %6280 = vsyncadd [#allocation9], 4294966016 }
  0x4f   :  { %6281 = dma.done.wait [#allocation11], 2112  }
  0x50   :  { %6282 = vsyncadd [#allocation11], 4294965184 }
  0x51   :  { %6283 = dma.done.wait [#allocation14], 2112  }
  0x52   :  { %6284 = vsyncadd [#allocation14], 4294965184 }
  0x53   :  { %6285 = dma.done.wait [#allocation17], 32  }
  0x54   :  { %6286 = vsyncadd [#allocation17], 4294967264  ;;  %v8409_v0 = vmov 0   ;;  %v291_v1 = vld [vmem:[#allocation8 + $0x40] sm:$0x11]  ;;  %vm347_vm0 = vcmask 1040384  }
  0x55   :  { %392 = vmatprep.mubr.bf16.mxu0 %v8409_v0  ;;  %435 = vmatprep.mubr.bf16.mxu1 %v8409_v0  ;;  %v292_v2 = vld [vmem:[#allocation8 + $0x48] sm:$0x11]  ;;  %v5115_v3 = vcombine.high %v291_v1, %v291_v1  ;;  %v5114_v5 = vcombine.low %v291_v1, %v291_v1  ;;  %v5442_v7 = vld [vmem:[#allocation8 + $0x24] ss:$16 sps:$4 sm:$0xff]   ;;  %v5446_v11 = vld [vmem:[#allocation8 + $0x20] ss:$16 sps:$4 sm:$0xff]  }
  0x56   :  { %v5117_v4 = vcombine.high %v292_v2, %v292_v2  ;;  %v5116_v6 = vcombine.low %v292_v2, %v292_v2  ;;  %v5444_v8 = vld [vmem:[#allocation8 + $0x2c] ss:$16 sps:$4 sm:$0xff]   ;;  %v5447_v12 = vld [vmem:[#allocation8 + $0x28] ss:$16 sps:$4 sm:$0xff]   ;;  %v5448_v13 = vld [vmem:[#allocation8 + $0x4] ss:$16 sps:$4 sm:$0xff]  }
  0x57   :  { %5118 = vmatprep.subr.msk.bf16.mxu0 %vm347_vm0, %v5115_v3  ;;  %v349_v9 = vsel %vm347_vm0, %v5114_v5, 0  ;;  %v5450_v14 = vld [vmem:[#allocation8 + $0xc] ss:$16 sps:$4 sm:$0xff]   ;;  %v5452_v15 = vld [vmem:[#allocation8] ss:$16 sps:$4 sm:$0xff]   ;;  %vm343_vm1 = vcmask 277504  }
  0x58   :  { %5120 = vmatprep.subr.msk.bf16.mxu1 %vm347_vm0, %v5117_v4  ;;  %v355_v10 = vsel %vm347_vm0, %v5116_v6, 0  ;;  %371 = vmatpush1.bf16.msra.mxu0 %v349_v9  ;;  %v5453_v16 = vld [vmem:[#allocation8 + $0x8] ss:$16 sps:$4 sm:$0xff]   ;;  %v280_v17 = vld [vmem:[%s8394_s1] sm:$0xff]  ;;  %vm1151_vm2 = vcmask 261120   ;;  %s6297_s18 = smov 64  }
  0x59   :  { %414 = vmatpush1.bf16.msra.mxu1 %v355_v10  ;;  %372 = vmatprep.subr.bf16.mxu0 %v5442_v7  ;;  %v281_v18 = vld [vmem:[%s8394_s1 + $0x8] sm:$0xff]  ;;  %v5456_v19 = vld [vmem:[%s8395_s2 + $0xe4] ss:$16 sps:$4 sm:$0xff]   ;;  %v5454_v22 = vld [vmem:[%s8395_s2 + $0xe0] ss:$16 sps:$4 sm:$0xff]   ;;  %vm1779_vm3 = vcmask 517120  }
  0x5a   :  { %415 = vmatprep.subr.bf16.mxu1 %v5444_v8  ;;  %v5459_v20 = vld [vmem:[%s8395_s2 + $0x2e4] ss:$16 sps:$4 sm:$0xff]   ;;  %v282_v21 = vpack.c.bf16 %v281_v18, %v280_v17  ;;  %v5457_v23 = vld [vmem:[%s8395_s2 + $0x2e0] ss:$16 sps:$4 sm:$0xff]   ;;  %vm1789_vm4 = vcmask 523264   ;;  %vm1949_vm5 = vcmask 519170  }
  0x5b   :  { %v5462_v24 = vld [vmem:[%s8395_s2 + $0xc4] ss:$16 sps:$4 sm:$0xff]   ;;  %v5460_v26 = vld [vmem:[%s8395_s2 + $0xc0] ss:$16 sps:$4 sm:$0xff]   ;;  %vm1955_vm6 = vcmask 521220   ;;  %vm1785_vm7 = vcmask 523270  }
  0x5c   :  { %373 = vmatpush1.bf16.msra.mxu0 %v5446_v11  ;;  %v5465_v25 = vld [vmem:[%s8395_s2 + $0x2c4] ss:$16 sps:$4 sm:$0xff]   ;;  %v5463_v27 = vld [vmem:[%s8395_s2 + $0x2c0] ss:$16 sps:$4 sm:$0xff]   ;;  %vm6299_vm8 = vmmov 0   ;;  %vm5095_vm9 = vcmask 130048  }
  0x5d   :  { %416 = vmatpush1.bf16.msra.mxu1 %v5447_v12  ;;  %374 = vmatprep.subr.bf16.mxu0 %v5448_v13  ;;  %v5468_v28 = vld [vmem:[%s8395_s2 + $0xa4] ss:$16 sps:$4 sm:$0xff]   ;;  %v5466_v30 = vld [vmem:[%s8395_s2 + $0xa0] ss:$16 sps:$4 sm:$0xff]  }
  0x5e   :  { %417 = vmatprep.subr.bf16.mxu1 %v5450_v14  ;;  %v5471_v29 = vld [vmem:[%s8395_s2 + $0x2a4] ss:$16 sps:$4 sm:$0xff]   ;;  %v5469_v31 = vld [vmem:[%s8395_s2 + $0x2a0] ss:$16 sps:$4 sm:$0xff]  }
  0x5f   :  { %v5474_v32 = vld [vmem:[%s8395_s2 + $0x84] ss:$16 sps:$4 sm:$0xff]   ;;  %v5472_v34 = vld [vmem:[%s8395_s2 + $0x80] ss:$16 sps:$4 sm:$0xff]  }
  0x60   :  { %375 = vmatpush1.bf16.msra.mxu0 %v5452_v15  ;;  %v5477_v33 = vld [vmem:[%s8395_s2 + $0x284] ss:$16 sps:$4 sm:$0xff]   ;;  %v5475_v35 = vld [vmem:[%s8395_s2 + $0x280] ss:$16 sps:$4 sm:$0xff]  }
  0x61   :  { %418 = vmatpush1.bf16.msra.mxu1 %v5453_v16  ;;  %1155 = vmatprep.subr.bf16.mxu0 %v5456_v19  ;;  %v5480_v36 = vld [vmem:[%s8395_s2 + $0x64] ss:$16 sps:$4 sm:$0xff]   ;;  %v5478_v38 = vld [vmem:[%s8395_s2 + $0x60] ss:$16 sps:$4 sm:$0xff]  }
  0x62   :  { %1198 = vmatprep.subr.bf16.mxu1 %v5459_v20  ;;  %v5483_v37 = vld [vmem:[%s8395_s2 + $0x264] ss:$16 sps:$4 sm:$0xff]   ;;  %v5481_v39 = vld [vmem:[%s8395_s2 + $0x260] ss:$16 sps:$4 sm:$0xff]  }
  0x63   :  { %5119 = vmatmul.mubr.msk.bf16.vlgmr.msra.gmra.mxu0 %vm343_vm1, %v282_v21  ;;  %v5486_v40 = vld [vmem:[%s8395_s2 + $0x44] ss:$16 sps:$4 sm:$0xff]   ;;  %v5484_v42 = vld [vmem:[%s8395_s2 + $0x40] ss:$16 sps:$4 sm:$0xff]  }
  0x64   :  { %5121 = vmatmul.mubr.msk.bf16.vlgmr.msra.gmra.mxu1 %vm343_vm1, %v282_v21  ;;  %1156 = vmatpush1.bf16.msra.mxu0 %v5454_v22  ;;  %v5489_v41 = vld [vmem:[%s8395_s2 + $0x244] ss:$16 sps:$4 sm:$0xff]   ;;  %v5487_v43 = vld [vmem:[%s8395_s2 + $0x240] ss:$16 sps:$4 sm:$0xff]  }
  0x65   :  { %1199 = vmatpush1.bf16.msra.mxu1 %v5457_v23  ;;  %1157 = vmatprep.subr.bf16.mxu0 %v5462_v24  ;;  %v5492_v44 = vld [vmem:[%s8395_s2 + $0x24] ss:$16 sps:$4 sm:$0xff]   ;;  %v5490_v46 = vld [vmem:[%s8395_s2 + $0x20] ss:$16 sps:$4 sm:$0xff]   ;;  %v5561_v24 = vld [vmem:[%s8395_s2 + $0xec] ss:$16 sps:$4 sm:$0xff]  }
  0x66   :  { %1200 = vmatprep.subr.bf16.mxu1 %v5465_v25  ;;  %v5495_v45 = vld [vmem:[%s8395_s2 + $0x224] ss:$16 sps:$4 sm:$0xff]   ;;  %v5493_v47 = vld [vmem:[%s8395_s2 + $0x220] ss:$16 sps:$4 sm:$0xff]  }
  0x67   :  { %v5498_v48 = vld [vmem:[%s8395_s2 + $0x4] ss:$16 sps:$4 sm:$0xff]   ;;  %v5496_v50 = vld [vmem:[%s8395_s2] ss:$16 sps:$4 sm:$0xff]  }
  0x68   :  { %1158 = vmatpush1.bf16.msra.mxu0 %v5460_v26  ;;  %v5501_v49 = vld [vmem:[%s8395_s2 + $0x204] ss:$16 sps:$4 sm:$0xff]   ;;  %v5499_v51 = vld [vmem:[%s8395_s2 + $0x200] ss:$16 sps:$4 sm:$0xff]   ;;  %v6636_v26 = vld [vmem:[%s8393_s0 + $0x8] ss:$20 sps:$4 sm:$0xff]  }
  0x69   :  { %1201 = vmatpush1.bf16.msra.mxu1 %v5463_v27  ;;  %1159 = vmatprep.subr.bf16.mxu0 %v5468_v28  ;;  %v5504_v52 = vld [vmem:[%s8395_s2 + $0x1e4] ss:$16 sps:$4 sm:$0xff]   ;;  %v5502_v54 = vld [vmem:[%s8395_s2 + $0x1e0] ss:$16 sps:$4 sm:$0xff]   ;;  %v5559_v28 = vld [vmem:[%s8395_s2 + $0xe8] ss:$16 sps:$4 sm:$0xff]  }
  0x6a   :  { %1202 = vmatprep.subr.bf16.mxu1 %v5471_v29  ;;  %v5507_v53 = vld [vmem:[%s8395_s2 + $0x3e4] ss:$16 sps:$4 sm:$0xff]   ;;  %v5505_v55 = vld [vmem:[%s8395_s2 + $0x3e0] ss:$16 sps:$4 sm:$0xff]  }
  0x6b   :  { %v5510_v56 = vld [vmem:[%s8395_s2 + $0x1c4] ss:$16 sps:$4 sm:$0xff]   ;;  %v5508_v58 = vld [vmem:[%s8395_s2 + $0x1c0] ss:$16 sps:$4 sm:$0xff]  }
  0x6c   :  { %1160 = vmatpush1.bf16.msra.mxu0 %v5466_v30  ;;  %v5513_v57 = vld [vmem:[%s8395_s2 + $0x3c4] ss:$16 sps:$4 sm:$0xff]   ;;  %v5511_v59 = vld [vmem:[%s8395_s2 + $0x3c0] ss:$16 sps:$4 sm:$0xff]   ;;  %v5567_v30 = vld [vmem:[%s8395_s2 + $0xcc] ss:$16 sps:$4 sm:$0xff]  }
  0x6d   :  { %1203 = vmatpush1.bf16.msra.mxu1 %v5469_v31  ;;  %1161 = vmatprep.subr.bf16.mxu0 %v5474_v32  ;;  %v5516_v60 = vld [vmem:[%s8395_s2 + $0x1a4] ss:$16 sps:$4 sm:$0xff]   ;;  %v5514_v62 = vld [vmem:[%s8395_s2 + $0x1a0] ss:$16 sps:$4 sm:$0xff]   ;;  %v5565_v32 = vld [vmem:[%s8395_s2 + $0xc8] ss:$16 sps:$4 sm:$0xff]  }
  0x6e   :  { %1204 = vmatprep.subr.bf16.mxu1 %v5477_v33  ;;  %v5519_v61 = vld [vmem:[%s8395_s2 + $0x3a4] ss:$16 sps:$4 sm:$0xff]   ;;  %v5517_v1 = vld [vmem:[%s8395_s2 + $0x3a0] ss:$16 sps:$4 sm:$0xff]   ;;  %v5571_v33 = vld [vmem:[%s8395_s2 + $0xac] ss:$16 sps:$4 sm:$0xff]  }
  0x6f   :  { %v6550_v63 = vld [vmem:[%s8393_s0 + $0x4] ss:$20 sps:$4 sm:$0xff]   ;;  %v6558_v2 = vld [vmem:[%s8393_s0 + $0xc] ss:$20 sps:$4 sm:$0xff]  }
  0x70   :  { %1162 = vmatpush1.bf16.msra.mxu0 %v5472_v34  ;;  %v5522_v3 = vld [vmem:[%s8395_s2 + $0x184] ss:$16 sps:$4 sm:$0xff]   ;;  %1187 = vmatprep.mubr.bf16.mxu0 %v6550_v63  ;;  %v5520_v5 = vld [vmem:[%s8395_s2 + $0x180] ss:$16 sps:$4 sm:$0xff]   ;;  %v5574_v34 = vld [vmem:[%s8395_s2 + $0x2ec] ss:$16 sps:$4 sm:$0xff]  }
  0x71   :  { %1205 = vmatpush1.bf16.msra.mxu1 %v5475_v35  ;;  %1163 = vmatprep.subr.bf16.mxu0 %v5480_v36  ;;  %v5525_v4 = vld [vmem:[%s8395_s2 + $0x384] ss:$16 sps:$4 sm:$0xff]   ;;  %v5523_v6 = vld [vmem:[%s8395_s2 + $0x380] ss:$16 sps:$4 sm:$0xff]   ;;  %v5569_v36 = vld [vmem:[%s8395_s2 + $0xa8] ss:$16 sps:$4 sm:$0xff]  }
  0x72   :  { %1206 = vmatprep.subr.bf16.mxu1 %v5483_v37  ;;  %1230 = vmatprep.mubr.bf16.mxu1 %v6558_v2  ;;  %v5528_v7 = vld [vmem:[%s8395_s2 + $0x164] ss:$16 sps:$4 sm:$0xff]   ;;  %v5526_v9 = vld [vmem:[%s8395_s2 + $0x160] ss:$16 sps:$4 sm:$0xff]   ;;  %v5572_v37 = vld [vmem:[%s8395_s2 + $0x2e8] ss:$16 sps:$4 sm:$0xff]  }
  0x73   :  { %v5531_v8 = vld [vmem:[%s8395_s2 + $0x364] ss:$16 sps:$4 sm:$0xff]   ;;  %v5529_v10 = vld [vmem:[%s8395_s2 + $0x360] ss:$16 sps:$4 sm:$0xff]  }
  0x74   :  { %1164 = vmatpush1.bf16.msra.mxu0 %v5478_v38  ;;  %v5534_v11 = vld [vmem:[%s8395_s2 + $0x144] ss:$16 sps:$4 sm:$0xff]   ;;  %v5532_v13 = vld [vmem:[%s8395_s2 + $0x140] ss:$16 sps:$4 sm:$0xff]   ;;  %v5577_v38 = vld [vmem:[%s8395_s2 + $0x8c] ss:$16 sps:$4 sm:$0xff]  }
  0x75   :  { %1207 = vmatpush1.bf16.msra.mxu1 %v5481_v39  ;;  %1165 = vmatprep.subr.bf16.mxu0 %v5486_v40  ;;  %v5537_v12 = vld [vmem:[%s8395_s2 + $0x344] ss:$16 sps:$4 sm:$0xff]   ;;  %v5535_v14 = vld [vmem:[%s8395_s2 + $0x340] ss:$16 sps:$4 sm:$0xff]   ;;  %v5580_v39 = vld [vmem:[%s8395_s2 + $0x2cc] ss:$16 sps:$4 sm:$0xff]  }
  0x76   :  { %1208 = vmatprep.subr.bf16.mxu1 %v5489_v41  ;;  %v5540_v15 = vld [vmem:[%s8395_s2 + $0x124] ss:$16 sps:$4 sm:$0xff]   ;;  %v5538_v17 = vld [vmem:[%s8395_s2 + $0x120] ss:$16 sps:$4 sm:$0xff]   ;;  %v5575_v40 = vld [vmem:[%s8395_s2 + $0x88] ss:$16 sps:$4 sm:$0xff]  }
  0x77   :  { %v5543_v16 = vld [vmem:[%s8395_s2 + $0x324] ss:$16 sps:$4 sm:$0xff]   ;;  %v5541_v18 = vld [vmem:[%s8395_s2 + $0x320] ss:$16 sps:$4 sm:$0xff]   ;;  %v5578_v41 = vld [vmem:[%s8395_s2 + $0x2c8] ss:$16 sps:$4 sm:$0xff]  }
  0x78   :  { %1166 = vmatpush1.bf16.msra.mxu0 %v5484_v42  ;;  %v5546_v19 = vld [vmem:[%s8395_s2 + $0x104] ss:$16 sps:$4 sm:$0xff]   ;;  %v5544_v21 = vld [vmem:[%s8395_s2 + $0x100] ss:$16 sps:$4 sm:$0xff]   ;;  %v5583_v42 = vld [vmem:[%s8395_s2 + $0x6c] ss:$16 sps:$4 sm:$0xff]  }
  0x79   :  { %1209 = vmatpush1.bf16.msra.mxu1 %v5487_v43  ;;  %1167 = vmatprep.subr.bf16.mxu0 %v5492_v44  ;;  %v5549_v20 = vld [vmem:[%s8395_s2 + $0x304] ss:$16 sps:$4 sm:$0xff]   ;;  %v5547_v22 = vld [vmem:[%s8395_s2 + $0x300] ss:$16 sps:$4 sm:$0xff]   ;;  %v5586_v43 = vld [vmem:[%s8395_s2 + $0x2ac] ss:$16 sps:$4 sm:$0xff]  }
  0x7a   :  { %1210 = vmatprep.subr.bf16.mxu1 %v5495_v45  ;;  %v5558_v23 = vld [vmem:[%s8395_s2 + $0x424] ss:$16 sps:$4 sm:$0xff]   ;;  %v5556_v27 = vld [vmem:[%s8395_s2 + $0x420] ss:$16 sps:$4 sm:$0xff]   ;;  %v5581_v44 = vld [vmem:[%s8395_s2 + $0x68] ss:$16 sps:$4 sm:$0xff]  }
  0x7b   :  { %v6631_v25 = vld [vmem:[%s8393_s0] ss:$20 sps:$4 sm:$0xff]   ;;  %v6669_v35 = vld [vmem:[%s8393_s0 + $0x10] ss:$20 sps:$4 sm:$0xff]   ;;  %v5584_v45 = vld [vmem:[%s8395_s2 + $0x2a8] ss:$16 sps:$4 sm:$0xff]  }
  0x7c   :  { %1168 = vmatpush1.bf16.msra.mxu0 %v5490_v46  ;;  %v5564_v29 = vld [vmem:[%s8395_s2 + $0x404] ss:$16 sps:$4 sm:$0xff]   ;;  %v5562_v31 = vld [vmem:[%s8395_s2 + $0x400] ss:$16 sps:$4 sm:$0xff]   ;;  %v5589_v46 = vld [vmem:[%s8395_s2 + $0x4c] ss:$16 sps:$4 sm:$0xff]  }
  0x7d   :  { %1211 = vmatpush1.bf16.msra.mxu1 %v5493_v47  ;;  %1169 = vmatprep.subr.bf16.mxu0 %v5498_v48  ;;  %v5592_v47 = vld [vmem:[%s8395_s2 + $0x28c] ss:$16 sps:$4 sm:$0xff]   ;;  %v5587_v48 = vld [vmem:[%s8395_s2 + $0x48] ss:$16 sps:$4 sm:$0xff]  }
  0x7e   :  { %1212 = vmatprep.subr.bf16.mxu1 %v5501_v49  ;;  %v5590_v49 = vld [vmem:[%s8395_s2 + $0x288] ss:$16 sps:$4 sm:$0xff]  }
  0x80   :  { %1170 = vmatpush1.bf16.msra.mxu0 %v5496_v50  ;;  %v5595_v50 = vld [vmem:[%s8395_s2 + $0x2c] ss:$16 sps:$4 sm:$0xff]  }
  0x81   :  { %1213 = vmatpush1.bf16.msra.mxu1 %v5499_v51  ;;  %1171 = vmatprep.subr.bf16.mxu0 %v5504_v52  ;;  %v5598_v51 = vld [vmem:[%s8395_s2 + $0x26c] ss:$16 sps:$4 sm:$0xff]   ;;  %v5593_v52 = vld [vmem:[%s8395_s2 + $0x28] ss:$16 sps:$4 sm:$0xff]  }
  0x82   :  { %1214 = vmatprep.subr.bf16.mxu1 %v5507_v53  ;;  %v5596_v53 = vld [vmem:[%s8395_s2 + $0x268] ss:$16 sps:$4 sm:$0xff]  }
  0x84   :  { %1172 = vmatpush2.bf16.msra.mxu0 %v5502_v54  ;;  %v5601_v54 = vld [vmem:[%s8395_s2 + $0xc] ss:$16 sps:$4 sm:$0xff]  }
  0x85   :  { %1215 = vmatpush2.bf16.msra.mxu1 %v5505_v55  ;;  %1173 = vmatprep.subr.bf16.mxu0 %v5510_v56  ;;  %v5604_v55 = vld [vmem:[%s8395_s2 + $0x24c] ss:$16 sps:$4 sm:$0xff]   ;;  %v5599_v56 = vld [vmem:[%s8395_s2 + $0x8] ss:$16 sps:$4 sm:$0xff]  }
  0x86   :  { %1216 = vmatprep.subr.bf16.mxu1 %v5513_v57  ;;  %v5602_v57 = vld [vmem:[%s8395_s2 + $0x248] ss:$16 sps:$4 sm:$0xff]  }
  0x88   :  { %1174 = vmatpush2.bf16.msra.mxu0 %v5508_v58  ;;  %v5607_v58 = vld [vmem:[%s8395_s2 + $0x1ec] ss:$16 sps:$4 sm:$0xff]  }
  0x89   :  { %1217 = vmatpush2.bf16.msra.mxu1 %v5511_v59  ;;  %1175 = vmatprep.subr.bf16.mxu0 %v5516_v60  ;;  %v5610_v59 = vld [vmem:[%s8395_s2 + $0x22c] ss:$16 sps:$4 sm:$0xff]   ;;  %v5605_v60 = vld [vmem:[%s8395_s2 + $0x1e8] ss:$16 sps:$4 sm:$0xff]  }
  0x8a   :  { %1218 = vmatprep.subr.bf16.mxu1 %v5519_v61  ;;  %v5608_v61 = vld [vmem:[%s8395_s2 + $0x228] ss:$16 sps:$4 sm:$0xff]  }
  0x8c   :  { %1176 = vmatpush2.bf16.msra.mxu0 %v5514_v62  ;;  %v5613_v62 = vld [vmem:[%s8395_s2 + $0x1cc] ss:$16 sps:$4 sm:$0xff]  }
  0x8d   :  { %1219 = vmatpush2.bf16.msra.mxu1 %v5517_v1  ;;  %1177 = vmatprep.subr.bf16.mxu0 %v5522_v3  ;;  %v5611_v1 = vld [vmem:[%s8395_s2 + $0x1c8] ss:$16 sps:$4 sm:$0xff]   ;;  %v5619_v3 = vld [vmem:[%s8395_s2 + $0x1ac] ss:$16 sps:$4 sm:$0xff]  }
  0x8e   :  { %1220 = vmatprep.subr.bf16.mxu1 %v5525_v4  ;;  %v5622_v4 = vld [vmem:[%s8395_s2 + $0x3ec] ss:$16 sps:$4 sm:$0xff]  }
  0x90   :  { %1178 = vmatpush2.bf16.msra.mxu0 %v5520_v5  ;;  %v5617_v5 = vld [vmem:[%s8395_s2 + $0x1a8] ss:$16 sps:$4 sm:$0xff]  }
  0x91   :  { %1221 = vmatpush2.bf16.msra.mxu1 %v5523_v6  ;;  %1179 = vmatprep.subr.bf16.mxu0 %v5528_v7  ;;  %v5620_v6 = vld [vmem:[%s8395_s2 + $0x3e8] ss:$16 sps:$4 sm:$0xff]   ;;  %v5625_v7 = vld [vmem:[%s8395_s2 + $0x18c] ss:$16 sps:$4 sm:$0xff]  }
  0x92   :  { %1222 = vmatprep.subr.bf16.mxu1 %v5531_v8  ;;  %v5628_v8 = vld [vmem:[%s8395_s2 + $0x3cc] ss:$16 sps:$4 sm:$0xff]  }
  0x94   :  { %1180 = vmatpush2.bf16.msra.mxu0 %v5526_v9  ;;  %v5623_v9 = vld [vmem:[%s8395_s2 + $0x188] ss:$16 sps:$4 sm:$0xff]  }
  0x95   :  { %1223 = vmatpush2.bf16.msra.mxu1 %v5529_v10  ;;  %1181 = vmatprep.subr.bf16.mxu0 %v5534_v11  ;;  %v5626_v10 = vld [vmem:[%s8395_s2 + $0x3c8] ss:$16 sps:$4 sm:$0xff]   ;;  %v5631_v11 = vld [vmem:[%s8395_s2 + $0x16c] ss:$16 sps:$4 sm:$0xff]  }
  0x96   :  { %1224 = vmatprep.subr.bf16.mxu1 %v5537_v12  ;;  %v5634_v12 = vld [vmem:[%s8395_s2 + $0x3ac] ss:$16 sps:$4 sm:$0xff]  }
  0x98   :  { %1182 = vmatpush2.bf16.msra.mxu0 %v5532_v13  ;;  %v5629_v13 = vld [vmem:[%s8395_s2 + $0x168] ss:$16 sps:$4 sm:$0xff]  }
  0x99   :  { %1225 = vmatpush2.bf16.msra.mxu1 %v5535_v14  ;;  %1183 = vmatprep.subr.bf16.mxu0 %v5540_v15  ;;  %v5632_v14 = vld [vmem:[%s8395_s2 + $0x3a8] ss:$16 sps:$4 sm:$0xff]   ;;  %v5637_v15 = vld [vmem:[%s8395_s2 + $0x14c] ss:$16 sps:$4 sm:$0xff]  }
  0x9a   :  { %1226 = vmatprep.subr.bf16.mxu1 %v5543_v16  ;;  %v5640_v16 = vld [vmem:[%s8395_s2 + $0x38c] ss:$16 sps:$4 sm:$0xff]  }
  0x9c   :  { %1184 = vmatpush2.bf16.msra.mxu0 %v5538_v17  ;;  %v5635_v17 = vld [vmem:[%s8395_s2 + $0x148] ss:$16 sps:$4 sm:$0xff]  }
  0x9d   :  { %1227 = vmatpush2.bf16.msra.mxu1 %v5541_v18  ;;  %1185 = vmatprep.subr.bf16.mxu0 %v5546_v19  ;;  %v5638_v18 = vld [vmem:[%s8395_s2 + $0x388] ss:$16 sps:$4 sm:$0xff]   ;;  %v5643_v19 = vld [vmem:[%s8395_s2 + $0x12c] ss:$16 sps:$4 sm:$0xff]  }
  0x9e   :  { %1228 = vmatprep.subr.bf16.mxu1 %v5549_v20  ;;  %v5646_v20 = vld [vmem:[%s8395_s2 + $0x36c] ss:$16 sps:$4 sm:$0xff]  }
  0xa0   :  { %1186 = vmatpush2.bf16.msra.mxu0 %v5544_v21  ;;  %v5641_v21 = vld [vmem:[%s8395_s2 + $0x128] ss:$16 sps:$4 sm:$0xff]  }
  0xa1   :  { %1229 = vmatpush2.bf16.msra.mxu1 %v5547_v22  ;;  %1253 = vmatprep.subr.bf16.mxu0 %v5558_v23  ;;  %v5644_v22 = vld [vmem:[%s8395_s2 + $0x368] ss:$16 sps:$4 sm:$0xff]   ;;  %v5649_v23 = vld [vmem:[%s8395_s2 + $0x10c] ss:$16 sps:$4 sm:$0xff]  }
  0xa2   :  { %1284 = vmatprep.subr.bf16.mxu1 %v5561_v24  ;;  %v5652_v24 = vld [vmem:[%s8395_s2 + $0x34c] ss:$16 sps:$4 sm:$0xff]  }
  0xa3   :  { %1188 = vmatmul.mubr.bf16.vlgmr.msra.gmra.mxu0 %v6631_v25 }
  0xa4   :  { %1231 = vmatmul.mubr.bf16.vlgmr.msra.gmra.mxu1 %v6636_v26  ;;  %1254 = vmatpush1.bf16.msra.mxu0 %v5556_v27  ;;  %v5647_v27 = vld [vmem:[%s8395_s2 + $0x108] ss:$16 sps:$4 sm:$0xff]  }
  0xa5   :  { %1285 = vmatpush1.bf16.msra.mxu1 %v5559_v28  ;;  %1255 = vmatprep.subr.bf16.mxu0 %v5564_v29  ;;  %v5650_v28 = vld [vmem:[%s8395_s2 + $0x348] ss:$16 sps:$4 sm:$0xff]   ;;  %v5655_v29 = vld [vmem:[%s8395_s2 + $0x32c] ss:$16 sps:$4 sm:$0xff]  }
  0xa6   :  { %1286 = vmatprep.subr.bf16.mxu1 %v5567_v30  ;;  %1273 = vmatprep.mubr.bf16.mxu0 %v8409_v0  ;;  %v5658_v30 = vld [vmem:[%s8395_s2 + $0x42c] ss:$16 sps:$4 sm:$0xff]  }
  0xa7   :  { %1316 = vmatprep.mubr.bf16.mxu1 %v6550_v63  ;;  %v5616_v63 = vld [vmem:[%s8395_s2 + $0x20c] ss:$16 sps:$4 sm:$0xff]  }
  0xa8   :  { %1256 = vmatpush1.bf16.msra.mxu0 %v5562_v31  ;;  %v5653_v31 = vld [vmem:[%s8395_s2 + $0x328] ss:$16 sps:$4 sm:$0xff]  }
  0xa9   :  { %1287 = vmatpush1.bf16.msra.mxu1 %v5565_v32  ;;  %1327 = vmatprep.subr.bf16.mxu0 %v5574_v34  ;;  %v5656_v32 = vld [vmem:[%s8395_s2 + $0x428] ss:$16 sps:$4 sm:$0xff]   ;;  %v5664_v34 = vld [vmem:[%s8395_s2 + $0x40c] ss:$16 sps:$4 sm:$0xff]  }
  0xaa   :  { %1288 = vmatprep.subr.bf16.mxu1 %v5571_v33  ;;  %v5661_v33 = vld [vmem:[%s8395_s2 + $0x30c] ss:$16 sps:$4 sm:$0xff]  }
  0xab   :  { %5263 = vmatmul.mubr.msk.bf16.vlgmr.msra.gmra.mxu0 %vm1151_vm2, %v6669_v35 }
  0xac   :  { %1328 = vmatpush1.bf16.msra.mxu0 %v5572_v37  ;;  %1359 = vmatprep.mubr.bf16.mxu0 %v6558_v2  ;;  %v5614_v2 = vld [vmem:[%s8395_s2 + $0x208] ss:$16 sps:$4 sm:$0xff]  }
  0xad   :  { %1289 = vmatpush1.bf16.msra.mxu1 %v5569_v36  ;;  %1329 = vmatprep.subr.bf16.mxu0 %v5580_v39  ;;  %v5659_v36 = vld [vmem:[%s8395_s2 + $0x308] ss:$16 sps:$4 sm:$0xff]   ;;  %v6869_v39 = vld [vmem:[%s8398_s5 + $0xec] ss:$16 sps:$4 sm:$0xff]  }
  0xae   :  { %1290 = vmatprep.subr.bf16.mxu1 %v5577_v38  ;;  %v5662_v37 = vld [vmem:[%s8395_s2 + $0x408] ss:$16 sps:$4 sm:$0xff]   ;;  %v6864_v38 = vld [vmem:[%s8398_s5 + $0xe4] ss:$16 sps:$4 sm:$0xff]  }
  0xb0   :  { %1330 = vmatpush1.bf16.msra.mxu0 %v5578_v41  ;;  %v6885_v41 = vld [vmem:[%s8398_s5 + $0xc4] ss:$16 sps:$4 sm:$0xff]  }
  0xb1   :  { %1291 = vmatpush1.bf16.msra.mxu1 %v5575_v40  ;;  %1331 = vmatprep.subr.bf16.mxu0 %v5586_v43  ;;  %v6880_v40 = vld [vmem:[%s8398_s5 + $0xe8] ss:$16 sps:$4 sm:$0xff]   ;;  %v6902_v43 = vld [vmem:[%s8398_s5 + $0xc0] ss:$16 sps:$4 sm:$0xff]  }
  0xb2   :  { %1292 = vmatprep.subr.bf16.mxu1 %v5583_v42  ;;  %v6890_v42 = vld [vmem:[%s8398_s5 + $0xcc] ss:$16 sps:$4 sm:$0xff]  }
  0xb4   :  { %1332 = vmatpush1.bf16.msra.mxu0 %v5584_v45  ;;  %v6928_v45 = vld [vmem:[%s8398_s5 + $0xa0] ss:$16 sps:$4 sm:$0xff]  }
  0xb5   :  { %1293 = vmatpush1.bf16.msra.mxu1 %v5581_v44  ;;  %1333 = vmatprep.subr.bf16.mxu0 %v5592_v47  ;;  %v6907_v44 = vld [vmem:[%s8398_s5 + $0xc8] ss:$16 sps:$4 sm:$0xff]   ;;  %v6940_v47 = vld [vmem:[%s8398_s5 + $0x84] ss:$16 sps:$4 sm:$0xff]  }
  0xb6   :  { %1294 = vmatprep.subr.bf16.mxu1 %v5589_v46  ;;  %v6933_v46 = vld [vmem:[%s8398_s5 + $0xa8] ss:$16 sps:$4 sm:$0xff]  }
  0xb8   :  { %1334 = vmatpush1.bf16.msra.mxu0 %v5590_v49  ;;  %v6952_v49 = vld [vmem:[%s8398_s5 + $0x80] ss:$16 sps:$4 sm:$0xff]  }
  0xb9   :  { %1295 = vmatpush1.bf16.msra.mxu1 %v5587_v48  ;;  %1335 = vmatprep.subr.bf16.mxu0 %v5598_v51  ;;  %v6945_v48 = vld [vmem:[%s8398_s5 + $0x8c] ss:$16 sps:$4 sm:$0xff]   ;;  %v6964_v51 = vld [vmem:[%s8398_s5 + $0x64] ss:$16 sps:$4 sm:$0xff]  }
  0xba   :  { %1296 = vmatprep.subr.bf16.mxu1 %v5595_v50  ;;  %v6957_v50 = vld [vmem:[%s8398_s5 + $0x88] ss:$16 sps:$4 sm:$0xff]  }
  0xbc   :  { %1336 = vmatpush1.bf16.msra.mxu0 %v5596_v53  ;;  %v6976_v53 = vld [vmem:[%s8398_s5 + $0x60] ss:$16 sps:$4 sm:$0xff]  }
  0xbd   :  { %1297 = vmatpush1.bf16.msra.mxu1 %v5593_v52  ;;  %1337 = vmatprep.subr.bf16.mxu0 %v5604_v55  ;;  %v6969_v52 = vld [vmem:[%s8398_s5 + $0x6c] ss:$16 sps:$4 sm:$0xff]   ;;  %v6988_v55 = vld [vmem:[%s8398_s5 + $0x44] ss:$16 sps:$4 sm:$0xff]  }
  0xbe   :  { %1298 = vmatprep.subr.bf16.mxu1 %v5601_v54  ;;  %v6981_v54 = vld [vmem:[%s8398_s5 + $0x68] ss:$16 sps:$4 sm:$0xff]  }
  0xc0   :  { %1338 = vmatpush1.bf16.msra.mxu0 %v5602_v57  ;;  %v7000_v57 = vld [vmem:[%s8398_s5 + $0x40] ss:$16 sps:$4 sm:$0xff]  }
  0xc1   :  { %1299 = vmatpush1.bf16.msra.mxu1 %v5599_v56  ;;  %1339 = vmatprep.subr.bf16.mxu0 %v5610_v59  ;;  %v6993_v56 = vld [vmem:[%s8398_s5 + $0x4c] ss:$16 sps:$4 sm:$0xff]   ;;  %v7012_v59 = vld [vmem:[%s8398_s5 + $0x24] ss:$16 sps:$4 sm:$0xff]  }
  0xc2   :  { %1300 = vmatprep.subr.bf16.mxu1 %v5607_v58  ;;  %v7005_v58 = vld [vmem:[%s8398_s5 + $0x48] ss:$16 sps:$4 sm:$0xff]  }
  0xc4   :  { %1340 = vmatpush1.bf16.msra.mxu0 %v5608_v61  ;;  %v7024_v61 = vld [vmem:[%s8398_s5 + $0x20] ss:$16 sps:$4 sm:$0xff]  }
  0xc5   :  { %1301 = vmatpush2.bf16.msra.mxu1 %v5605_v60  ;;  %1341 = vmatprep.subr.bf16.mxu0 %v5616_v63  ;;  %v7017_v60 = vld [vmem:[%s8398_s5 + $0x2c] ss:$16 sps:$4 sm:$0xff]   ;;  %v7036_v63 = vld [vmem:[%s8398_s5 + $0x4] ss:$16 sps:$4 sm:$0xff]  }
  0xc6   :  { %1302 = vmatprep.subr.bf16.mxu1 %v5613_v62  ;;  %v7029_v62 = vld [vmem:[%s8398_s5 + $0x28] ss:$16 sps:$4 sm:$0xff]  }
  0xc8   :  { %1342 = vmatpush1.bf16.msra.mxu0 %v5614_v2  ;;  %v7048_v2 = vld [vmem:[%s8398_s5] ss:$16 sps:$4 sm:$0xff]  }
  0xc9   :  { %1303 = vmatpush2.bf16.msra.mxu1 %v5611_v1  ;;  %1343 = vmatprep.subr.bf16.mxu0 %v5622_v4  ;;  %v7041_v1 = vld [vmem:[%s8398_s5 + $0xc] ss:$16 sps:$4 sm:$0xff]  }
  0xca   :  { %1304 = vmatprep.subr.bf16.mxu1 %v5619_v3  ;;  %v7053_v3 = vld [vmem:[%s8398_s5 + $0x8] ss:$16 sps:$4 sm:$0xff]  }
  0xcc   :  { %1344 = vmatpush2.bf16.msra.mxu0 %v5620_v6 }
  0xcd   :  { %1305 = vmatpush2.bf16.msra.mxu1 %v5617_v5  ;;  %1345 = vmatprep.subr.bf16.mxu0 %v5628_v8 }
  0xce   :  { %1306 = vmatprep.subr.bf16.mxu1 %v5625_v7 }
  0xd0   :  { %1346 = vmatpush2.bf16.msra.mxu0 %v5626_v10  ;;  %v1415_v10 = vlaneseq }
  0xd1   :  { %1307 = vmatpush2.bf16.msra.mxu1 %v5623_v9  ;;  %1347 = vmatprep.subr.bf16.mxu0 %v5634_v12 }
  0xd2   :  { %1308 = vmatprep.subr.bf16.mxu1 %v5631_v11 }
  0xd4   :  { %1348 = vmatpush2.bf16.msra.mxu0 %v5632_v14 }
  0xd5   :  { %1309 = vmatpush2.bf16.msra.mxu1 %v5629_v13  ;;  %1349 = vmatprep.subr.bf16.mxu0 %v5640_v16  ;;  %v7097_v13 = vshrl.u32 %v1415_v10, 7 }
  0xd6   :  { %1310 = vmatprep.subr.bf16.mxu1 %v5637_v15 }
  0xd8   :  { %1350 = vmatpush2.bf16.msra.mxu0 %v5638_v18 }
  0xd9   :  { %1311 = vmatpush2.bf16.msra.mxu1 %v5635_v17  ;;  %1351 = vmatprep.subr.bf16.mxu0 %v5646_v20 }
  0xda   :  { %1312 = vmatprep.subr.bf16.mxu1 %v5643_v19  ;;  %v8411_v19 = vsub.s32 0, %v7097_v13 }
  0xdc   :  { %1352 = vmatpush2.bf16.msra.mxu0 %v5644_v22 }
  0xdd   :  { %1313 = vmatpush2.bf16.msra.mxu1 %v5641_v21  ;;  %1353 = vmatprep.subr.bf16.mxu0 %v5652_v24  ;;  %v1413_v21 = vld [vmem:[#allocation10] sm:$0xf] }
  0xde   :  { %1314 = vmatprep.subr.bf16.mxu1 %v5649_v23  ;;  %v1421_v23 = vsub.s32 1, %v7097_v13 }
  0xe0   :  { %1354 = vmatpush2.bf16.msra.mxu0 %v5650_v28 }
  0xe1   :  { %1315 = vmatpush2.bf16.msra.mxu1 %v5647_v27  ;;  %1355 = vmatprep.subr.bf16.mxu0 %v5655_v29 }
  0xe2   :  { %1382 = vmatprep.subr.bf16.mxu1 %v5658_v30  ;;  %v1418_v30 = vrot.slane %v1413_v21, %v8411_v19 }
  0xe4   :  { %1317 = vmatmul.mubr.bf16.vlgmr.msra.gmra.mxu1 %v6631_v25  ;;  %1356 = vmatpush2.bf16.msra.mxu0 %v5653_v31  ;;  %v6875_v25 = vld [vmem:[%s8398_s5 + $0xe0] ss:$16 sps:$4 sm:$0xff]  }
  0xe5   :  { %1383 = vmatpush1.bf16.msra.mxu1 %v5656_v32  ;;  %1357 = vmatprep.subr.bf16.mxu0 %v5661_v33 }
  0xe6   :  { %1384 = vmatprep.subr.bf16.mxu1 %v5664_v34  ;;  %1402 = vmatprep.mubr.bf16.mxu1 %v8409_v0 }
  0xe8   :  { %1358 = vmatpush2.bf16.msra.mxu0 %v5659_v36  ;;  %v1422_v36 = vrot.slane %v1413_v21, %v1421_v23 }
  0xe9   :  { %1385 = vmatpush1.bf16.msra.mxu1 %v5662_v37  ;;  %1643 = vmatprep.subr.bf16.mxu0 %v6864_v38 }
  0xea   :  { %1684 = vmatprep.subr.bf16.mxu1 %v6869_v39 }
  0xeb   :  { %1360 = vmatmul.mubr.bf16.vlgmr.msra.gmra.mxu0 %v6636_v26  ;;  %v6914_v26 = vld [vmem:[%s8398_s5 + $0xa4] ss:$16 sps:$4 sm:$0xff]  }
  0xec   :  { %5264 = vmatmul.mubr.msk.bf16.vlgmr.msra.gmra.mxu1 %vm1151_vm2, %v6669_v35  ;;  %1644 = vmatpush1.bf16.msra.mxu0 %v6875_v25  ;;  %v6919_v35 = vld [vmem:[%s8398_s5 + $0xac] ss:$16 sps:$4 sm:$0xff]  }
  0xed   :  { %1685 = vmatpush1.bf16.msra.mxu1 %v6880_v40  ;;  %1645 = vmatprep.subr.bf16.mxu0 %v6885_v41 }
  0xee   :  { %1686 = vmatprep.subr.bf16.mxu1 %v6890_v42  ;;  %1675 = vmatprep.mubr.bf16.mxu0 %v8409_v0 }
  0xef   :  { %1716 = vmatprep.mubr.bf16.mxu1 %v8409_v0 }
  0xf0   :  { %1646 = vmatpush1.bf16.msra.mxu0 %v6902_v43 }
  0xf1   :  { %1687 = vmatpush1.bf16.msra.mxu1 %v6907_v44  ;;  %1647 = vmatprep.subr.bf16.mxu0 %v6914_v26 }
  0xf2   :  { %1688 = vmatprep.subr.bf16.mxu1 %v6919_v35 }
  0xf4   :  { %1648 = vmatpush1.bf16.msra.mxu0 %v6928_v45 }
  0xf5   :  { %1689 = vmatpush1.bf16.msra.mxu1 %v6933_v46  ;;  %1649 = vmatprep.subr.bf16.mxu0 %v6940_v47 }
  0xf6   :  { %1690 = vmatprep.subr.bf16.mxu1 %v6945_v48 }
  0xf8   :  { %1650 = vmatpush1.bf16.msra.mxu0 %v6952_v49 }
  0xf9   :  { %1691 = vmatpush1.bf16.msra.mxu1 %v6957_v50  ;;  %1651 = vmatprep.subr.bf16.mxu0 %v6964_v51 }
  0xfa   :  { %1692 = vmatprep.subr.bf16.mxu1 %v6969_v52 }
  0xfc   :  { %1652 = vmatpush1.bf16.msra.mxu0 %v6976_v53 }
  0xfd   :  { %1693 = vmatpush1.bf16.msra.mxu1 %v6981_v54  ;;  %1653 = vmatprep.subr.bf16.mxu0 %v6988_v55 }
  0xfe   :  { %1694 = vmatprep.subr.bf16.mxu1 %v6993_v56 }
 0x100   :  { %1654 = vmatpush1.bf16.msra.mxu0 %v7000_v57 }
 0x101   :  { %1695 = vmatpush1.bf16.msra.mxu1 %v7005_v58  ;;  %1655 = vmatprep.subr.bf16.mxu0 %v7012_v59 }
 0x102   :  { %1696 = vmatprep.subr.bf16.mxu1 %v7017_v60 }
 0x104   :  { %1656 = vmatpush1.bf16.msra.mxu0 %v7024_v61 }
 0x105   :  { %1697 = vmatpush1.bf16.msra.mxu1 %v7029_v62  ;;  %1657 = vmatprep.subr.bf16.mxu0 %v7036_v63 }
 0x106   :  { %1698 = vmatprep.subr.bf16.mxu1 %v7041_v1 }
 0x108   :  { %1658 = vmatpush1.bf16.msra.mxu0 %v7048_v2 }
 0x109   :  { %1699 = vmatpush1.bf16.msra.mxu1 %v7053_v3  ;;  %1800 = vmatprep.subr.bf16.mxu0 %v6864_v38 }
 0x10a   :  { %1841 = vmatprep.subr.bf16.mxu1 %v6869_v39 }
 0x10b   :  { %1676 = vmatmul.mubr.bf16.vlgmr.msra.gmra.mxu0 %v8409_v0 }
 0x10c   :  { %1717 = vmatmul.mubr.bf16.vlgmr.msra.gmra.mxu1 %v8409_v0  ;;  %1801 = vmatpush1.bf16.msra.mxu0 %v6875_v25 }
 0x10d   :  { %1842 = vmatpush1.bf16.msra.mxu1 %v6880_v40  ;;  %1802 = vmatprep.subr.bf16.mxu0 %v6885_v41 }
 0x10e   :  { %1843 = vmatprep.subr.bf16.mxu1 %v6890_v42  ;;  %1832 = vmatprep.mubr.bf16.mxu0 %v8409_v0 }
 0x10f   :  { %1873 = vmatprep.mubr.bf16.mxu1 %v8409_v0 }
 0x110   :  { %1803 = vmatpush1.bf16.msra.mxu0 %v6902_v43 }
 0x111   :  { %1844 = vmatpush1.bf16.msra.mxu1 %v6907_v44  ;;  %1804 = vmatprep.subr.bf16.mxu0 %v6914_v26 }
 0x112   :  { %1845 = vmatprep.subr.bf16.mxu1 %v6919_v35 }
 0x114   :  { %1805 = vmatpush1.bf16.msra.mxu0 %v6928_v45 }
 0x115   :  { %1846 = vmatpush1.bf16.msra.mxu1 %v6933_v46  ;;  %1806 = vmatprep.subr.bf16.mxu0 %v6940_v47 }
 0x116   :  { %1847 = vmatprep.subr.bf16.mxu1 %v6945_v48 }
 0x118   :  { %1807 = vmatpush1.bf16.msra.mxu0 %v6952_v49 }
 0x119   :  { %1848 = vmatpush1.bf16.msra.mxu1 %v6957_v50  ;;  %1808 = vmatprep.subr.bf16.mxu0 %v6964_v51 }
 0x11a   :  { %1849 = vmatprep.subr.bf16.mxu1 %v6969_v52 }
 0x11c   :  { %1809 = vmatpush1.bf16.msra.mxu0 %v6976_v53 }
 0x11d   :  { %1850 = vmatpush1.bf16.msra.mxu1 %v6981_v54  ;;  %1810 = vmatprep.subr.bf16.mxu0 %v6988_v55 }
 0x11e   :  { %1851 = vmatprep.subr.bf16.mxu1 %v6993_v56 }
 0x120   :  { %1811 = vmatpush1.bf16.msra.mxu0 %v7000_v57 }
 0x121   :  { %1852 = vmatpush1.bf16.msra.mxu1 %v7005_v58  ;;  %1812 = vmatprep.subr.bf16.mxu0 %v7012_v59 }
 0x122   :  { %1853 = vmatprep.subr.bf16.mxu1 %v7017_v60 }
 0x123   :  { %v394_v5 = vpop.f32.mrf.mxu0 }
 0x124   :  { %1813 = vmatpush1.bf16.msra.mxu0 %v7024_v61  ;;  %v437_v4 = vpop.f32.mrf.mxu1 }
 0x125   :  { %1854 = vmatpush1.bf16.msra.mxu1 %v7029_v62  ;;  %1814 = vmatprep.subr.bf16.mxu0 %v7036_v63  ;;  %v396_v7 = vpop.f32.mrf.mxu0 }
 0x126   :  { %1855 = vmatprep.subr.bf16.mxu1 %v7041_v1  ;;  %v439_v6 = vpop.f32.mrf.mxu1 }
 0x127   :  { %v398_v9 = vpop.f32.mrf.mxu0 }
 0x128   :  { %1815 = vmatpush1.bf16.msra.mxu0 %v7048_v2  ;;  %v441_v8 = vpop.f32.mrf.mxu1 }
 0x129   :  { %1856 = vmatpush1.bf16.msra.mxu1 %v7053_v3  ;;  %1972 = vmatprep.subr.bf16.mxu0 %v6864_v38  ;;  %v400_v12 = vpop.f32.mrf.mxu0 }
 0x12a   :  { %2013 = vmatprep.subr.bf16.mxu1 %v6869_v39  ;;  %v443_v11 = vpop.f32.mrf.mxu1 }
 0x163   :  { %v1189_v14 = vpop.f32.mrf.mxu0 }
 0x164   :  { %v1232_v15 = vpop.f32.mrf.mxu1  ;;  %v1190_v18 = vadd.f32 %v1189_v14, %v394_v5 }
 0x165   :  { %v1191_v16 = vpop.f32.mrf.mxu0 }
 0x166   :  { %v1234_v17 = vpop.f32.mrf.mxu1  ;;  %v1192_v22 = vadd.f32 %v1191_v16, %v396_v7  ;;  %v1233_v28 = vadd.f32 %v1232_v15, %v1190_v18 }
 0x167   :  { %v1193_v20 = vpop.f32.mrf.mxu0 }
 0x168   :  { %v1236_v27 = vpop.f32.mrf.mxu1  ;;  %v1194_v29 = vadd.f32 %v1193_v20, %v398_v9  ;;  %v1235_v32 = vadd.f32 %v1234_v17, %v1192_v22 }
 0x169   :  { %v1195_v24 = vpop.f32.mrf.mxu0 }
 0x16a   :  { %v1196_v33 = vadd.f32 %v1195_v24, %v400_v12  ;;  %v1238_v37 = vpop.f32.mrf.mxu1  ;;  %v1237_v10 = vadd.f32 %v1236_v27, %v1194_v29 }
 0x16b   :  { %v1275_v31 = vpop.f32.mrf.mxu0 }
 0x16c   :  { %v1276_v34 = vadd.f32 %v1275_v31, %v1233_v28  ;;  %v1239_v0 = vadd.f32 %v1238_v37, %v1196_v33  ;;  %v1425_v28 = vsub.s32 2, %v7097_v13  ;;  %v1429_v31 = vsub.s32 3, %v7097_v13 }
 0x16d   :  { %v1277_v5 = vpop.f32.mrf.mxu0 }
 0x16e   :  { %v1435_v7 = vadd.f32 %v1418_v30, %v1276_v34  ;;  %v1278_v14 = vadd.f32 %v1277_v5, %v1235_v32 }
 0x16f   :  { %v1279_v16 = vpop.f32.mrf.mxu0 }
 0x170   :  { %1443 = vst [vmem:[#allocation2 + $0x30] sm:$0xff] %v1435_v7  ;;  %v1436_v15 = vadd.f32 %v1422_v36, %v1278_v14  ;;  %v1280_v9 = vadd.f32 %v1279_v16, %v1237_v10  ;;  %v1430_v7 = vrot.slane %v1413_v21, %v1429_v31 }
 0x171   :  { %v1281_v18 = vpop.f32.mrf.mxu0 }
 0x172   :  { %1444 = vst [vmem:[#allocation2] sm:$0xff] %v1436_v15  ;;  %v1439_v20 = vadd.f32 %v1418_v30, %v1280_v9  ;;  %v1282_v19 = vadd.f32 %v1281_v18, %v1239_v0  ;;  %v1426_v30 = vrot.slane %v1413_v21, %v1425_v28 }
 0x174   :  { %1447 = vst [vmem:[#allocation2 + $0x8] sm:$0xff] %v1439_v20  ;;  %v1440_v12 = vadd.f32 %v1422_v36, %v1282_v19 }
 0x176   :  { %1448 = vst [vmem:[#allocation2 + $0x20] sm:$0xff] %v1440_v12 }
 0x177   :  { %v1725_v21 = vld [vmem:[#allocation2 + $0x30] sm:$0x3] }
 0x1a4   :  { %v1318_v17 = vpop.f32.mrf.mxu1 }
 0x1a5   :  { %v1319_v29 = vadd.f32 %v1318_v17, %v437_v4 }
 0x1a6   :  { %v1320_v22 = vpop.f32.mrf.mxu1 }
 0x1a7   :  { %v1321_v34 = vadd.f32 %v1320_v22, %v439_v6 }
 0x1a8   :  { %v1322_v24 = vpop.f32.mrf.mxu1 }
 0x1a9   :  { %v1323_v19 = vadd.f32 %v1322_v24, %v441_v8 }
 0x1aa   :  { %v1324_v27 = vpop.f32.mrf.mxu1 }
 0x1ab   :  { %v1361_v32 = vpop.f32.mrf.mxu0  ;;  %v1325_v4 = vadd.f32 %v1324_v27, %v443_v11 }
 0x1ac   :  { %v1404_v33 = vpop.f32.mrf.mxu1  ;;  %v1362_v37 = vadd.f32 %v1361_v32, %v1319_v29 }
 0x1ad   :  { %v1363_v0 = vpop.f32.mrf.mxu0 }
 0x1ae   :  { %v1406_v5 = vpop.f32.mrf.mxu1  ;;  %v1364_v36 = vadd.f32 %v1363_v0, %v1321_v34  ;;  %v1405_v10 = vadd.f32 %v1404_v33, %v1362_v37 }
 0x1af   :  { %v1365_v14 = vpop.f32.mrf.mxu0 }
 0x1b0   :  { %v1408_v16 = vpop.f32.mrf.mxu1  ;;  %v1437_v15 = vadd.f32 %v1426_v30, %v1405_v10  ;;  %v1366_v9 = vadd.f32 %v1365_v14, %v1323_v19  ;;  %v1407_v18 = vadd.f32 %v1406_v5, %v1364_v36  ;;  %v1726_v36 = vld [vmem:[#allocation2] sm:$0x3] }
 0x1b1   :  { %v1367_v20 = vpop.f32.mrf.mxu0 }
 0x1b2   :  { %v1410_v6 = vpop.f32.mrf.mxu1  ;;  %1445 = vst [vmem:[#allocation2 + $0x18] sm:$0xff] %v1437_v15  ;;  %v1438_v12 = vadd.f32 %v1430_v7, %v1407_v18  ;;  %v1368_v17 = vadd.f32 %v1367_v20, %v1325_v4  ;;  %v1409_v22 = vadd.f32 %v1408_v16, %v1366_v9 }
 0x1b4   :  { %1446 = vst [vmem:[#allocation2 + $0x10] sm:$0xff] %v1438_v12  ;;  %v1441_v29 = vadd.f32 %v1426_v30, %v1409_v22  ;;  %v1411_v8 = vadd.f32 %v1410_v6, %v1368_v17 }
 0x1b6   :  { %1449 = vst [vmem:[#allocation2 + $0x28] sm:$0xff] %v1441_v29  ;;  %v1442_v24 = vadd.f32 %v1430_v7, %v1411_v8 }
 0x1b8   :  { %1450 = vst [vmem:[#allocation2 + $0x38] sm:$0xff] %v1442_v24 }
 0x1bd   :  { %v1727_v27 = vld [vmem:[#allocation2 + $0x28] sm:$0xc0] }
 0x1bf   :  { %v1728_v9 = vld [vmem:[#allocation2 + $0x38] sm:$0xc0] }
 0x1cb   :  { %v1677_v32 = vpop.f32.mrf.mxu0 }
 0x1cc   :  { %v1718_v33 = vpop.f32.mrf.mxu1  ;;  %v1729_v34 = vadd.f32 %v1725_v21, %v1677_v32 }
 0x1cd   :  { %v1751_v11 = vrot.slane %v1718_v33, 2  ;;  %v1679_v37 = vpop.f32.mrf.mxu0 }
 0x1ce   :  { %v1720_v0 = vpop.f32.mrf.mxu1  ;;  %v1731_v5 = vmul.f32 0.5, %v1729_v34  ;;  %v1730_v30 = vadd.f32 %v1726_v36, %v1679_v37 }
 0x1cf   :  { %v1755_v19 = vadd.f32 %v1751_v11, %v1727_v27  ;;  %v1681_v10 = vpop.f32.mrf.mxu0  ;;  %v1752_v4 = vrot.slane %v1720_v0, 2 }
 0x1d0   :  { %v1722_v14 = vpop.f32.mrf.mxu1  ;;  %5819 = vtanh.f32 %v1731_v5  ;;  %v1736_v33 = vmul.f32 0.5, %v1730_v30 }
 0x1d1   :  { %v1757_v16 = vmul.f32 0.5, %v1755_v19  ;;  %v1682_v15 = vpop.f32.mrf.mxu0  ;;  %v1756_v18 = vadd.f32 %v1752_v4, %v1728_v9 }
 0x1d2   :  { %v1723_v7 = vpop.f32.mrf.mxu1 }
 0x1d3   :  { %5821 = vtanh.f32 %v1757_v16  ;;  %v1762_v34 = vmul.f32 0.5, %v1756_v18 }
 0x1d4   :  { %5823 = vtanh.f32 %v1730_v30 }
 0x1d5   :  { %5825 = vtanh.f32 %v1756_v18 }
 0x1d6   :  { %5827 = vtanh.f32 %v1736_v33 }
 0x1d7   :  { %5829 = vtanh.f32 %v1762_v34 }
 0x1dd   :  { %v5820_v20 = vpop.eup %5819 }
 0x1de   :  { %v1733_v6 = vmul.f32 0.5, %v5820_v20 }
 0x1e0   :  { %v5822_v12 = vpop.eup %5821  ;;  %v1734_v17 = vadd.f32 0.5, %v1733_v6 }
 0x1e1   :  { %v1759_v22 = vmul.f32 0.5, %v5822_v12  ;;  %v5824_v29 = vpop.eup %5823 }
 0x1e2   :  { %v1741_v8 = vmul.f32 %v5824_v29, %v1734_v17  ;;  %v5826_v32 = vpop.eup %5825  ;;  %v1740_v11 = vmul.f32 0.0, %v1734_v17 }
 0x1e3   :  { %v1760_v24 = vadd.f32 0.5, %v1759_v22  ;;  %v5828_v36 = vpop.eup %5827 }
 0x1e4   :  { %1743 = vrot.lane.b32.xlu0 %v1741_v8, %s6297_s18  ;;  %v1738_v10 = vmul.f32 0.5, %v5828_v36  ;;  %v5830_v14 = vpop.eup %5829 }
 0x1e5   :  { %v1767_v21 = vmul.f32 %v5826_v32, %v1760_v24  ;;  %v1766_v0 = vmul.f32 0.0, %v1760_v24  ;;  %v1764_v16 = vmul.f32 0.5, %v5830_v14  ;;  %v8412_v32 = vmov 0  }
 0x1e6   :  { %v1739_v4 = vadd.f32 0.5, %v1738_v10 }
 0x1e7   :  { %v1765_v9 = vadd.f32 0.5, %v1764_v16 }
 0x1e8   :  { %1769 = vrot.lane.b32.xlu0 %v1767_v21, %s6297_s18 }
 0x256   :  { %v1744_v27 = vpop.permute.xlu0 %1743 }
 0x257   :  { %v1746_v37 = vadd.f32 %v1744_v27, %v1740_v11  ;;  %v1882_v27 = vld [vmem:[#allocation2 + $0x30] sm:$0xc] }
 0x259   :  { %5831 = vtanh.f32 %v1746_v37 }
 0x25a   :  { %v1770_v5 = vpop.permute.xlu0 %1769 }
 0x25b   :  { %v1772_v19 = vadd.f32 %v1770_v5, %v1766_v0 }
 0x25d   :  { %5833 = vtanh.f32 %v1772_v19  ;;  %v1796_v22 = vrot.slane %v1772_v19, 6 }
 0x266   :  { %v5832_v15 = vpop.eup %5831 }
 0x267   :  { %v1748_v7 = vmul.f32 %v5832_v15, %v1739_v4 }
 0x269   :  { %1776 = vrot.lane.b32.xlu1 %v1748_v7, %s6297_s18 }
 0x26a   :  { %v5834_v30 = vpop.eup %5833 }
 0x26b   :  { %v7114_v18 = vmul.f32 %v5834_v30, %v1765_v9  ;;  %v1883_v9 = vld [vmem:[#allocation2] sm:$0xc] }
 0x26d   :  { %1792 = vrot.lane.b32.xlu1 %v1746_v37, %s6297_s18  ;;  %v1787_v20 = vrot.slane %v7114_v18, 6  ;;  %v1884_v37 = vld [vmem:[#allocation2 + $0x28] sm:$0x30] }
 0x2db   :  { %v1777_v6 = vpop.permute.xlu1 %1776 }
 0x2dc   :  { %1780 = vst.msk [vmem:[#allocation3] sm:$0x3] %vm1779_vm3, %v1777_v6  ;;  %v1790_v12 = vsel %vm1789_vm4, %v1777_v6, %v1787_v20 }
 0x2dd   :  { %v1799_v17 = vpack.c.bf16 %v1790_v12, %v1790_v12  ;;  %v1885_v12 = vld [vmem:[#allocation2 + $0x38] sm:$0x30] }
 0x2df   :  { %1833 = vmatmul.mubr.bf16.vlgmr.msra.gmra.mxu0 %v1799_v17  ;;  %1874 = vmatmul.mubr.bf16.vlgmr.msra.gmra.mxu1 %v1799_v17  ;;  %v1793_v29 = vpop.permute.xlu1 %1792 }
 0x2e0   :  { %v7121_v8 = vsel %vm1789_vm4, %v1793_v29, %v1796_v22  ;;  %1973 = vmatpush1.bf16.msra.mxu0 %v6875_v25  ;;  %2014 = vmatpush1.bf16.msra.mxu1 %v6880_v40 }
 0x2e1   :  { %v1904_v24 = vrot.slane %v7121_v8, 6  ;;  %1974 = vmatprep.subr.bf16.mxu0 %v6885_v41  ;;  %2015 = vmatprep.subr.bf16.mxu1 %v6890_v42 }
 0x2e2   :  { %2004 = vmatprep.mubr.bf16.mxu0 %v8412_v32  ;;  %2045 = vmatprep.mubr.bf16.mxu1 %v8412_v32 }
 0x2e3   :  { %1905 = vrot.lane.b32.xlu0 %v1904_v24, %s6297_s18 }
 0x2e4   :  { %1975 = vmatpush1.bf16.msra.mxu0 %v6902_v43  ;;  %2016 = vmatpush1.bf16.msra.mxu1 %v6907_v44 }
 0x2e5   :  { %1976 = vmatprep.subr.bf16.mxu0 %v6914_v26  ;;  %2017 = vmatprep.subr.bf16.mxu1 %v6919_v35 }
 0x2e8   :  { %1977 = vmatpush1.bf16.msra.mxu0 %v6928_v45  ;;  %2018 = vmatpush1.bf16.msra.mxu1 %v6933_v46 }
 0x2e9   :  { %1978 = vmatprep.subr.bf16.mxu0 %v6940_v47  ;;  %2019 = vmatprep.subr.bf16.mxu1 %v6945_v48 }
 0x2ec   :  { %1979 = vmatpush1.bf16.msra.mxu0 %v6952_v49  ;;  %2020 = vmatpush1.bf16.msra.mxu1 %v6957_v50 }
 0x2ed   :  { %1980 = vmatprep.subr.bf16.mxu0 %v6964_v51  ;;  %2021 = vmatprep.subr.bf16.mxu1 %v6969_v52 }
 0x2f0   :  { %1981 = vmatpush1.bf16.msra.mxu0 %v6976_v53  ;;  %2022 = vmatpush1.bf16.msra.mxu1 %v6981_v54 }
 0x2f1   :  { %1982 = vmatprep.subr.bf16.mxu0 %v6988_v55  ;;  %2023 = vmatprep.subr.bf16.mxu1 %v6993_v56 }
 0x2f4   :  { %1983 = vmatpush1.bf16.msra.mxu0 %v7000_v57  ;;  %2024 = vmatpush1.bf16.msra.mxu1 %v7005_v58 }
 0x2f5   :  { %1984 = vmatprep.subr.bf16.mxu0 %v7012_v59  ;;  %2025 = vmatprep.subr.bf16.mxu1 %v7017_v60 }
 0x2f8   :  { %1985 = vmatpush1.bf16.msra.mxu0 %v7024_v61  ;;  %2026 = vmatpush1.bf16.msra.mxu1 %v7029_v62 }
 0x2f9   :  { %1986 = vmatprep.subr.bf16.mxu0 %v7036_v63  ;;  %2027 = vmatprep.subr.bf16.mxu1 %v7041_v1 }
 0x2fc   :  { %1987 = vmatpush1.bf16.msra.mxu0 %v7048_v2  ;;  %2028 = vmatpush1.bf16.msra.mxu1 %v7053_v3 }
 0x2fd   :  { %2140 = vmatprep.subr.bf16.mxu0 %v6864_v38  ;;  %2181 = vmatprep.subr.bf16.mxu1 %v6869_v39 }
 0x39f   :  { %v1834_v21 = vpop.f32.mrf.mxu0  ;;  %v1875_v33 = vpop.f32.mrf.mxu1 }
 0x3a0   :  { %v1888_v34 = vrot.slane %v1834_v21, 6  ;;  %v1919_v11 = vrot.slane %v1875_v33, 4 }
 0x3a1   :  { %v1836_v0 = vpop.f32.mrf.mxu0  ;;  %v1877_v5 = vpop.f32.mrf.mxu1 }
 0x3a2   :  { %v1892_v19 = vadd.f32 %v1888_v34, %v1882_v27  ;;  %v1923_v36 = vadd.f32 %v1919_v11, %v1884_v37  ;;  %v1889_v10 = vrot.slane %v1836_v0, 6  ;;  %v1920_v14 = vrot.slane %v1877_v5, 4 }
 0x3a3   :  { %v1838_v16 = vpop.f32.mrf.mxu0  ;;  %v1879_v4 = vpop.f32.mrf.mxu1  ;;  %v1934_v11 = vrot.slane %v7121_v8, 4 }
 0x3a4   :  { %v1894_v15 = vmul.f32 0.5, %v1892_v19  ;;  %v1925_v7 = vmul.f32 0.5, %v1923_v36  ;;  %v1893_v6 = vadd.f32 %v1889_v10, %v1883_v9  ;;  %v1924_v17 = vadd.f32 %v1920_v14, %v1885_v12  ;;  %v1906_v14 = vpop.permute.xlu0 %1905 }
 0x3a5   :  { %v1839_v30 = vpop.f32.mrf.mxu0  ;;  %v1880_v20 = vpop.f32.mrf.mxu1 }
 0x3a6   :  { %5835 = vtanh.f32 %v1894_v15  ;;  %v1899_v36 = vmul.f32 0.5, %v1893_v6  ;;  %v1930_v10 = vmul.f32 0.5, %v1924_v17 }
 0x3a7   :  { %5837 = vtanh.f32 %v1925_v7 }
 0x3a8   :  { %5839 = vtanh.f32 %v1893_v6 }
 0x3a9   :  { %5841 = vtanh.f32 %v1924_v17 }
 0x3aa   :  { %5843 = vtanh.f32 %v1899_v36 }
 0x3ab   :  { %5845 = vtanh.f32 %v1930_v10 }
 0x3b3   :  { %v5836_v22 = vpop.eup %5835 }
 0x3b4   :  { %v5838_v29 = vpop.eup %5837  ;;  %v1896_v24 = vmul.f32 0.5, %v5836_v22 }
 0x3b5   :  { %v1927_v21 = vmul.f32 0.5, %v5838_v29  ;;  %v5840_v34 = vpop.eup %5839 }
 0x3b6   :  { %v1897_v33 = vadd.f32 0.5, %v1896_v24  ;;  %v5842_v37 = vpop.eup %5841 }
 0x3b7   :  { %v1928_v27 = vadd.f32 0.5, %v1927_v21  ;;  %v5844_v8 = vpop.eup %5843 }
 0x3b8   :  { %v1909_v0 = vmul.f32 %v5840_v34, %v1897_v33  ;;  %v1908_v16 = vmul.f32 %v1906_v14, %v1897_v33  ;;  %v5846_v30 = vpop.eup %5845  ;;  %v1901_v20 = vmul.f32 0.5, %v5844_v8 }
 0x3b9   :  { %v1937_v5 = vmul.f32 %v5842_v37, %v1928_v27  ;;  %v1936_v19 = vmul.f32 %v1934_v11, %v1928_v27  ;;  %v1932_v12 = vmul.f32 0.5, %v5846_v30 }
 0x3ba   :  { %1911 = vrot.lane.b32.xlu1 %v1909_v0, %s6297_s18  ;;  %v1902_v22 = vadd.f32 0.5, %v1901_v20 }
 0x3bb   :  { %1939 = vrot.lane.b32.xlu0 %v1937_v5, %s6297_s18  ;;  %v1933_v6 = vadd.f32 0.5, %v1932_v12 }
 0x42c   :  { %v1912_v4 = vpop.permute.xlu1 %1911 }
 0x42d   :  { %v1940_v15 = vpop.permute.xlu0 %1939  ;;  %v1914_v7 = vadd.f32 %v1912_v4, %v1908_v16 }
 0x42e   :  { %v1942_v9 = vadd.f32 %v1940_v15, %v1936_v19  ;;  %v2054_v15 = vld [vmem:[#allocation2 + $0x30] sm:$0x30] }
 0x42f   :  { %5847 = vtanh.f32 %v1914_v7  ;;  %1961 = vrot.lane.b32.xlu0 %v1914_v7, %s6297_s18  ;;  %v2056_v7 = vld [vmem:[#allocation2 + $0x28] sm:$0xc] }
 0x430   :  { %5849 = vtanh.f32 %v1942_v9  ;;  %v1965_v33 = vrot.slane %v1942_v9, 2 }
 0x43c   :  { %v5848_v29 = vpop.eup %5847 }
 0x43d   :  { %v5850_v17 = vpop.eup %5849  ;;  %v1916_v24 = vmul.f32 %v5848_v29, %v1902_v22 }
 0x43e   :  { %v7163_v21 = vmul.f32 %v5850_v17, %v1933_v6 }
 0x43f   :  { %1946 = vrot.lane.b32.xlu1 %v1916_v24, %s6297_s18 }
 0x440   :  { %v1957_v37 = vrot.slane %v7163_v21, 2 }
 0x4a1   :  { %v1962_v34 = vpop.permute.xlu0 %1961 }
 0x4a2   :  { %v7167_v11 = vsel %vm1789_vm4, %v1962_v34, %v1965_v33  ;;  %v2055_v33 = vld [vmem:[#allocation2] sm:$0x30] }
 0x4a3   :  { %v2076_v27 = vrot.slane %v7167_v11, 6 }
 0x4a5   :  { %2077 = vrot.lane.b32.xlu1 %v2076_v27, %s6297_s18  ;;  %v2057_v27 = vld [vmem:[#allocation2 + $0x38] sm:$0xc] }
 0x4b1   :  { %v1947_v0 = vpop.permute.xlu1 %1946 }
 0x4b2   :  { %1950 = vst.msk [vmem:[#allocation3] sm:$0xc] %vm1949_vm5, %v1947_v0  ;;  %v1959_v5 = vsel %vm1789_vm4, %v1947_v0, %v1957_v37 }
 0x4b3   :  { %v1968_v19 = vpack.c.bf16 %v1959_v5, %v1959_v5 }
 0x4b5   :  { %v1970_v36 = vrot.slane %v1968_v19, 1 }
 0x4b7   :  { %2005 = vmatmul.mubr.bf16.vlgmr.msra.gmra.mxu0 %v1970_v36  ;;  %2046 = vmatmul.mubr.bf16.vlgmr.msra.gmra.mxu1 %v1970_v36 }
 0x4b8   :  { %2141 = vmatpush1.bf16.msra.mxu0 %v6875_v25  ;;  %2182 = vmatpush1.bf16.msra.mxu1 %v6880_v40 }
 0x4b9   :  { %2142 = vmatprep.subr.bf16.mxu0 %v6885_v41  ;;  %2183 = vmatprep.subr.bf16.mxu1 %v6890_v42 }
 0x4ba   :  { %2172 = vmatprep.mubr.bf16.mxu0 %v8412_v32  ;;  %2213 = vmatprep.mubr.bf16.mxu1 %v8412_v32 }
 0x4bc   :  { %2143 = vmatpush1.bf16.msra.mxu0 %v6902_v43  ;;  %2184 = vmatpush1.bf16.msra.mxu1 %v6907_v44 }
 0x4bd   :  { %2144 = vmatprep.subr.bf16.mxu0 %v6914_v26  ;;  %2185 = vmatprep.subr.bf16.mxu1 %v6919_v35 }
 0x4c0   :  { %2145 = vmatpush1.bf16.msra.mxu0 %v6928_v45  ;;  %2186 = vmatpush1.bf16.msra.mxu1 %v6933_v46 }
 0x4c1   :  { %2146 = vmatprep.subr.bf16.mxu0 %v6940_v47  ;;  %2187 = vmatprep.subr.bf16.mxu1 %v6945_v48 }
 0x4c4   :  { %2147 = vmatpush1.bf16.msra.mxu0 %v6952_v49  ;;  %2188 = vmatpush1.bf16.msra.mxu1 %v6957_v50 }
 0x4c5   :  { %2148 = vmatprep.subr.bf16.mxu0 %v6964_v51  ;;  %2189 = vmatprep.subr.bf16.mxu1 %v6969_v52 }
 0x4c8   :  { %2149 = vmatpush1.bf16.msra.mxu0 %v6976_v53  ;;  %2190 = vmatpush1.bf16.msra.mxu1 %v6981_v54 }
 0x4c9   :  { %2150 = vmatprep.subr.bf16.mxu0 %v6988_v55  ;;  %2191 = vmatprep.subr.bf16.mxu1 %v6993_v56 }
 0x4cc   :  { %2151 = vmatpush1.bf16.msra.mxu0 %v7000_v57  ;;  %2192 = vmatpush1.bf16.msra.mxu1 %v7005_v58 }
 0x4cd   :  { %2152 = vmatprep.subr.bf16.mxu0 %v7012_v59  ;;  %2193 = vmatprep.subr.bf16.mxu1 %v7017_v60 }
 0x4d0   :  { %2153 = vmatpush1.bf16.msra.mxu0 %v7024_v61  ;;  %2194 = vmatpush1.bf16.msra.mxu1 %v7029_v62 }
 0x4d1   :  { %2154 = vmatprep.subr.bf16.mxu0 %v7036_v63  ;;  %2195 = vmatprep.subr.bf16.mxu1 %v7041_v1 }
 0x4d4   :  { %2155 = vmatpush1.bf16.msra.mxu0 %v7048_v2  ;;  %2196 = vmatpush1.bf16.msra.mxu1 %v7053_v3 }
 0x4d5   :  { %2304 = vmatprep.subr.bf16.mxu0 %v6864_v38  ;;  %2345 = vmatprep.subr.bf16.mxu1 %v6869_v39 }
 0x577   :  { %v2006_v10 = vpop.f32.mrf.mxu0  ;;  %v2047_v14 = vpop.f32.mrf.mxu1 }
 0x578   :  { %v2060_v16 = vrot.slane %v2006_v10, 4  ;;  %v2091_v4 = vrot.slane %v2047_v14, 6 }
 0x579   :  { %v2008_v9 = vpop.f32.mrf.mxu0  ;;  %v2049_v8 = vpop.f32.mrf.mxu1 }
 0x57a   :  { %v2064_v30 = vadd.f32 %v2060_v16, %v2054_v15  ;;  %v2095_v20 = vadd.f32 %v2091_v4, %v2056_v7  ;;  %v2061_v12 = vrot.slane %v2008_v9, 4  ;;  %v2092_v22 = vrot.slane %v2049_v8, 6 }
 0x57b   :  { %v2010_v29 = vpop.f32.mrf.mxu0  ;;  %v2051_v6 = vpop.f32.mrf.mxu1 }
 0x57c   :  { %v2066_v17 = vmul.f32 0.5, %v2064_v30  ;;  %v2097_v24 = vmul.f32 0.5, %v2095_v20  ;;  %v2065_v39 = vadd.f32 %v2061_v12, %v2055_v33  ;;  %v2096_v37 = vadd.f32 %v2092_v22, %v2057_v27  ;;  %v2078_v30 = vpop.permute.xlu1 %2077 }
 0x57d   :  { %v2011_v38 = vpop.f32.mrf.mxu0  ;;  %v2052_v34 = vpop.f32.mrf.mxu1 }
 0x57e   :  { %5851 = vtanh.f32 %v2066_v17  ;;  %v2071_v9 = vmul.f32 0.5, %v2065_v39  ;;  %v2102_v8 = vmul.f32 0.5, %v2096_v37 }
 0x57f   :  { %5853 = vtanh.f32 %v2097_v24 }
 0x580   :  { %5855 = vtanh.f32 %v2065_v39 }
 0x581   :  { %5857 = vtanh.f32 %v2096_v37 }
 0x582   :  { %5859 = vtanh.f32 %v2071_v9 }
 0x583   :  { %5861 = vtanh.f32 %v2102_v8 }
 0x58b   :  { %v5852_v0 = vpop.eup %5851 }
 0x58c   :  { %v5854_v5 = vpop.eup %5853  ;;  %v2068_v19 = vmul.f32 0.5, %v5852_v0 }
 0x58d   :  { %v2099_v36 = vmul.f32 0.5, %v5854_v5  ;;  %v5856_v14 = vpop.eup %5855 }
 0x58e   :  { %v2069_v10 = vadd.f32 0.5, %v2068_v19  ;;  %v5858_v4 = vpop.eup %5857 }
 0x58f   :  { %v2100_v16 = vadd.f32 0.5, %v2099_v36  ;;  %v5860_v24 = vpop.eup %5859 }
 0x590   :  { %v2081_v15 = vmul.f32 %v5856_v14, %v2069_v10  ;;  %v2080_v20 = vmul.f32 %v2078_v30, %v2069_v10  ;;  %v5862_v33 = vpop.eup %5861  ;;  %v2073_v38 = vmul.f32 0.5, %v5860_v24 }
 0x591   :  { %v2107_v7 = vmul.f32 %v5858_v4, %v2100_v16  ;;  %v2106_v22 = vmul.f32 %v2100_v16, %v7167_v11  ;;  %v2104_v34 = vmul.f32 0.5, %v5862_v33 }
 0x592   :  { %2083 = vrot.lane.b32.xlu0 %v2081_v15, %s6297_s18  ;;  %v2074_v39 = vadd.f32 0.5, %v2073_v38 }
 0x593   :  { %2109 = vrot.lane.b32.xlu1 %v2107_v7, %s6297_s18  ;;  %v2105_v37 = vadd.f32 0.5, %v2104_v34 }
 0x604   :  { %v2084_v12 = vpop.permute.xlu0 %2083 }
 0x605   :  { %v2086_v29 = vadd.f32 %v2084_v12, %v2080_v20  ;;  %v2110_v6 = vpop.permute.xlu1 %2109 }
 0x606   :  { %v2112_v17 = vadd.f32 %v2110_v6, %v2106_v22 }
 0x607   :  { %5863 = vtanh.f32 %v2086_v29  ;;  %2129 = vrot.lane.b32.xlu1 %v2086_v29, %s6297_s18 }
 0x608   :  { %5865 = vtanh.f32 %v2112_v17  ;;  %v2133_v11 = vrot.slane %v2112_v17, 6 }
 0x614   :  { %v5864_v27 = vpop.eup %5863 }
 0x615   :  { %v5866_v0 = vpop.eup %5865  ;;  %v2088_v5 = vmul.f32 %v5864_v27, %v2074_v39 }
 0x616   :  { %v7212_v19 = vmul.f32 %v5866_v0, %v2105_v37 }
 0x617   :  { %2116 = vrot.lane.b32.xlu0 %v2088_v5, %s6297_s18 }
 0x618   :  { %v2125_v16 = vrot.slane %v7212_v19, 6 }
 0x679   :  { %v2130_v36 = vpop.permute.xlu1 %2129 }
 0x67a   :  { %v7216_v10 = vsel %vm1789_vm4, %v2130_v36, %v2133_v11 }
 0x67b   :  { %v2244_v14 = vrot.slane %v7216_v10, 6 }
 0x67d   :  { %2245 = vrot.lane.b32.xlu0 %v2244_v14, %s6297_s18 }
 0x689   :  { %v2117_v4 = vpop.permute.xlu0 %2116 }
 0x68a   :  { %2119 = vst.msk [vmem:[#allocation3] sm:$0x30] %vm1955_vm6, %v2117_v4  ;;  %v2127_v15 = vsel %vm1789_vm4, %v2117_v4, %v2125_v16 }
 0x68b   :  { %v2136_v7 = vpack.c.bf16 %v2127_v15, %v2127_v15 }
 0x68d   :  { %v2138_v9 = vrot.slane %v2136_v7, 2 }
 0x68f   :  { %2173 = vmatmul.mubr.bf16.vlgmr.msra.gmra.mxu0 %v2138_v9  ;;  %2214 = vmatmul.mubr.bf16.vlgmr.msra.gmra.mxu1 %v2138_v9 }
 0x690   :  { %2305 = vmatpush1.bf16.msra.mxu0 %v6875_v25  ;;  %2346 = vmatpush1.bf16.msra.mxu1 %v6880_v40  ;;  %v7258_v25 = vld [vmem:[%s8398_s5 + $0xe4] ss:$16 sps:$4 sm:$0xff]   ;;  %v7264_v40 = vld [vmem:[%s8398_s5 + $0xec] ss:$16 sps:$4 sm:$0xff]  }
 0x691   :  { %2306 = vmatprep.subr.bf16.mxu0 %v6885_v41  ;;  %2347 = vmatprep.subr.bf16.mxu1 %v6890_v42 }
 0x692   :  { %2336 = vmatprep.mubr.bf16.mxu0 %v8412_v32  ;;  %2377 = vmatprep.mubr.bf16.mxu1 %v8412_v32 }
 0x694   :  { %2307 = vmatpush1.bf16.msra.mxu0 %v6902_v43  ;;  %2348 = vmatpush1.bf16.msra.mxu1 %v6907_v44  ;;  %v2224_v43 = vld [vmem:[#allocation2 + $0x28] sm:$0x3] }
 0x695   :  { %2308 = vmatprep.subr.bf16.mxu0 %v6914_v26  ;;  %2349 = vmatprep.subr.bf16.mxu1 %v6919_v35  ;;  %v2222_v35 = vld [vmem:[#allocation2 + $0x30] sm:$0xc0] }
 0x698   :  { %2309 = vmatpush1.bf16.msra.mxu0 %v6928_v45  ;;  %2350 = vmatpush1.bf16.msra.mxu1 %v6933_v46 }
 0x699   :  { %2310 = vmatprep.subr.bf16.mxu0 %v6940_v47  ;;  %2351 = vmatprep.subr.bf16.mxu1 %v6945_v48 }
 0x69c   :  { %2311 = vmatpush1.bf16.msra.mxu0 %v6952_v49  ;;  %2352 = vmatpush1.bf16.msra.mxu1 %v6957_v50  ;;  %v2225_v50 = vld [vmem:[#allocation2 + $0x38] sm:$0x3] }
 0x69d   :  { %2312 = vmatprep.subr.bf16.mxu0 %v6964_v51  ;;  %2353 = vmatprep.subr.bf16.mxu1 %v6969_v52 }
 0x6a0   :  { %2313 = vmatpush1.bf16.msra.mxu0 %v6976_v53  ;;  %2354 = vmatpush1.bf16.msra.mxu1 %v6981_v54 }
 0x6a1   :  { %2314 = vmatprep.subr.bf16.mxu0 %v6988_v55  ;;  %2355 = vmatprep.subr.bf16.mxu1 %v6993_v56  ;;  %v2223_v55 = vld [vmem:[#allocation2] sm:$0xc0] }
 0x6a4   :  { %2315 = vmatpush1.bf16.msra.mxu0 %v7000_v57  ;;  %2356 = vmatpush1.bf16.msra.mxu1 %v7005_v58 }
 0x6a5   :  { %2316 = vmatprep.subr.bf16.mxu0 %v7012_v59  ;;  %2357 = vmatprep.subr.bf16.mxu1 %v7017_v60 }
 0x6a8   :  { %2317 = vmatpush1.bf16.msra.mxu0 %v7024_v61  ;;  %2358 = vmatpush1.bf16.msra.mxu1 %v7029_v62  ;;  %v2268_v62 = vrot.slane %v7216_v10, 4 }
 0x6a9   :  { %2318 = vmatprep.subr.bf16.mxu0 %v7036_v63  ;;  %2359 = vmatprep.subr.bf16.mxu1 %v7041_v1 }
 0x6ac   :  { %2319 = vmatpush1.bf16.msra.mxu0 %v7048_v2  ;;  %2360 = vmatpush1.bf16.msra.mxu1 %v7053_v3 }
 0x6ad   :  { %2463 = vmatprep.subr.bf16.mxu0 %v7258_v25  ;;  %2504 = vmatprep.subr.bf16.mxu1 %v7264_v40 }
 0x6ef   :  { %v2246_v6 = vpop.permute.xlu0 %2245 }
 0x74f   :  { %v2174_v41 = vpop.f32.mrf.mxu0  ;;  %v2215_v42 = vpop.f32.mrf.mxu1 }
 0x750   :  { %v2228_v44 = vrot.slane %v2174_v41, 2  ;;  %v2257_v26 = vadd.f32 %v2224_v43, %v2215_v42 }
 0x751   :  { %v2176_v45 = vpop.f32.mrf.mxu0  ;;  %v2217_v46 = vpop.f32.mrf.mxu1 }
 0x752   :  { %v2232_v47 = vadd.f32 %v2228_v44, %v2222_v35  ;;  %v2259_v48 = vmul.f32 0.5, %v2257_v26  ;;  %v2229_v49 = vrot.slane %v2176_v45, 2  ;;  %v2258_v54 = vadd.f32 %v2225_v50, %v2217_v46  ;;  %v7285_v35 = vld [vmem:[%s8398_s5 + $0xe0] ss:$16 sps:$4 sm:$0xff]   ;;  %v7291_v45 = vld [vmem:[%s8398_s5 + $0xe8] ss:$16 sps:$4 sm:$0xff]  }
 0x753   :  { %v2178_v51 = vpop.f32.mrf.mxu0  ;;  %v2219_v52 = vpop.f32.mrf.mxu1  ;;  %v7297_v46 = vld [vmem:[%s8398_s5 + $0xc4] ss:$16 sps:$4 sm:$0xff]  }
 0x754   :  { %v2234_v53 = vmul.f32 0.5, %v2232_v47  ;;  %5867 = vtanh.f32 %v2259_v48  ;;  %v2233_v58 = vadd.f32 %v2229_v49, %v2223_v55  ;;  %v2264_v22 = vmul.f32 0.5, %v2258_v54  ;;  %v7303_v47 = vld [vmem:[%s8398_s5 + $0xcc] ss:$16 sps:$4 sm:$0xff]   ;;  %v7311_v48 = vld [vmem:[%s8398_s5 + $0xc0] ss:$16 sps:$4 sm:$0xff]  }
 0x755   :  { %v2179_v56 = vpop.f32.mrf.mxu0  ;;  %v2220_v57 = vpop.f32.mrf.mxu1  ;;  %v7317_v49 = vld [vmem:[%s8398_s5 + $0xc8] ss:$16 sps:$4 sm:$0xff]   ;;  %v7323_v50 = vld [vmem:[%s8398_s5 + $0xa4] ss:$16 sps:$4 sm:$0xff]   ;;  %v7329_v51 = vld [vmem:[%s8398_s5 + $0xac] ss:$16 sps:$4 sm:$0xff]  }
 0x756   :  { %5869 = vtanh.f32 %v2234_v53  ;;  %v2239_v29 = vmul.f32 0.5, %v2233_v58  ;;  %v7335_v52 = vld [vmem:[%s8398_s5 + $0xa0] ss:$16 sps:$4 sm:$0xff]   ;;  %v7341_v53 = vld [vmem:[%s8398_s5 + $0xa8] ss:$16 sps:$4 sm:$0xff]  }
 0x757   :  { %5871 = vtanh.f32 %v2258_v54  ;;  %v7347_v54 = vld [vmem:[%s8398_s5 + $0x84] ss:$16 sps:$4 sm:$0xff]   ;;  %v7353_v55 = vld [vmem:[%s8398_s5 + $0x8c] ss:$16 sps:$4 sm:$0xff]   ;;  %v7359_v56 = vld [vmem:[%s8398_s5 + $0x80] ss:$16 sps:$4 sm:$0xff]  }
 0x758   :  { %5873 = vtanh.f32 %v2233_v58  ;;  %v7365_v57 = vld [vmem:[%s8398_s5 + $0x88] ss:$16 sps:$4 sm:$0xff]   ;;  %v7371_v58 = vld [vmem:[%s8398_s5 + $0x64] ss:$16 sps:$4 sm:$0xff]  }
 0x759   :  { %5875 = vtanh.f32 %v2264_v22  ;;  %v7449_v22 = vld [vmem:[%s8398_s5 + $0xc] ss:$16 sps:$4 sm:$0xff]  }
 0x75a   :  { %5877 = vtanh.f32 %v2239_v29  ;;  %v7455_v29 = vld [vmem:[%s8398_s5] ss:$16 sps:$4 sm:$0xff]  }
 0x761   :  { %v5868_v59 = vpop.eup %5867 }
 0x762   :  { %v2261_v60 = vmul.f32 0.5, %v5868_v59  ;;  %v7377_v59 = vld [vmem:[%s8398_s5 + $0x6c] ss:$16 sps:$4 sm:$0xff]  }
 0x763   :  { %v5870_v61 = vpop.eup %5869 }
 0x764   :  { %v2262_v63 = vadd.f32 0.5, %v2261_v60  ;;  %v2236_v1 = vmul.f32 0.5, %v5870_v61  ;;  %v5872_v2 = vpop.eup %5871  ;;  %v7383_v60 = vld [vmem:[%s8398_s5 + $0x60] ss:$16 sps:$4 sm:$0xff]   ;;  %v7389_v61 = vld [vmem:[%s8398_s5 + $0x68] ss:$16 sps:$4 sm:$0xff]  }
 0x765   :  { %v5874_v20 = vpop.eup %5873 }
 0x766   :  { %v2271_v3 = vmul.f32 %v5872_v2, %v2262_v63  ;;  %v2237_v8 = vadd.f32 0.5, %v2236_v1  ;;  %v2270_v30 = vmul.f32 %v2268_v62, %v2262_v63  ;;  %v5876_v39 = vpop.eup %5875  ;;  %v7395_v62 = vld [vmem:[%s8398_s5 + $0x44] ss:$16 sps:$4 sm:$0xff]   ;;  %v7401_v63 = vld [vmem:[%s8398_s5 + $0x4c] ss:$16 sps:$4 sm:$0xff]  }
 0x767   :  { %v5878_v27 = vpop.eup %5877  ;;  %v2266_v37 = vmul.f32 0.5, %v5876_v39  ;;  %v7407_v1 = vld [vmem:[%s8398_s5 + $0x40] ss:$16 sps:$4 sm:$0xff]   ;;  %v7413_v2 = vld [vmem:[%s8398_s5 + $0x48] ss:$16 sps:$4 sm:$0xff]  }
 0x768   :  { %2273 = vrot.lane.b32.xlu0 %v2271_v3, %s6297_s18  ;;  %v2249_v12 = vmul.f32 %v5874_v20, %v2237_v8  ;;  %v2248_v33 = vmul.f32 %v2246_v6, %v2237_v8  ;;  %v2241_v0 = vmul.f32 0.5, %v5878_v27  ;;  %v7419_v3 = vld [vmem:[%s8398_s5 + $0x24] ss:$16 sps:$4 sm:$0xff]   ;;  %v7425_v8 = vld [vmem:[%s8398_s5 + $0x2c] ss:$16 sps:$4 sm:$0xff]  }
 0x769   :  { %v2267_v5 = vadd.f32 0.5, %v2266_v37  ;;  %v7437_v20 = vld [vmem:[%s8398_s5 + $0x28] ss:$16 sps:$4 sm:$0xff]   ;;  %v2388_v39 = vld [vmem:[#allocation2 + $0x18] sm:$0xc0] }
 0x76a   :  { %2251 = vrot.lane.b32.xlu1 %v2249_v12, %s6297_s18  ;;  %v2242_v36 = vadd.f32 0.5, %v2241_v0  ;;  %v7443_v12 = vld [vmem:[%s8398_s5 + $0x4] ss:$16 sps:$4 sm:$0xff]   ;;  %v7461_v6 = vld [vmem:[%s8398_s5 + $0x8] ss:$16 sps:$4 sm:$0xff]  }
 0x7da   :  { %v2274_v17 = vpop.permute.xlu0 %2273 }
 0x7db   :  { %v2276_v24 = vadd.f32 %v2274_v17, %v2270_v30  ;;  %v7431_v30 = vld [vmem:[%s8398_s5 + $0x20] ss:$16 sps:$4 sm:$0xff]  }
 0x7dc   :  { %v2252_v38 = vpop.permute.xlu1 %2251 }
 0x7dd   :  { %5879 = vtanh.f32 %v2276_v24  ;;  %v2254_v34 = vadd.f32 %v2252_v38, %v2248_v33  ;;  %v2297_v4 = vrot.slane %v2276_v24, 2  ;;  %v2386_v24 = vld [vmem:[#allocation2 + $0x8] sm:$0x3] }
 0x7df   :  { %5881 = vtanh.f32 %v2254_v34  ;;  %2293 = vrot.lane.b32.xlu0 %v2254_v34, %s6297_s18 }
 0x7ea   :  { %v5880_v11 = vpop.eup %5879 }
 0x7eb   :  { %v7271_v10 = vmul.f32 %v5880_v11, %v2267_v5 }
 0x7ec   :  { %v5882_v14 = vpop.eup %5881 }
 0x7ed   :  { %v2256_v16 = vmul.f32 %v5882_v14, %v2242_v36  ;;  %v2289_v41 = vrot.slane %v7271_v10, 2  ;;  %v2387_v36 = vld [vmem:[#allocation2 + $0x20] sm:$0x3] }
 0x7ef   :  { %2280 = vrot.lane.b32.xlu1 %v2256_v16, %s6297_s18 }
 0x851   :  { %v2294_v15 = vpop.permute.xlu0 %2293 }
 0x852   :  { %v7275_v7 = vsel %vm1789_vm4, %v2294_v15, %v2297_v4 }
 0x853   :  { %v2402_v9 = vrot.slane %v7275_v7, 6 }
 0x855   :  { %2403 = vrot.lane.b32.xlu1 %v2402_v9, %s6297_s18  ;;  %v2389_v9 = vld [vmem:[#allocation2 + $0x10] sm:$0xc0] }
 0x861   :  { %v2281_v42 = vpop.permute.xlu1 %2280 }
 0x862   :  { %2283 = vst.msk [vmem:[#allocation3] sm:$0xc0] %vm1785_vm7, %v2281_v42  ;;  %v2291_v43 = vsel %vm1789_vm4, %v2281_v42, %v2289_v41 }
 0x863   :  { %v2300_v44 = vpack.c.bf16 %v2291_v43, %v2291_v43 }
 0x865   :  { %v2302_v26 = vrot.slane %v2300_v44, 3 }
 0x867   :  { %2337 = vmatmul.mubr.bf16.vlgmr.msra.gmra.mxu0 %v2302_v26  ;;  %2378 = vmatmul.mubr.bf16.vlgmr.msra.gmra.mxu1 %v2302_v26 }
 0x868   :  { %2464 = vmatpush1.bf16.msra.mxu0 %v7285_v35  ;;  %2505 = vmatpush1.bf16.msra.mxu1 %v7291_v45 }
 0x869   :  { %2465 = vmatprep.subr.bf16.mxu0 %v7297_v46  ;;  %2506 = vmatprep.subr.bf16.mxu1 %v7303_v47 }
 0x86a   :  { %2495 = vmatprep.mubr.bf16.mxu0 %v8412_v32  ;;  %2536 = vmatprep.mubr.bf16.mxu1 %v8412_v32 }
 0x86c   :  { %2466 = vmatpush1.bf16.msra.mxu0 %v7311_v48  ;;  %2507 = vmatpush1.bf16.msra.mxu1 %v7317_v49 }
 0x86d   :  { %2467 = vmatprep.subr.bf16.mxu0 %v7323_v50  ;;  %2508 = vmatprep.subr.bf16.mxu1 %v7329_v51 }
 0x870   :  { %2468 = vmatpush1.bf16.msra.mxu0 %v7335_v52  ;;  %2509 = vmatpush1.bf16.msra.mxu1 %v7341_v53 }
 0x871   :  { %2469 = vmatprep.subr.bf16.mxu0 %v7347_v54  ;;  %2510 = vmatprep.subr.bf16.mxu1 %v7353_v55 }
 0x874   :  { %2470 = vmatpush1.bf16.msra.mxu0 %v7359_v56  ;;  %2511 = vmatpush1.bf16.msra.mxu1 %v7365_v57 }
 0x875   :  { %2471 = vmatprep.subr.bf16.mxu0 %v7371_v58  ;;  %2512 = vmatprep.subr.bf16.mxu1 %v7377_v59 }
 0x878   :  { %2472 = vmatpush1.bf16.msra.mxu0 %v7383_v60  ;;  %2513 = vmatpush1.bf16.msra.mxu1 %v7389_v61 }
 0x879   :  { %2473 = vmatprep.subr.bf16.mxu0 %v7395_v62  ;;  %2514 = vmatprep.subr.bf16.mxu1 %v7401_v63 }
 0x87c   :  { %2474 = vmatpush1.bf16.msra.mxu0 %v7407_v1  ;;  %2515 = vmatpush1.bf16.msra.mxu1 %v7413_v2 }
 0x87d   :  { %2475 = vmatprep.subr.bf16.mxu0 %v7419_v3  ;;  %2516 = vmatprep.subr.bf16.mxu1 %v7425_v8 }
 0x880   :  { %2476 = vmatpush1.bf16.msra.mxu0 %v7431_v30  ;;  %2517 = vmatpush1.bf16.msra.mxu1 %v7437_v20 }
 0x881   :  { %2477 = vmatprep.subr.bf16.mxu0 %v7443_v12  ;;  %2518 = vmatprep.subr.bf16.mxu1 %v7449_v22 }
 0x884   :  { %2478 = vmatpush1.bf16.msra.mxu0 %v7455_v29  ;;  %2519 = vmatpush1.bf16.msra.mxu1 %v7461_v6 }
 0x885   :  { %2633 = vmatprep.subr.bf16.mxu0 %v7258_v25  ;;  %2674 = vmatprep.subr.bf16.mxu1 %v7264_v40 }
 0x927   :  { %v2338_v17 = vpop.f32.mrf.mxu0  ;;  %v2379_v33 = vpop.f32.mrf.mxu1 }
 0x928   :  { %v2390_v38 = vadd.f32 %v2386_v24, %v2338_v17  ;;  %v2417_v34 = vrot.slane %v2379_v33, 2 }
 0x929   :  { %v2340_v27 = vpop.f32.mrf.mxu0  ;;  %v2381_v37 = vpop.f32.mrf.mxu1 }
 0x92a   :  { %v2392_v0 = vmul.f32 0.5, %v2390_v38  ;;  %v2421_v5 = vadd.f32 %v2417_v34, %v2388_v39  ;;  %v2418_v11 = vrot.slane %v2381_v37, 2  ;;  %v2391_v15 = vadd.f32 %v2387_v36, %v2340_v27 }
 0x92b   :  { %v2342_v14 = vpop.f32.mrf.mxu0  ;;  %v2383_v16 = vpop.f32.mrf.mxu1 }
 0x92c   :  { %5883 = vtanh.f32 %v2392_v0  ;;  %v2423_v4 = vmul.f32 0.5, %v2421_v5  ;;  %v2422_v43 = vadd.f32 %v2418_v11, %v2389_v9  ;;  %v2397_v27 = vmul.f32 0.5, %v2391_v15  ;;  %v2404_v11 = vpop.permute.xlu1 %2403 }
 0x92d   :  { %v2343_v41 = vpop.f32.mrf.mxu0  ;;  %v2384_v42 = vpop.f32.mrf.mxu1 }
 0x92e   :  { %5885 = vtanh.f32 %v2423_v4  ;;  %v2428_v5 = vmul.f32 0.5, %v2422_v43 }
 0x92f   :  { %5887 = vtanh.f32 %v2391_v15 }
 0x930   :  { %5889 = vtanh.f32 %v2422_v43 }
 0x931   :  { %5891 = vtanh.f32 %v2397_v27 }
 0x932   :  { %5893 = vtanh.f32 %v2428_v5 }
 0x939   :  { %v5884_v44 = vpop.eup %5883 }
 0x93a   :  { %v2394_v26 = vmul.f32 0.5, %v5884_v44 }
 0x93b   :  { %v5886_v17 = vpop.eup %5885 }
 0x93c   :  { %v2395_v24 = vadd.f32 0.5, %v2394_v26  ;;  %v2425_v33 = vmul.f32 0.5, %v5886_v17  ;;  %v5888_v38 = vpop.eup %5887 }
 0x93d   :  { %v5890_v37 = vpop.eup %5889 }
 0x93e   :  { %v2407_v34 = vmul.f32 %v5888_v38, %v2395_v24  ;;  %v2426_v39 = vadd.f32 0.5, %v2425_v33  ;;  %v2406_v36 = vmul.f32 %v2404_v11, %v2395_v24  ;;  %v5892_v42 = vpop.eup %5891 }
 0x93f   :  { %v5894_v44 = vpop.eup %5893  ;;  %v2399_v26 = vmul.f32 0.5, %v5892_v42  ;;  %v2547_v42 = vld [vmem:[#allocation2 + $0x18] sm:$0x30] }
 0x940   :  { %2409 = vrot.lane.b32.xlu0 %v2407_v34, %s6297_s18  ;;  %v2433_v0 = vmul.f32 %v5890_v37, %v2426_v39  ;;  %v2432_v4 = vmul.f32 %v2426_v39, %v7275_v7  ;;  %v2430_v17 = vmul.f32 0.5, %v5894_v44 }
 0x941   :  { %v2400_v15 = vadd.f32 0.5, %v2399_v26 }
 0x942   :  { %2435 = vrot.lane.b32.xlu1 %v2433_v0, %s6297_s18  ;;  %v2431_v33 = vadd.f32 0.5, %v2430_v17 }
 0x9b2   :  { %v2410_v14 = vpop.permute.xlu0 %2409 }
 0x9b3   :  { %v2412_v16 = vadd.f32 %v2410_v14, %v2406_v36 }
 0x9b4   :  { %v2436_v9 = vpop.permute.xlu1 %2435 }
 0x9b5   :  { %5895 = vtanh.f32 %v2412_v16  ;;  %v2438_v41 = vadd.f32 %v2436_v9, %v2432_v4  ;;  %2455 = vrot.lane.b32.xlu1 %v2412_v16, %s6297_s18 }
 0x9b7   :  { %5897 = vtanh.f32 %v2438_v41  ;;  %v2459_v7 = vrot.slane %v2438_v41, 6  ;;  %v2545_v41 = vld [vmem:[#allocation2 + $0x8] sm:$0xc] }
 0x9c2   :  { %v5896_v43 = vpop.eup %5895 }
 0x9c3   :  { %v2414_v38 = vmul.f32 %v5896_v43, %v2400_v15 }
 0x9c4   :  { %v5898_v34 = vpop.eup %5897 }
 0x9c5   :  { %2442 = vrot.lane.b32.xlu0 %v2414_v38, %s6297_s18  ;;  %v7471_v24 = vmul.f32 %v5898_v34, %v2431_v33 }
 0x9c7   :  { %v2451_v27 = vrot.slane %v7471_v24, 6 }
 0xa27   :  { %v2456_v39 = vpop.permute.xlu1 %2455 }
 0xa28   :  { %v7474_v37 = vsel %vm1789_vm4, %v2456_v39, %v2459_v7 }
 0xa29   :  { %v2567_v0 = vrot.slane %v7474_v37, 6 }
 0xa2b   :  { %2568 = vrot.lane.b32.xlu0 %v2567_v0, %s6297_s18  ;;  %v2546_v0 = vld [vmem:[#allocation2 + $0x20] sm:$0xc] }
 0xa37   :  { %v2443_v5 = vpop.permute.xlu0 %2442 }
 0xa38   :  { %2445 = vst.msk [vmem:[#allocation3 + $0x8] sm:$0x3] %vm1779_vm3, %v2443_v5  ;;  %v2453_v11 = vsel %vm1789_vm4, %v2443_v5, %v2451_v27  ;;  %v2548_v5 = vld [vmem:[#allocation2 + $0x10] sm:$0x30] }
 0xa39   :  { %v2462_v36 = vpack.c.bf16 %v2453_v11, %v2453_v11 }
 0xa3b   :  { %2496 = vmatmul.mubr.bf16.vlgmr.msra.gmra.mxu0 %v2462_v36  ;;  %2537 = vmatmul.mubr.bf16.vlgmr.msra.gmra.mxu1 %v2462_v36 }
 0xa3c   :  { %2634 = vmatpush1.bf16.msra.mxu0 %v7285_v35  ;;  %2675 = vmatpush1.bf16.msra.mxu1 %v7291_v45 }
 0xa3d   :  { %2635 = vmatprep.subr.bf16.mxu0 %v7297_v46  ;;  %2676 = vmatprep.subr.bf16.mxu1 %v7303_v47 }
 0xa3e   :  { %2665 = vmatprep.mubr.bf16.mxu0 %v8412_v32  ;;  %2706 = vmatprep.mubr.bf16.mxu1 %v8412_v32 }
 0xa40   :  { %2636 = vmatpush1.bf16.msra.mxu0 %v7311_v48  ;;  %2677 = vmatpush1.bf16.msra.mxu1 %v7317_v49 }
 0xa41   :  { %2637 = vmatprep.subr.bf16.mxu0 %v7323_v50  ;;  %2678 = vmatprep.subr.bf16.mxu1 %v7329_v51 }
 0xa44   :  { %2638 = vmatpush1.bf16.msra.mxu0 %v7335_v52  ;;  %2679 = vmatpush1.bf16.msra.mxu1 %v7341_v53 }
 0xa45   :  { %2639 = vmatprep.subr.bf16.mxu0 %v7347_v54  ;;  %2680 = vmatprep.subr.bf16.mxu1 %v7353_v55 }
 0xa48   :  { %2640 = vmatpush1.bf16.msra.mxu0 %v7359_v56  ;;  %2681 = vmatpush1.bf16.msra.mxu1 %v7365_v57 }
 0xa49   :  { %2641 = vmatprep.subr.bf16.mxu0 %v7371_v58  ;;  %2682 = vmatprep.subr.bf16.mxu1 %v7377_v59 }
 0xa4c   :  { %2642 = vmatpush1.bf16.msra.mxu0 %v7383_v60  ;;  %2683 = vmatpush1.bf16.msra.mxu1 %v7389_v61 }
 0xa4d   :  { %2643 = vmatprep.subr.bf16.mxu0 %v7395_v62  ;;  %2684 = vmatprep.subr.bf16.mxu1 %v7401_v63 }
 0xa50   :  { %2644 = vmatpush1.bf16.msra.mxu0 %v7407_v1  ;;  %2685 = vmatpush1.bf16.msra.mxu1 %v7413_v2 }
 0xa51   :  { %2645 = vmatprep.subr.bf16.mxu0 %v7419_v3  ;;  %2686 = vmatprep.subr.bf16.mxu1 %v7425_v8 }
 0xa54   :  { %2646 = vmatpush1.bf16.msra.mxu0 %v7431_v30  ;;  %2687 = vmatpush1.bf16.msra.mxu1 %v7437_v20 }
 0xa55   :  { %2647 = vmatprep.subr.bf16.mxu0 %v7443_v12  ;;  %2688 = vmatprep.subr.bf16.mxu1 %v7449_v22 }
 0xa58   :  { %2648 = vmatpush1.bf16.msra.mxu0 %v7455_v29  ;;  %2689 = vmatpush1.bf16.msra.mxu1 %v7461_v6 }
 0xa59   :  { %2801 = vmatprep.subr.bf16.mxu0 %v7258_v25  ;;  %2842 = vmatprep.subr.bf16.mxu1 %v7264_v40 }
 0xafb   :  { %v2497_v14 = vpop.f32.mrf.mxu0  ;;  %v2538_v16 = vpop.f32.mrf.mxu1 }
 0xafc   :  { %v2551_v4 = vrot.slane %v2497_v14, 6  ;;  %v2582_v9 = vrot.slane %v2538_v16, 4 }
 0xafd   :  { %v2499_v44 = vpop.f32.mrf.mxu0  ;;  %v2540_v26 = vpop.f32.mrf.mxu1 }
 0xafe   :  { %v2555_v17 = vadd.f32 %v2551_v4, %v2545_v41  ;;  %v2586_v15 = vadd.f32 %v2582_v9, %v2547_v42  ;;  %v2552_v43 = vrot.slane %v2499_v44, 6  ;;  %v2583_v33 = vrot.slane %v2540_v26, 4 }
 0xaff   :  { %v2501_v38 = vpop.f32.mrf.mxu0  ;;  %v2542_v34 = vpop.f32.mrf.mxu1  ;;  %v2597_v42 = vrot.slane %v7474_v37, 4 }
 0xb00   :  { %v2557_v7 = vmul.f32 0.5, %v2555_v17  ;;  %v2588_v39 = vmul.f32 0.5, %v2586_v15  ;;  %v2556_v40 = vadd.f32 %v2552_v43, %v2546_v0  ;;  %v2587_v11 = vadd.f32 %v2583_v33, %v2548_v5  ;;  %v2569_v34 = vpop.permute.xlu0 %2568 }
 0xb01   :  { %v2502_v25 = vpop.f32.mrf.mxu0  ;;  %v2543_v27 = vpop.f32.mrf.mxu1 }
 0xb02   :  { %5899 = vtanh.f32 %v2557_v7  ;;  %v2562_v43 = vmul.f32 0.5, %v2556_v40  ;;  %v2593_v33 = vmul.f32 0.5, %v2587_v11 }
 0xb03   :  { %5901 = vtanh.f32 %v2588_v39 }
 0xb04   :  { %5903 = vtanh.f32 %v2556_v40 }
 0xb05   :  { %5905 = vtanh.f32 %v2587_v11 }
 0xb06   :  { %5907 = vtanh.f32 %v2562_v43 }
 0xb07   :  { %5909 = vtanh.f32 %v2593_v33 }
 0xb0f   :  { %v5900_v36 = vpop.eup %5899 }
 0xb10   :  { %v5902_v14 = vpop.eup %5901  ;;  %v2559_v16 = vmul.f32 0.5, %v5900_v36 }
 0xb11   :  { %v2590_v4 = vmul.f32 0.5, %v5902_v14  ;;  %v5904_v41 = vpop.eup %5903 }
 0xb12   :  { %v2560_v9 = vadd.f32 0.5, %v2559_v16  ;;  %v5906_v26 = vpop.eup %5905 }
 0xb13   :  { %v2591_v44 = vadd.f32 0.5, %v2590_v4  ;;  %v5908_v37 = vpop.eup %5907 }
 0xb14   :  { %v2572_v17 = vmul.f32 %v5904_v41, %v2560_v9  ;;  %v2571_v7 = vmul.f32 %v2569_v34, %v2560_v9  ;;  %v5910_v5 = vpop.eup %5909  ;;  %v2564_v36 = vmul.f32 0.5, %v5908_v37 }
 0xb15   :  { %v2600_v15 = vmul.f32 %v5906_v26, %v2591_v44  ;;  %v2599_v38 = vmul.f32 %v2597_v42, %v2591_v44  ;;  %v2595_v14 = vmul.f32 0.5, %v5910_v5 }
 0xb16   :  { %2574 = vrot.lane.b32.xlu1 %v2572_v17, %s6297_s18  ;;  %v2565_v16 = vadd.f32 0.5, %v2564_v36 }
 0xb17   :  { %2602 = vrot.lane.b32.xlu0 %v2600_v15, %s6297_s18  ;;  %v2596_v40 = vadd.f32 0.5, %v2595_v14 }
 0xb88   :  { %v2575_v39 = vpop.permute.xlu1 %2574 }
 0xb89   :  { %v2603_v0 = vpop.permute.xlu0 %2602  ;;  %v2577_v25 = vadd.f32 %v2575_v39, %v2571_v7 }
 0xb8a   :  { %v2605_v27 = vadd.f32 %v2603_v0, %v2599_v38 }
 0xb8b   :  { %5911 = vtanh.f32 %v2577_v25  ;;  %2622 = vrot.lane.b32.xlu0 %v2577_v25, %s6297_s18 }
 0xb8c   :  { %5913 = vtanh.f32 %v2605_v27  ;;  %v2626_v9 = vrot.slane %v2605_v27, 2 }
 0xb98   :  { %v5912_v4 = vpop.eup %5911 }
 0xb99   :  { %v5914_v11 = vpop.eup %5913  ;;  %v2579_v41 = vmul.f32 %v5912_v4, %v2565_v16 }
 0xb9a   :  { %v7519_v42 = vmul.f32 %v5914_v11, %v2596_v40 }
 0xb9b   :  { %2609 = vrot.lane.b32.xlu1 %v2579_v41, %s6297_s18 }
 0xb9c   :  { %v2618_v15 = vrot.slane %v7519_v42, 2 }
 0xbfd   :  { %v2623_v44 = vpop.permute.xlu0 %2622 }
 0xbfe   :  { %v7523_v26 = vsel %vm1789_vm4, %v2623_v44, %v2626_v9 }
 0xbff   :  { %v2737_v17 = vrot.slane %v7523_v26, 6 }
 0xc01   :  { %2738 = vrot.lane.b32.xlu1 %v2737_v17, %s6297_s18 }
 0xc0d   :  { %v2610_v38 = vpop.permute.xlu1 %2609 }
 0xc0e   :  { %2612 = vst.msk [vmem:[#allocation3 + $0x8] sm:$0xc] %vm1949_vm5, %v2610_v38  ;;  %v2620_v43 = vsel %vm1789_vm4, %v2610_v38, %v2618_v15 }
 0xc0f   :  { %v2629_v33 = vpack.c.bf16 %v2620_v43, %v2620_v43 }
 0xc11   :  { %v2631_v34 = vrot.slane %v2629_v33, 1 }
 0xc13   :  { %2666 = vmatmul.mubr.bf16.vlgmr.msra.gmra.mxu0 %v2631_v34  ;;  %2707 = vmatmul.mubr.bf16.vlgmr.msra.gmra.mxu1 %v2631_v34 }
 0xc14   :  { %2802 = vmatpush1.bf16.msra.mxu0 %v7285_v35  ;;  %2843 = vmatpush1.bf16.msra.mxu1 %v7291_v45 }
 0xc15   :  { %2803 = vmatprep.subr.bf16.mxu0 %v7297_v46  ;;  %2844 = vmatprep.subr.bf16.mxu1 %v7303_v47 }
 0xc16   :  { %2833 = vmatprep.mubr.bf16.mxu0 %v8412_v32  ;;  %2874 = vmatprep.mubr.bf16.mxu1 %v8412_v32 }
 0xc18   :  { %2804 = vmatpush1.bf16.msra.mxu0 %v7311_v48  ;;  %2845 = vmatpush1.bf16.msra.mxu1 %v7317_v49  ;;  %v2715_v48 = vld [vmem:[#allocation2 + $0x8] sm:$0x30]  ;;  %v2717_v49 = vld [vmem:[#allocation2 + $0x18] sm:$0xc] }
 0xc19   :  { %2805 = vmatprep.subr.bf16.mxu0 %v7323_v50  ;;  %2846 = vmatprep.subr.bf16.mxu1 %v7329_v51 }
 0xc1c   :  { %2806 = vmatpush1.bf16.msra.mxu0 %v7335_v52  ;;  %2847 = vmatpush1.bf16.msra.mxu1 %v7341_v53 }
 0xc1d   :  { %2807 = vmatprep.subr.bf16.mxu0 %v7347_v54  ;;  %2848 = vmatprep.subr.bf16.mxu1 %v7353_v55 }
 0xc20   :  { %2808 = vmatpush1.bf16.msra.mxu0 %v7359_v56  ;;  %2849 = vmatpush1.bf16.msra.mxu1 %v7365_v57 }
 0xc21   :  { %2809 = vmatprep.subr.bf16.mxu0 %v7371_v58  ;;  %2850 = vmatprep.subr.bf16.mxu1 %v7377_v59 }
 0xc24   :  { %2810 = vmatpush1.bf16.msra.mxu0 %v7383_v60  ;;  %2851 = vmatpush1.bf16.msra.mxu1 %v7389_v61  ;;  %v2716_v60 = vld [vmem:[#allocation2 + $0x20] sm:$0x30] }
 0xc25   :  { %2811 = vmatprep.subr.bf16.mxu0 %v7395_v62  ;;  %2852 = vmatprep.subr.bf16.mxu1 %v7401_v63 }
 0xc28   :  { %2812 = vmatpush1.bf16.msra.mxu0 %v7407_v1  ;;  %2853 = vmatpush1.bf16.msra.mxu1 %v7413_v2  ;;  %v2718_v1 = vld [vmem:[#allocation2 + $0x10] sm:$0xc] }
 0xc29   :  { %2813 = vmatprep.subr.bf16.mxu0 %v7419_v3  ;;  %2854 = vmatprep.subr.bf16.mxu1 %v7425_v8 }
 0xc2c   :  { %2814 = vmatpush1.bf16.msra.mxu0 %v7431_v30  ;;  %2855 = vmatpush1.bf16.msra.mxu1 %v7437_v20 }
 0xc2d   :  { %2815 = vmatprep.subr.bf16.mxu0 %v7443_v12  ;;  %2856 = vmatprep.subr.bf16.mxu1 %v7449_v22 }
 0xc30   :  { %2816 = vmatpush1.bf16.msra.mxu0 %v7455_v29  ;;  %2857 = vmatpush1.bf16.msra.mxu1 %v7461_v6 }
 0xc73   :  { %v2739_v27 = vpop.permute.xlu1 %2738 }
 0xcd3   :  { %v2667_v35 = vpop.f32.mrf.mxu0  ;;  %v2708_v45 = vpop.f32.mrf.mxu1 }
 0xcd4   :  { %v2721_v46 = vrot.slane %v2667_v35, 4  ;;  %v2752_v47 = vrot.slane %v2708_v45, 6 }
 0xcd5   :  { %v2669_v50 = vpop.f32.mrf.mxu0  ;;  %v2710_v51 = vpop.f32.mrf.mxu1 }
 0xcd6   :  { %v2725_v52 = vadd.f32 %v2721_v46, %v2715_v48  ;;  %v2756_v53 = vadd.f32 %v2752_v47, %v2717_v49  ;;  %v2722_v54 = vrot.slane %v2669_v50, 4  ;;  %v2753_v55 = vrot.slane %v2710_v51, 6 }
 0xcd7   :  { %v2671_v56 = vpop.f32.mrf.mxu0  ;;  %v2712_v57 = vpop.f32.mrf.mxu1 }
 0xcd8   :  { %v2727_v58 = vmul.f32 0.5, %v2725_v52  ;;  %v2758_v59 = vmul.f32 0.5, %v2756_v53  ;;  %v2726_v63 = vadd.f32 %v2722_v54, %v2716_v60  ;;  %v2757_v2 = vadd.f32 %v2753_v55, %v2718_v1  ;;  %v2885_v55 = vld [vmem:[#allocation2 + $0x18] sm:$0x3] }
 0xcd9   :  { %v2672_v61 = vpop.f32.mrf.mxu0  ;;  %v2713_v62 = vpop.f32.mrf.mxu1 }
 0xcda   :  { %5915 = vtanh.f32 %v2727_v58  ;;  %v2732_v0 = vmul.f32 0.5, %v2726_v63  ;;  %v2763_v25 = vmul.f32 0.5, %v2757_v2  ;;  %v2883_v58 = vld [vmem:[#allocation2 + $0x8] sm:$0xc0] }
 0xcdb   :  { %5917 = vtanh.f32 %v2758_v59 }
 0xcdc   :  { %5919 = vtanh.f32 %v2726_v63  ;;  %v2886_v63 = vld [vmem:[#allocation2 + $0x10] sm:$0x3] }
 0xcdd   :  { %5921 = vtanh.f32 %v2757_v2 }
 0xcde   :  { %5923 = vtanh.f32 %v2732_v0 }
 0xcdf   :  { %5925 = vtanh.f32 %v2763_v25 }
 0xce7   :  { %v5916_v3 = vpop.eup %5915 }
 0xce8   :  { %v5918_v8 = vpop.eup %5917  ;;  %v2729_v30 = vmul.f32 0.5, %v5916_v3 }
 0xce9   :  { %v2760_v20 = vmul.f32 0.5, %v5918_v8  ;;  %v5920_v22 = vpop.eup %5919 }
 0xcea   :  { %v2730_v12 = vadd.f32 0.5, %v2729_v30  ;;  %v5922_v6 = vpop.eup %5921 }
 0xceb   :  { %v2761_v29 = vadd.f32 0.5, %v2760_v20  ;;  %v5924_v40 = vpop.eup %5923 }
 0xcec   :  { %v2742_v7 = vmul.f32 %v5920_v22, %v2730_v12  ;;  %v2741_v37 = vmul.f32 %v2739_v27, %v2730_v12  ;;  %v5926_v11 = vpop.eup %5925  ;;  %v2734_v41 = vmul.f32 0.5, %v5924_v40  ;;  %v2884_v22 = vld [vmem:[#allocation2 + $0x20] sm:$0xc0] }
 0xced   :  { %v2768_v39 = vmul.f32 %v5922_v6, %v2761_v29  ;;  %v2767_v36 = vmul.f32 %v2761_v29, %v7523_v26  ;;  %v2765_v9 = vmul.f32 0.5, %v5926_v11  ;;  %v5713_v40 = vld [vmem:[#allocation13 + $0x60] ss:$16 sps:$4 sm:$0xff]   ;;  %v5715_v11 = vld [vmem:[#allocation13 + $0x64] ss:$16 sps:$4 sm:$0xff]  }
 0xcee   :  { %2744 = vrot.lane.b32.xlu0 %v2742_v7, %s6297_s18  ;;  %v2735_v44 = vadd.f32 0.5, %v2734_v41  ;;  %v5716_v41 = vld [vmem:[#allocation13 + $0x68] ss:$16 sps:$4 sm:$0xff]   ;;  %3079 = vmatprep.subr.bf16.mxu0 %v5715_v11  ;;  %v2950_v11 = vld [vmem:[#allocation3] sm:$0xff] }
 0xcef   :  { %2770 = vrot.lane.b32.xlu1 %v2768_v39, %s6297_s18  ;;  %v2766_v15 = vadd.f32 0.5, %v2765_v9  ;;  %v5718_v9 = vld [vmem:[#allocation13 + $0x6c] ss:$16 sps:$4 sm:$0xff]  }
 0xcf0   :  { %3122 = vmatprep.subr.bf16.mxu1 %v5718_v9  ;;  %v7624_v9 = vld [vmem:[%s8402_s9 + $0xe8] ss:$16 sps:$4 sm:$0xff]  }
 0xd60   :  { %v2745_v5 = vpop.permute.xlu0 %2744 }
 0xd61   :  { %v2747_v14 = vadd.f32 %v2745_v5, %v2741_v37  ;;  %v2771_v16 = vpop.permute.xlu1 %2770 }
 0xd62   :  { %v2773_v4 = vadd.f32 %v2771_v16, %v2767_v36 }
 0xd63   :  { %5927 = vtanh.f32 %v2747_v14  ;;  %2790 = vrot.lane.b32.xlu1 %v2747_v14, %s6297_s18 }
 0xd64   :  { %5929 = vtanh.f32 %v2773_v4  ;;  %v2794_v26 = vrot.slane %v2773_v4, 6 }
 0xd70   :  { %v5928_v17 = vpop.eup %5927 }
 0xd71   :  { %v5930_v38 = vpop.eup %5929  ;;  %v2749_v43 = vmul.f32 %v5928_v17, %v2735_v44  ;;  %v5721_v44 = vld [vmem:[#allocation13 + $0x44] ss:$16 sps:$4 sm:$0xff]   ;;  %v5724_v17 = vld [vmem:[#allocation13 + $0x4c] ss:$16 sps:$4 sm:$0xff]  }
 0xd72   :  { %v2775_v33 = vmul.f32 %v5930_v38, %v2766_v15  ;;  %v5719_v15 = vld [vmem:[#allocation13 + $0x40] ss:$16 sps:$4 sm:$0xff]   ;;  %v5722_v38 = vld [vmem:[#allocation13 + $0x48] ss:$16 sps:$4 sm:$0xff]  }
 0xd73   :  { %2777 = vrot.lane.b32.xlu0 %v2749_v43, %s6297_s18 }
 0xd74   :  { %v2786_v46 = vrot.slane %v2775_v33, 6 }
 0xdd5   :  { %v2791_v34 = vpop.permute.xlu1 %2790 }
 0xdd6   :  { %v2796_v35 = vsel %vm1789_vm4, %v2791_v34, %v2794_v26 }
 0xdd7   :  { %v2905_v45 = vrot.slane %v2796_v35, 6  ;;  %v2929_v0 = vrot.slane %v2796_v35, 4 }
 0xdd9   :  { %2906 = vrot.lane.b32.xlu1 %v2905_v45, %s6297_s18  ;;  %v5725_v45 = vld [vmem:[#allocation13 + $0x20] ss:$16 sps:$4 sm:$0xff]  }
 0xddd   :  { %1782 = vrot.lane.b32.xlu1 %v7114_v18, %s6297_s18 }
 0xde1   :  { %2121 = vrot.lane.b32.xlu1 %v7212_v19, %s6297_s18 }
 0xde5   :  { %v2778_v47 = vpop.permute.xlu0 %2777  ;;  %2447 = vrot.lane.b32.xlu1 %v7471_v24, %s6297_s18 }
 0xde6   :  { %2780 = vst.msk [vmem:[#allocation3 + $0x8] sm:$0x30] %vm1955_vm6, %v2778_v47  ;;  %v2788_v48 = vsel %vm1789_vm4, %v2778_v47, %v2786_v46  ;;  %v5727_v46 = vld [vmem:[#allocation13 + $0x24] ss:$16 sps:$4 sm:$0xff]   ;;  %v5728_v47 = vld [vmem:[#allocation13 + $0x28] ss:$16 sps:$4 sm:$0xff]  }
 0xde7   :  { %v2797_v49 = vpack.c.bf16 %v2788_v48, %v2788_v48  ;;  %v5730_v48 = vld [vmem:[#allocation13 + $0x2c] ss:$16 sps:$4 sm:$0xff]  }
 0xde9   :  { %v2799_v50 = vrot.slane %v2797_v49, 2  ;;  %2782 = vrot.lane.b32.xlu1 %v2775_v33, %s6297_s18 }
 0xdeb   :  { %2834 = vmatmul.mubr.bf16.vlgmr.msra.gmra.mxu0 %v2799_v50  ;;  %2875 = vmatmul.mubr.bf16.vlgmr.msra.gmra.mxu1 %v2799_v50  ;;  %v5731_v50 = vld [vmem:[#allocation13] ss:$16 sps:$4 sm:$0xff]  }
 0xdec   :  { %3103 = vmatprep.mubr.bf16.mxu0 %v8412_v32  ;;  %3146 = vmatprep.mubr.bf16.mxu1 %v8412_v32 }
 0xded   :  { %3080 = vmatpush1.bf16.msra.mxu0 %v5713_v40  ;;  %3123 = vmatpush1.bf16.msra.mxu1 %v5716_v41  ;;  %v7619_v41 = vld [vmem:[%s8402_s9 + $0xe0] ss:$16 sps:$4 sm:$0xff]  }
 0xdee   :  { %3081 = vmatprep.subr.bf16.mxu0 %v5721_v44  ;;  %3124 = vmatprep.subr.bf16.mxu1 %v5724_v17  ;;  %v7631_v17 = vld [vmem:[%s8402_s9 + $0xc4] ss:$16 sps:$4 sm:$0xff]  }
 0xdf1   :  { %3082 = vmatpush1.bf16.msra.mxu0 %v5719_v15  ;;  %3125 = vmatpush1.bf16.msra.mxu1 %v5722_v38  ;;  %v7636_v15 = vld [vmem:[%s8402_s9 + $0xcc] ss:$16 sps:$4 sm:$0xff]   ;;  %v7645_v38 = vld [vmem:[%s8402_s9 + $0xc0] ss:$16 sps:$4 sm:$0xff]  }
 0xdf2   :  { %3083 = vmatprep.subr.bf16.mxu0 %v5727_v46  ;;  %3126 = vmatprep.subr.bf16.mxu1 %v5730_v48  ;;  %v7700_v46 = vld [vmem:[%s8402_s9 + $0x88] ss:$16 sps:$4 sm:$0xff]   ;;  %v7712_v48 = vld [vmem:[%s8402_s9 + $0x6c] ss:$16 sps:$4 sm:$0xff]  }
 0xdf5   :  { %3084 = vmatpush1.bf16.msra.mxu0 %v5725_v45  ;;  %3127 = vmatpush1.bf16.msra.mxu1 %v5728_v47  ;;  %v7695_v45 = vld [vmem:[%s8402_s9 + $0x80] ss:$16 sps:$4 sm:$0xff]   ;;  %v7707_v47 = vld [vmem:[%s8402_s9 + $0x64] ss:$16 sps:$4 sm:$0xff]  }
 0xe4b   :  { %v7580_v18 = vpop.permute.xlu1 %2906 }
 0xe4f   :  { %v1783_v19 = vpop.permute.xlu1 %1782 }
 0xe50   :  { %1786 = vst.msk [vmem:[#allocation4 + $0x8] sm:$0xc0] %vm1785_vm7, %v1783_v19  ;;  %v5733_v19 = vld [vmem:[#allocation13 + $0x4] ss:$16 sps:$4 sm:$0xff]  }
 0xe51   :  { %3085 = vmatprep.subr.bf16.mxu0 %v5733_v19  ;;  %v7736_v19 = vld [vmem:[%s8402_s9 + $0x4c] ss:$16 sps:$4 sm:$0xff]  }
 0xe52   :  { %3086 = vmatpush1.bf16.msra.mxu0 %v5731_v50  ;;  %v7731_v50 = vld [vmem:[%s8402_s9 + $0x44] ss:$16 sps:$4 sm:$0xff]  }
 0xe53   :  { %v2122_v24 = vpop.permute.xlu1 %2121 }
 0xe54   :  { %2124 = vst.msk [vmem:[#allocation4 + $0x8] sm:$0xc] %vm1949_vm5, %v2122_v24  ;;  %v5734_v24 = vld [vmem:[#allocation13 + $0x8] ss:$16 sps:$4 sm:$0xff]  }
 0xe57   :  { %v2448_v51 = vpop.permute.xlu1 %2447 }
 0xe58   :  { %2450 = vst.msk [vmem:[#allocation4] sm:$0xc0] %vm1785_vm7, %v2448_v51 }
 0xe5b   :  { %v2783_v52 = vpop.permute.xlu1 %2782 }
 0xe5c   :  { %2785 = vst.msk [vmem:[#allocation4] sm:$0xc] %vm1949_vm5, %v2783_v52  ;;  %v5739_v52 = vld [vmem:[#allocation12 + $0x64] ss:$16 sps:$4 sm:$0xff]  }
 0xe5d   :  { %3248 = vmatprep.subr.bf16.mxu0 %v5739_v52  ;;  %v7760_v52 = vld [vmem:[%s8402_s9 + $0x2c] ss:$16 sps:$4 sm:$0xff]  }
 0xeab   :  { %v2835_v53 = vpop.f32.mrf.mxu0  ;;  %v2876_v54 = vpop.f32.mrf.mxu1 }
 0xeac   :  { %v2889_v56 = vrot.slane %v2835_v53, 2  ;;  %v2918_v57 = vadd.f32 %v2885_v55, %v2876_v54  ;;  %v5742_v55 = vld [vmem:[#allocation12 + $0x6c] ss:$16 sps:$4 sm:$0xff]  }
 0xead   :  { %v2837_v59 = vpop.f32.mrf.mxu0  ;;  %v2878_v60 = vpop.f32.mrf.mxu1 }
 0xeae   :  { %v2893_v61 = vadd.f32 %v2889_v56, %v2883_v58  ;;  %v2920_v62 = vmul.f32 0.5, %v2918_v57  ;;  %v2890_v8 = vrot.slane %v2837_v59, 2  ;;  %v2919_v30 = vadd.f32 %v2886_v63, %v2878_v60 }
 0xeaf   :  { %v2839_v1 = vpop.f32.mrf.mxu0  ;;  %v2880_v2 = vpop.f32.mrf.mxu1 }
 0xeb0   :  { %v2895_v3 = vmul.f32 0.5, %v2893_v61  ;;  %5931 = vtanh.f32 %v2920_v62  ;;  %v2894_v29 = vadd.f32 %v2890_v8, %v2884_v22  ;;  %v5740_v8 = vld [vmem:[#allocation12 + $0x68] ss:$16 sps:$4 sm:$0xff]   ;;  %v5745_v22 = vld [vmem:[#allocation12 + $0x44] ss:$16 sps:$4 sm:$0xff]  }
 0xeb1   :  { %v2840_v20 = vpop.f32.mrf.mxu0  ;;  %v2881_v12 = vpop.f32.mrf.mxu1 }
 0xeb2   :  { %5933 = vtanh.f32 %v2895_v3  ;;  %v2900_v43 = vmul.f32 0.5, %v2894_v29  ;;  %v5737_v3 = vld [vmem:[#allocation12 + $0x60] ss:$16 sps:$4 sm:$0xff]  }
 0xeb3   :  { %5935 = vtanh.f32 %v2919_v30 }
 0xeb4   :  { %5937 = vtanh.f32 %v2894_v29  ;;  %v5748_v29 = vld [vmem:[#allocation12 + $0x4c] ss:$16 sps:$4 sm:$0xff]  }
 0xebd   :  { %v5932_v6 = vpop.eup %5931 }
 0xebe   :  { %v2922_v7 = vmul.f32 0.5, %v5932_v6  ;;  %v5743_v6 = vld [vmem:[#allocation12 + $0x40] ss:$16 sps:$4 sm:$0xff]  }
 0xebf   :  { %v5934_v39 = vpop.eup %5933 }
 0xec0   :  { %v2923_v25 = vadd.f32 0.5, %v2922_v7  ;;  %v2897_v27 = vmul.f32 0.5, %v5934_v39  ;;  %v5936_v37 = vpop.eup %5935  ;;  %v5746_v7 = vld [vmem:[#allocation12 + $0x48] ss:$16 sps:$4 sm:$0xff]   ;;  %v5751_v39 = vld [vmem:[#allocation12 + $0x24] ss:$16 sps:$4 sm:$0xff]  }
 0xec1   :  { %v5938_v16 = vpop.eup %5937 }
 0xec2   :  { %v2932_v5 = vmul.f32 %v5936_v37, %v2923_v25  ;;  %v2898_v36 = vadd.f32 0.5, %v2897_v27  ;;  %v2931_v14 = vmul.f32 %v2929_v0, %v2923_v25  ;;  %v5754_v0 = vld [vmem:[#allocation12 + $0x2c] ss:$16 sps:$4 sm:$0xff]   ;;  %v5749_v25 = vld [vmem:[#allocation12 + $0x20] ss:$16 sps:$4 sm:$0xff]  }
 0xec3   :  { %v5752_v27 = vld [vmem:[#allocation12 + $0x28] ss:$16 sps:$4 sm:$0xff]   ;;  %v5757_v37 = vld [vmem:[#allocation12 + $0x4] ss:$16 sps:$4 sm:$0xff]  }
 0xec4   :  { %2934 = vrot.lane.b32.xlu0 %v2932_v5, %s6297_s18  ;;  %v2910_v4 = vmul.f32 %v5938_v16, %v2898_v36  ;;  %v5760_v5 = vld [vmem:[#allocation12 + $0xc] ss:$16 sps:$4 sm:$0xff]   ;;  %v7609_v16 = vld [vmem:[%s8402_s9 + $0xe4] ss:$16 sps:$4 sm:$0xff]  }
 0xec8   :  { %2912 = vrot.lane.b32.xlu0 %v2910_v4, %s6297_s18  ;;  %v7614_v4 = vld [vmem:[%s8402_s9 + $0xec] ss:$16 sps:$4 sm:$0xff]  }
 0xecc   :  { %1952 = vrot.lane.b32.xlu0 %v7163_v21, %s6297_s18  ;;  %v2925_v21 = vmul.f32 0.5, %v2919_v30 }
 0xece   :  { %5939 = vtanh.f32 %v2925_v21  ;;  %v7650_v21 = vld [vmem:[%s8402_s9 + $0xc8] ss:$16 sps:$4 sm:$0xff]  }
 0xecf   :  { %5941 = vtanh.f32 %v2900_v43  ;;  %v7657_v43 = vld [vmem:[%s8402_s9 + $0xa4] ss:$16 sps:$4 sm:$0xff]  }
 0xed0   :  { %2285 = vrot.lane.b32.xlu0 %v7271_v10, %s6297_s18  ;;  %v2909_v10 = vmul.f32 %v7580_v18, %v2898_v36  ;;  %v5736_v18 = vld [vmem:[#allocation13 + $0xc] ss:$16 sps:$4 sm:$0xff]   ;;  %v5755_v36 = vld [vmem:[#allocation12] ss:$16 sps:$4 sm:$0xff]  }
 0xed1   :  { %3128 = vmatprep.subr.bf16.mxu1 %v5736_v18  ;;  %v7755_v18 = vld [vmem:[%s8402_s9 + $0x24] ss:$16 sps:$4 sm:$0xff]  }
 0xed2   :  { %3129 = vmatpush1.bf16.msra.mxu1 %v5734_v24  ;;  %v7743_v24 = vld [vmem:[%s8402_s9 + $0x40] ss:$16 sps:$4 sm:$0xff]  }
 0xed3   :  { %3291 = vmatprep.subr.bf16.mxu1 %v5742_v55  ;;  %v7779_v55 = vld [vmem:[%s8402_s9 + $0x4] ss:$16 sps:$4 sm:$0xff]  }
 0xed4   :  { %2614 = vrot.lane.b32.xlu0 %v7519_v42, %s6297_s18 }
 0xedb   :  { %v5940_v49 = vpop.eup %5939 }
 0xedc   :  { %v2927_v51 = vmul.f32 0.5, %v5940_v49  ;;  %v5942_v53 = vpop.eup %5941  ;;  %v7719_v49 = vld [vmem:[%s8402_s9 + $0x60] ss:$16 sps:$4 sm:$0xff]  }
 0xedd   :  { %v2902_v57 = vmul.f32 0.5, %v5942_v53  ;;  %v7767_v53 = vld [vmem:[%s8402_s9 + $0x20] ss:$16 sps:$4 sm:$0xff]  }
 0xede   :  { %v2928_v56 = vadd.f32 0.5, %v2927_v51  ;;  %v7748_v51 = vld [vmem:[%s8402_s9 + $0x48] ss:$16 sps:$4 sm:$0xff]  }
 0xedf   :  { %v2903_v61 = vadd.f32 0.5, %v2902_v57  ;;  %v7791_v57 = vld [vmem:[%s8402_s9] ss:$16 sps:$4 sm:$0xff]  }
 0xf36   :  { %v2935_v33 = vpop.permute.xlu0 %2934 }
 0xf37   :  { %v2937_v26 = vadd.f32 %v2935_v33, %v2931_v14  ;;  %v5758_v14 = vld [vmem:[#allocation12 + $0x8] ss:$16 sps:$4 sm:$0xff]  }
 0xf38   :  { %v7662_v33 = vld [vmem:[%s8402_s9 + $0xac] ss:$16 sps:$4 sm:$0xff]  }
 0xf39   :  { %5943 = vtanh.f32 %v2937_v26  ;;  %v7671_v26 = vld [vmem:[%s8402_s9 + $0xa0] ss:$16 sps:$4 sm:$0xff]  }
 0xf3a   :  { %v2913_v34 = vpop.permute.xlu0 %2912 }
 0xf3b   :  { %v2915_v35 = vadd.f32 %v2913_v34, %v2909_v10  ;;  %v7676_v10 = vld [vmem:[%s8402_s9 + $0xa8] ss:$16 sps:$4 sm:$0xff]   ;;  %v7683_v34 = vld [vmem:[%s8402_s9 + $0x84] ss:$16 sps:$4 sm:$0xff]  }
 0xf3d   :  { %5945 = vtanh.f32 %v2915_v35  ;;  %v7688_v35 = vld [vmem:[%s8402_s9 + $0x8c] ss:$16 sps:$4 sm:$0xff]  }
 0xf3e   :  { %v1953_v42 = vpop.permute.xlu0 %1952 }
 0xf3f   :  { %1956 = vst.msk [vmem:[#allocation4 + $0x8] sm:$0x30] %vm1955_vm6, %v1953_v42  ;;  %v7724_v42 = vld [vmem:[%s8402_s9 + $0x68] ss:$16 sps:$4 sm:$0xff]  }
 0xf42   :  { %v2286_v54 = vpop.permute.xlu0 %2285 }
 0xf43   :  { %2288 = vst.msk [vmem:[#allocation4 + $0x8] sm:$0x3] %vm1779_vm3, %v2286_v54  ;;  %v7772_v54 = vld [vmem:[%s8402_s9 + $0x28] ss:$16 sps:$4 sm:$0xff]  }
 0xf46   :  { %v5944_v58 = vpop.eup %5943  ;;  %v2615_v59 = vpop.permute.xlu0 %2614 }
 0xf47   :  { %2617 = vst.msk [vmem:[#allocation4] sm:$0x30] %vm1955_vm6, %v2615_v59  ;;  %v2939_v60 = vmul.f32 %v5944_v58, %v2928_v56  ;;  %v7784_v56 = vld [vmem:[%s8402_s9 + $0xc] ss:$16 sps:$4 sm:$0xff]   ;;  %v7796_v58 = vld [vmem:[%s8402_s9 + $0x8] ss:$16 sps:$4 sm:$0xff]  }
 0xf49   :  { %2946 = vrot.lane.b32.xlu0 %v2939_v60, %s6297_s18 }
 0xf4a   :  { %v5946_v62 = vpop.eup %5945  ;;  %v2970_v20 = vld [vmem:[#allocation4 + $0x8] sm:$0xff] }
 0xf4b   :  { %v2917_v63 = vmul.f32 %v5946_v62, %v2903_v61 }
 0xf4d   :  { %2941 = vrot.lane.b32.xlu1 %v2917_v63, %s6297_s18 }
 0xfbb   :  { %v2947_v1 = vpop.permute.xlu0 %2946 }
 0xfbc   :  { %2949 = vst.msk [vmem:[#allocation4] sm:$0x3] %vm1779_vm3, %v2947_v1 }
 0xfbf   :  { %v2942_v2 = vpop.permute.xlu1 %2941 }
 0xfc0   :  { %2944 = vst.msk [vmem:[#allocation3 + $0x8] sm:$0xc0] %vm1785_vm7, %v2942_v2  ;;  %v3326_v2 = vld [vmem:[#allocation15] sm:$0xf] }
 0xfc3   :  { %v2969_v30 = vld [vmem:[#allocation4] sm:$0xff] }
 0xfc4   :  { %v2971_v12 = vpack.c.bf16 %v2970_v20, %v2969_v30  ;;  %v8413_v30 = vsub.s32 0, %v7097_v13 }
 0xfc6   :  { %5313 = vmatmul.mubr.msk.bf16.vlgmr.msra.gmra.mxu0 %vm1789_vm4, %v2971_v12  ;;  %5314 = vmatmul.mubr.msk.bf16.vlgmr.msra.gmra.mxu1 %vm1789_vm4, %v2971_v12  ;;  %v3331_v20 = vrot.slane %v3326_v2, %v8413_v30  ;;  %v3339_v12 = vrot.slane %v3326_v2, %v1425_v28 }
 0xfc7   :  { %3249 = vmatpush1.bf16.msra.mxu0 %v5737_v3  ;;  %3292 = vmatpush1.bf16.msra.mxu1 %v5740_v8  ;;  %v2951_v40 = vld [vmem:[#allocation3 + $0x8] sm:$0xff] }
 0xfc8   :  { %3250 = vmatprep.subr.bf16.mxu0 %v5745_v22  ;;  %3293 = vmatprep.subr.bf16.mxu1 %v5748_v29  ;;  %v2952_v44 = vpack.c.bf16 %v2951_v40, %v2950_v11 }
 0xfc9   :  { %3272 = vmatprep.mubr.bf16.mxu0 %v8412_v32  ;;  %3315 = vmatprep.mubr.bf16.mxu1 %v8412_v32 }
 0xfcb   :  { %3251 = vmatpush1.bf16.msra.mxu0 %v5743_v6  ;;  %3294 = vmatpush1.bf16.msra.mxu1 %v5746_v7 }
 0xfcc   :  { %3252 = vmatprep.subr.bf16.mxu0 %v5751_v39  ;;  %3295 = vmatprep.subr.bf16.mxu1 %v5754_v0  ;;  %v3335_v39 = vrot.slane %v3326_v2, %v1421_v23  ;;  %v3343_v0 = vrot.slane %v3326_v2, %v1429_v31 }
 0xfcf   :  { %3253 = vmatpush1.bf16.msra.mxu0 %v5749_v25  ;;  %3296 = vmatpush1.bf16.msra.mxu1 %v5752_v27 }
 0xfd0   :  { %3254 = vmatprep.subr.bf16.mxu0 %v5757_v37  ;;  %3297 = vmatprep.subr.bf16.mxu1 %v5760_v5 }
 0xfd3   :  { %3255 = vmatpush1.bf16.msra.mxu0 %v5755_v36  ;;  %3298 = vmatpush1.bf16.msra.mxu1 %v5758_v14 }
 0xfd4   :  { %3556 = vmatprep.subr.bf16.mxu0 %v7609_v16  ;;  %3597 = vmatprep.subr.bf16.mxu1 %v7614_v4 }
 0xfd6   :  { %5331 = vmatmul.mubr.msk.bf16.vlgmr.msra.gmra.mxu0 %vm1789_vm4, %v2952_v44  ;;  %5332 = vmatmul.mubr.msk.bf16.vlgmr.msra.gmra.mxu1 %vm1789_vm4, %v2952_v44 }
 0xfd7   :  { %3557 = vmatpush1.bf16.msra.mxu0 %v7619_v41  ;;  %3598 = vmatpush1.bf16.msra.mxu1 %v7624_v9 }
 0xfd8   :  { %3558 = vmatprep.subr.bf16.mxu0 %v7631_v17  ;;  %3599 = vmatprep.subr.bf16.mxu1 %v7636_v15 }
 0xfd9   :  { %3588 = vmatprep.mubr.bf16.mxu0 %v8412_v32  ;;  %3629 = vmatprep.mubr.bf16.mxu1 %v8412_v32 }
 0xfdb   :  { %3559 = vmatpush1.bf16.msra.mxu0 %v7645_v38  ;;  %3600 = vmatpush1.bf16.msra.mxu1 %v7650_v21 }
 0xfdc   :  { %3560 = vmatprep.subr.bf16.mxu0 %v7657_v43  ;;  %3601 = vmatprep.subr.bf16.mxu1 %v7662_v33 }
 0xfdf   :  { %3561 = vmatpush1.bf16.msra.mxu0 %v7671_v26  ;;  %3602 = vmatpush1.bf16.msra.mxu1 %v7676_v10 }
 0xfe0   :  { %3562 = vmatprep.subr.bf16.mxu0 %v7683_v34  ;;  %3603 = vmatprep.subr.bf16.mxu1 %v7688_v35 }
 0xfe3   :  { %3563 = vmatpush1.bf16.msra.mxu0 %v7695_v45  ;;  %3604 = vmatpush1.bf16.msra.mxu1 %v7700_v46 }
 0xfe4   :  { %3564 = vmatprep.subr.bf16.mxu0 %v7707_v47  ;;  %3605 = vmatprep.subr.bf16.mxu1 %v7712_v48 }
 0xfe7   :  { %3565 = vmatpush1.bf16.msra.mxu0 %v7719_v49  ;;  %3606 = vmatpush1.bf16.msra.mxu1 %v7724_v42 }
 0xfe8   :  { %3566 = vmatprep.subr.bf16.mxu0 %v7731_v50  ;;  %3607 = vmatprep.subr.bf16.mxu1 %v7736_v19 }
 0xfeb   :  { %3567 = vmatpush1.bf16.msra.mxu0 %v7743_v24  ;;  %3608 = vmatpush1.bf16.msra.mxu1 %v7748_v51 }
 0xfec   :  { %3568 = vmatprep.subr.bf16.mxu0 %v7755_v18  ;;  %3609 = vmatprep.subr.bf16.mxu1 %v7760_v52 }
 0xfef   :  { %3569 = vmatpush1.bf16.msra.mxu0 %v7767_v53  ;;  %3610 = vmatpush1.bf16.msra.mxu1 %v7772_v54 }
 0xff0   :  { %3570 = vmatprep.subr.bf16.mxu0 %v7779_v55  ;;  %3611 = vmatprep.subr.bf16.mxu1 %v7784_v56 }
 0xff3   :  { %3571 = vmatpush1.bf16.msra.mxu0 %v7791_v57  ;;  %3612 = vmatpush1.bf16.msra.mxu1 %v7796_v58 }
 0xff4   :  { %3710 = vmatprep.subr.bf16.mxu0 %v7609_v16  ;;  %3751 = vmatprep.subr.bf16.mxu1 %v7614_v4 }
 0xff6   :  { %3589 = vmatmul.mubr.bf16.vlgmr.msra.gmra.mxu0 %v8412_v32  ;;  %3630 = vmatmul.mubr.bf16.vlgmr.msra.gmra.mxu1 %v8412_v32 }
 0xff7   :  { %3711 = vmatpush1.bf16.msra.mxu0 %v7619_v41  ;;  %3752 = vmatpush1.bf16.msra.mxu1 %v7624_v9 }
 0xff8   :  { %3712 = vmatprep.subr.bf16.mxu0 %v7631_v17  ;;  %3753 = vmatprep.subr.bf16.mxu1 %v7636_v15 }
 0xff9   :  { %3742 = vmatprep.mubr.bf16.mxu0 %v8412_v32  ;;  %3783 = vmatprep.mubr.bf16.mxu1 %v8412_v32 }
 0xffb   :  { %3713 = vmatpush1.bf16.msra.mxu0 %v7645_v38  ;;  %3754 = vmatpush1.bf16.msra.mxu1 %v7650_v21 }
 0xffc   :  { %3714 = vmatprep.subr.bf16.mxu0 %v7657_v43  ;;  %3755 = vmatprep.subr.bf16.mxu1 %v7662_v33 }
 0xfff   :  { %3715 = vmatpush1.bf16.msra.mxu0 %v7671_v26  ;;  %3756 = vmatpush1.bf16.msra.mxu1 %v7676_v10 }
0x1000   :  { %3716 = vmatprep.subr.bf16.mxu0 %v7683_v34  ;;  %3757 = vmatprep.subr.bf16.mxu1 %v7688_v35 }
0x1003   :  { %3717 = vmatpush1.bf16.msra.mxu0 %v7695_v45  ;;  %3758 = vmatpush1.bf16.msra.mxu1 %v7700_v46 }
0x1004   :  { %3718 = vmatprep.subr.bf16.mxu0 %v7707_v47  ;;  %3759 = vmatprep.subr.bf16.mxu1 %v7712_v48 }
0x1007   :  { %3719 = vmatpush1.bf16.msra.mxu0 %v7719_v49  ;;  %3760 = vmatpush1.bf16.msra.mxu1 %v7724_v42 }
0x1008   :  { %3720 = vmatprep.subr.bf16.mxu0 %v7731_v50  ;;  %3761 = vmatprep.subr.bf16.mxu1 %v7736_v19 }
0x100b   :  { %3721 = vmatpush1.bf16.msra.mxu0 %v7743_v24  ;;  %3762 = vmatpush1.bf16.msra.mxu1 %v7748_v51 }
0x100c   :  { %3722 = vmatprep.subr.bf16.mxu0 %v7755_v18  ;;  %3763 = vmatprep.subr.bf16.mxu1 %v7760_v52 }
0x100f   :  { %3723 = vmatpush1.bf16.msra.mxu0 %v7767_v53  ;;  %3764 = vmatpush1.bf16.msra.mxu1 %v7772_v54 }
0x1010   :  { %3724 = vmatprep.subr.bf16.mxu0 %v7779_v55  ;;  %3765 = vmatprep.subr.bf16.mxu1 %v7784_v56 }
0x1013   :  { %3725 = vmatpush1.bf16.msra.mxu0 %v7791_v57  ;;  %3766 = vmatpush1.bf16.msra.mxu1 %v7796_v58 }
0x1014   :  { %3880 = vmatprep.subr.bf16.mxu0 %v7609_v16  ;;  %3921 = vmatprep.subr.bf16.mxu1 %v7614_v4 }
0x1086   :  { %v3105_v59 = vpop.f32.mrf.mxu0  ;;  %v3148_v60 = vpop.f32.mrf.mxu1 }
0x1088   :  { %v3107_v61 = vpop.f32.mrf.mxu0  ;;  %v3150_v62 = vpop.f32.mrf.mxu1 }
0x108a   :  { %v3109_v63 = vpop.f32.mrf.mxu0  ;;  %v3152_v1 = vpop.f32.mrf.mxu1 }
0x108c   :  { %v3111_v3 = vpop.f32.mrf.mxu0  ;;  %v3154_v8 = vpop.f32.mrf.mxu1 }
0x1096   :  { %v3274_v22 = vpop.f32.mrf.mxu0  ;;  %v3317_v29 = vpop.f32.mrf.mxu1 }
0x1097   :  { %v3275_v6 = vadd.f32 %v3274_v22, %v3105_v59  ;;  %v3318_v7 = vadd.f32 %v3317_v29, %v3148_v60 }
0x1098   :  { %v3276_v25 = vpop.f32.mrf.mxu0  ;;  %v3319_v27 = vpop.f32.mrf.mxu1 }
0x1099   :  { %v3348_v37 = vadd.f32 %v3331_v20, %v3275_v6  ;;  %v3350_v5 = vadd.f32 %v3339_v12, %v3318_v7  ;;  %v3277_v36 = vadd.f32 %v3276_v25, %v3107_v61  ;;  %v3320_v14 = vadd.f32 %v3319_v27, %v3150_v62 }
0x109a   :  { %v3278_v40 = vpop.f32.mrf.mxu0  ;;  %v3321_v11 = vpop.f32.mrf.mxu1 }
0x109b   :  { %3356 = vst [vmem:[#allocation5] sm:$0xff] %v3348_v37  ;;  %3358 = vst [vmem:[#allocation5 + $0x10] sm:$0xff] %v3350_v5  ;;  %v3349_v28 = vadd.f32 %v3335_v39, %v3277_v36  ;;  %v3351_v44 = vadd.f32 %v3343_v0, %v3320_v14  ;;  %v3279_v59 = vadd.f32 %v3278_v40, %v3109_v63 }
0x109c   :  { %v3322_v60 = vadd.f32 %v3321_v11, %v3152_v1  ;;  %v3280_v30 = vpop.f32.mrf.mxu0  ;;  %v3323_v22 = vpop.f32.mrf.mxu1 }
0x109d   :  { %3357 = vst [vmem:[#allocation5 + $0x18] sm:$0xff] %v3349_v28  ;;  %3359 = vst [vmem:[#allocation5 + $0x20] sm:$0xff] %v3351_v44  ;;  %v3352_v13 = vadd.f32 %v3331_v20, %v3279_v59  ;;  %v3281_v31 = vadd.f32 %v3280_v30, %v3111_v3  ;;  %v3324_v2 = vadd.f32 %v3323_v22, %v3154_v8 }
0x109e   :  { %v3354_v23 = vadd.f32 %v3339_v12, %v3322_v60 }
0x109f   :  { %3360 = vst [vmem:[#allocation5 + $0x28] sm:$0xff] %v3352_v13  ;;  %v3353_v61 = vadd.f32 %v3335_v39, %v3281_v31  ;;  %v3355_v62 = vadd.f32 %v3343_v0, %v3324_v2 }
0x10a0   :  { %3362 = vst [vmem:[#allocation5 + $0x30] sm:$0xff] %v3354_v23 }
0x10a1   :  { %3361 = vst [vmem:[#allocation5 + $0x8] sm:$0xff] %v3353_v61  ;;  %3363 = vst [vmem:[#allocation5 + $0x38] sm:$0xff] %v3355_v62 }
0x10a2   :  { %v3638_v6 = vld [vmem:[#allocation5] sm:$0x3] }
0x10a4   :  { %v3639_v12 = vld [vmem:[#allocation5 + $0x18] sm:$0x3] }
0x10a7   :  { %v3640_v1 = vld [vmem:[#allocation5 + $0x30] sm:$0xc0] }
0x10a8   :  { %v3641_v0 = vld [vmem:[#allocation5 + $0x38] sm:$0xc0] }
0x10b6   :  { %v3590_v29 = vpop.f32.mrf.mxu0  ;;  %v3631_v7 = vpop.f32.mrf.mxu1 }
0x10b7   :  { %v3642_v25 = vadd.f32 %v3638_v6, %v3590_v29  ;;  %v3664_v63 = vrot.slane %v3631_v7, 2 }
0x10b8   :  { %v3592_v27 = vpop.f32.mrf.mxu0  ;;  %v3633_v37 = vpop.f32.mrf.mxu1 }
0x10b9   :  { %v3644_v5 = vmul.f32 0.5, %v3642_v25  ;;  %v3668_v36 = vadd.f32 %v3664_v63, %v3640_v1  ;;  %v3665_v20 = vrot.slane %v3633_v37, 2  ;;  %v3643_v39 = vadd.f32 %v3639_v12, %v3592_v27 }
0x10ba   :  { %v3594_v3 = vpop.f32.mrf.mxu0  ;;  %v3635_v8 = vpop.f32.mrf.mxu1 }
0x10bb   :  { %5947 = vtanh.f32 %v3644_v5  ;;  %v3670_v14 = vmul.f32 0.5, %v3668_v36  ;;  %v3669_v28 = vadd.f32 %v3665_v20, %v3641_v0  ;;  %v3649_v62 = vmul.f32 0.5, %v3643_v39 }
0x10bc   :  { %v3595_v40 = vpop.f32.mrf.mxu0  ;;  %v3636_v11 = vpop.f32.mrf.mxu1 }
0x10bd   :  { %5949 = vtanh.f32 %v3670_v14  ;;  %v3675_v29 = vmul.f32 0.5, %v3669_v28 }
0x10be   :  { %5951 = vtanh.f32 %v3643_v39 }
0x10bf   :  { %5953 = vtanh.f32 %v3669_v28 }
0x10c0   :  { %5955 = vtanh.f32 %v3649_v62  ;;  %v3794_v62 = vld [vmem:[#allocation5 + $0x30] sm:$0x30] }
0x10c1   :  { %5957 = vtanh.f32 %v3675_v29 }
0x10c8   :  { %v5948_v44 = vpop.eup %5947 }
0x10c9   :  { %v3646_v59 = vmul.f32 0.5, %v5948_v44 }
0x10ca   :  { %v5950_v60 = vpop.eup %5949 }
0x10cb   :  { %v3647_v30 = vadd.f32 0.5, %v3646_v59  ;;  %v3672_v22 = vmul.f32 0.5, %v5950_v60  ;;  %v5952_v13 = vpop.eup %5951 }
0x10cc   :  { %v5954_v2 = vpop.eup %5953 }
0x10cd   :  { %v3654_v23 = vmul.f32 %v5952_v13, %v3647_v30  ;;  %v3673_v31 = vadd.f32 0.5, %v3672_v22  ;;  %v3653_v6 = vmul.f32 0.0, %v3647_v30  ;;  %v5956_v37 = vpop.eup %5955 }
0x10ce   :  { %v5958_v5 = vpop.eup %5957  ;;  %v3651_v36 = vmul.f32 0.5, %v5956_v37 }
0x10cf   :  { %3656 = vrot.lane.b32.xlu0 %v3654_v23, %s6297_s18  ;;  %v3680_v61 = vmul.f32 %v5954_v2, %v3673_v31  ;;  %v3679_v63 = vmul.f32 0.0, %v3673_v31  ;;  %v3677_v20 = vmul.f32 0.5, %v5958_v5 }
0x10d0   :  { %v3652_v12 = vadd.f32 0.5, %v3651_v36 }
0x10d1   :  { %3682 = vrot.lane.b32.xlu1 %v3680_v61, %s6297_s18  ;;  %v3678_v8 = vadd.f32 0.5, %v3677_v20  ;;  %v3792_v61 = vld [vmem:[#allocation5] sm:$0xc]  ;;  %v3793_v20 = vld [vmem:[#allocation5 + $0x18] sm:$0xc] }
0x1141   :  { %v3657_v7 = vpop.permute.xlu0 %3656 }
0x1142   :  { %v3659_v25 = vadd.f32 %v3657_v7, %v3653_v6 }
0x1143   :  { %v3683_v1 = vpop.permute.xlu1 %3682 }
0x1144   :  { %5959 = vtanh.f32 %v3659_v25  ;;  %v3685_v27 = vadd.f32 %v3683_v1, %v3679_v63  ;;  %3702 = vrot.lane.b32.xlu1 %v3659_v25, %s6297_s18 }
0x1146   :  { %5961 = vtanh.f32 %v3685_v27  ;;  %v3706_v40 = vrot.slane %v3685_v27, 6 }
0x1151   :  { %v5960_v3 = vpop.eup %5959 }
0x1152   :  { %v3661_v14 = vmul.f32 %v5960_v3, %v3652_v12 }
0x1153   :  { %v5962_v39 = vpop.eup %5961 }
0x1154   :  { %3689 = vrot.lane.b32.xlu0 %v3661_v14, %s6297_s18  ;;  %v7852_v0 = vmul.f32 %v5962_v39, %v3678_v8  ;;  %v3795_v14 = vld [vmem:[#allocation5 + $0x38] sm:$0x30] }
0x1156   :  { %v3698_v59 = vrot.slane %v7852_v0, 6 }
0x11b6   :  { %v3703_v11 = vpop.permute.xlu1 %3702 }
0x11b7   :  { %v7855_v28 = vsel %vm1789_vm4, %v3703_v11, %v3706_v40 }
0x11b8   :  { %v3814_v44 = vrot.slane %v7855_v28, 6 }
0x11ba   :  { %3815 = vrot.lane.b32.xlu0 %v3814_v44, %s6297_s18 }
0x11c6   :  { %v3690_v60 = vpop.permute.xlu0 %3689 }
0x11c7   :  { %3692 = vst.msk [vmem:[#allocation6] sm:$0x3] %vm1779_vm3, %v3690_v60  ;;  %v3700_v30 = vsel %vm1789_vm4, %v3690_v60, %v3698_v59 }
0x11c8   :  { %v3709_v22 = vpack.c.bf16 %v3700_v30, %v3700_v30 }
0x11ca   :  { %3743 = vmatmul.mubr.bf16.vlgmr.msra.gmra.mxu0 %v3709_v22  ;;  %3784 = vmatmul.mubr.bf16.vlgmr.msra.gmra.mxu1 %v3709_v22  ;;  %v3844_v22 = vrot.slane %v7855_v28, 4 }
0x11cb   :  { %3881 = vmatpush1.bf16.msra.mxu0 %v7619_v41  ;;  %3922 = vmatpush1.bf16.msra.mxu1 %v7624_v9 }
0x11cc   :  { %3882 = vmatprep.subr.bf16.mxu0 %v7631_v17  ;;  %3923 = vmatprep.subr.bf16.mxu1 %v7636_v15 }
0x11cd   :  { %3912 = vmatprep.mubr.bf16.mxu0 %v8412_v32  ;;  %3953 = vmatprep.mubr.bf16.mxu1 %v8412_v32 }
0x11cf   :  { %3883 = vmatpush1.bf16.msra.mxu0 %v7645_v38  ;;  %3924 = vmatpush1.bf16.msra.mxu1 %v7650_v21 }
0x11d0   :  { %3884 = vmatprep.subr.bf16.mxu0 %v7657_v43  ;;  %3925 = vmatprep.subr.bf16.mxu1 %v7662_v33 }
0x11d3   :  { %3885 = vmatpush1.bf16.msra.mxu0 %v7671_v26  ;;  %3926 = vmatpush1.bf16.msra.mxu1 %v7676_v10 }
0x11d4   :  { %3886 = vmatprep.subr.bf16.mxu0 %v7683_v34  ;;  %3927 = vmatprep.subr.bf16.mxu1 %v7688_v35 }
0x11d7   :  { %3887 = vmatpush1.bf16.msra.mxu0 %v7695_v45  ;;  %3928 = vmatpush1.bf16.msra.mxu1 %v7700_v46 }
0x11d8   :  { %3888 = vmatprep.subr.bf16.mxu0 %v7707_v47  ;;  %3929 = vmatprep.subr.bf16.mxu1 %v7712_v48 }
0x11db   :  { %3889 = vmatpush1.bf16.msra.mxu0 %v7719_v49  ;;  %3930 = vmatpush1.bf16.msra.mxu1 %v7724_v42 }
0x11dc   :  { %3890 = vmatprep.subr.bf16.mxu0 %v7731_v50  ;;  %3931 = vmatprep.subr.bf16.mxu1 %v7736_v19 }
0x11df   :  { %3891 = vmatpush1.bf16.msra.mxu0 %v7743_v24  ;;  %3932 = vmatpush1.bf16.msra.mxu1 %v7748_v51 }
0x11e0   :  { %3892 = vmatprep.subr.bf16.mxu0 %v7755_v18  ;;  %3933 = vmatprep.subr.bf16.mxu1 %v7760_v52 }
0x11e3   :  { %3893 = vmatpush1.bf16.msra.mxu0 %v7767_v53  ;;  %3934 = vmatpush1.bf16.msra.mxu1 %v7772_v54 }
0x11e4   :  { %3894 = vmatprep.subr.bf16.mxu0 %v7779_v55  ;;  %3935 = vmatprep.subr.bf16.mxu1 %v7784_v56 }
0x11e7   :  { %3895 = vmatpush1.bf16.msra.mxu0 %v7791_v57  ;;  %3936 = vmatpush1.bf16.msra.mxu1 %v7796_v58 }
0x11e8   :  { %4048 = vmatprep.subr.bf16.mxu0 %v7609_v16  ;;  %4089 = vmatprep.subr.bf16.mxu1 %v7614_v4 }
0x128a   :  { %v3744_v13 = vpop.f32.mrf.mxu0  ;;  %v3785_v23 = vpop.f32.mrf.mxu1 }
0x128b   :  { %v3798_v31 = vrot.slane %v3744_v13, 6  ;;  %v3829_v2 = vrot.slane %v3785_v23, 4 }
0x128c   :  { %v3746_v29 = vpop.f32.mrf.mxu0  ;;  %v3787_v6 = vpop.f32.mrf.mxu1 }
0x128d   :  { %v3802_v7 = vadd.f32 %v3798_v31, %v3792_v61  ;;  %v3833_v25 = vadd.f32 %v3829_v2, %v3794_v62  ;;  %v3799_v63 = vrot.slane %v3746_v29, 6  ;;  %v3830_v1 = vrot.slane %v3787_v6, 4  ;;  %v3816_v6 = vpop.permute.xlu0 %3815 }
0x128e   :  { %v3748_v27 = vpop.f32.mrf.mxu0  ;;  %v3789_v37 = vpop.f32.mrf.mxu1 }
0x128f   :  { %v3804_v5 = vmul.f32 0.5, %v3802_v7  ;;  %v3835_v36 = vmul.f32 0.5, %v3833_v25  ;;  %v3803_v8 = vadd.f32 %v3799_v63, %v3793_v20  ;;  %v3834_v39 = vadd.f32 %v3830_v1, %v3795_v14 }
0x1290   :  { %v3749_v12 = vpop.f32.mrf.mxu0  ;;  %v3790_v3 = vpop.f32.mrf.mxu1 }
0x1291   :  { %5963 = vtanh.f32 %v3804_v5  ;;  %v3809_v62 = vmul.f32 0.5, %v3803_v8  ;;  %v3840_v29 = vmul.f32 0.5, %v3834_v39 }
0x1292   :  { %5965 = vtanh.f32 %v3835_v36 }
0x1293   :  { %5967 = vtanh.f32 %v3803_v8 }
0x1294   :  { %5969 = vtanh.f32 %v3834_v39 }
0x1295   :  { %5971 = vtanh.f32 %v3809_v62 }
0x1296   :  { %5973 = vtanh.f32 %v3840_v29  ;;  %v3962_v29 = vld [vmem:[#allocation5] sm:$0x30] }
0x129e   :  { %v5964_v40 = vpop.eup %5963 }
0x129f   :  { %v5966_v11 = vpop.eup %5965  ;;  %v3806_v44 = vmul.f32 0.5, %v5964_v40 }
0x12a0   :  { %v3837_v59 = vmul.f32 0.5, %v5966_v11  ;;  %v5968_v30 = vpop.eup %5967 }
0x12a1   :  { %v3807_v60 = vadd.f32 0.5, %v3806_v44  ;;  %v5970_v23 = vpop.eup %5969 }
0x12a2   :  { %v3838_v13 = vadd.f32 0.5, %v3837_v59  ;;  %v5972_v28 = vpop.eup %5971 }
0x12a3   :  { %v3819_v31 = vmul.f32 %v5968_v30, %v3807_v60  ;;  %v3818_v7 = vmul.f32 %v3816_v6, %v3807_v60  ;;  %v5974_v37 = vpop.eup %5973  ;;  %v3811_v5 = vmul.f32 0.5, %v5972_v28  ;;  %v3964_v6 = vld [vmem:[#allocation5 + $0x30] sm:$0xc] }
0x12a4   :  { %v3847_v2 = vmul.f32 %v5970_v23, %v3838_v13  ;;  %v3846_v61 = vmul.f32 %v3844_v22, %v3838_v13  ;;  %v3842_v36 = vmul.f32 0.5, %v5974_v37 }
0x12a5   :  { %3821 = vrot.lane.b32.xlu1 %v3819_v31, %s6297_s18  ;;  %v3812_v20 = vadd.f32 0.5, %v3811_v5 }
0x12a6   :  { %3849 = vrot.lane.b32.xlu0 %v3847_v2, %s6297_s18  ;;  %v3843_v3 = vadd.f32 0.5, %v3842_v36 }
0x1317   :  { %v3822_v25 = vpop.permute.xlu1 %3821 }
0x1318   :  { %v3824_v63 = vadd.f32 %v3822_v25, %v3818_v7  ;;  %v3850_v1 = vpop.permute.xlu0 %3849 }
0x1319   :  { %v3852_v27 = vadd.f32 %v3850_v1, %v3846_v61 }
0x131a   :  { %5975 = vtanh.f32 %v3824_v63  ;;  %3869 = vrot.lane.b32.xlu0 %v3824_v63, %s6297_s18 }
0x131b   :  { %5977 = vtanh.f32 %v3852_v27  ;;  %v3873_v40 = vrot.slane %v3852_v27, 2 }
0x1327   :  { %v5976_v12 = vpop.eup %5975 }
0x1328   :  { %v5978_v8 = vpop.eup %5977  ;;  %v3826_v14 = vmul.f32 %v5976_v12, %v3812_v20  ;;  %v3963_v12 = vld [vmem:[#allocation5 + $0x18] sm:$0x30] }
0x1329   :  { %v7900_v39 = vmul.f32 %v5978_v8, %v3843_v3 }
0x132a   :  { %3856 = vrot.lane.b32.xlu1 %v3826_v14, %s6297_s18 }
0x132b   :  { %v3865_v60 = vrot.slane %v7900_v39, 2 }
0x138c   :  { %v3870_v11 = vpop.permute.xlu0 %3869 }
0x138d   :  { %v7904_v44 = vsel %vm1789_vm4, %v3870_v11, %v3873_v40  ;;  %v3965_v40 = vld [vmem:[#allocation5 + $0x38] sm:$0xc] }
0x138e   :  { %v3984_v59 = vrot.slane %v7904_v44, 6 }
0x1390   :  { %3985 = vrot.lane.b32.xlu1 %v3984_v59, %s6297_s18 }
0x139c   :  { %v3857_v30 = vpop.permute.xlu1 %3856 }
0x139d   :  { %3859 = vst.msk [vmem:[#allocation6] sm:$0xc] %vm1949_vm5, %v3857_v30  ;;  %v3867_v22 = vsel %vm1789_vm4, %v3857_v30, %v3865_v60 }
0x139e   :  { %v3876_v13 = vpack.c.bf16 %v3867_v22, %v3867_v22 }
0x13a0   :  { %v3878_v23 = vrot.slane %v3876_v13, 1 }
0x13a2   :  { %3913 = vmatmul.mubr.bf16.vlgmr.msra.gmra.mxu0 %v3878_v23  ;;  %3954 = vmatmul.mubr.bf16.vlgmr.msra.gmra.mxu1 %v3878_v23 }
0x13a3   :  { %4049 = vmatpush1.bf16.msra.mxu0 %v7619_v41  ;;  %4090 = vmatpush1.bf16.msra.mxu1 %v7624_v9 }
0x13a4   :  { %4050 = vmatprep.subr.bf16.mxu0 %v7631_v17  ;;  %4091 = vmatprep.subr.bf16.mxu1 %v7636_v15 }
0x13a5   :  { %4080 = vmatprep.mubr.bf16.mxu0 %v8412_v32  ;;  %4121 = vmatprep.mubr.bf16.mxu1 %v8412_v32 }
0x13a7   :  { %4051 = vmatpush1.bf16.msra.mxu0 %v7645_v38  ;;  %4092 = vmatpush1.bf16.msra.mxu1 %v7650_v21 }
0x13a8   :  { %4052 = vmatprep.subr.bf16.mxu0 %v7657_v43  ;;  %4093 = vmatprep.subr.bf16.mxu1 %v7662_v33 }
0x13ab   :  { %4053 = vmatpush1.bf16.msra.mxu0 %v7671_v26  ;;  %4094 = vmatpush1.bf16.msra.mxu1 %v7676_v10 }
0x13ac   :  { %4054 = vmatprep.subr.bf16.mxu0 %v7683_v34  ;;  %4095 = vmatprep.subr.bf16.mxu1 %v7688_v35 }
0x13af   :  { %4055 = vmatpush1.bf16.msra.mxu0 %v7695_v45  ;;  %4096 = vmatpush1.bf16.msra.mxu1 %v7700_v46 }
0x13b0   :  { %4056 = vmatprep.subr.bf16.mxu0 %v7707_v47  ;;  %4097 = vmatprep.subr.bf16.mxu1 %v7712_v48 }
0x13b3   :  { %4057 = vmatpush1.bf16.msra.mxu0 %v7719_v49  ;;  %4098 = vmatpush1.bf16.msra.mxu1 %v7724_v42 }
0x13b4   :  { %4058 = vmatprep.subr.bf16.mxu0 %v7731_v50  ;;  %4099 = vmatprep.subr.bf16.mxu1 %v7736_v19 }
0x13b7   :  { %4059 = vmatpush1.bf16.msra.mxu0 %v7743_v24  ;;  %4100 = vmatpush1.bf16.msra.mxu1 %v7748_v51 }
0x13b8   :  { %4060 = vmatprep.subr.bf16.mxu0 %v7755_v18  ;;  %4101 = vmatprep.subr.bf16.mxu1 %v7760_v52 }
0x13bb   :  { %4061 = vmatpush1.bf16.msra.mxu0 %v7767_v53  ;;  %4102 = vmatpush1.bf16.msra.mxu1 %v7772_v54 }
0x13bc   :  { %4062 = vmatprep.subr.bf16.mxu0 %v7779_v55  ;;  %4103 = vmatprep.subr.bf16.mxu1 %v7784_v56 }
0x13bf   :  { %4063 = vmatpush1.bf16.msra.mxu0 %v7791_v57  ;;  %4104 = vmatpush1.bf16.msra.mxu1 %v7796_v58 }
0x13c0   :  { %4212 = vmatprep.subr.bf16.mxu0 %v7609_v16  ;;  %4253 = vmatprep.subr.bf16.mxu1 %v7614_v4 }
0x1462   :  { %v3914_v31 = vpop.f32.mrf.mxu0  ;;  %v3955_v2 = vpop.f32.mrf.mxu1 }
0x1463   :  { %v3968_v61 = vrot.slane %v3914_v31, 4  ;;  %v3999_v62 = vrot.slane %v3955_v2, 6 }
0x1464   :  { %v3916_v7 = vpop.f32.mrf.mxu0  ;;  %v3957_v25 = vpop.f32.mrf.mxu1 }
0x1465   :  { %v3972_v63 = vadd.f32 %v3968_v61, %v3962_v29  ;;  %v4003_v1 = vadd.f32 %v3999_v62, %v3964_v6  ;;  %v3969_v27 = vrot.slane %v3916_v7, 4  ;;  %v4000_v28 = vrot.slane %v3957_v25, 6  ;;  %v3986_v7 = vpop.permute.xlu1 %3985 }
0x1466   :  { %v3918_v37 = vpop.f32.mrf.mxu0  ;;  %v3959_v5 = vpop.f32.mrf.mxu1 }
0x1467   :  { %v3974_v36 = vmul.f32 0.5, %v3972_v63  ;;  %v4005_v20 = vmul.f32 0.5, %v4003_v1  ;;  %v3973_v14 = vadd.f32 %v3969_v27, %v3963_v12  ;;  %v4004_v11 = vadd.f32 %v4000_v28, %v3965_v40 }
0x1468   :  { %v3919_v3 = vpop.f32.mrf.mxu0  ;;  %v3960_v8 = vpop.f32.mrf.mxu1 }
0x1469   :  { %5979 = vtanh.f32 %v3974_v36  ;;  %v3979_v29 = vmul.f32 0.5, %v3973_v14  ;;  %v4010_v6 = vmul.f32 0.5, %v4004_v11 }
0x146a   :  { %5981 = vtanh.f32 %v4005_v20 }
0x146b   :  { %5983 = vtanh.f32 %v3973_v14 }
0x146c   :  { %5985 = vtanh.f32 %v4004_v11 }
0x146d   :  { %5987 = vtanh.f32 %v3979_v29 }
0x146e   :  { %5989 = vtanh.f32 %v4010_v6 }
0x1476   :  { %v5980_v59 = vpop.eup %5979 }
0x1477   :  { %v5982_v60 = vpop.eup %5981  ;;  %v3976_v30 = vmul.f32 0.5, %v5980_v59 }
0x1478   :  { %v4007_v22 = vmul.f32 0.5, %v5982_v60  ;;  %v5984_v23 = vpop.eup %5983 }
0x1479   :  { %v3977_v13 = vadd.f32 0.5, %v3976_v30  ;;  %v5986_v2 = vpop.eup %5985 }
0x147a   :  { %v4008_v31 = vadd.f32 0.5, %v4007_v22  ;;  %v5988_v5 = vpop.eup %5987 }
0x147b   :  { %v3989_v61 = vmul.f32 %v5984_v23, %v3977_v13  ;;  %v3988_v25 = vmul.f32 %v3986_v7, %v3977_v13  ;;  %v5990_v36 = vpop.eup %5989  ;;  %v3981_v20 = vmul.f32 0.5, %v5988_v5 }
0x147c   :  { %v4015_v62 = vmul.f32 %v5986_v2, %v4008_v31  ;;  %v4014_v63 = vmul.f32 %v4008_v31, %v7904_v44  ;;  %v4012_v12 = vmul.f32 0.5, %v5990_v36 }
0x147d   :  { %3991 = vrot.lane.b32.xlu0 %v3989_v61, %s6297_s18  ;;  %v3982_v3 = vadd.f32 0.5, %v3981_v20 }
0x147e   :  { %4017 = vrot.lane.b32.xlu1 %v4015_v62, %s6297_s18  ;;  %v4013_v14 = vadd.f32 0.5, %v4012_v12 }
0x14ef   :  { %v3992_v1 = vpop.permute.xlu0 %3991 }
0x14f0   :  { %v4018_v27 = vpop.permute.xlu1 %4017  ;;  %v3994_v28 = vadd.f32 %v3992_v1, %v3988_v25 }
0x14f1   :  { %v4020_v37 = vadd.f32 %v4018_v27, %v4014_v63 }
0x14f2   :  { %5991 = vtanh.f32 %v3994_v28  ;;  %4037 = vrot.lane.b32.xlu1 %v3994_v28, %s6297_s18 }
0x14f3   :  { %5993 = vtanh.f32 %v4020_v37  ;;  %v4041_v44 = vrot.slane %v4020_v37, 6 }
0x14ff   :  { %v5992_v8 = vpop.eup %5991 }
0x1500   :  { %v5994_v40 = vpop.eup %5993  ;;  %v3996_v11 = vmul.f32 %v5992_v8, %v3982_v3 }
0x1501   :  { %v7949_v59 = vmul.f32 %v5994_v40, %v4013_v14 }
0x1502   :  { %4024 = vrot.lane.b32.xlu0 %v3996_v11, %s6297_s18 }
0x1503   :  { %v4033_v13 = vrot.slane %v7949_v59, 6 }
0x1564   :  { %v4038_v60 = vpop.permute.xlu1 %4037 }
0x1565   :  { %v7953_v30 = vsel %vm1789_vm4, %v4038_v60, %v4041_v44 }
0x1566   :  { %v4152_v22 = vrot.slane %v7953_v30, 6 }
0x1568   :  { %4153 = vrot.lane.b32.xlu0 %v4152_v22, %s6297_s18 }
0x1574   :  { %v4025_v23 = vpop.permute.xlu0 %4024 }
0x1575   :  { %4027 = vst.msk [vmem:[#allocation6] sm:$0x30] %vm1955_vm6, %v4025_v23  ;;  %v4035_v31 = vsel %vm1789_vm4, %v4025_v23, %v4033_v13 }
0x1576   :  { %v4044_v2 = vpack.c.bf16 %v4035_v31, %v4035_v31 }
0x1578   :  { %v4046_v61 = vrot.slane %v4044_v2, 2 }
0x157a   :  { %4081 = vmatmul.mubr.bf16.vlgmr.msra.gmra.mxu0 %v4046_v61  ;;  %4122 = vmatmul.mubr.bf16.vlgmr.msra.gmra.mxu1 %v4046_v61  ;;  %v8012_v61 = vld [vmem:[%s8402_s9 + $0xe0] ss:$16 sps:$4 sm:$0xff]  }
0x157b   :  { %4213 = vmatpush1.bf16.msra.mxu0 %v7619_v41  ;;  %4254 = vmatpush1.bf16.msra.mxu1 %v7624_v9 }
0x157c   :  { %4214 = vmatprep.subr.bf16.mxu0 %v7631_v17  ;;  %4255 = vmatprep.subr.bf16.mxu1 %v7636_v15  ;;  %v4132_v17 = vld [vmem:[#allocation5 + $0x30] sm:$0x3] }
0x157d   :  { %4244 = vmatprep.mubr.bf16.mxu0 %v8412_v32  ;;  %4285 = vmatprep.mubr.bf16.mxu1 %v8412_v32 }
0x157f   :  { %4215 = vmatpush1.bf16.msra.mxu0 %v7645_v38  ;;  %4256 = vmatpush1.bf16.msra.mxu1 %v7650_v21  ;;  %v4130_v21 = vld [vmem:[#allocation5] sm:$0xc0] }
0x1580   :  { %4216 = vmatprep.subr.bf16.mxu0 %v7657_v43  ;;  %4257 = vmatprep.subr.bf16.mxu1 %v7662_v33 }
0x1583   :  { %4217 = vmatpush1.bf16.msra.mxu0 %v7671_v26  ;;  %4258 = vmatpush1.bf16.msra.mxu1 %v7676_v10 }
0x1584   :  { %4218 = vmatprep.subr.bf16.mxu0 %v7683_v34  ;;  %4259 = vmatprep.subr.bf16.mxu1 %v7688_v35  ;;  %v4133_v35 = vld [vmem:[#allocation5 + $0x38] sm:$0x3] }
0x1587   :  { %4219 = vmatpush1.bf16.msra.mxu0 %v7695_v45  ;;  %4260 = vmatpush1.bf16.msra.mxu1 %v7700_v46 }
0x1588   :  { %4220 = vmatprep.subr.bf16.mxu0 %v7707_v47  ;;  %4261 = vmatprep.subr.bf16.mxu1 %v7712_v48 }
0x158b   :  { %4221 = vmatpush1.bf16.msra.mxu0 %v7719_v49  ;;  %4262 = vmatpush1.bf16.msra.mxu1 %v7724_v42 }
0x158c   :  { %4222 = vmatprep.subr.bf16.mxu0 %v7731_v50  ;;  %4263 = vmatprep.subr.bf16.mxu1 %v7736_v19 }
0x158f   :  { %4223 = vmatpush1.bf16.msra.mxu0 %v7743_v24  ;;  %4264 = vmatpush1.bf16.msra.mxu1 %v7748_v51  ;;  %v4176_v51 = vrot.slane %v7953_v30, 4 }
0x1590   :  { %4224 = vmatprep.subr.bf16.mxu0 %v7755_v18  ;;  %4265 = vmatprep.subr.bf16.mxu1 %v7760_v52 }
0x1593   :  { %4225 = vmatpush1.bf16.msra.mxu0 %v7767_v53  ;;  %4266 = vmatpush1.bf16.msra.mxu1 %v7772_v54 }
0x1594   :  { %4226 = vmatprep.subr.bf16.mxu0 %v7779_v55  ;;  %4267 = vmatprep.subr.bf16.mxu1 %v7784_v56 }
0x1597   :  { %4227 = vmatpush1.bf16.msra.mxu0 %v7791_v57  ;;  %4268 = vmatpush1.bf16.msra.mxu1 %v7796_v58 }
0x1598   :  { %4371 = vmatprep.subr.bf16.mxu0 %v7609_v16  ;;  %4412 = vmatprep.subr.bf16.mxu1 %v7614_v4  ;;  %v4131_v16 = vld [vmem:[#allocation5 + $0x18] sm:$0xc0] }
0x15da   :  { %v4154_v6 = vpop.permute.xlu0 %4153 }
0x163a   :  { %v4082_v41 = vpop.f32.mrf.mxu0  ;;  %v4123_v9 = vpop.f32.mrf.mxu1 }
0x163b   :  { %v4136_v15 = vrot.slane %v4082_v41, 2  ;;  %v4165_v38 = vadd.f32 %v4132_v17, %v4123_v9  ;;  %v8018_v41 = vld [vmem:[%s8402_s9 + $0xe8] ss:$16 sps:$4 sm:$0xff]   ;;  %v8024_v9 = vld [vmem:[%s8402_s9 + $0xc4] ss:$16 sps:$4 sm:$0xff]  }
0x163c   :  { %v4084_v43 = vpop.f32.mrf.mxu0  ;;  %v4125_v33 = vpop.f32.mrf.mxu1  ;;  %v8030_v17 = vld [vmem:[%s8402_s9 + $0xcc] ss:$16 sps:$4 sm:$0xff]  }
0x163d   :  { %v4140_v26 = vadd.f32 %v4136_v15, %v4130_v21  ;;  %v4167_v10 = vmul.f32 0.5, %v4165_v38  ;;  %v4137_v34 = vrot.slane %v4084_v43, 2  ;;  %v4166_v48 = vadd.f32 %v4133_v35, %v4125_v33  ;;  %v8038_v15 = vld [vmem:[%s8402_s9 + $0xc0] ss:$16 sps:$4 sm:$0xff]   ;;  %v8044_v38 = vld [vmem:[%s8402_s9 + $0xc8] ss:$16 sps:$4 sm:$0xff]  }
0x163e   :  { %v4086_v45 = vpop.f32.mrf.mxu0  ;;  %v4127_v46 = vpop.f32.mrf.mxu1  ;;  %v8050_v21 = vld [vmem:[%s8402_s9 + $0xa4] ss:$16 sps:$4 sm:$0xff]   ;;  %v8056_v43 = vld [vmem:[%s8402_s9 + $0xac] ss:$16 sps:$4 sm:$0xff]   ;;  %v8062_v33 = vld [vmem:[%s8402_s9 + $0xa0] ss:$16 sps:$4 sm:$0xff]  }
0x163f   :  { %v4142_v47 = vmul.f32 0.5, %v4140_v26  ;;  %5995 = vtanh.f32 %v4167_v10  ;;  %v4141_v42 = vadd.f32 %v4137_v34, %v4131_v16  ;;  %v4172_v62 = vmul.f32 0.5, %v4166_v48  ;;  %v8068_v26 = vld [vmem:[%s8402_s9 + $0xa8] ss:$16 sps:$4 sm:$0xff]   ;;  %v8074_v10 = vld [vmem:[%s8402_s9 + $0x84] ss:$16 sps:$4 sm:$0xff]  }
0x1640   :  { %v4087_v49 = vpop.f32.mrf.mxu0  ;;  %v4128_v4 = vpop.f32.mrf.mxu1  ;;  %v8080_v34 = vld [vmem:[%s8402_s9 + $0x8c] ss:$16 sps:$4 sm:$0xff]   ;;  %v8086_v35 = vld [vmem:[%s8402_s9 + $0x80] ss:$16 sps:$4 sm:$0xff]   ;;  %v8092_v45 = vld [vmem:[%s8402_s9 + $0x88] ss:$16 sps:$4 sm:$0xff]  }
0x1641   :  { %5997 = vtanh.f32 %v4142_v47  ;;  %v4147_v29 = vmul.f32 0.5, %v4141_v42  ;;  %v8098_v46 = vld [vmem:[%s8402_s9 + $0x64] ss:$16 sps:$4 sm:$0xff]   ;;  %v8104_v47 = vld [vmem:[%s8402_s9 + $0x6c] ss:$16 sps:$4 sm:$0xff]  }
0x1642   :  { %5999 = vtanh.f32 %v4166_v48  ;;  %v8110_v48 = vld [vmem:[%s8402_s9 + $0x60] ss:$16 sps:$4 sm:$0xff]   ;;  %v8116_v16 = vld [vmem:[%s8402_s9 + $0x68] ss:$16 sps:$4 sm:$0xff]   ;;  %v8122_v49 = vld [vmem:[%s8402_s9 + $0x44] ss:$16 sps:$4 sm:$0xff]  }
0x1643   :  { %6001 = vtanh.f32 %v4141_v42  ;;  %v8128_v4 = vld [vmem:[%s8402_s9 + $0x4c] ss:$16 sps:$4 sm:$0xff]   ;;  %v8134_v42 = vld [vmem:[%s8402_s9 + $0x40] ss:$16 sps:$4 sm:$0xff]  }
0x1644   :  { %6003 = vtanh.f32 %v4172_v62  ;;  %v4294_v62 = vld [vmem:[#allocation5 + $0x28] sm:$0x3] }
0x1645   :  { %6005 = vtanh.f32 %v4147_v29 }
0x164c   :  { %v5996_v50 = vpop.eup %5995 }
0x164d   :  { %v4169_v19 = vmul.f32 0.5, %v5996_v50  ;;  %v8140_v50 = vld [vmem:[%s8402_s9 + $0x48] ss:$16 sps:$4 sm:$0xff]  }
0x164e   :  { %v5998_v24 = vpop.eup %5997 }
0x164f   :  { %v4170_v18 = vadd.f32 0.5, %v4169_v19  ;;  %v4144_v52 = vmul.f32 0.5, %v5998_v24  ;;  %v6000_v53 = vpop.eup %5999  ;;  %v8146_v19 = vld [vmem:[%s8402_s9 + $0x24] ss:$16 sps:$4 sm:$0xff]   ;;  %v8152_v24 = vld [vmem:[%s8402_s9 + $0x2c] ss:$16 sps:$4 sm:$0xff]  }
0x1650   :  { %v6002_v57 = vpop.eup %6001 }
0x1651   :  { %v4179_v54 = vmul.f32 %v6000_v53, %v4170_v18  ;;  %v4145_v55 = vadd.f32 0.5, %v4144_v52  ;;  %v4178_v56 = vmul.f32 %v4176_v51, %v4170_v18  ;;  %v6004_v28 = vpop.eup %6003  ;;  %v8158_v51 = vld [vmem:[%s8402_s9 + $0x20] ss:$16 sps:$4 sm:$0xff]   ;;  %v8164_v18 = vld [vmem:[%s8402_s9 + $0x28] ss:$16 sps:$4 sm:$0xff]  }
0x1652   :  { %v6006_v37 = vpop.eup %6005  ;;  %v4174_v5 = vmul.f32 0.5, %v6004_v28  ;;  %v8170_v52 = vld [vmem:[%s8402_s9 + $0x4] ss:$16 sps:$4 sm:$0xff]   ;;  %v8176_v53 = vld [vmem:[%s8402_s9 + $0xc] ss:$16 sps:$4 sm:$0xff]  }
0x1653   :  { %4181 = vrot.lane.b32.xlu0 %v4179_v54, %s6297_s18  ;;  %v4157_v58 = vmul.f32 %v6002_v57, %v4145_v55  ;;  %v4156_v63 = vmul.f32 %v4154_v6, %v4145_v55  ;;  %v4149_v36 = vmul.f32 0.5, %v6006_v37  ;;  %v8182_v54 = vld [vmem:[%s8402_s9] ss:$16 sps:$4 sm:$0xff]   ;;  %v8188_v55 = vld [vmem:[%s8402_s9 + $0x8] ss:$16 sps:$4 sm:$0xff]  }
0x1654   :  { %v4175_v20 = vadd.f32 0.5, %v4174_v5  ;;  %v8200_v57 = vld [vmem:[%s8402_s9 + $0xec] ss:$16 sps:$4 sm:$0xff]   ;;  %v4295_v5 = vld [vmem:[#allocation5 + $0x8] sm:$0x3] }
0x1655   :  { %4159 = vrot.lane.b32.xlu1 %v4157_v58, %s6297_s18  ;;  %v4150_v3 = vadd.f32 0.5, %v4149_v36 }
0x16c5   :  { %v4182_v7 = vpop.permute.xlu0 %4181 }
0x16c6   :  { %v4184_v25 = vadd.f32 %v4182_v7, %v4178_v56  ;;  %v8194_v56 = vld [vmem:[%s8402_s9 + $0xe4] ss:$16 sps:$4 sm:$0xff]  }
0x16c7   :  { %v4160_v1 = vpop.permute.xlu1 %4159 }
0x16c8   :  { %6007 = vtanh.f32 %v4184_v25  ;;  %v4162_v27 = vadd.f32 %v4160_v1, %v4156_v63  ;;  %v4205_v11 = vrot.slane %v4184_v25, 2  ;;  %v4296_v25 = vld [vmem:[#allocation5 + $0x10] sm:$0xc0] }
0x16ca   :  { %6009 = vtanh.f32 %v4162_v27  ;;  %4201 = vrot.lane.b32.xlu0 %v4162_v27, %s6297_s18 }
0x16d5   :  { %v6008_v12 = vpop.eup %6007 }
0x16d6   :  { %v7998_v8 = vmul.f32 %v6008_v12, %v4175_v20 }
0x16d7   :  { %v6010_v14 = vpop.eup %6009 }
0x16d8   :  { %v4164_v40 = vmul.f32 %v6010_v14, %v4150_v3  ;;  %v4197_v22 = vrot.slane %v7998_v8, 2  ;;  %v4297_v14 = vld [vmem:[#allocation5 + $0x20] sm:$0xc0] }
0x16da   :  { %4188 = vrot.lane.b32.xlu1 %v4164_v40, %s6297_s18 }
0x173c   :  { %v4202_v44 = vpop.permute.xlu0 %4201 }
0x173d   :  { %v8002_v60 = vsel %vm1789_vm4, %v4202_v44, %v4205_v11 }
0x173e   :  { %v4310_v30 = vrot.slane %v8002_v60, 6 }
0x1740   :  { %4311 = vrot.lane.b32.xlu1 %v4310_v30, %s6297_s18 }
0x174c   :  { %v4189_v13 = vpop.permute.xlu1 %4188 }
0x174d   :  { %4191 = vst.msk [vmem:[#allocation6] sm:$0xc0] %vm1785_vm7, %v4189_v13  ;;  %v4199_v23 = vsel %vm1789_vm4, %v4189_v13, %v4197_v22 }
0x174e   :  { %v4208_v31 = vpack.c.bf16 %v4199_v23, %v4199_v23 }
0x1750   :  { %v4210_v2 = vrot.slane %v4208_v31, 3 }
0x1752   :  { %4245 = vmatmul.mubr.bf16.vlgmr.msra.gmra.mxu0 %v4210_v2  ;;  %4286 = vmatmul.mubr.bf16.vlgmr.msra.gmra.mxu1 %v4210_v2 }
0x1753   :  { %4372 = vmatpush1.bf16.msra.mxu0 %v8012_v61  ;;  %4413 = vmatpush1.bf16.msra.mxu1 %v8018_v41 }
0x1754   :  { %4373 = vmatprep.subr.bf16.mxu0 %v8024_v9  ;;  %4414 = vmatprep.subr.bf16.mxu1 %v8030_v17 }
0x1755   :  { %4403 = vmatprep.mubr.bf16.mxu0 %v8412_v32  ;;  %4444 = vmatprep.mubr.bf16.mxu1 %v8412_v32 }
0x1757   :  { %4374 = vmatpush1.bf16.msra.mxu0 %v8038_v15  ;;  %4415 = vmatpush1.bf16.msra.mxu1 %v8044_v38 }
0x1758   :  { %4375 = vmatprep.subr.bf16.mxu0 %v8050_v21  ;;  %4416 = vmatprep.subr.bf16.mxu1 %v8056_v43 }
0x175b   :  { %4376 = vmatpush1.bf16.msra.mxu0 %v8062_v33  ;;  %4417 = vmatpush1.bf16.msra.mxu1 %v8068_v26 }
0x175c   :  { %4377 = vmatprep.subr.bf16.mxu0 %v8074_v10  ;;  %4418 = vmatprep.subr.bf16.mxu1 %v8080_v34 }
0x175f   :  { %4378 = vmatpush1.bf16.msra.mxu0 %v8086_v35  ;;  %4419 = vmatpush1.bf16.msra.mxu1 %v8092_v45 }
0x1760   :  { %4379 = vmatprep.subr.bf16.mxu0 %v8098_v46  ;;  %4420 = vmatprep.subr.bf16.mxu1 %v8104_v47 }
0x1763   :  { %4380 = vmatpush1.bf16.msra.mxu0 %v8110_v48  ;;  %4421 = vmatpush1.bf16.msra.mxu1 %v8116_v16 }
0x1764   :  { %4381 = vmatprep.subr.bf16.mxu0 %v8122_v49  ;;  %4422 = vmatprep.subr.bf16.mxu1 %v8128_v4 }
0x1767   :  { %4382 = vmatpush1.bf16.msra.mxu0 %v8134_v42  ;;  %4423 = vmatpush1.bf16.msra.mxu1 %v8140_v50 }
0x1768   :  { %4383 = vmatprep.subr.bf16.mxu0 %v8146_v19  ;;  %4424 = vmatprep.subr.bf16.mxu1 %v8152_v24 }
0x176b   :  { %4384 = vmatpush1.bf16.msra.mxu0 %v8158_v51  ;;  %4425 = vmatpush1.bf16.msra.mxu1 %v8164_v18 }
0x176c   :  { %4385 = vmatprep.subr.bf16.mxu0 %v8170_v52  ;;  %4426 = vmatprep.subr.bf16.mxu1 %v8176_v53 }
0x176f   :  { %4386 = vmatpush1.bf16.msra.mxu0 %v8182_v54  ;;  %4427 = vmatpush1.bf16.msra.mxu1 %v8188_v55 }
0x1770   :  { %4541 = vmatprep.subr.bf16.mxu0 %v8194_v56  ;;  %4582 = vmatprep.subr.bf16.mxu1 %v8200_v57 }
0x1812   :  { %v4246_v58 = vpop.f32.mrf.mxu0  ;;  %v4287_v29 = vpop.f32.mrf.mxu1 }
0x1813   :  { %v4298_v6 = vadd.f32 %v4294_v62, %v4246_v58  ;;  %v4325_v7 = vrot.slane %v4287_v29, 2 }
0x1814   :  { %v4248_v63 = vpop.f32.mrf.mxu0  ;;  %v4289_v1 = vpop.f32.mrf.mxu1 }
0x1815   :  { %v4300_v27 = vmul.f32 0.5, %v4298_v6  ;;  %v4329_v28 = vadd.f32 %v4325_v7, %v4296_v25  ;;  %v4326_v37 = vrot.slane %v4289_v1, 2  ;;  %v4299_v3 = vadd.f32 %v4295_v5, %v4248_v63  ;;  %v4312_v63 = vpop.permute.xlu1 %4311 }
0x1816   :  { %v4250_v36 = vpop.f32.mrf.mxu0  ;;  %v4291_v20 = vpop.f32.mrf.mxu1 }
0x1817   :  { %6011 = vtanh.f32 %v4300_v27  ;;  %v4331_v12 = vmul.f32 0.5, %v4329_v28  ;;  %v4330_v44 = vadd.f32 %v4326_v37, %v4297_v14  ;;  %v4305_v7 = vmul.f32 0.5, %v4299_v3 }
0x1818   :  { %v4251_v40 = vpop.f32.mrf.mxu0  ;;  %v4292_v11 = vpop.f32.mrf.mxu1 }
0x1819   :  { %6013 = vtanh.f32 %v4331_v12  ;;  %v4336_v25 = vmul.f32 0.5, %v4330_v44 }
0x181a   :  { %6015 = vtanh.f32 %v4299_v3 }
0x181b   :  { %6017 = vtanh.f32 %v4330_v44 }
0x181c   :  { %6019 = vtanh.f32 %v4305_v7 }
0x181d   :  { %6021 = vtanh.f32 %v4336_v25 }
0x1824   :  { %v6012_v30 = vpop.eup %6011 }
0x1825   :  { %v4302_v22 = vmul.f32 0.5, %v6012_v30 }
0x1826   :  { %v6014_v13 = vpop.eup %6013 }
0x1827   :  { %v4303_v23 = vadd.f32 0.5, %v4302_v22  ;;  %v4333_v31 = vmul.f32 0.5, %v6014_v13  ;;  %v6016_v2 = vpop.eup %6015 }
0x1828   :  { %v6018_v29 = vpop.eup %6017 }
0x1829   :  { %v4315_v58 = vmul.f32 %v6016_v2, %v4303_v23  ;;  %v4334_v62 = vadd.f32 0.5, %v4333_v31  ;;  %v4314_v1 = vmul.f32 %v4312_v63, %v4303_v23  ;;  %v6020_v20 = vpop.eup %6019 }
0x182a   :  { %v6022_v12 = vpop.eup %6021  ;;  %v4307_v14 = vmul.f32 0.5, %v6020_v20 }
0x182b   :  { %4317 = vrot.lane.b32.xlu0 %v4315_v58, %s6297_s18  ;;  %v4341_v6 = vmul.f32 %v6018_v29, %v4334_v62  ;;  %v4340_v37 = vmul.f32 %v4334_v62, %v8002_v60  ;;  %v4338_v40 = vmul.f32 0.5, %v6022_v12 }
0x182c   :  { %v4308_v3 = vadd.f32 0.5, %v4307_v14 }
0x182d   :  { %4343 = vrot.lane.b32.xlu1 %v4341_v6, %s6297_s18  ;;  %v4339_v44 = vadd.f32 0.5, %v4338_v40 }
0x189d   :  { %v4318_v27 = vpop.permute.xlu0 %4317 }
0x189e   :  { %v4320_v28 = vadd.f32 %v4318_v27, %v4314_v1  ;;  %v4453_v27 = vld [vmem:[#allocation5 + $0x28] sm:$0xc] }
0x189f   :  { %v4344_v5 = vpop.permute.xlu1 %4343 }
0x18a0   :  { %6023 = vtanh.f32 %v4320_v28  ;;  %v4346_v36 = vadd.f32 %v4344_v5, %v4340_v37  ;;  %4363 = vrot.lane.b32.xlu1 %v4320_v28, %s6297_s18  ;;  %v4455_v28 = vld [vmem:[#allocation5 + $0x10] sm:$0x30] }
0x18a2   :  { %6025 = vtanh.f32 %v4346_v36  ;;  %v4367_v60 = vrot.slane %v4346_v36, 6 }
0x18ad   :  { %v6024_v11 = vpop.eup %6023 }
0x18ae   :  { %v4322_v30 = vmul.f32 %v6024_v11, %v4308_v3 }
0x18af   :  { %v6026_v22 = vpop.eup %6025 }
0x18b0   :  { %4350 = vrot.lane.b32.xlu0 %v4322_v30, %s6297_s18  ;;  %v8208_v13 = vmul.f32 %v6026_v22, %v4339_v44  ;;  %v4454_v30 = vld [vmem:[#allocation5 + $0x8] sm:$0xc] }
0x18b2   :  { %v4359_v58 = vrot.slane %v8208_v13, 6 }
0x1912   :  { %v4364_v23 = vpop.permute.xlu1 %4363 }
0x1913   :  { %v8211_v31 = vsel %vm1789_vm4, %v4364_v23, %v4367_v60  ;;  %v4456_v60 = vld [vmem:[#allocation5 + $0x20] sm:$0x30] }
0x1914   :  { %v4475_v2 = vrot.slane %v8211_v31, 6 }
0x1916   :  { %4476 = vrot.lane.b32.xlu0 %v4475_v2, %s6297_s18 }
0x1922   :  { %v4351_v62 = vpop.permute.xlu0 %4350 }
0x1923   :  { %4353 = vst.msk [vmem:[#allocation6 + $0x8] sm:$0x3] %vm1779_vm3, %v4351_v62  ;;  %v4361_v29 = vsel %vm1789_vm4, %v4351_v62, %v4359_v58 }
0x1924   :  { %v4370_v6 = vpack.c.bf16 %v4361_v29, %v4361_v29 }
0x1926   :  { %4404 = vmatmul.mubr.bf16.vlgmr.msra.gmra.mxu0 %v4370_v6  ;;  %4445 = vmatmul.mubr.bf16.vlgmr.msra.gmra.mxu1 %v4370_v6 }
0x1927   :  { %4542 = vmatpush1.bf16.msra.mxu0 %v8012_v61  ;;  %4583 = vmatpush1.bf16.msra.mxu1 %v8018_v41 }
0x1928   :  { %4543 = vmatprep.subr.bf16.mxu0 %v8024_v9  ;;  %4584 = vmatprep.subr.bf16.mxu1 %v8030_v17 }
0x1929   :  { %4573 = vmatprep.mubr.bf16.mxu0 %v8412_v32  ;;  %4614 = vmatprep.mubr.bf16.mxu1 %v8412_v32 }
0x192b   :  { %4544 = vmatpush1.bf16.msra.mxu0 %v8038_v15  ;;  %4585 = vmatpush1.bf16.msra.mxu1 %v8044_v38 }
0x192c   :  { %4545 = vmatprep.subr.bf16.mxu0 %v8050_v21  ;;  %4586 = vmatprep.subr.bf16.mxu1 %v8056_v43 }
0x192f   :  { %4546 = vmatpush1.bf16.msra.mxu0 %v8062_v33  ;;  %4587 = vmatpush1.bf16.msra.mxu1 %v8068_v26 }
0x1930   :  { %4547 = vmatprep.subr.bf16.mxu0 %v8074_v10  ;;  %4588 = vmatprep.subr.bf16.mxu1 %v8080_v34 }
0x1933   :  { %4548 = vmatpush1.bf16.msra.mxu0 %v8086_v35  ;;  %4589 = vmatpush1.bf16.msra.mxu1 %v8092_v45 }
0x1934   :  { %4549 = vmatprep.subr.bf16.mxu0 %v8098_v46  ;;  %4590 = vmatprep.subr.bf16.mxu1 %v8104_v47 }
0x1937   :  { %4550 = vmatpush1.bf16.msra.mxu0 %v8110_v48  ;;  %4591 = vmatpush1.bf16.msra.mxu1 %v8116_v16 }
0x1938   :  { %4551 = vmatprep.subr.bf16.mxu0 %v8122_v49  ;;  %4592 = vmatprep.subr.bf16.mxu1 %v8128_v4 }
0x193b   :  { %4552 = vmatpush1.bf16.msra.mxu0 %v8134_v42  ;;  %4593 = vmatpush1.bf16.msra.mxu1 %v8140_v50 }
0x193c   :  { %4553 = vmatprep.subr.bf16.mxu0 %v8146_v19  ;;  %4594 = vmatprep.subr.bf16.mxu1 %v8152_v24 }
0x193f   :  { %4554 = vmatpush1.bf16.msra.mxu0 %v8158_v51  ;;  %4595 = vmatpush1.bf16.msra.mxu1 %v8164_v18 }
0x1940   :  { %4555 = vmatprep.subr.bf16.mxu0 %v8170_v52  ;;  %4596 = vmatprep.subr.bf16.mxu1 %v8176_v53 }
0x1943   :  { %4556 = vmatpush1.bf16.msra.mxu0 %v8182_v54  ;;  %4597 = vmatpush1.bf16.msra.mxu1 %v8188_v55 }
0x1944   :  { %4709 = vmatprep.subr.bf16.mxu0 %v8194_v56  ;;  %4750 = vmatprep.subr.bf16.mxu1 %v8200_v57 }
0x19e6   :  { %v4405_v7 = vpop.f32.mrf.mxu0  ;;  %v4446_v25 = vpop.f32.mrf.mxu1 }
0x19e7   :  { %v4459_v63 = vrot.slane %v4405_v7, 6  ;;  %v4490_v1 = vrot.slane %v4446_v25, 4  ;;  %v4505_v25 = vrot.slane %v8211_v31, 4 }
0x19e8   :  { %v4407_v37 = vpop.f32.mrf.mxu0  ;;  %v4448_v5 = vpop.f32.mrf.mxu1 }
0x19e9   :  { %v4463_v36 = vadd.f32 %v4459_v63, %v4453_v27  ;;  %v4494_v20 = vadd.f32 %v4490_v1, %v4455_v28  ;;  %v4460_v12 = vrot.slane %v4407_v37, 6  ;;  %v4491_v14 = vrot.slane %v4448_v5, 4 }
0x19ea   :  { %v4409_v40 = vpop.f32.mrf.mxu0  ;;  %v4450_v3 = vpop.f32.mrf.mxu1 }
0x19eb   :  { %v4465_v11 = vmul.f32 0.5, %v4463_v36  ;;  %v4496_v44 = vmul.f32 0.5, %v4494_v20  ;;  %v4464_v57 = vadd.f32 %v4460_v12, %v4454_v30  ;;  %v4495_v23 = vadd.f32 %v4491_v14, %v4456_v60  ;;  %v4477_v20 = vpop.permute.xlu0 %4476 }
0x19ec   :  { %v4410_v56 = vpop.f32.mrf.mxu0  ;;  %v4451_v22 = vpop.f32.mrf.mxu1 }
0x19ed   :  { %6027 = vtanh.f32 %v4465_v11  ;;  %v4470_v5 = vmul.f32 0.5, %v4464_v57  ;;  %v4501_v36 = vmul.f32 0.5, %v4495_v23 }
0x19ee   :  { %6029 = vtanh.f32 %v4496_v44 }
0x19ef   :  { %6031 = vtanh.f32 %v4464_v57 }
0x19f0   :  { %6033 = vtanh.f32 %v4495_v23 }
0x19f1   :  { %6035 = vtanh.f32 %v4470_v5 }
0x19f2   :  { %6037 = vtanh.f32 %v4501_v36 }
0x19fa   :  { %v6028_v2 = vpop.eup %6027 }
0x19fb   :  { %v6030_v58 = vpop.eup %6029  ;;  %v4467_v62 = vmul.f32 0.5, %v6028_v2 }
0x19fc   :  { %v4498_v29 = vmul.f32 0.5, %v6030_v58  ;;  %v6032_v7 = vpop.eup %6031 }
0x19fd   :  { %v4468_v6 = vadd.f32 0.5, %v4467_v62  ;;  %v6034_v1 = vpop.eup %6033 }
0x19fe   :  { %v4499_v63 = vadd.f32 0.5, %v4498_v29  ;;  %v6036_v31 = vpop.eup %6035 }
0x19ff   :  { %v4480_v27 = vmul.f32 %v6032_v7, %v4468_v6  ;;  %v4479_v12 = vmul.f32 %v4477_v20, %v4468_v6  ;;  %v6038_v44 = vpop.eup %6037  ;;  %v4472_v30 = vmul.f32 0.5, %v6036_v31 }
0x1a00   :  { %v4508_v28 = vmul.f32 %v6034_v1, %v4499_v63  ;;  %v4507_v37 = vmul.f32 %v4505_v25, %v4499_v63  ;;  %v4503_v56 = vmul.f32 0.5, %v6038_v44 }
0x1a01   :  { %4482 = vrot.lane.b32.xlu1 %v4480_v27, %s6297_s18  ;;  %v4473_v22 = vadd.f32 0.5, %v4472_v30 }
0x1a02   :  { %4510 = vrot.lane.b32.xlu0 %v4508_v28, %s6297_s18  ;;  %v4504_v57 = vadd.f32 0.5, %v4503_v56 }
0x1a73   :  { %v4483_v14 = vpop.permute.xlu1 %4482 }
0x1a74   :  { %v4485_v40 = vadd.f32 %v4483_v14, %v4479_v12  ;;  %v4511_v3 = vpop.permute.xlu0 %4510 }
0x1a75   :  { %v4513_v11 = vadd.f32 %v4511_v3, %v4507_v37 }
0x1a76   :  { %6039 = vtanh.f32 %v4485_v40  ;;  %4530 = vrot.lane.b32.xlu0 %v4485_v40, %s6297_s18 }
0x1a77   :  { %6041 = vtanh.f32 %v4513_v11  ;;  %v4534_v62 = vrot.slane %v4513_v11, 2 }
0x1a83   :  { %v6040_v60 = vpop.eup %6039 }
0x1a84   :  { %v6042_v23 = vpop.eup %6041  ;;  %v4487_v2 = vmul.f32 %v6040_v60, %v4473_v22 }
0x1a85   :  { %v8256_v58 = vmul.f32 %v6042_v23, %v4504_v57 }
0x1a86   :  { %4517 = vrot.lane.b32.xlu1 %v4487_v2, %s6297_s18 }
0x1a87   :  { %v4526_v25 = vrot.slane %v8256_v58, 2 }
0x1ae8   :  { %v4531_v29 = vpop.permute.xlu0 %4530 }
0x1ae9   :  { %v8260_v6 = vsel %vm1789_vm4, %v4531_v29, %v4534_v62 }
0x1aea   :  { %v4645_v7 = vrot.slane %v8260_v6, 6 }
0x1aec   :  { %4646 = vrot.lane.b32.xlu1 %v4645_v7, %s6297_s18 }
0x1af8   :  { %v4518_v63 = vpop.permute.xlu1 %4517 }
0x1af9   :  { %4520 = vst.msk [vmem:[#allocation6 + $0x8] sm:$0xc] %vm1949_vm5, %v4518_v63  ;;  %v4528_v1 = vsel %vm1789_vm4, %v4518_v63, %v4526_v25 }
0x1afa   :  { %v4537_v27 = vpack.c.bf16 %v4528_v1, %v4528_v1 }
0x1afc   :  { %v4539_v28 = vrot.slane %v4537_v27, 1 }
0x1afe   :  { %4574 = vmatmul.mubr.bf16.vlgmr.msra.gmra.mxu0 %v4539_v28  ;;  %4615 = vmatmul.mubr.bf16.vlgmr.msra.gmra.mxu1 %v4539_v28 }
0x1aff   :  { %4710 = vmatpush1.bf16.msra.mxu0 %v8012_v61  ;;  %4751 = vmatpush1.bf16.msra.mxu1 %v8018_v41 }
0x1b00   :  { %4711 = vmatprep.subr.bf16.mxu0 %v8024_v9  ;;  %4752 = vmatprep.subr.bf16.mxu1 %v8030_v17  ;;  %v4623_v17 = vld [vmem:[#allocation5 + $0x28] sm:$0x30] }
0x1b01   :  { %4741 = vmatprep.mubr.bf16.mxu0 %v8412_v32  ;;  %4782 = vmatprep.mubr.bf16.mxu1 %v8412_v32 }
0x1b03   :  { %4712 = vmatpush1.bf16.msra.mxu0 %v8038_v15  ;;  %4753 = vmatpush1.bf16.msra.mxu1 %v8044_v38  ;;  %v4625_v15 = vld [vmem:[#allocation5 + $0x10] sm:$0xc] }
0x1b04   :  { %4713 = vmatprep.subr.bf16.mxu0 %v8050_v21  ;;  %4754 = vmatprep.subr.bf16.mxu1 %v8056_v43 }
0x1b07   :  { %4714 = vmatpush1.bf16.msra.mxu0 %v8062_v33  ;;  %4755 = vmatpush1.bf16.msra.mxu1 %v8068_v26 }
0x1b08   :  { %4715 = vmatprep.subr.bf16.mxu0 %v8074_v10  ;;  %4756 = vmatprep.subr.bf16.mxu1 %v8080_v34 }
0x1b0b   :  { %4716 = vmatpush1.bf16.msra.mxu0 %v8086_v35  ;;  %4757 = vmatpush1.bf16.msra.mxu1 %v8092_v45 }
0x1b0c   :  { %4717 = vmatprep.subr.bf16.mxu0 %v8098_v46  ;;  %4758 = vmatprep.subr.bf16.mxu1 %v8104_v47  ;;  %v4624_v47 = vld [vmem:[#allocation5 + $0x8] sm:$0x30] }
0x1b0f   :  { %4718 = vmatpush1.bf16.msra.mxu0 %v8110_v48  ;;  %4759 = vmatpush1.bf16.msra.mxu1 %v8116_v16 }
0x1b10   :  { %4719 = vmatprep.subr.bf16.mxu0 %v8122_v49  ;;  %4760 = vmatprep.subr.bf16.mxu1 %v8128_v4  ;;  %v4626_v4 = vld [vmem:[#allocation5 + $0x20] sm:$0xc] }
0x1b13   :  { %4720 = vmatpush1.bf16.msra.mxu0 %v8134_v42  ;;  %4761 = vmatpush1.bf16.msra.mxu1 %v8140_v50 }
0x1b14   :  { %4721 = vmatprep.subr.bf16.mxu0 %v8146_v19  ;;  %4762 = vmatprep.subr.bf16.mxu1 %v8152_v24 }
0x1b17   :  { %4722 = vmatpush1.bf16.msra.mxu0 %v8158_v51  ;;  %4763 = vmatpush1.bf16.msra.mxu1 %v8164_v18 }
0x1b18   :  { %4723 = vmatprep.subr.bf16.mxu0 %v8170_v52  ;;  %4764 = vmatprep.subr.bf16.mxu1 %v8176_v53 }
0x1b1b   :  { %4724 = vmatpush1.bf16.msra.mxu0 %v8182_v54  ;;  %4765 = vmatpush1.bf16.msra.mxu1 %v8188_v55 }
0x1b5e   :  { %v4647_v20 = vpop.permute.xlu1 %4646 }
0x1bbe   :  { %v4575_v32 = vpop.f32.mrf.mxu0  ;;  %v4616_v61 = vpop.f32.mrf.mxu1 }
0x1bbf   :  { %v4629_v41 = vrot.slane %v4575_v32, 4  ;;  %v4660_v9 = vrot.slane %v4616_v61, 6 }
0x1bc0   :  { %v4577_v38 = vpop.f32.mrf.mxu0  ;;  %v4618_v21 = vpop.f32.mrf.mxu1 }
0x1bc1   :  { %v4633_v43 = vadd.f32 %v4629_v41, %v4623_v17  ;;  %v4664_v33 = vadd.f32 %v4660_v9, %v4625_v15  ;;  %v4630_v26 = vrot.slane %v4577_v38, 4  ;;  %v4661_v10 = vrot.slane %v4618_v21, 6  ;;  %v4793_v17 = vld [vmem:[#allocation5 + $0x10] sm:$0x3]  ;;  %v4791_v21 = vld [vmem:[#allocation5 + $0x28] sm:$0xc0] }
0x1bc2   :  { %v4579_v34 = vpop.f32.mrf.mxu0  ;;  %v4620_v35 = vpop.f32.mrf.mxu1 }
0x1bc3   :  { %v4635_v45 = vmul.f32 0.5, %v4633_v43  ;;  %v4666_v46 = vmul.f32 0.5, %v4664_v33  ;;  %v4634_v49 = vadd.f32 %v4630_v26, %v4624_v47  ;;  %v4665_v42 = vadd.f32 %v4661_v10, %v4626_v4  ;;  %v4794_v35 = vld [vmem:[#allocation5 + $0x20] sm:$0x3] }
0x1bc4   :  { %v4580_v48 = vpop.f32.mrf.mxu0  ;;  %v4621_v16 = vpop.f32.mrf.mxu1 }
0x1bc5   :  { %6043 = vtanh.f32 %v4635_v45  ;;  %v4640_v5 = vmul.f32 0.5, %v4634_v49  ;;  %v4671_v36 = vmul.f32 0.5, %v4665_v42  ;;  %v4792_v16 = vld [vmem:[#allocation5 + $0x8] sm:$0xc0] }
0x1bc6   :  { %6045 = vtanh.f32 %v4666_v46 }
0x1bc7   :  { %6047 = vtanh.f32 %v4634_v49 }
0x1bc8   :  { %6049 = vtanh.f32 %v4665_v42 }
0x1bc9   :  { %6051 = vtanh.f32 %v4640_v5 }
0x1bca   :  { %6053 = vtanh.f32 %v4671_v36 }
0x1bd2   :  { %v6044_v50 = vpop.eup %6043 }
0x1bd3   :  { %v6046_v19 = vpop.eup %6045  ;;  %v4637_v24 = vmul.f32 0.5, %v6044_v50 }
0x1bd4   :  { %v4668_v51 = vmul.f32 0.5, %v6046_v19  ;;  %v6048_v52 = vpop.eup %6047 }
0x1bd5   :  { %v4638_v18 = vadd.f32 0.5, %v4637_v24  ;;  %v6050_v54 = vpop.eup %6049 }
0x1bd6   :  { %v4669_v53 = vadd.f32 0.5, %v4668_v51  ;;  %v6052_v44 = vpop.eup %6051 }
0x1bd7   :  { %v4650_v55 = vmul.f32 %v6048_v52, %v4638_v18  ;;  %v4649_v12 = vmul.f32 %v4647_v20, %v4638_v18  ;;  %v6054_v30 = vpop.eup %6053  ;;  %v4642_v56 = vmul.f32 0.5, %v6052_v44  ;;  %v5809_v20 = vld [vmem:[%s8404_s11 + $0x18] sm:$0xff]  }
0x1bd8   :  { %v4676_v37 = vmul.f32 %v6050_v54, %v4669_v53  ;;  %v4675_v14 = vmul.f32 %v4669_v53, %v8260_v6  ;;  %v4673_v22 = vmul.f32 0.5, %v6054_v30  ;;  %v5812_v30 = vld [vmem:[%s8403_s10 + $0x10] sm:$0xff]  }
0x1bd9   :  { %4652 = vrot.lane.b32.xlu0 %v4650_v55, %s6297_s18  ;;  %v4643_v60 = vadd.f32 0.5, %v4642_v56 }
0x1bda   :  { %4678 = vrot.lane.b32.xlu1 %v4676_v37, %s6297_s18  ;;  %v4674_v23 = vadd.f32 0.5, %v4673_v22 }
0x1c4b   :  { %v4653_v40 = vpop.permute.xlu0 %4652 }
0x1c4c   :  { %v4679_v3 = vpop.permute.xlu1 %4678  ;;  %v4655_v11 = vadd.f32 %v4653_v40, %v4649_v12  ;;  %v5810_v12 = vld [vmem:[%s8403_s10 + $0x18] sm:$0xff]  }
0x1c4d   :  { %v4681_v31 = vadd.f32 %v4679_v3, %v4675_v14  ;;  %v6298_v14 = vmov 0.0  }
0x1c4e   :  { %6055 = vtanh.f32 %v4655_v11  ;;  %4698 = vrot.lane.b32.xlu1 %v4655_v11, %s6297_s18  ;;  %5393 = vmatprep.subr.bf16.mxu0 %v6298_v14 }
0x1c4f   :  { %6057 = vtanh.f32 %v4681_v31  ;;  %v4702_v6 = vrot.slane %v4681_v31, 6  ;;  %5405 = vmatprep.subr.bf16.mxu1 %v6298_v14 }
0x1c5b   :  { %v6056_v57 = vpop.eup %6055 }
0x1c5c   :  { %v6058_v2 = vpop.eup %6057  ;;  %v4657_v62 = vmul.f32 %v6056_v57, %v4643_v60  ;;  %v5813_v60 = vld [vmem:[%s8404_s11 + $0x8] sm:$0xff]  }
0x1c5d   :  { %v8303_v29 = vmul.f32 %v6058_v2, %v4674_v23  ;;  %v5814_v57 = vld [vmem:[%s8403_s10 + $0x8] sm:$0xff]  }
0x1c5e   :  { %4685 = vrot.lane.b32.xlu0 %v4657_v62, %s6297_s18  ;;  %v5815_v62 = vld [vmem:[%s8404_s11] sm:$0xff]  }
0x1c5f   :  { %v4694_v1 = vrot.slane %v8303_v29, 6 }
0x1cc0   :  { %v4699_v7 = vpop.permute.xlu1 %4698 }
0x1cc1   :  { %v4704_v25 = vsel %vm1789_vm4, %v4699_v7, %v4702_v6  ;;  %v5816_v7 = vld [vmem:[%s8403_s10] sm:$0xff]  }
0x1cc2   :  { %v4813_v63 = vrot.slane %v4704_v25, 6  ;;  %v4837_v51 = vrot.slane %v4704_v25, 4 }
0x1cc4   :  { %4814 = vrot.lane.b32.xlu0 %v4813_v63, %s6297_s18 }
0x1cd0   :  { %v4686_v27 = vpop.permute.xlu0 %4685 }
0x1cd1   :  { %4688 = vst.msk [vmem:[#allocation6 + $0x8] sm:$0x30] %vm1955_vm6, %v4686_v27  ;;  %v4696_v28 = vsel %vm1789_vm4, %v4686_v27, %v4694_v1 }
0x1cd2   :  { %v4705_v32 = vpack.c.bf16 %v4696_v28, %v4696_v28 }
0x1cd4   :  { %v4707_v61 = vrot.slane %v4705_v32, 2 }
0x1cd6   :  { %4742 = vmatmul.mubr.bf16.vlgmr.msra.gmra.mxu0 %v4707_v61  ;;  %4783 = vmatmul.mubr.bf16.vlgmr.msra.gmra.mxu1 %v4707_v61 }
0x1cd7   :  { %5394 = vmatpush3.bf16.msra.mxu0 %v5809_v20  ;;  %5406 = vmatpush3.bf16.msra.mxu1 %v5810_v12 }
0x1cd8   :  { %5395 = vmatprep.subr.bf16.mxu0 %v6298_v14  ;;  %5407 = vmatprep.subr.bf16.mxu1 %v6298_v14 }
0x1cd9   :  { %5401 = vmatprep.mubr.msk.bf16.mxu0 %vm6299_vm8, %v6298_v14  ;;  %5413 = vmatprep.mubr.msk.bf16.mxu1 %vm6299_vm8, %v6298_v14 }
0x1cdb   :  { %5408 = vmatpush3.bf16.msra.mxu1 %v5812_v30 }
0x1cdc   :  { %5409 = vmatprep.subr.bf16.mxu1 %v6298_v14 }
0x1cdf   :  { %5410 = vmatpush3.bf16.msra.mxu1 %v5814_v57 }
0x1ce0   :  { %5411 = vmatprep.subr.bf16.mxu1 %v6298_v14 }
0x1ce3   :  { %5412 = vmatpush3.bf16.msra.mxu1 %v5816_v7 }
0x1d96   :  { %v4743_v41 = vpop.f32.mrf.mxu0  ;;  %v4784_v9 = vpop.f32.mrf.mxu1 }
0x1d97   :  { %v4797_v15 = vrot.slane %v4743_v41, 2  ;;  %v4826_v38 = vadd.f32 %v4793_v17, %v4784_v9 }
0x1d98   :  { %v4745_v43 = vpop.f32.mrf.mxu0  ;;  %v4786_v33 = vpop.f32.mrf.mxu1 }
0x1d99   :  { %v4801_v26 = vadd.f32 %v4797_v15, %v4791_v21  ;;  %v4828_v10 = vmul.f32 0.5, %v4826_v38  ;;  %v4798_v34 = vrot.slane %v4745_v43, 2  ;;  %v4827_v48 = vadd.f32 %v4794_v35, %v4786_v33  ;;  %v4858_v33 = vld [vmem:[#allocation6] sm:$0xff] }
0x1d9a   :  { %v4747_v45 = vpop.f32.mrf.mxu0  ;;  %v4788_v46 = vpop.f32.mrf.mxu1  ;;  %v5818_v35 = vld [vmem:[%s8406_s13] sm:$0xff]  }
0x1d9b   :  { %v4803_v47 = vmul.f32 0.5, %v4801_v26  ;;  %6059 = vtanh.f32 %v4828_v10  ;;  %v4802_v42 = vadd.f32 %v4798_v34, %v4792_v16  ;;  %v5817_v34 = vld [vmem:[%s8406_s13 + $0x8] sm:$0xff]   ;;  %v5375_v16 = vld [vmem:[#allocation16] ss:$0 sm:$0xff] }
0x1d9c   :  { %v4748_v49 = vpop.f32.mrf.mxu0  ;;  %v4789_v4 = vpop.f32.mrf.mxu1 }
0x1d9d   :  { %6061 = vtanh.f32 %v4803_v47 }
0x1d9e   :  { %6063 = vtanh.f32 %v4827_v48 }
0x1d9f   :  { %6065 = vtanh.f32 %v4802_v42 }
0x1da8   :  { %v6060_v50 = vpop.eup %6059 }
0x1da9   :  { %v4830_v19 = vmul.f32 0.5, %v6060_v50 }
0x1daa   :  { %v6062_v24 = vpop.eup %6061 }
0x1dab   :  { %v4831_v18 = vadd.f32 0.5, %v4830_v19  ;;  %v4805_v52 = vmul.f32 0.5, %v6062_v24  ;;  %v6064_v53 = vpop.eup %6063 }
0x1dac   :  { %v6066_v5 = vpop.eup %6065 }
0x1dad   :  { %v4840_v54 = vmul.f32 %v6064_v53, %v4831_v18  ;;  %v4806_v55 = vadd.f32 0.5, %v4805_v52  ;;  %v4839_v37 = vmul.f32 %v4837_v51, %v4831_v18 }
0x1daf   :  { %4842 = vrot.lane.b32.xlu0 %v4840_v54, %s6297_s18  ;;  %v4818_v36 = vmul.f32 %v6066_v5, %v4806_v55 }
0x1db1   :  { %4820 = vrot.lane.b32.xlu1 %v4818_v36, %s6297_s18 }
0x1db3   :  { %3861 = vrot.lane.b32.xlu0 %v7900_v39, %s6297_s18  ;;  %v4833_v39 = vmul.f32 0.5, %v4827_v48 }
0x1db5   :  { %3694 = vrot.lane.b32.xlu1 %v7852_v0, %s6297_s18  ;;  %v5811_v0 = vld [vmem:[%s8404_s11 + $0x10] sm:$0xff]   ;;  %6067 = vtanh.f32 %v4833_v39 }
0x1db6   :  { %5396 = vmatpush3.bf16.msra.mxu0 %v5811_v0 }
0x1db7   :  { %4193 = vrot.lane.b32.xlu0 %v7998_v8, %s6297_s18  ;;  %5397 = vmatprep.subr.bf16.mxu0 %v6298_v14  ;;  %v4808_v8 = vmul.f32 0.5, %v4802_v42 }
0x1db9   :  { %4029 = vrot.lane.b32.xlu1 %v7949_v59, %s6297_s18  ;;  %v4815_v59 = vpop.permute.xlu0 %4814  ;;  %6069 = vtanh.f32 %v4808_v8 }
0x1dba   :  { %v4817_v11 = vmul.f32 %v4815_v59, %v4806_v55  ;;  %5398 = vmatpush3.bf16.msra.mxu0 %v5813_v60  ;;  %v5376_v55 = vld [vmem:[#allocation18] ss:$0 sm:$0xff] }
0x1dbb   :  { %4522 = vrot.lane.b32.xlu0 %v8256_v58, %s6297_s18  ;;  %5399 = vmatprep.subr.bf16.mxu0 %v6298_v14 }
0x1dbd   :  { %4355 = vrot.lane.b32.xlu1 %v8208_v13, %s6297_s18 }
0x1dbe   :  { %5400 = vmatpush3.bf16.msra.mxu0 %v5815_v62 }
0x1dbf   :  { %5417 = vmatprep.subr.bf16.mxu0 %v6298_v14 }
0x1dc1   :  { %4690 = vrot.lane.b32.xlu1 %v8303_v29, %s6297_s18 }
0x1dc2   :  { %v6068_v56 = vpop.eup %6067 }
0x1dc3   :  { %v4835_v29 = vmul.f32 0.5, %v6068_v56 }
0x1dc5   :  { %v4836_v1 = vadd.f32 0.5, %v4835_v29 }
0x1dc6   :  { %v6070_v23 = vpop.eup %6069 }
0x1dc7   :  { %v4810_v25 = vmul.f32 0.5, %v6070_v23 }
0x1dc9   :  { %v4811_v32 = vadd.f32 0.5, %v4810_v25 }
0x1e21   :  { %v4843_v40 = vpop.permute.xlu0 %4842 }
0x1e22   :  { %v4845_v3 = vadd.f32 %v4843_v40, %v4839_v37 }
0x1e23   :  { %v4821_v31 = vpop.permute.xlu1 %4820 }
0x1e24   :  { %6071 = vtanh.f32 %v4845_v3  ;;  %v4823_v58 = vadd.f32 %v4821_v31, %v4817_v11 }
0x1e25   :  { %v3862_v44 = vpop.permute.xlu0 %3861 }
0x1e26   :  { %6073 = vtanh.f32 %v4823_v58  ;;  %3864 = vst.msk [vmem:[#allocation7 + $0x8] sm:$0x30] %vm1955_vm6, %v3862_v44 }
0x1e27   :  { %v3695_v13 = vpop.permute.xlu1 %3694 }
0x1e28   :  { %3697 = vst.msk [vmem:[#allocation7 + $0x8] sm:$0xc0] %vm1785_vm7, %v3695_v13 }
0x1e29   :  { %v4194_v22 = vpop.permute.xlu0 %4193 }
0x1e2a   :  { %4196 = vst.msk [vmem:[#allocation7 + $0x8] sm:$0x3] %vm1779_vm3, %v4194_v22 }
0x1e2b   :  { %v4030_v2 = vpop.permute.xlu1 %4029 }
0x1e2c   :  { %4032 = vst.msk [vmem:[#allocation7 + $0x8] sm:$0xc] %vm1949_vm5, %v4030_v2 }
0x1e2d   :  { %v4523_v6 = vpop.permute.xlu0 %4522 }
0x1e2e   :  { %4525 = vst.msk [vmem:[#allocation7] sm:$0x30] %vm1955_vm6, %v4523_v6 }
0x1e2f   :  { %v4356_v63 = vpop.permute.xlu1 %4355 }
0x1e30   :  { %4358 = vst.msk [vmem:[#allocation7] sm:$0xc0] %vm1785_vm7, %v4356_v63 }
0x1e31   :  { %v6072_v27 = vpop.eup %6071 }
0x1e32   :  { %v4847_v28 = vmul.f32 %v6072_v27, %v4836_v1 }
0x1e33   :  { %v6074_v61 = vpop.eup %6073  ;;  %v4691_v41 = vpop.permute.xlu1 %4690  ;;  %v4870_v21 = vld [vmem:[#allocation7 + $0x8] sm:$0xff] }
0x1e34   :  { %4693 = vst.msk [vmem:[#allocation7] sm:$0xc] %vm1949_vm5, %v4691_v41  ;;  %4854 = vrot.lane.b32.xlu1 %v4847_v28, %s6297_s18  ;;  %v4825_v9 = vmul.f32 %v6074_v61, %v4811_v32 }
0x1e36   :  { %4849 = vrot.lane.b32.xlu0 %v4825_v9, %s6297_s18 }
0x1ea6   :  { %v4855_v17 = vpop.permute.xlu1 %4854 }
0x1ea7   :  { %4857 = vst.msk [vmem:[#allocation7] sm:$0x3] %vm1779_vm3, %v4855_v17 }
0x1ea8   :  { %v4850_v15 = vpop.permute.xlu0 %4849 }
0x1ea9   :  { %4852 = vst.msk [vmem:[#allocation6 + $0x8] sm:$0xc0] %vm1785_vm7, %v4850_v15 }
0x1eae   :  { %v4869_v38 = vld [vmem:[#allocation7] sm:$0xff] }
0x1eaf   :  { %v4871_v43 = vpack.c.bf16 %v4870_v21, %v4869_v38 }
0x1eb0   :  { %v4859_v26 = vld [vmem:[#allocation6 + $0x8] sm:$0xff] }
0x1eb1   :  { %5402 = vmatmul.mubr.msk.bf16.vlgmr.msra.gmra.mxu0 %vm1789_vm4, %v4871_v43  ;;  %v4860_v10 = vpack.c.bf16 %v4859_v26, %v4858_v33 }
0x1eb2   :  { %5421 = vmatprep.mubr.msk.bf16.mxu0 %vm6299_vm8, %v6298_v14  ;;  %5418 = vmatpush3.bf16.msra.mxu0 %v5817_v34 }
0x1eb3   :  { %5414 = vmatmul.mubr.msk.bf16.vlgmr.msra.gmra.mxu1 %vm1789_vm4, %v4860_v10  ;;  %5419 = vmatprep.subr.bf16.mxu0 %v6298_v14 }
0x1eb6   :  { %5420 = vmatpush3.bf16.msra.mxu0 %v5818_v35 }
0x1f71   :  { %v4941_v45 = vpop.f32.mrf.mxu0 }
0x1f73   :  { %v5403_v46 = vpop.f32.mrf.mxu0  ;;  %v5009_v47 = vpop.f32.mrf.mxu1 }
0x1f74   :  { %v5010_v48 = vadd.f32 %v5009_v47, %v4941_v45 }
0x1f75   :  { %v4944_v49 = vpop.f32.mrf.mxu0  ;;  %v5415_v4 = vpop.f32.mrf.mxu1 }
0x1f76   :  { %v5023_v19 = vadd.f32 %v5375_v16, %v5010_v48 }
0x1f77   :  { %v5404_v42 = vpop.f32.mrf.mxu0  ;;  %v5012_v50 = vpop.f32.mrf.mxu1 }
0x1f78   :  { %v5013_v24 = vadd.f32 %v5012_v50, %v4944_v49  ;;  %v5025_v52 = vmax.f32 %v5023_v19, 0.0 }
0x1f79   :  { %v5416_v51 = vpop.f32.mrf.mxu1 }
0x1f7a   :  { %v5024_v18 = vadd.f32 %v5375_v16, %v5013_v24 }
0x1f7c   :  { %v5026_v53 = vmax.f32 %v5024_v18, 0.0 }
0x1f7e   :  { %v5027_v54 = vpack.c.bf16 %v5026_v53, %v5025_v52 }
0x1f80   :  { %5422 = vmatmul.mubr.msk.bf16.vlgmr.msra.gmra.mxu0 %vm1151_vm2, %v5027_v54 }
0x2040   :  { %v5088_v37 = vpop.f32.mrf.mxu0 }
0x2041   :  { %v5089_v5 = vadd.f32 %v5376_v55, %v5088_v37 }
0x2042   :  { %v5423_v36 = vpop.f32.mrf.mxu0 }
0x2043   :  { %5096 = vst.msk [vmem:[%s8408_s15] sm:$0xff] %vm5095_vm9, %v5089_v5 }
0x2044   :  { %v5091_v20 = vpop.f32.mrf.mxu0 }
0x2045   :  { %v5092_v12 = vadd.f32 %v5376_v55, %v5091_v20 }
0x2046   :  { %v5424_v14 = vpop.f32.mrf.mxu0 }
0x2047   :  { %5097 = vst.msk [vmem:[%s8408_s15 + $0x8] sm:$0xff] %vm5095_vm9, %v5092_v12 }
0x2048   :  { %5102 = vsyncpa [#allocation9], 1 }
0x2049   :  { %5103 = vsyncpa [#allocation11], 1 }
0x204a   :  { %5104 = vsyncpa [#allocation14], 1 }
0x204b   :  { %5105 = vsyncpa [#allocation17], 1 }

</bundles_post_ra>
